<compile_context>
chip_gen: v6e
topology: v6e:2x2x1
jax: 0.10.0
libtpu: 0.0.40
codegen_flags: <defaults>
</compile_context>

<pallas_src>
import functools

import jax
import jax.numpy as jnp
from jax.experimental import pallas as pl
from jax.experimental.pallas import tpu as pltpu

BN_EPS = 1e-5


def _round_up(x, m):
    return ((x + m - 1) // m) * m


# ----------------------------- Pallas kernels -----------------------------

def _matmul_kernel(*refs, relu, has_res):
    """Tiled matmul with K-reduction accumulator + fused bias / residual / ReLU epilogue."""
    if has_res:
        a_ref, b_ref, bias_ref, res_ref, o_ref, acc_ref = refs
    else:
        a_ref, b_ref, bias_ref, o_ref, acc_ref = refs
        res_ref = None
    kk = pl.program_id(2)

    @pl.when(kk == 0)
    def _init():
        acc_ref[...] = jnp.zeros_like(acc_ref)

    acc_ref[...] += jnp.dot(a_ref[...], b_ref[...],
                            preferred_element_type=jnp.float32)

    @pl.when(kk == pl.num_programs(2) - 1)
    def _finalize():
        out = acc_ref[...] + bias_ref[...]
        if res_ref is not None:
            out = out + res_ref[...].astype(jnp.float32)
        if relu:
            out = jnp.maximum(out, 0.0)
        o_ref[...] = out.astype(o_ref.dtype)


def _maxpool_kernel(x_ref, o_ref):
    """Running max over the tap grid axis; output block stays resident."""
    t = pl.program_id(1)
    v = x_ref[0]  # (tm, C)

    @pl.when(t == 0)
    def _init():
        o_ref[...] = v

    @pl.when(t > 0)
    def _acc():
        o_ref[...] = jnp.maximum(o_ref[...], v)


def _avgpool_kernel(x_ref, o_ref, *, inv_hw):
    """Sum over spatial tiles (reduction grid axis), scale at the last step."""
    s = pl.program_id(0)

    @pl.when(s == 0)
    def _init():
        o_ref[...] = jnp.zeros_like(o_ref)

    o_ref[...] += jnp.sum(x_ref[...].astype(jnp.float32), axis=1)

    @pl.when(s == pl.num_programs(0) - 1)
    def _finalize():
        o_ref[...] = o_ref[...] * inv_hw


# ----------------------------- kernel wrappers -----------------------------

_TM = 256      # M tile (rows of pixels); full-dim block used when M <= _TM
_TN = 512      # N tile (output channels); ResNet18 never exceeds 512
_TK_MAX = 1024  # K larger than this gets split into a reduction grid axis


def _pick_tk(kp):
    if kp <= _TK_MAX:
        return kp
    for tk in (512, 384, 256, 128):
        if kp % tk == 0:
            return tk
    return kp


def pallas_matmul_bias(a, w2d, bias2d, relu, residual=None, out_dtype=jnp.bfloat16):
    """out = [relu]( a @ w2d + bias [+ residual] ).

    a:        (M, K)   any float -> cast to bf16
    w2d:      (Kp, N)  bf16, pre-folded / pre-padded weight (Kp = round_up(K, 128))
    bias2d:   (1, N)   f32
    residual: (M, N)   optional, fused into the epilogue (residual add + ReLU)
    """
    M, K = a.shape
    Kp, N = w2d.shape
    a = a.astype(jnp.bfloat16)
    if Kp != K:                       # only when K is genuinely misaligned (e.g. stem 147)
        a = jnp.pad(a, ((0, 0), (0, Kp - K)))

    # --- tile selection (full-dim blocks need no padding) ---
    if M <= _TM:
        tm, Mp = M, M
    else:
        tm = _TM
        Mp = _round_up(M, _TM)
        if Mp != M:
            a = jnp.pad(a, ((0, Mp - M), (0, 0)))
            if residual is not None:
                residual = jnp.pad(residual, ((0, Mp - M), (0, 0)))
    tn = N if N <= _TN else _TN
    assert N % tn == 0
    tk = _pick_tk(Kp)
    grid = (Mp // tm, N // tn, Kp // tk)

    in_specs = [
        pl.BlockSpec((tm, tk), lambda i, j, k: (i, k)),
        pl.BlockSpec((tk, tn), lambda i, j, k: (k, j)),
        pl.BlockSpec((1, tn), lambda i, j, k: (0, j)),
    ]
    inputs = [a, w2d, bias2d]
    has_res = residual is not None
    if has_res:
        in_specs.append(pl.BlockSpec((tm, tn), lambda i, j, k: (i, j)))
        inputs.append(residual.astype(jnp.bfloat16))

    out = pl.pallas_call(
        functools.partial(_matmul_kernel, relu=relu, has_res=has_res),
        out_shape=jax.ShapeDtypeStruct((Mp, N), out_dtype),
        grid=grid,
        in_specs=in_specs,
        out_specs=pl.BlockSpec((tm, tn), lambda i, j, k: (i, j)),
        scratch_shapes=[pltpu.VMEM((tm, tn), jnp.float32)],
        compiler_params=pltpu.CompilerParams(
            dimension_semantics=("parallel", "parallel", "arbitrary")),
    )(*inputs)
    if Mp != M:
        out = out[:M]
    return out


def pallas_maxpool_3x3_s2p1(x):
    """MaxPool2d(kernel=3, stride=2, padding=1) on NHWC; taps reduced on a grid axis."""
    N, H, W, C = x.shape
    k, s, pad = 3, 2, 1
    Ho = (H + 2 * pad - k) // s + 1
    Wo = (W + 2 * pad - k) // s + 1
    xp = jnp.pad(x, ((0, 0), (pad, pad), (pad, pad), (0, 0)),
                 constant_values=-jnp.inf)
    slabs = [xp[:, i:i + s * Ho:s, j:j + s * Wo:s, :].reshape(N * Ho * Wo, C)
             for i in range(k) for j in range(k)]
    stacked = jnp.stack(slabs, axis=0)  # (9, M, C) bf16
    M = N * Ho * Wo
    TM = 512
    if M <= TM:
        tm, Mp = M, M
    else:
        tm = TM
        Mp = _round_up(M, TM)
        if Mp != M:
            stacked = jnp.pad(stacked, ((0, 0), (0, Mp - M), (0, 0)))
    out = pl.pallas_call(
        _maxpool_kernel,
        out_shape=jax.ShapeDtypeStruct((Mp, C), x.dtype),
        grid=(Mp // tm, k * k),
        in_specs=[pl.BlockSpec((1, tm, C), lambda m, t: (t, m, 0))],
        out_specs=pl.BlockSpec((tm, C), lambda m, t: (m, 0)),
        compiler_params=pltpu.CompilerParams(
            dimension_semantics=("parallel", "arbitrary")),
    )(stacked)
    return out[:M].reshape(N, Ho, Wo, C)


def pallas_global_avgpool(x):
    """AdaptiveAvgPool2d((1,1)): x (N, HW, C) -> (N, C) f32, HW tiled as a reduction axis."""
    N, HW, C = x.shape
    x = x.astype(jnp.bfloat16)
    THW = 512
    if HW <= THW:
        thw, HWp = HW, HW
    else:
        thw = THW
        HWp = _round_up(HW, THW)
        if HWp != HW:
            x = jnp.pad(x, ((0, 0), (0, HWp - HW), (0, 0)))
    return pl.pallas_call(
        functools.partial(_avgpool_kernel, inv_hw=1.0 / HW),
        out_shape=jax.ShapeDtypeStruct((N, C), jnp.float32),
        grid=(HWp // thw,),
        in_specs=[pl.BlockSpec((N, thw, C), lambda s: (0, s, 0))],
        out_specs=pl.BlockSpec((N, C), lambda s: (0, 0)),
        compiler_params=pltpu.CompilerParams(dimension_semantics=("arbitrary",)),
    )(x)


# ----------------------------- conv + folded BN -----------------------------

def conv_bn(x, cp, k, stride, pad, relu, residual=None):
    """x: NHWC bf16.  cp: prepared {w2d (Kp, cout) bf16, b (1, cout) f32}.
    Conv lowered to im2col (glue) + tiled Pallas matmul (hot path); optional fused
    residual-add + ReLU epilogue."""
    N, H, W, Cin = x.shape
    cout = cp['w2d'].shape[1]
    Ho = (H + 2 * pad - k) // stride + 1
    Wo = (W + 2 * pad - k) // stride + 1
    xp = jnp.pad(x, ((0, 0), (pad, pad), (pad, pad), (0, 0))) if pad else x
    if k == 1 and stride == 1:
        patches = x.reshape(N * H * W, Cin)
    else:
        cols = [xp[:, i:i + stride * Ho:stride, j:j + stride * Wo:stride, :]
                for i in range(k) for j in range(k)]
        patches = jnp.concatenate(cols, axis=-1).reshape(N * Ho * Wo, k * k * Cin)
    res2d = None if residual is None else residual.reshape(N * Ho * Wo, cout)
    y = pallas_matmul_bias(patches, cp['w2d'], cp['b'], relu=relu, residual=res2d)
    return y.reshape(N, Ho, Wo, cout)


# ----------------------------- parameters -----------------------------

def _conv_bn_params(key, cin, cout, k):
    k1, k2, k3 = jax.random.split(key, 3)
    return dict(
        w=0.05 * jax.random.normal(k1, (cout, cin, k, k), jnp.float32),
        gamma=1.0 + 0.1 * jax.random.normal(k2, (cout,), jnp.float32),
        beta=0.05 * jax.random.normal(k3, (cout,), jnp.float32),
        mean=jnp.zeros((cout,), jnp.float32),
        var=jnp.ones((cout,), jnp.float32),
    )


def init_params(key):
    # Deterministic synthetic init (no ImageNet checkpoint load).
    keys = jax.random.split(key, 64)
    ki = iter(keys)
    params = {'conv1': _conv_bn_params(next(ki), 3, 64, 7)}
    stage_cfg = [(64, 64, 1), (64, 128, 2), (128, 256, 2), (256, 512, 2)]
    for s, (cin, cout, stride) in enumerate(stage_cfg):
        blocks = []
        for b in range(2):
            in_c = cin if b == 0 else cout
            st = stride if b == 0 else 1
            blk = dict(conv1=_conv_bn_params(next(ki), in_c, cout, 3),
                       conv2=_conv_bn_params(next(ki), cout, cout, 3))
            if st != 1 or in_c != cout:
                blk['down'] = _conv_bn_params(next(ki), in_c, cout, 1)
            blocks.append(blk)
        params[f'layer{s + 1}'] = blocks
    kf1, kf2, kf3, kf4 = jax.random.split(next(ki), 4)
    params['fc1_w'] = 0.02 * jax.random.normal(kf1, (512, 512), jnp.float32)  # PyTorch (out,in)
    params['fc1_b'] = 0.01 * jax.random.normal(kf2, (512,), jnp.float32)
    params['fc2_w'] = 0.02 * jax.random.normal(kf3, (1, 512), jnp.float32)
    params['fc2_b'] = 0.01 * jax.random.normal(kf4, (1,), jnp.float32)
    return params


def _fold_conv_bn(p):
    """Eval-mode BN folded into conv weight/bias, reshaped for im2col matmul,
    K-padded to a multiple of 128 and cast to bf16.  Done once, outside the fwd path."""
    w, gamma, beta, mean, var = p['w'], p['gamma'], p['beta'], p['mean'], p['var']
    scale = gamma / jnp.sqrt(var + BN_EPS)
    w_f = w * scale[:, None, None, None]
    b_f = beta - mean * scale
    cout, cin, kh, kw = w.shape
    K = kh * kw * cin
    w2d = jnp.transpose(w_f, (2, 3, 1, 0)).reshape(K, cout)
    Kp = _round_up(K, 128)
    if Kp != K:
        w2d = jnp.pad(w2d, ((0, Kp - K), (0, 0)))
    return dict(w2d=w2d.astype(jnp.bfloat16),
                b=b_f.reshape(1, cout).astype(jnp.float32))


def prepare_params(params):
    prep = {'conv1': _fold_conv_bn(params['conv1'])}
    for s in range(4):
        blocks = []
        for blk in params[f'layer{s + 1}']:
            pb = {'conv1': _fold_conv_bn(blk['conv1']),
                  'conv2': _fold_conv_bn(blk['conv2'])}
            if 'down' in blk:
                pb['down'] = _fold_conv_bn(blk['down'])
            blocks.append(pb)
        prep[f'layer{s + 1}'] = blocks
    prep['fc1_w'] = params['fc1_w'].T.astype(jnp.bfloat16)          # (512, 512)
    prep['fc1_b'] = params['fc1_b'].reshape(1, -1).astype(jnp.float32)
    prep['fc2_w'] = params['fc2_w'].T.astype(jnp.bfloat16)          # (512, 1)
    prep['fc2_b'] = params['fc2_b'].reshape(1, -1).astype(jnp.float32)
    return prep


# ----------------------------- forward -----------------------------

def cancer_classifier_forward(prep, x_nchw):
    x = jnp.transpose(x_nchw, (0, 2, 3, 1)).astype(jnp.bfloat16)  # NCHW -> NHWC, bf16 activations
    # stem: conv7x7/2 + BN + ReLU, maxpool3x3/2
    x = conv_bn(x, prep['conv1'], k=7, stride=2, pad=3, relu=True)
    x = pallas_maxpool_3x3_s2p1(x)
    # 4 stages x 2 BasicBlocks; residual add+ReLU fused into conv2's matmul epilogue
    stage_strides = [1, 2, 2, 2]
    for s in range(4):
        for b, blk in enumerate(prep[f'layer{s + 1}']):
            st = stage_strides[s] if b == 0 else 1
            identity = x
            out = conv_bn(x, blk['conv1'], k=3, stride=st, pad=1, relu=True)
            if 'down' in blk:
                identity = conv_bn(x, blk['down'], k=1, stride=st, pad=0, relu=False)
            x = conv_bn(out, blk['conv2'], k=3, stride=1, pad=1, relu=True,
                        residual=identity)
    # global average pool -> (N, 512)
    N, H, W, C = x.shape
    feat = pallas_global_avgpool(x.reshape(N, H * W, C))
    # head: Linear(512,512) -> ReLU -> Dropout (identity at inference) -> Linear(512,1)
    h = pallas_matmul_bias(feat, prep['fc1_w'], prep['fc1_b'], relu=True)
    logits = pallas_matmul_bias(h, prep['fc2_w'], prep['fc2_b'], relu=False,
                                out_dtype=jnp.float32)
    return logits  # (N, 1) f32


if __name__ == "__main__":
    key = jax.random.PRNGKey(0)
    kp, kx = jax.random.split(key)
    params = init_params(kp)
    prep = prepare_params(params)                         # fold/transpose/pad weights once
    x = jax.random.normal(kx, (2, 3, 32, 32), jnp.float32)  # NCHW, like PyTorch
    fwd = jax.jit(cancer_classifier_forward)
    out = fwd(prep, x)
    out = jax.block_until_ready(out)
    assert out.shape == (2, 1) and out.dtype == jnp.float32
    print("KERNEL_OK")
</pallas_src>

<mosaic_0001>
module attributes {stable_mosaic.version = 11 : i64} {
  func.func @_matmul_kernel(%arg0: i32, %arg1: i32, %arg2: i32, %arg3: memref<256x256xbf16, #tpu.memory_space<vmem>>, %arg4: memref<256x64xbf16, #tpu.memory_space<vmem>>, %arg5: memref<1x64xf32, #tpu.memory_space<vmem>>, %arg6: memref<256x64xbf16, #tpu.memory_space<vmem>>, %arg7: memref<256x64xf32, #tpu.memory_space<vmem>>) attributes {dimension_semantics = [#tpu.dimension_semantics<parallel>, #tpu.dimension_semantics<parallel>, #tpu.dimension_semantics<arbitrary>], iteration_bounds = array<i64: 2, 1, 1>, scalar_prefetch = 0 : i64, scratch_operands = 1 : i64, tpu.core_type = #tpu.core_type<tc>, window_params = [{transform_indices = @transform_0, window_bounds = array<i64: 256, 256>}, {transform_indices = @transform_1, window_bounds = array<i64: 256, 64>}, {transform_indices = @transform_2, window_bounds = array<i64: 1, 64>}, {transform_indices = @transform_3, window_bounds = array<i64: 256, 64>}]} {
    %c0_i32 = arith.constant 0 : i32
    %0 = arith.cmpi eq, %arg2, %c0_i32 : i32
    %1 = arith.extui %0 : i1 to i32
    %c0_i32_0 = arith.constant 0 : i32
    %2 = arith.cmpi ne, %1, %c0_i32_0 : i32
    scf.if %2 {
      %cst_10 = arith.constant 0.000000e+00 : f32
      %12 = vector.broadcast %cst_10 : f32 to vector<256x64xf32>
      %c0_11 = arith.constant 0 : index
      %c0_12 = arith.constant 0 : index
      %13 = vector.load %arg7[%c0_11, %c0_12] : memref<256x64xf32, #tpu.memory_space<vmem>>, vector<256x64xf32>
      tpu.vector_store %arg7[%c0_11, %c0_12], %12 {strides = array<i32>} : memref<256x64xf32, #tpu.memory_space<vmem>>, vector<256x64xf32>,
    } else {
    }
    %c0 = arith.constant 0 : index
    %c0_1 = arith.constant 0 : index
    %3 = vector.load %arg7[%c0, %c0_1] : memref<256x64xf32, #tpu.memory_space<vmem>>, vector<256x64xf32>
    %c0_2 = arith.constant 0 : index
    %c0_3 = arith.constant 0 : index
    %4 = vector.load %arg3[%c0_2, %c0_3] : memref<256x256xbf16, #tpu.memory_space<vmem>>, vector<256x256xbf16>
    %c0_4 = arith.constant 0 : index
    %c0_5 = arith.constant 0 : index
    %5 = vector.load %arg4[%c0_4, %c0_5] : memref<256x64xbf16, #tpu.memory_space<vmem>>, vector<256x64xbf16>
    %cst = arith.constant dense<0.000000e+00> : vector<256x64xf32>
    %6 = tpu.matmul %4, %5, %cst {dimension_numbers = #tpu.dot_dimension_numbers<[1], [0], [0], [1], [0, 0, 1, 1], [], []>} : vector<256x256xbf16>, vector<256x64xbf16>, vector<256x64xf32> -> vector<256x64xf32>
    %7 = arith.addf %3, %6 : vector<256x64xf32>
    %c0_6 = arith.constant 0 : index
    %c0_7 = arith.constant 0 : index
    %8 = vector.load %arg7[%c0_6, %c0_7] : memref<256x64xf32, #tpu.memory_space<vmem>>, vector<256x64xf32>
    tpu.vector_store %arg7[%c0_6, %c0_7], %7 {strides = array<i32>} : memref<256x64xf32, #tpu.memory_space<vmem>>, vector<256x64xf32>,
    %c0_i32_8 = arith.constant 0 : i32
    %9 = arith.cmpi eq, %arg2, %c0_i32_8 : i32
    %10 = arith.extui %9 : i1 to i32
    %c0_i32_9 = arith.constant 0 : i32
    %11 = arith.cmpi ne, %10, %c0_i32_9 : i32
    scf.if %11 {
      %c0_10 = arith.constant 0 : index
      %c0_11 = arith.constant 0 : index
      %12 = vector.load %arg7[%c0_10, %c0_11] : memref<256x64xf32, #tpu.memory_space<vmem>>, vector<256x64xf32>
      %c0_12 = arith.constant 0 : index
      %c0_13 = arith.constant 0 : index
      %13 = vector.load %arg5[%c0_12, %c0_13] : memref<1x64xf32, #tpu.memory_space<vmem>>, vector<1x64xf32>
      %14 = vector.broadcast %13 : vector<1x64xf32> to vector<256x64xf32>
      %15 = arith.addf %12, %14 : vector<256x64xf32>
      %cst_14 = arith.constant 0.000000e+00 : f32
      %16 = vector.broadcast %cst_14 : f32 to vector<256x64xf32>
      %17 = arith.maximumf %15, %16 : vector<256x64xf32>
      %18 = arith.truncf %17 : vector<256x64xf32> to vector<256x64xbf16>
      %c0_15 = arith.constant 0 : index
      %c0_16 = arith.constant 0 : index
      %19 = vector.load %arg6[%c0_15, %c0_16] : memref<256x64xbf16, #tpu.memory_space<vmem>>, vector<256x64xbf16>
      tpu.vector_store %arg6[%c0_15, %c0_16], %18 {strides = array<i32>} : memref<256x64xbf16, #tpu.memory_space<vmem>>, vector<256x64xbf16>,
    } else {
    }
    return
  }
  func.func @transform_0(%arg0: i32, %arg1: i32, %arg2: i32) -> (i32, i32) {
    %c0_i32 = arith.constant 0 : i32
    return %arg0, %arg2 : i32, i32
  }
  func.func @transform_1(%arg0: i32, %arg1: i32, %arg2: i32) -> (i32, i32) {
    %c0_i32 = arith.constant 0 : i32
    return %arg2, %arg1 : i32, i32
  }
  func.func @transform_2(%arg0: i32, %arg1: i32, %arg2: i32) -> (i32, i32) {
    %c0_i32 = arith.constant 0 : i32
    %c0_i32_0 = arith.constant 0 : i32
    return %c0_i32, %arg1 : i32, i32
  }
  func.func @transform_3(%arg0: i32, %arg1: i32, %arg2: i32) -> (i32, i32) {
    %c0_i32 = arith.constant 0 : i32
    return %arg0, %arg1 : i32, i32
  }
}

module attributes {stable_mosaic.version = 11 : i64} {
  func.func @_maxpool_kernel(%arg0: i32, %arg1: i32, %arg2: memref<1x128x64xbf16, #tpu.memory_space<vmem>>, %arg3: memref<128x64xbf16, #tpu.memory_space<vmem>>) attributes {dimension_semantics = [#tpu.dimension_semantics<parallel>, #tpu.dimension_semantics<arbitrary>], iteration_bounds = array<i64: 1, 9>, scalar_prefetch = 0 : i64, scratch_operands = 0 : i64, tpu.core_type = #tpu.core_type<tc>, window_params = [{transform_indices = @transform_0, window_bounds = array<i64: 1, 128, 64>}, {transform_indices = @transform_1, window_bounds = array<i64: 128, 64>}]} {
    %c0 = arith.constant 0 : index
    %c0_0 = arith.constant 0 : index
    %c0_1 = arith.constant 0 : index
    %0 = vector.load %arg2[%c0, %c0_0, %c0_1] : memref<1x128x64xbf16, #tpu.memory_space<vmem>>, vector<1x128x64xbf16>
    %1 = vector.shape_cast %0 : vector<1x128x64xbf16> to vector<128x64xbf16>
    %c0_i32 = arith.constant 0 : i32
    %2 = arith.cmpi eq, %arg1, %c0_i32 : i32
    %3 = arith.extui %2 : i1 to i32
    %c0_i32_2 = arith.constant 0 : i32
    %4 = arith.cmpi ne, %3, %c0_i32_2 : i32
    scf.if %4 {
      %c0_5 = arith.constant 0 : index
      %c0_6 = arith.constant 0 : index
      %8 = vector.load %arg3[%c0_5, %c0_6] : memref<128x64xbf16, #tpu.memory_space<vmem>>, vector<128x64xbf16>
      tpu.vector_store %arg3[%c0_5, %c0_6], %1 {strides = array<i32>} : memref<128x64xbf16, #tpu.memory_space<vmem>>, vector<128x64xbf16>,
    } else {
    }
    %c0_i32_3 = arith.constant 0 : i32
    %5 = arith.cmpi sgt, %arg1, %c0_i32_3 : i32
    %6 = arith.extui %5 : i1 to i32
    %c0_i32_4 = arith.constant 0 : i32
    %7 = arith.cmpi ne, %6, %c0_i32_4 : i32
    scf.if %7 {
      %c0_5 = arith.constant 0 : index
      %c0_6 = arith.constant 0 : index
      %8 = vector.load %arg3[%c0_5, %c0_6] : memref<128x64xbf16, #tpu.memory_space<vmem>>, vector<128x64xbf16>
      %9 = arith.maximumf %8, %1 : vector<128x64xbf16>
      %c0_7 = arith.constant 0 : index
      %c0_8 = arith.constant 0 : index
      %10 = vector.load %arg3[%c0_7, %c0_8] : memref<128x64xbf16, #tpu.memory_space<vmem>>, vector<128x64xbf16>
      tpu.vector_store %arg3[%c0_7, %c0_8], %9 {strides = array<i32>} : memref<128x64xbf16, #tpu.memory_space<vmem>>, vector<128x64xbf16>,
    } else {
    }
    return
  }
  func.func @transform_0(%arg0: i32, %arg1: i32) -> (i32, i32, i32) {
    %c0_i32 = arith.constant 0 : i32
    %c0_i32_0 = arith.constant 0 : i32
    return %arg1, %arg0, %c0_i32 : i32, i32, i32
  }
  func.func @transform_1(%arg0: i32, %arg1: i32) -> (i32, i32) {
    %c0_i32 = arith.constant 0 : i32
    %c0_i32_0 = arith.constant 0 : i32
    return %arg0, %c0_i32 : i32, i32
  }
}

module attributes {stable_mosaic.version = 11 : i64} {
  func.func @_matmul_kernel(%arg0: i32, %arg1: i32, %arg2: i32, %arg3: memref<128x640xbf16, #tpu.memory_space<vmem>>, %arg4: memref<640x64xbf16, #tpu.memory_space<vmem>>, %arg5: memref<1x64xf32, #tpu.memory_space<vmem>>, %arg6: memref<128x64xbf16, #tpu.memory_space<vmem>>, %arg7: memref<128x64xbf16, #tpu.memory_space<vmem>>, %arg8: memref<128x64xf32, #tpu.memory_space<vmem>>) attributes {dimension_semantics = [#tpu.dimension_semantics<parallel>, #tpu.dimension_semantics<parallel>, #tpu.dimension_semantics<arbitrary>], iteration_bounds = array<i64: 1, 1, 1>, scalar_prefetch = 0 : i64, scratch_operands = 1 : i64, tpu.core_type = #tpu.core_type<tc>, window_params = [{transform_indices = @transform_0, window_bounds = array<i64: 128, 640>}, {transform_indices = @transform_1, window_bounds = array<i64: 640, 64>}, {transform_indices = @transform_2, window_bounds = array<i64: 1, 64>}, {transform_indices = @transform_3, window_bounds = array<i64: 128, 64>}, {transform_indices = @transform_4, window_bounds = array<i64: 128, 64>}]} {
    %c0_i32 = arith.constant 0 : i32
    %0 = arith.cmpi eq, %arg2, %c0_i32 : i32
    %1 = arith.extui %0 : i1 to i32
    %c0_i32_0 = arith.constant 0 : i32
    %2 = arith.cmpi ne, %1, %c0_i32_0 : i32
    scf.if %2 {
      %cst_10 = arith.constant 0.000000e+00 : f32
      %12 = vector.broadcast %cst_10 : f32 to vector<128x64xf32>
      %c0_11 = arith.constant 0 : index
      %c0_12 = arith.constant 0 : index
      %13 = vector.load %arg8[%c0_11, %c0_12] : memref<128x64xf32, #tpu.memory_space<vmem>>, vector<128x64xf32>
      tpu.vector_store %arg8[%c0_11, %c0_12], %12 {strides = array<i32>} : memref<128x64xf32, #tpu.memory_space<vmem>>, vector<128x64xf32>,
    } else {
    }
    %c0 = arith.constant 0 : index
    %c0_1 = arith.constant 0 : index
    %3 = vector.load %arg8[%c0, %c0_1] : memref<128x64xf32, #tpu.memory_space<vmem>>, vector<128x64xf32>
    %c0_2 = arith.constant 0 : index
    %c0_3 = arith.constant 0 : index
    %4 = vector.load %arg3[%c0_2, %c0_3] : memref<128x640xbf16, #tpu.memory_space<vmem>>, vector<128x640xbf16>
    %c0_4 = arith.constant 0 : index
    %c0_5 = arith.constant 0 : index
    %5 = vector.load %arg4[%c0_4, %c0_5] : memref<640x64xbf16, #tpu.memory_space<vmem>>, vector<640x64xbf16>
    %cst = arith.constant dense<0.000000e+00> : vector<128x64xf32>
    %6 = tpu.matmul %4, %5, %cst {dimension_numbers = #tpu.dot_dimension_numbers<[1], [0], [0], [1], [0, 0, 1, 1], [], []>} : vector<128x640xbf16>, vector<640x64xbf16>, vector<128x64xf32> -> vector<128x64xf32>
    %7 = arith.addf %3, %6 : vector<128x64xf32>
    %c0_6 = arith.constant 0 : index
    %c0_7 = arith.constant 0 : index
    %8 = vector.load %arg8[%c0_6, %c0_7] : memref<128x64xf32, #tpu.memory_space<vmem>>, vector<128x64xf32>
    tpu.vector_store %arg8[%c0_6, %c0_7], %7 {strides = array<i32>} : memref<128x64xf32, #tpu.memory_space<vmem>>, vector<128x64xf32>,
    %c0_i32_8 = arith.constant 0 : i32
    %9 = arith.cmpi eq, %arg2, %c0_i32_8 : i32
    %10 = arith.extui %9 : i1 to i32
    %c0_i32_9 = arith.constant 0 : i32
    %11 = arith.cmpi ne, %10, %c0_i32_9 : i32
    scf.if %11 {
      %c0_10 = arith.constant 0 : index
      %c0_11 = arith.constant 0 : index
      %12 = vector.load %arg8[%c0_10, %c0_11] : memref<128x64xf32, #tpu.memory_space<vmem>>, vector<128x64xf32>
      %c0_12 = arith.constant 0 : index
      %c0_13 = arith.constant 0 : index
      %13 = vector.load %arg5[%c0_12, %c0_13] : memref<1x64xf32, #tpu.memory_space<vmem>>, vector<1x64xf32>
      %14 = vector.broadcast %13 : vector<1x64xf32> to vector<128x64xf32>
      %15 = arith.addf %12, %14 : vector<128x64xf32>
      %c0_14 = arith.constant 0 : index
      %c0_15 = arith.constant 0 : index
      %16 = vector.load %arg6[%c0_14, %c0_15] : memref<128x64xbf16, #tpu.memory_space<vmem>>, vector<128x64xbf16>
      %17 = arith.extf %16 : vector<128x64xbf16> to vector<128x64xf32>
      %18 = arith.addf %15, %17 : vector<128x64xf32>
      %cst_16 = arith.constant 0.000000e+00 : f32
      %19 = vector.broadcast %cst_16 : f32 to vector<128x64xf32>
      %20 = arith.maximumf %18, %19 : vector<128x64xf32>
      %21 = arith.truncf %20 : vector<128x64xf32> to vector<128x64xbf16>
      %c0_17 = arith.constant 0 : index
      %c0_18 = arith.constant 0 : index
      %22 = vector.load %arg7[%c0_17, %c0_18] : memref<128x64xbf16, #tpu.memory_space<vmem>>, vector<128x64xbf16>
      tpu.vector_store %arg7[%c0_17, %c0_18], %21 {strides = array<i32>} : memref<128x64xbf16, #tpu.memory_space<vmem>>, vector<128x64xbf16>,
    } else {
    }
    return
  }
  func.func @transform_0(%arg0: i32, %arg1: i32, %arg2: i32) -> (i32, i32) {
    %c0_i32 = arith.constant 0 : i32
    return %arg0, %arg2 : i32, i32
  }
  func.func @transform_1(%arg0: i32, %arg1: i32, %arg2: i32) -> (i32, i32) {
    %c0_i32 = arith.constant 0 : i32
    return %arg2, %arg1 : i32, i32
  }
  func.func @transform_2(%arg0: i32, %arg1: i32, %arg2: i32) -> (i32, i32) {
    %c0_i32 = arith.constant 0 : i32
    %c0_i32_0 = arith.constant 0 : i32
    return %c0_i32, %arg1 : i32, i32
  }
  func.func @transform_3(%arg0: i32, %arg1: i32, %arg2: i32) -> (i32, i32) {
    %c0_i32 = arith.constant 0 : i32
    return %arg0, %arg1 : i32, i32
  }
  func.func @transform_4(%arg0: i32, %arg1: i32, %arg2: i32) -> (i32, i32) {
    %c0_i32 = arith.constant 0 : i32
    return %arg0, %arg1 : i32, i32
  }
}

module attributes {stable_mosaic.version = 11 : i64} {
  func.func @_matmul_kernel(%arg0: i32, %arg1: i32, %arg2: i32, %arg3: memref<128x640xbf16, #tpu.memory_space<vmem>>, %arg4: memref<640x64xbf16, #tpu.memory_space<vmem>>, %arg5: memref<1x64xf32, #tpu.memory_space<vmem>>, %arg6: memref<128x64xbf16, #tpu.memory_space<vmem>>, %arg7: memref<128x64xf32, #tpu.memory_space<vmem>>) attributes {dimension_semantics = [#tpu.dimension_semantics<parallel>, #tpu.dimension_semantics<parallel>, #tpu.dimension_semantics<arbitrary>], iteration_bounds = array<i64: 1, 1, 1>, scalar_prefetch = 0 : i64, scratch_operands = 1 : i64, tpu.core_type = #tpu.core_type<tc>, window_params = [{transform_indices = @transform_0, window_bounds = array<i64: 128, 640>}, {transform_indices = @transform_1, window_bounds = array<i64: 640, 64>}, {transform_indices = @transform_2, window_bounds = array<i64: 1, 64>}, {transform_indices = @transform_3, window_bounds = array<i64: 128, 64>}]} {
    %c0_i32 = arith.constant 0 : i32
    %0 = arith.cmpi eq, %arg2, %c0_i32 : i32
    %1 = arith.extui %0 : i1 to i32
    %c0_i32_0 = arith.constant 0 : i32
    %2 = arith.cmpi ne, %1, %c0_i32_0 : i32
    scf.if %2 {
      %cst_10 = arith.constant 0.000000e+00 : f32
      %12 = vector.broadcast %cst_10 : f32 to vector<128x64xf32>
      %c0_11 = arith.constant 0 : index
      %c0_12 = arith.constant 0 : index
      %13 = vector.load %arg7[%c0_11, %c0_12] : memref<128x64xf32, #tpu.memory_space<vmem>>, vector<128x64xf32>
      tpu.vector_store %arg7[%c0_11, %c0_12], %12 {strides = array<i32>} : memref<128x64xf32, #tpu.memory_space<vmem>>, vector<128x64xf32>,
    } else {
    }
    %c0 = arith.constant 0 : index
    %c0_1 = arith.constant 0 : index
    %3 = vector.load %arg7[%c0, %c0_1] : memref<128x64xf32, #tpu.memory_space<vmem>>, vector<128x64xf32>
    %c0_2 = arith.constant 0 : index
    %c0_3 = arith.constant 0 : index
    %4 = vector.load %arg3[%c0_2, %c0_3] : memref<128x640xbf16, #tpu.memory_space<vmem>>, vector<128x640xbf16>
    %c0_4 = arith.constant 0 : index
    %c0_5 = arith.constant 0 : index
    %5 = vector.load %arg4[%c0_4, %c0_5] : memref<640x64xbf16, #tpu.memory_space<vmem>>, vector<640x64xbf16>
    %cst = arith.constant dense<0.000000e+00> : vector<128x64xf32>
    %6 = tpu.matmul %4, %5, %cst {dimension_numbers = #tpu.dot_dimension_numbers<[1], [0], [0], [1], [0, 0, 1, 1], [], []>} : vector<128x640xbf16>, vector<640x64xbf16>, vector<128x64xf32> -> vector<128x64xf32>
    %7 = arith.addf %3, %6 : vector<128x64xf32>
    %c0_6 = arith.constant 0 : index
    %c0_7 = arith.constant 0 : index
    %8 = vector.load %arg7[%c0_6, %c0_7] : memref<128x64xf32, #tpu.memory_space<vmem>>, vector<128x64xf32>
    tpu.vector_store %arg7[%c0_6, %c0_7], %7 {strides = array<i32>} : memref<128x64xf32, #tpu.memory_space<vmem>>, vector<128x64xf32>,
    %c0_i32_8 = arith.constant 0 : i32
    %9 = arith.cmpi eq, %arg2, %c0_i32_8 : i32
    %10 = arith.extui %9 : i1 to i32
    %c0_i32_9 = arith.constant 0 : i32
    %11 = arith.cmpi ne, %10, %c0_i32_9 : i32
    scf.if %11 {
      %c0_10 = arith.constant 0 : index
      %c0_11 = arith.constant 0 : index
      %12 = vector.load %arg7[%c0_10, %c0_11] : memref<128x64xf32, #tpu.memory_space<vmem>>, vector<128x64xf32>
      %c0_12 = arith.constant 0 : index
      %c0_13 = arith.constant 0 : index
      %13 = vector.load %arg5[%c0_12, %c0_13] : memref<1x64xf32, #tpu.memory_space<vmem>>, vector<1x64xf32>
      %14 = vector.broadcast %13 : vector<1x64xf32> to vector<128x64xf32>
      %15 = arith.addf %12, %14 : vector<128x64xf32>
      %cst_14 = arith.constant 0.000000e+00 : f32
      %16 = vector.broadcast %cst_14 : f32 to vector<128x64xf32>
      %17 = arith.maximumf %15, %16 : vector<128x64xf32>
      %18 = arith.truncf %17 : vector<128x64xf32> to vector<128x64xbf16>
      %c0_15 = arith.constant 0 : index
      %c0_16 = arith.constant 0 : index
      %19 = vector.load %arg6[%c0_15, %c0_16] : memref<128x64xbf16, #tpu.memory_space<vmem>>, vector<128x64xbf16>
      tpu.vector_store %arg6[%c0_15, %c0_16], %18 {strides = array<i32>} : memref<128x64xbf16, #tpu.memory_space<vmem>>, vector<128x64xbf16>,
    } else {
    }
    return
  }
  func.func @transform_0(%arg0: i32, %arg1: i32, %arg2: i32) -> (i32, i32) {
    %c0_i32 = arith.constant 0 : i32
    return %arg0, %arg2 : i32, i32
  }
  func.func @transform_1(%arg0: i32, %arg1: i32, %arg2: i32) -> (i32, i32) {
    %c0_i32 = arith.constant 0 : i32
    return %arg2, %arg1 : i32, i32
  }
  func.func @transform_2(%arg0: i32, %arg1: i32, %arg2: i32) -> (i32, i32) {
    %c0_i32 = arith.constant 0 : i32
    %c0_i32_0 = arith.constant 0 : i32
    return %c0_i32, %arg1 : i32, i32
  }
  func.func @transform_3(%arg0: i32, %arg1: i32, %arg2: i32) -> (i32, i32) {
    %c0_i32 = arith.constant 0 : i32
    return %arg0, %arg1 : i32, i32
  }
}

module attributes {stable_mosaic.version = 11 : i64} {
  func.func @_matmul_kernel(%arg0: i32, %arg1: i32, %arg2: i32, %arg3: memref<32x640xbf16, #tpu.memory_space<vmem>>, %arg4: memref<640x128xbf16, #tpu.memory_space<vmem>>, %arg5: memref<1x128xf32, #tpu.memory_space<vmem>>, %arg6: memref<32x128xbf16, #tpu.memory_space<vmem>>, %arg7: memref<32x128xf32, #tpu.memory_space<vmem>>) attributes {dimension_semantics = [#tpu.dimension_semantics<parallel>, #tpu.dimension_semantics<parallel>, #tpu.dimension_semantics<arbitrary>], iteration_bounds = array<i64: 1, 1, 1>, scalar_prefetch = 0 : i64, scratch_operands = 1 : i64, tpu.core_type = #tpu.core_type<tc>, window_params = [{transform_indices = @transform_0, window_bounds = array<i64: 32, 640>}, {transform_indices = @transform_1, window_bounds = array<i64: 640, 128>}, {transform_indices = @transform_2, window_bounds = array<i64: 1, 128>}, {transform_indices = @transform_3, window_bounds = array<i64: 32, 128>}]} {
    %c0_i32 = arith.constant 0 : i32
    %0 = arith.cmpi eq, %arg2, %c0_i32 : i32
    %1 = arith.extui %0 : i1 to i32
    %c0_i32_0 = arith.constant 0 : i32
    %2 = arith.cmpi ne, %1, %c0_i32_0 : i32
    scf.if %2 {
      %cst_10 = arith.constant 0.000000e+00 : f32
      %12 = vector.broadcast %cst_10 : f32 to vector<32x128xf32>
      %c0_11 = arith.constant 0 : index
      %c0_12 = arith.constant 0 : index
      %13 = vector.load %arg7[%c0_11, %c0_12] : memref<32x128xf32, #tpu.memory_space<vmem>>, vector<32x128xf32>
      tpu.vector_store %arg7[%c0_11, %c0_12], %12 {strides = array<i32>} : memref<32x128xf32, #tpu.memory_space<vmem>>, vector<32x128xf32>,
    } else {
    }
    %c0 = arith.constant 0 : index
    %c0_1 = arith.constant 0 : index
    %3 = vector.load %arg7[%c0, %c0_1] : memref<32x128xf32, #tpu.memory_space<vmem>>, vector<32x128xf32>
    %c0_2 = arith.constant 0 : index
    %c0_3 = arith.constant 0 : index
    %4 = vector.load %arg3[%c0_2, %c0_3] : memref<32x640xbf16, #tpu.memory_space<vmem>>, vector<32x640xbf16>
    %c0_4 = arith.constant 0 : index
    %c0_5 = arith.constant 0 : index
    %5 = vector.load %arg4[%c0_4, %c0_5] : memref<640x128xbf16, #tpu.memory_space<vmem>>, vector<640x128xbf16>
    %cst = arith.constant dense<0.000000e+00> : vector<32x128xf32>
    %6 = tpu.matmul %4, %5, %cst {dimension_numbers = #tpu.dot_dimension_numbers<[1], [0], [0], [1], [0, 0, 1, 1], [], []>} : vector<32x640xbf16>, vector<640x128xbf16>, vector<32x128xf32> -> vector<32x128xf32>
    %7 = arith.addf %3, %6 : vector<32x128xf32>
    %c0_6 = arith.constant 0 : index
    %c0_7 = arith.constant 0 : index
    %8 = vector.load %arg7[%c0_6, %c0_7] : memref<32x128xf32, #tpu.memory_space<vmem>>, vector<32x128xf32>
    tpu.vector_store %arg7[%c0_6, %c0_7], %7 {strides = array<i32>} : memref<32x128xf32, #tpu.memory_space<vmem>>, vector<32x128xf32>,
    %c0_i32_8 = arith.constant 0 : i32
    %9 = arith.cmpi eq, %arg2, %c0_i32_8 : i32
    %10 = arith.extui %9 : i1 to i32
    %c0_i32_9 = arith.constant 0 : i32
    %11 = arith.cmpi ne, %10, %c0_i32_9 : i32
    scf.if %11 {
      %c0_10 = arith.constant 0 : index
      %c0_11 = arith.constant 0 : index
      %12 = vector.load %arg7[%c0_10, %c0_11] : memref<32x128xf32, #tpu.memory_space<vmem>>, vector<32x128xf32>
      %c0_12 = arith.constant 0 : index
      %c0_13 = arith.constant 0 : index
      %13 = vector.load %arg5[%c0_12, %c0_13] : memref<1x128xf32, #tpu.memory_space<vmem>>, vector<1x128xf32>
      %14 = vector.broadcast %13 : vector<1x128xf32> to vector<32x128xf32>
      %15 = arith.addf %12, %14 : vector<32x128xf32>
      %cst_14 = arith.constant 0.000000e+00 : f32
      %16 = vector.broadcast %cst_14 : f32 to vector<32x128xf32>
      %17 = arith.maximumf %15, %16 : vector<32x128xf32>
      %18 = arith.truncf %17 : vector<32x128xf32> to vector<32x128xbf16>
      %c0_15 = arith.constant 0 : index
      %c0_16 = arith.constant 0 : index
      %19 = vector.load %arg6[%c0_15, %c0_16] : memref<32x128xbf16, #tpu.memory_space<vmem>>, vector<32x128xbf16>
      tpu.vector_store %arg6[%c0_15, %c0_16], %18 {strides = array<i32>} : memref<32x128xbf16, #tpu.memory_space<vmem>>, vector<32x128xbf16>,
    } else {
    }
    return
  }
  func.func @transform_0(%arg0: i32, %arg1: i32, %arg2: i32) -> (i32, i32) {
    %c0_i32 = arith.constant 0 : i32
    return %arg0, %arg2 : i32, i32
  }
  func.func @transform_1(%arg0: i32, %arg1: i32, %arg2: i32) -> (i32, i32) {
    %c0_i32 = arith.constant 0 : i32
    return %arg2, %arg1 : i32, i32
  }
  func.func @transform_2(%arg0: i32, %arg1: i32, %arg2: i32) -> (i32, i32) {
    %c0_i32 = arith.constant 0 : i32
    %c0_i32_0 = arith.constant 0 : i32
    return %c0_i32, %arg1 : i32, i32
  }
  func.func @transform_3(%arg0: i32, %arg1: i32, %arg2: i32) -> (i32, i32) {
    %c0_i32 = arith.constant 0 : i32
    return %arg0, %arg1 : i32, i32
  }
}

module attributes {stable_mosaic.version = 11 : i64} {
  func.func @_matmul_kernel(%arg0: i32, %arg1: i32, %arg2: i32, %arg3: memref<32x384xbf16, #tpu.memory_space<vmem>>, %arg4: memref<384x128xbf16, #tpu.memory_space<vmem>>, %arg5: memref<1x128xf32, #tpu.memory_space<vmem>>, %arg6: memref<32x128xbf16, #tpu.memory_space<vmem>>, %arg7: memref<32x128xf32, #tpu.memory_space<vmem>>) attributes {dimension_semantics = [#tpu.dimension_semantics<parallel>, #tpu.dimension_semantics<parallel>, #tpu.dimension_semantics<arbitrary>], iteration_bounds = array<i64: 1, 1, 3>, scalar_prefetch = 0 : i64, scratch_operands = 1 : i64, tpu.core_type = #tpu.core_type<tc>, window_params = [{transform_indices = @transform_0, window_bounds = array<i64: 32, 384>}, {transform_indices = @transform_1, window_bounds = array<i64: 384, 128>}, {transform_indices = @transform_2, window_bounds = array<i64: 1, 128>}, {transform_indices = @transform_3, window_bounds = array<i64: 32, 128>}]} {
    %c0_i32 = arith.constant 0 : i32
    %0 = arith.cmpi eq, %arg2, %c0_i32 : i32
    %1 = arith.extui %0 : i1 to i32
    %c0_i32_0 = arith.constant 0 : i32
    %2 = arith.cmpi ne, %1, %c0_i32_0 : i32
    scf.if %2 {
      %cst_9 = arith.constant 0.000000e+00 : f32
      %12 = vector.broadcast %cst_9 : f32 to vector<32x128xf32>
      %c0_10 = arith.constant 0 : index
      %c0_11 = arith.constant 0 : index
      %13 = vector.load %arg7[%c0_10, %c0_11] : memref<32x128xf32, #tpu.memory_space<vmem>>, vector<32x128xf32>
      tpu.vector_store %arg7[%c0_10, %c0_11], %12 {strides = array<i32>} : memref<32x128xf32, #tpu.memory_space<vmem>>, vector<32x128xf32>,
    } else {
    }
    %c0 = arith.constant 0 : index
    %c0_1 = arith.constant 0 : index
    %3 = vector.load %arg7[%c0, %c0_1] : memref<32x128xf32, #tpu.memory_space<vmem>>, vector<32x128xf32>
    %c0_2 = arith.constant 0 : index
    %c0_3 = arith.constant 0 : index
    %4 = vector.load %arg3[%c0_2, %c0_3] : memref<32x384xbf16, #tpu.memory_space<vmem>>, vector<32x384xbf16>
    %c0_4 = arith.constant 0 : index
    %c0_5 = arith.constant 0 : index
    %5 = vector.load %arg4[%c0_4, %c0_5] : memref<384x128xbf16, #tpu.memory_space<vmem>>, vector<384x128xbf16>
    %cst = arith.constant dense<0.000000e+00> : vector<32x128xf32>
    %6 = tpu.matmul %4, %5, %cst {dimension_numbers = #tpu.dot_dimension_numbers<[1], [0], [0], [1], [0, 0, 1, 1], [], []>} : vector<32x384xbf16>, vector<384x128xbf16>, vector<32x128xf32> -> vector<32x128xf32>
    %7 = arith.addf %3, %6 : vector<32x128xf32>
    %c0_6 = arith.constant 0 : index
    %c0_7 = arith.constant 0 : index
    %8 = vector.load %arg7[%c0_6, %c0_7] : memref<32x128xf32, #tpu.memory_space<vmem>>, vector<32x128xf32>
    tpu.vector_store %arg7[%c0_6, %c0_7], %7 {strides = array<i32>} : memref<32x128xf32, #tpu.memory_space<vmem>>, vector<32x128xf32>,
    %c2_i32 = arith.constant 2 : i32
    %9 = arith.cmpi eq, %arg2, %c2_i32 : i32
    %10 = arith.extui %9 : i1 to i32
    %c0_i32_8 = arith.constant 0 : i32
    %11 = arith.cmpi ne, %10, %c0_i32_8 : i32
    scf.if %11 {
      %c0_9 = arith.constant 0 : index
      %c0_10 = arith.constant 0 : index
      %12 = vector.load %arg7[%c0_9, %c0_10] : memref<32x128xf32, #tpu.memory_space<vmem>>, vector<32x128xf32>
      %c0_11 = arith.constant 0 : index
      %c0_12 = arith.constant 0 : index
      %13 = vector.load %arg5[%c0_11, %c0_12] : memref<1x128xf32, #tpu.memory_space<vmem>>, vector<1x128xf32>
      %14 = vector.broadcast %13 : vector<1x128xf32> to vector<32x128xf32>
      %15 = arith.addf %12, %14 : vector<32x128xf32>
      %cst_13 = arith.constant 0.000000e+00 : f32
      %16 = vector.broadcast %cst_13 : f32 to vector<32x128xf32>
      %17 = arith.maximumf %15, %16 : vector<32x128xf32>
      %18 = arith.truncf %17 : vector<32x128xf32> to vector<32x128xbf16>
      %c0_14 = arith.constant 0 : index
      %c0_15 = arith.constant 0 : index
      %19 = vector.load %arg6[%c0_14, %c0_15] : memref<32x128xbf16, #tpu.memory_space<vmem>>, vector<32x128xbf16>
      tpu.vector_store %arg6[%c0_14, %c0_15], %18 {strides = array<i32>} : memref<32x128xbf16, #tpu.memory_space<vmem>>, vector<32x128xbf16>,
    } else {
    }
    return
  }
  func.func @transform_0(%arg0: i32, %arg1: i32, %arg2: i32) -> (i32, i32) {
    %c0_i32 = arith.constant 0 : i32
    return %arg0, %arg2 : i32, i32
  }
  func.func @transform_1(%arg0: i32, %arg1: i32, %arg2: i32) -> (i32, i32) {
    %c0_i32 = arith.constant 0 : i32
    return %arg2, %arg1 : i32, i32
  }
  func.func @transform_2(%arg0: i32, %arg1: i32, %arg2: i32) -> (i32, i32) {
    %c0_i32 = arith.constant 0 : i32
    %c0_i32_0 = arith.constant 0 : i32
    return %c0_i32, %arg1 : i32, i32
  }
  func.func @transform_3(%arg0: i32, %arg1: i32, %arg2: i32) -> (i32, i32) {
    %c0_i32 = arith.constant 0 : i32
    return %arg0, %arg1 : i32, i32
  }
}

module attributes {stable_mosaic.version = 11 : i64} {
  func.func @_matmul_kernel(%arg0: i32, %arg1: i32, %arg2: i32, %arg3: memref<32x128xbf16, #tpu.memory_space<vmem>>, %arg4: memref<128x128xbf16, #tpu.memory_space<vmem>>, %arg5: memref<1x128xf32, #tpu.memory_space<vmem>>, %arg6: memref<32x128xbf16, #tpu.memory_space<vmem>>, %arg7: memref<32x128xf32, #tpu.memory_space<vmem>>) attributes {dimension_semantics = [#tpu.dimension_semantics<parallel>, #tpu.dimension_semantics<parallel>, #tpu.dimension_semantics<arbitrary>], iteration_bounds = array<i64: 1, 1, 1>, scalar_prefetch = 0 : i64, scratch_operands = 1 : i64, tpu.core_type = #tpu.core_type<tc>, window_params = [{transform_indices = @transform_0, window_bounds = array<i64: 32, 128>}, {transform_indices = @transform_1, window_bounds = array<i64: 128, 128>}, {transform_indices = @transform_2, window_bounds = array<i64: 1, 128>}, {transform_indices = @transform_3, window_bounds = array<i64: 32, 128>}]} {
    %c0_i32 = arith.constant 0 : i32
    %0 = arith.cmpi eq, %arg2, %c0_i32 : i32
    %1 = arith.extui %0 : i1 to i32
    %c0_i32_0 = arith.constant 0 : i32
    %2 = arith.cmpi ne, %1, %c0_i32_0 : i32
    scf.if %2 {
      %cst_10 = arith.constant 0.000000e+00 : f32
      %12 = vector.broadcast %cst_10 : f32 to vector<32x128xf32>
      %c0_11 = arith.constant 0 : index
      %c0_12 = arith.constant 0 : index
      %13 = vector.load %arg7[%c0_11, %c0_12] : memref<32x128xf32, #tpu.memory_space<vmem>>, vector<32x128xf32>
      tpu.vector_store %arg7[%c0_11, %c0_12], %12 {strides = array<i32>} : memref<32x128xf32, #tpu.memory_space<vmem>>, vector<32x128xf32>,
    } else {
    }
    %c0 = arith.constant 0 : index
    %c0_1 = arith.constant 0 : index
    %3 = vector.load %arg7[%c0, %c0_1] : memref<32x128xf32, #tpu.memory_space<vmem>>, vector<32x128xf32>
    %c0_2 = arith.constant 0 : index
    %c0_3 = arith.constant 0 : index
    %4 = vector.load %arg3[%c0_2, %c0_3] : memref<32x128xbf16, #tpu.memory_space<vmem>>, vector<32x128xbf16>
    %c0_4 = arith.constant 0 : index
    %c0_5 = arith.constant 0 : index
    %5 = vector.load %arg4[%c0_4, %c0_5] : memref<128x128xbf16, #tpu.memory_space<vmem>>, vector<128x128xbf16>
    %cst = arith.constant dense<0.000000e+00> : vector<32x128xf32>
    %6 = tpu.matmul %4, %5, %cst {dimension_numbers = #tpu.dot_dimension_numbers<[1], [0], [0], [1], [0, 0, 1, 1], [], []>} : vector<32x128xbf16>, vector<128x128xbf16>, vector<32x128xf32> -> vector<32x128xf32>
    %7 = arith.addf %3, %6 : vector<32x128xf32>
    %c0_6 = arith.constant 0 : index
    %c0_7 = arith.constant 0 : index
    %8 = vector.load %arg7[%c0_6, %c0_7] : memref<32x128xf32, #tpu.memory_space<vmem>>, vector<32x128xf32>
    tpu.vector_store %arg7[%c0_6, %c0_7], %7 {strides = array<i32>} : memref<32x128xf32, #tpu.memory_space<vmem>>, vector<32x128xf32>,
    %c0_i32_8 = arith.constant 0 : i32
    %9 = arith.cmpi eq, %arg2, %c0_i32_8 : i32
    %10 = arith.extui %9 : i1 to i32
    %c0_i32_9 = arith.constant 0 : i32
    %11 = arith.cmpi ne, %10, %c0_i32_9 : i32
    scf.if %11 {
      %c0_10 = arith.constant 0 : index
      %c0_11 = arith.constant 0 : index
      %12 = vector.load %arg7[%c0_10, %c0_11] : memref<32x128xf32, #tpu.memory_space<vmem>>, vector<32x128xf32>
      %c0_12 = arith.constant 0 : index
      %c0_13 = arith.constant 0 : index
      %13 = vector.load %arg5[%c0_12, %c0_13] : memref<1x128xf32, #tpu.memory_space<vmem>>, vector<1x128xf32>
      %14 = vector.broadcast %13 : vector<1x128xf32> to vector<32x128xf32>
      %15 = arith.addf %12, %14 : vector<32x128xf32>
      %16 = arith.truncf %15 : vector<32x128xf32> to vector<32x128xbf16>
      %c0_14 = arith.constant 0 : index
      %c0_15 = arith.constant 0 : index
      %17 = vector.load %arg6[%c0_14, %c0_15] : memref<32x128xbf16, #tpu.memory_space<vmem>>, vector<32x128xbf16>
      tpu.vector_store %arg6[%c0_14, %c0_15], %16 {strides = array<i32>} : memref<32x128xbf16, #tpu.memory_space<vmem>>, vector<32x128xbf16>,
    } else {
    }
    return
  }
  func.func @transform_0(%arg0: i32, %arg1: i32, %arg2: i32) -> (i32, i32) {
    %c0_i32 = arith.constant 0 : i32
    return %arg0, %arg2 : i32, i32
  }
  func.func @transform_1(%arg0: i32, %arg1: i32, %arg2: i32) -> (i32, i32) {
    %c0_i32 = arith.constant 0 : i32
    return %arg2, %arg1 : i32, i32
  }
  func.func @transform_2(%arg0: i32, %arg1: i32, %arg2: i32) -> (i32, i32) {
    %c0_i32 = arith.constant 0 : i32
    %c0_i32_0 = arith.constant 0 : i32
    return %c0_i32, %arg1 : i32, i32
  }
  func.func @transform_3(%arg0: i32, %arg1: i32, %arg2: i32) -> (i32, i32) {
    %c0_i32 = arith.constant 0 : i32
    return %arg0, %arg1 : i32, i32
  }
}

module attributes {stable_mosaic.version = 11 : i64} {
  func.func @_matmul_kernel(%arg0: i32, %arg1: i32, %arg2: i32, %arg3: memref<32x384xbf16, #tpu.memory_space<vmem>>, %arg4: memref<384x128xbf16, #tpu.memory_space<vmem>>, %arg5: memref<1x128xf32, #tpu.memory_space<vmem>>, %arg6: memref<32x128xbf16, #tpu.memory_space<vmem>>, %arg7: memref<32x128xbf16, #tpu.memory_space<vmem>>, %arg8: memref<32x128xf32, #tpu.memory_space<vmem>>) attributes {dimension_semantics = [#tpu.dimension_semantics<parallel>, #tpu.dimension_semantics<parallel>, #tpu.dimension_semantics<arbitrary>], iteration_bounds = array<i64: 1, 1, 3>, scalar_prefetch = 0 : i64, scratch_operands = 1 : i64, tpu.core_type = #tpu.core_type<tc>, window_params = [{transform_indices = @transform_0, window_bounds = array<i64: 32, 384>}, {transform_indices = @transform_1, window_bounds = array<i64: 384, 128>}, {transform_indices = @transform_2, window_bounds = array<i64: 1, 128>}, {transform_indices = @transform_3, window_bounds = array<i64: 32, 128>}, {transform_indices = @transform_4, window_bounds = array<i64: 32, 128>}]} {
    %c0_i32 = arith.constant 0 : i32
    %0 = arith.cmpi eq, %arg2, %c0_i32 : i32
    %1 = arith.extui %0 : i1 to i32
    %c0_i32_0 = arith.constant 0 : i32
    %2 = arith.cmpi ne, %1, %c0_i32_0 : i32
    scf.if %2 {
      %cst_9 = arith.constant 0.000000e+00 : f32
      %12 = vector.broadcast %cst_9 : f32 to vector<32x128xf32>
      %c0_10 = arith.constant 0 : index
      %c0_11 = arith.constant 0 : index
      %13 = vector.load %arg8[%c0_10, %c0_11] : memref<32x128xf32, #tpu.memory_space<vmem>>, vector<32x128xf32>
      tpu.vector_store %arg8[%c0_10, %c0_11], %12 {strides = array<i32>} : memref<32x128xf32, #tpu.memory_space<vmem>>, vector<32x128xf32>,
    } else {
    }
    %c0 = arith.constant 0 : index
    %c0_1 = arith.constant 0 : index
    %3 = vector.load %arg8[%c0, %c0_1] : memref<32x128xf32, #tpu.memory_space<vmem>>, vector<32x128xf32>
    %c0_2 = arith.constant 0 : index
    %c0_3 = arith.constant 0 : index
    %4 = vector.load %arg3[%c0_2, %c0_3] : memref<32x384xbf16, #tpu.memory_space<vmem>>, vector<32x384xbf16>
    %c0_4 = arith.constant 0 : index
    %c0_5 = arith.constant 0 : index
    %5 = vector.load %arg4[%c0_4, %c0_5] : memref<384x128xbf16, #tpu.memory_space<vmem>>, vector<384x128xbf16>
    %cst = arith.constant dense<0.000000e+00> : vector<32x128xf32>
    %6 = tpu.matmul %4, %5, %cst {dimension_numbers = #tpu.dot_dimension_numbers<[1], [0], [0], [1], [0, 0, 1, 1], [], []>} : vector<32x384xbf16>, vector<384x128xbf16>, vector<32x128xf32> -> vector<32x128xf32>
    %7 = arith.addf %3, %6 : vector<32x128xf32>
    %c0_6 = arith.constant 0 : index
    %c0_7 = arith.constant 0 : index
    %8 = vector.load %arg8[%c0_6, %c0_7] : memref<32x128xf32, #tpu.memory_space<vmem>>, vector<32x128xf32>
    tpu.vector_store %arg8[%c0_6, %c0_7], %7 {strides = array<i32>} : memref<32x128xf32, #tpu.memory_space<vmem>>, vector<32x128xf32>,
    %c2_i32 = arith.constant 2 : i32
    %9 = arith.cmpi eq, %arg2, %c2_i32 : i32
    %10 = arith.extui %9 : i1 to i32
    %c0_i32_8 = arith.constant 0 : i32
    %11 = arith.cmpi ne, %10, %c0_i32_8 : i32
    scf.if %11 {
      %c0_9 = arith.constant 0 : index
      %c0_10 = arith.constant 0 : index
      %12 = vector.load %arg8[%c0_9, %c0_10] : memref<32x128xf32, #tpu.memory_space<vmem>>, vector<32x128xf32>
      %c0_11 = arith.constant 0 : index
      %c0_12 = arith.constant 0 : index
      %13 = vector.load %arg5[%c0_11, %c0_12] : memref<1x128xf32, #tpu.memory_space<vmem>>, vector<1x128xf32>
      %14 = vector.broadcast %13 : vector<1x128xf32> to vector<32x128xf32>
      %15 = arith.addf %12, %14 : vector<32x128xf32>
      %c0_13 = arith.constant 0 : index
      %c0_14 = arith.constant 0 : index
      %16 = vector.load %arg6[%c0_13, %c0_14] : memref<32x128xbf16, #tpu.memory_space<vmem>>, vector<32x128xbf16>
      %17 = arith.extf %16 : vector<32x128xbf16> to vector<32x128xf32>
      %18 = arith.addf %15, %17 : vector<32x128xf32>
      %cst_15 = arith.constant 0.000000e+00 : f32
      %19 = vector.broadcast %cst_15 : f32 to vector<32x128xf32>
      %20 = arith.maximumf %18, %19 : vector<32x128xf32>
      %21 = arith.truncf %20 : vector<32x128xf32> to vector<32x128xbf16>
      %c0_16 = arith.constant 0 : index
      %c0_17 = arith.constant 0 : index
      %22 = vector.load %arg7[%c0_16, %c0_17] : memref<32x128xbf16, #tpu.memory_space<vmem>>, vector<32x128xbf16>
      tpu.vector_store %arg7[%c0_16, %c0_17], %21 {strides = array<i32>} : memref<32x128xbf16, #tpu.memory_space<vmem>>, vector<32x128xbf16>,
    } else {
    }
    return
  }
  func.func @transform_0(%arg0: i32, %arg1: i32, %arg2: i32) -> (i32, i32) {
    %c0_i32 = arith.constant 0 : i32
    return %arg0, %arg2 : i32, i32
  }
  func.func @transform_1(%arg0: i32, %arg1: i32, %arg2: i32) -> (i32, i32) {
    %c0_i32 = arith.constant 0 : i32
    return %arg2, %arg1 : i32, i32
  }
  func.func @transform_2(%arg0: i32, %arg1: i32, %arg2: i32) -> (i32, i32) {
    %c0_i32 = arith.constant 0 : i32
    %c0_i32_0 = arith.constant 0 : i32
    return %c0_i32, %arg1 : i32, i32
  }
  func.func @transform_3(%arg0: i32, %arg1: i32, %arg2: i32) -> (i32, i32) {
    %c0_i32 = arith.constant 0 : i32
    return %arg0, %arg1 : i32, i32
  }
  func.func @transform_4(%arg0: i32, %arg1: i32, %arg2: i32) -> (i32, i32) {
    %c0_i32 = arith.constant 0 : i32
    return %arg0, %arg1 : i32, i32
  }
}

module attributes {stable_mosaic.version = 11 : i64} {
  func.func @_matmul_kernel(%arg0: i32, %arg1: i32, %arg2: i32, %arg3: memref<8x384xbf16, #tpu.memory_space<vmem>>, %arg4: memref<384x256xbf16, #tpu.memory_space<vmem>>, %arg5: memref<1x256xf32, #tpu.memory_space<vmem>>, %arg6: memref<8x256xbf16, #tpu.memory_space<vmem>>, %arg7: memref<8x256xf32, #tpu.memory_space<vmem>>) attributes {dimension_semantics = [#tpu.dimension_semantics<parallel>, #tpu.dimension_semantics<parallel>, #tpu.dimension_semantics<arbitrary>], iteration_bounds = array<i64: 1, 1, 3>, scalar_prefetch = 0 : i64, scratch_operands = 1 : i64, tpu.core_type = #tpu.core_type<tc>, window_params = [{transform_indices = @transform_0, window_bounds = array<i64: 8, 384>}, {transform_indices = @transform_1, window_bounds = array<i64: 384, 256>}, {transform_indices = @transform_2, window_bounds = array<i64: 1, 256>}, {transform_indices = @transform_3, window_bounds = array<i64: 8, 256>}]} {
    %c0_i32 = arith.constant 0 : i32
    %0 = arith.cmpi eq, %arg2, %c0_i32 : i32
    %1 = arith.extui %0 : i1 to i32
    %c0_i32_0 = arith.constant 0 : i32
    %2 = arith.cmpi ne, %1, %c0_i32_0 : i32
    scf.if %2 {
      %cst_9 = arith.constant 0.000000e+00 : f32
      %12 = vector.broadcast %cst_9 : f32 to vector<8x256xf32>
      %c0_10 = arith.constant 0 : index
      %c0_11 = arith.constant 0 : index
      %13 = vector.load %arg7[%c0_10, %c0_11] : memref<8x256xf32, #tpu.memory_space<vmem>>, vector<8x256xf32>
      tpu.vector_store %arg7[%c0_10, %c0_11], %12 {strides = array<i32>} : memref<8x256xf32, #tpu.memory_space<vmem>>, vector<8x256xf32>,
    } else {
    }
    %c0 = arith.constant 0 : index
    %c0_1 = arith.constant 0 : index
    %3 = vector.load %arg7[%c0, %c0_1] : memref<8x256xf32, #tpu.memory_space<vmem>>, vector<8x256xf32>
    %c0_2 = arith.constant 0 : index
    %c0_3 = arith.constant 0 : index
    %4 = vector.load %arg3[%c0_2, %c0_3] : memref<8x384xbf16, #tpu.memory_space<vmem>>, vector<8x384xbf16>
    %c0_4 = arith.constant 0 : index
    %c0_5 = arith.constant 0 : index
    %5 = vector.load %arg4[%c0_4, %c0_5] : memref<384x256xbf16, #tpu.memory_space<vmem>>, vector<384x256xbf16>
    %cst = arith.constant dense<0.000000e+00> : vector<8x256xf32>
    %6 = tpu.matmul %4, %5, %cst {dimension_numbers = #tpu.dot_dimension_numbers<[1], [0], [0], [1], [0, 0, 1, 1], [], []>} : vector<8x384xbf16>, vector<384x256xbf16>, vector<8x256xf32> -> vector<8x256xf32>
    %7 = arith.addf %3, %6 : vector<8x256xf32>
    %c0_6 = arith.constant 0 : index
    %c0_7 = arith.constant 0 : index
    %8 = vector.load %arg7[%c0_6, %c0_7] : memref<8x256xf32, #tpu.memory_space<vmem>>, vector<8x256xf32>
    tpu.vector_store %arg7[%c0_6, %c0_7], %7 {strides = array<i32>} : memref<8x256xf32, #tpu.memory_space<vmem>>, vector<8x256xf32>,
    %c2_i32 = arith.constant 2 : i32
    %9 = arith.cmpi eq, %arg2, %c2_i32 : i32
    %10 = arith.extui %9 : i1 to i32
    %c0_i32_8 = arith.constant 0 : i32
    %11 = arith.cmpi ne, %10, %c0_i32_8 : i32
    scf.if %11 {
      %c0_9 = arith.constant 0 : index
      %c0_10 = arith.constant 0 : index
      %12 = vector.load %arg7[%c0_9, %c0_10] : memref<8x256xf32, #tpu.memory_space<vmem>>, vector<8x256xf32>
      %c0_11 = arith.constant 0 : index
      %c0_12 = arith.constant 0 : index
      %13 = vector.load %arg5[%c0_11, %c0_12] : memref<1x256xf32, #tpu.memory_space<vmem>>, vector<1x256xf32>
      %14 = vector.broadcast %13 : vector<1x256xf32> to vector<8x256xf32>
      %15 = arith.addf %12, %14 : vector<8x256xf32>
      %cst_13 = arith.constant 0.000000e+00 : f32
      %16 = vector.broadcast %cst_13 : f32 to vector<8x256xf32>
      %17 = arith.maximumf %15, %16 : vector<8x256xf32>
      %18 = arith.truncf %17 : vector<8x256xf32> to vector<8x256xbf16>
      %c0_14 = arith.constant 0 : index
      %c0_15 = arith.constant 0 : index
      %19 = vector.load %arg6[%c0_14, %c0_15] : memref<8x256xbf16, #tpu.memory_space<vmem>>, vector<8x256xbf16>
      tpu.vector_store %arg6[%c0_14, %c0_15], %18 {strides = array<i32>} : memref<8x256xbf16, #tpu.memory_space<vmem>>, vector<8x256xbf16>,
    } else {
    }
    return
  }
  func.func @transform_0(%arg0: i32, %arg1: i32, %arg2: i32) -> (i32, i32) {
    %c0_i32 = arith.constant 0 : i32
    return %arg0, %arg2 : i32, i32
  }
  func.func @transform_1(%arg0: i32, %arg1: i32, %arg2: i32) -> (i32, i32) {
    %c0_i32 = arith.constant 0 : i32
    return %arg2, %arg1 : i32, i32
  }
  func.func @transform_2(%arg0: i32, %arg1: i32, %arg2: i32) -> (i32, i32) {
    %c0_i32 = arith.constant 0 : i32
    %c0_i32_0 = arith.constant 0 : i32
    return %c0_i32, %arg1 : i32, i32
  }
  func.func @transform_3(%arg0: i32, %arg1: i32, %arg2: i32) -> (i32, i32) {
    %c0_i32 = arith.constant 0 : i32
    return %arg0, %arg1 : i32, i32
  }
}

module attributes {stable_mosaic.version = 11 : i64} {
  func.func @_matmul_kernel(%arg0: i32, %arg1: i32, %arg2: i32, %arg3: memref<8x384xbf16, #tpu.memory_space<vmem>>, %arg4: memref<384x256xbf16, #tpu.memory_space<vmem>>, %arg5: memref<1x256xf32, #tpu.memory_space<vmem>>, %arg6: memref<8x256xbf16, #tpu.memory_space<vmem>>, %arg7: memref<8x256xf32, #tpu.memory_space<vmem>>) attributes {dimension_semantics = [#tpu.dimension_semantics<parallel>, #tpu.dimension_semantics<parallel>, #tpu.dimension_semantics<arbitrary>], iteration_bounds = array<i64: 1, 1, 6>, scalar_prefetch = 0 : i64, scratch_operands = 1 : i64, tpu.core_type = #tpu.core_type<tc>, window_params = [{transform_indices = @transform_0, window_bounds = array<i64: 8, 384>}, {transform_indices = @transform_1, window_bounds = array<i64: 384, 256>}, {transform_indices = @transform_2, window_bounds = array<i64: 1, 256>}, {transform_indices = @transform_3, window_bounds = array<i64: 8, 256>}]} {
    %c0_i32 = arith.constant 0 : i32
    %0 = arith.cmpi eq, %arg2, %c0_i32 : i32
    %1 = arith.extui %0 : i1 to i32
    %c0_i32_0 = arith.constant 0 : i32
    %2 = arith.cmpi ne, %1, %c0_i32_0 : i32
    scf.if %2 {
      %cst_9 = arith.constant 0.000000e+00 : f32
      %12 = vector.broadcast %cst_9 : f32 to vector<8x256xf32>
      %c0_10 = arith.constant 0 : index
      %c0_11 = arith.constant 0 : index
      %13 = vector.load %arg7[%c0_10, %c0_11] : memref<8x256xf32, #tpu.memory_space<vmem>>, vector<8x256xf32>
      tpu.vector_store %arg7[%c0_10, %c0_11], %12 {strides = array<i32>} : memref<8x256xf32, #tpu.memory_space<vmem>>, vector<8x256xf32>,
    } else {
    }
    %c0 = arith.constant 0 : index
    %c0_1 = arith.constant 0 : index
    %3 = vector.load %arg7[%c0, %c0_1] : memref<8x256xf32, #tpu.memory_space<vmem>>, vector<8x256xf32>
    %c0_2 = arith.constant 0 : index
    %c0_3 = arith.constant 0 : index
    %4 = vector.load %arg3[%c0_2, %c0_3] : memref<8x384xbf16, #tpu.memory_space<vmem>>, vector<8x384xbf16>
    %c0_4 = arith.constant 0 : index
    %c0_5 = arith.constant 0 : index
    %5 = vector.load %arg4[%c0_4, %c0_5] : memref<384x256xbf16, #tpu.memory_space<vmem>>, vector<384x256xbf16>
    %cst = arith.constant dense<0.000000e+00> : vector<8x256xf32>
    %6 = tpu.matmul %4, %5, %cst {dimension_numbers = #tpu.dot_dimension_numbers<[1], [0], [0], [1], [0, 0, 1, 1], [], []>} : vector<8x384xbf16>, vector<384x256xbf16>, vector<8x256xf32> -> vector<8x256xf32>
    %7 = arith.addf %3, %6 : vector<8x256xf32>
    %c0_6 = arith.constant 0 : index
    %c0_7 = arith.constant 0 : index
    %8 = vector.load %arg7[%c0_6, %c0_7] : memref<8x256xf32, #tpu.memory_space<vmem>>, vector<8x256xf32>
    tpu.vector_store %arg7[%c0_6, %c0_7], %7 {strides = array<i32>} : memref<8x256xf32, #tpu.memory_space<vmem>>, vector<8x256xf32>,
    %c5_i32 = arith.constant 5 : i32
    %9 = arith.cmpi eq, %arg2, %c5_i32 : i32
    %10 = arith.extui %9 : i1 to i32
    %c0_i32_8 = arith.constant 0 : i32
    %11 = arith.cmpi ne, %10, %c0_i32_8 : i32
    scf.if %11 {
      %c0_9 = arith.constant 0 : index
      %c0_10 = arith.constant 0 : index
      %12 = vector.load %arg7[%c0_9, %c0_10] : memref<8x256xf32, #tpu.memory_space<vmem>>, vector<8x256xf32>
      %c0_11 = arith.constant 0 : index
      %c0_12 = arith.constant 0 : index
      %13 = vector.load %arg5[%c0_11, %c0_12] : memref<1x256xf32, #tpu.memory_space<vmem>>, vector<1x256xf32>
      %14 = vector.broadcast %13 : vector<1x256xf32> to vector<8x256xf32>
      %15 = arith.addf %12, %14 : vector<8x256xf32>
      %cst_13 = arith.constant 0.000000e+00 : f32
      %16 = vector.broadcast %cst_13 : f32 to vector<8x256xf32>
      %17 = arith.maximumf %15, %16 : vector<8x256xf32>
      %18 = arith.truncf %17 : vector<8x256xf32> to vector<8x256xbf16>
      %c0_14 = arith.constant 0 : index
      %c0_15 = arith.constant 0 : index
      %19 = vector.load %arg6[%c0_14, %c0_15] : memref<8x256xbf16, #tpu.memory_space<vmem>>, vector<8x256xbf16>
      tpu.vector_store %arg6[%c0_14, %c0_15], %18 {strides = array<i32>} : memref<8x256xbf16, #tpu.memory_space<vmem>>, vector<8x256xbf16>,
    } else {
    }
    return
  }
  func.func @transform_0(%arg0: i32, %arg1: i32, %arg2: i32) -> (i32, i32) {
    %c0_i32 = arith.constant 0 : i32
    return %arg0, %arg2 : i32, i32
  }
  func.func @transform_1(%arg0: i32, %arg1: i32, %arg2: i32) -> (i32, i32) {
    %c0_i32 = arith.constant 0 : i32
    return %arg2, %arg1 : i32, i32
  }
  func.func @transform_2(%arg0: i32, %arg1: i32, %arg2: i32) -> (i32, i32) {
    %c0_i32 = arith.constant 0 : i32
    %c0_i32_0 = arith.constant 0 : i32
    return %c0_i32, %arg1 : i32, i32
  }
  func.func @transform_3(%arg0: i32, %arg1: i32, %arg2: i32) -> (i32, i32) {
    %c0_i32 = arith.constant 0 : i32
    return %arg0, %arg1 : i32, i32
  }
}

module attributes {stable_mosaic.version = 11 : i64} {
  func.func @_matmul_kernel(%arg0: i32, %arg1: i32, %arg2: i32, %arg3: memref<8x128xbf16, #tpu.memory_space<vmem>>, %arg4: memref<128x256xbf16, #tpu.memory_space<vmem>>, %arg5: memref<1x256xf32, #tpu.memory_space<vmem>>, %arg6: memref<8x256xbf16, #tpu.memory_space<vmem>>, %arg7: memref<8x256xf32, #tpu.memory_space<vmem>>) attributes {dimension_semantics = [#tpu.dimension_semantics<parallel>, #tpu.dimension_semantics<parallel>, #tpu.dimension_semantics<arbitrary>], iteration_bounds = array<i64: 1, 1, 1>, scalar_prefetch = 0 : i64, scratch_operands = 1 : i64, tpu.core_type = #tpu.core_type<tc>, window_params = [{transform_indices = @transform_0, window_bounds = array<i64: 8, 128>}, {transform_indices = @transform_1, window_bounds = array<i64: 128, 256>}, {transform_indices = @transform_2, window_bounds = array<i64: 1, 256>}, {transform_indices = @transform_3, window_bounds = array<i64: 8, 256>}]} {
    %c0_i32 = arith.constant 0 : i32
    %0 = arith.cmpi eq, %arg2, %c0_i32 : i32
    %1 = arith.extui %0 : i1 to i32
    %c0_i32_0 = arith.constant 0 : i32
    %2 = arith.cmpi ne, %1, %c0_i32_0 : i32
    scf.if %2 {
      %cst_10 = arith.constant 0.000000e+00 : f32
      %12 = vector.broadcast %cst_10 : f32 to vector<8x256xf32>
      %c0_11 = arith.constant 0 : index
      %c0_12 = arith.constant 0 : index
      %13 = vector.load %arg7[%c0_11, %c0_12] : memref<8x256xf32, #tpu.memory_space<vmem>>, vector<8x256xf32>
      tpu.vector_store %arg7[%c0_11, %c0_12], %12 {strides = array<i32>} : memref<8x256xf32, #tpu.memory_space<vmem>>, vector<8x256xf32>,
    } else {
    }
    %c0 = arith.constant 0 : index
    %c0_1 = arith.constant 0 : index
    %3 = vector.load %arg7[%c0, %c0_1] : memref<8x256xf32, #tpu.memory_space<vmem>>, vector<8x256xf32>
    %c0_2 = arith.constant 0 : index
    %c0_3 = arith.constant 0 : index
    %4 = vector.load %arg3[%c0_2, %c0_3] : memref<8x128xbf16, #tpu.memory_space<vmem>>, vector<8x128xbf16>
    %c0_4 = arith.constant 0 : index
    %c0_5 = arith.constant 0 : index
    %5 = vector.load %arg4[%c0_4, %c0_5] : memref<128x256xbf16, #tpu.memory_space<vmem>>, vector<128x256xbf16>
    %cst = arith.constant dense<0.000000e+00> : vector<8x256xf32>
    %6 = tpu.matmul %4, %5, %cst {dimension_numbers = #tpu.dot_dimension_numbers<[1], [0], [0], [1], [0, 0, 1, 1], [], []>} : vector<8x128xbf16>, vector<128x256xbf16>, vector<8x256xf32> -> vector<8x256xf32>
    %7 = arith.addf %3, %6 : vector<8x256xf32>
    %c0_6 = arith.constant 0 : index
    %c0_7 = arith.constant 0 : index
    %8 = vector.load %arg7[%c0_6, %c0_7] : memref<8x256xf32, #tpu.memory_space<vmem>>, vector<8x256xf32>
    tpu.vector_store %arg7[%c0_6, %c0_7], %7 {strides = array<i32>} : memref<8x256xf32, #tpu.memory_space<vmem>>, vector<8x256xf32>,
    %c0_i32_8 = arith.constant 0 : i32
    %9 = arith.cmpi eq, %arg2, %c0_i32_8 : i32
    %10 = arith.extui %9 : i1 to i32
    %c0_i32_9 = arith.constant 0 : i32
    %11 = arith.cmpi ne, %10, %c0_i32_9 : i32
    scf.if %11 {
      %c0_10 = arith.constant 0 : index
      %c0_11 = arith.constant 0 : index
      %12 = vector.load %arg7[%c0_10, %c0_11] : memref<8x256xf32, #tpu.memory_space<vmem>>, vector<8x256xf32>
      %c0_12 = arith.constant 0 : index
      %c0_13 = arith.constant 0 : index
      %13 = vector.load %arg5[%c0_12, %c0_13] : memref<1x256xf32, #tpu.memory_space<vmem>>, vector<1x256xf32>
      %14 = vector.broadcast %13 : vector<1x256xf32> to vector<8x256xf32>
      %15 = arith.addf %12, %14 : vector<8x256xf32>
      %16 = arith.truncf %15 : vector<8x256xf32> to vector<8x256xbf16>
      %c0_14 = arith.constant 0 : index
      %c0_15 = arith.constant 0 : index
      %17 = vector.load %arg6[%c0_14, %c0_15] : memref<8x256xbf16, #tpu.memory_space<vmem>>, vector<8x256xbf16>
      tpu.vector_store %arg6[%c0_14, %c0_15], %16 {strides = array<i32>} : memref<8x256xbf16, #tpu.memory_space<vmem>>, vector<8x256xbf16>,
    } else {
    }
    return
  }
  func.func @transform_0(%arg0: i32, %arg1: i32, %arg2: i32) -> (i32, i32) {
    %c0_i32 = arith.constant 0 : i32
    return %arg0, %arg2 : i32, i32
  }
  func.func @transform_1(%arg0: i32, %arg1: i32, %arg2: i32) -> (i32, i32) {
    %c0_i32 = arith.constant 0 : i32
    return %arg2, %arg1 : i32, i32
  }
  func.func @transform_2(%arg0: i32, %arg1: i32, %arg2: i32) -> (i32, i32) {
    %c0_i32 = arith.constant 0 : i32
    %c0_i32_0 = arith.constant 0 : i32
    return %c0_i32, %arg1 : i32, i32
  }
  func.func @transform_3(%arg0: i32, %arg1: i32, %arg2: i32) -> (i32, i32) {
    %c0_i32 = arith.constant 0 : i32
    return %arg0, %arg1 : i32, i32
  }
}

module attributes {stable_mosaic.version = 11 : i64} {
  func.func @_matmul_kernel(%arg0: i32, %arg1: i32, %arg2: i32, %arg3: memref<8x384xbf16, #tpu.memory_space<vmem>>, %arg4: memref<384x256xbf16, #tpu.memory_space<vmem>>, %arg5: memref<1x256xf32, #tpu.memory_space<vmem>>, %arg6: memref<8x256xbf16, #tpu.memory_space<vmem>>, %arg7: memref<8x256xbf16, #tpu.memory_space<vmem>>, %arg8: memref<8x256xf32, #tpu.memory_space<vmem>>) attributes {dimension_semantics = [#tpu.dimension_semantics<parallel>, #tpu.dimension_semantics<parallel>, #tpu.dimension_semantics<arbitrary>], iteration_bounds = array<i64: 1, 1, 6>, scalar_prefetch = 0 : i64, scratch_operands = 1 : i64, tpu.core_type = #tpu.core_type<tc>, window_params = [{transform_indices = @transform_0, window_bounds = array<i64: 8, 384>}, {transform_indices = @transform_1, window_bounds = array<i64: 384, 256>}, {transform_indices = @transform_2, window_bounds = array<i64: 1, 256>}, {transform_indices = @transform_3, window_bounds = array<i64: 8, 256>}, {transform_indices = @transform_4, window_bounds = array<i64: 8, 256>}]} {
    %c0_i32 = arith.constant 0 : i32
    %0 = arith.cmpi eq, %arg2, %c0_i32 : i32
    %1 = arith.extui %0 : i1 to i32
    %c0_i32_0 = arith.constant 0 : i32
    %2 = arith.cmpi ne, %1, %c0_i32_0 : i32
    scf.if %2 {
      %cst_9 = arith.constant 0.000000e+00 : f32
      %12 = vector.broadcast %cst_9 : f32 to vector<8x256xf32>
      %c0_10 = arith.constant 0 : index
      %c0_11 = arith.constant 0 : index
      %13 = vector.load %arg8[%c0_10, %c0_11] : memref<8x256xf32, #tpu.memory_space<vmem>>, vector<8x256xf32>
      tpu.vector_store %arg8[%c0_10, %c0_11], %12 {strides = array<i32>} : memref<8x256xf32, #tpu.memory_space<vmem>>, vector<8x256xf32>,
    } else {
    }
    %c0 = arith.constant 0 : index
    %c0_1 = arith.constant 0 : index
    %3 = vector.load %arg8[%c0, %c0_1] : memref<8x256xf32, #tpu.memory_space<vmem>>, vector<8x256xf32>
    %c0_2 = arith.constant 0 : index
    %c0_3 = arith.constant 0 : index
    %4 = vector.load %arg3[%c0_2, %c0_3] : memref<8x384xbf16, #tpu.memory_space<vmem>>, vector<8x384xbf16>
    %c0_4 = arith.constant 0 : index
    %c0_5 = arith.constant 0 : index
    %5 = vector.load %arg4[%c0_4, %c0_5] : memref<384x256xbf16, #tpu.memory_space<vmem>>, vector<384x256xbf16>
    %cst = arith.constant dense<0.000000e+00> : vector<8x256xf32>
    %6 = tpu.matmul %4, %5, %cst {dimension_numbers = #tpu.dot_dimension_numbers<[1], [0], [0], [1], [0, 0, 1, 1], [], []>} : vector<8x384xbf16>, vector<384x256xbf16>, vector<8x256xf32> -> vector<8x256xf32>
    %7 = arith.addf %3, %6 : vector<8x256xf32>
    %c0_6 = arith.constant 0 : index
    %c0_7 = arith.constant 0 : index
    %8 = vector.load %arg8[%c0_6, %c0_7] : memref<8x256xf32, #tpu.memory_space<vmem>>, vector<8x256xf32>
    tpu.vector_store %arg8[%c0_6, %c0_7], %7 {strides = array<i32>} : memref<8x256xf32, #tpu.memory_space<vmem>>, vector<8x256xf32>,
    %c5_i32 = arith.constant 5 : i32
    %9 = arith.cmpi eq, %arg2, %c5_i32 : i32
    %10 = arith.extui %9 : i1 to i32
    %c0_i32_8 = arith.constant 0 : i32
    %11 = arith.cmpi ne, %10, %c0_i32_8 : i32
    scf.if %11 {
      %c0_9 = arith.constant 0 : index
      %c0_10 = arith.constant 0 : index
      %12 = vector.load %arg8[%c0_9, %c0_10] : memref<8x256xf32, #tpu.memory_space<vmem>>, vector<8x256xf32>
      %c0_11 = arith.constant 0 : index
      %c0_12 = arith.constant 0 : index
      %13 = vector.load %arg5[%c0_11, %c0_12] : memref<1x256xf32, #tpu.memory_space<vmem>>, vector<1x256xf32>
      %14 = vector.broadcast %13 : vector<1x256xf32> to vector<8x256xf32>
      %15 = arith.addf %12, %14 : vector<8x256xf32>
      %c0_13 = arith.constant 0 : index
      %c0_14 = arith.constant 0 : index
      %16 = vector.load %arg6[%c0_13, %c0_14] : memref<8x256xbf16, #tpu.memory_space<vmem>>, vector<8x256xbf16>
      %17 = arith.extf %16 : vector<8x256xbf16> to vector<8x256xf32>
      %18 = arith.addf %15, %17 : vector<8x256xf32>
      %cst_15 = arith.constant 0.000000e+00 : f32
      %19 = vector.broadcast %cst_15 : f32 to vector<8x256xf32>
      %20 = arith.maximumf %18, %19 : vector<8x256xf32>
      %21 = arith.truncf %20 : vector<8x256xf32> to vector<8x256xbf16>
      %c0_16 = arith.constant 0 : index
      %c0_17 = arith.constant 0 : index
      %22 = vector.load %arg7[%c0_16, %c0_17] : memref<8x256xbf16, #tpu.memory_space<vmem>>, vector<8x256xbf16>
      tpu.vector_store %arg7[%c0_16, %c0_17], %21 {strides = array<i32>} : memref<8x256xbf16, #tpu.memory_space<vmem>>, vector<8x256xbf16>,
    } else {
    }
    return
  }
  func.func @transform_0(%arg0: i32, %arg1: i32, %arg2: i32) -> (i32, i32) {
    %c0_i32 = arith.constant 0 : i32
    return %arg0, %arg2 : i32, i32
  }
  func.func @transform_1(%arg0: i32, %arg1: i32, %arg2: i32) -> (i32, i32) {
    %c0_i32 = arith.constant 0 : i32
    return %arg2, %arg1 : i32, i32
  }
  func.func @transform_2(%arg0: i32, %arg1: i32, %arg2: i32) -> (i32, i32) {
    %c0_i32 = arith.constant 0 : i32
    %c0_i32_0 = arith.constant 0 : i32
    return %c0_i32, %arg1 : i32, i32
  }
  func.func @transform_3(%arg0: i32, %arg1: i32, %arg2: i32) -> (i32, i32) {
    %c0_i32 = arith.constant 0 : i32
    return %arg0, %arg1 : i32, i32
  }
  func.func @transform_4(%arg0: i32, %arg1: i32, %arg2: i32) -> (i32, i32) {
    %c0_i32 = arith.constant 0 : i32
    return %arg0, %arg1 : i32, i32
  }
}

module attributes {stable_mosaic.version = 11 : i64} {
  func.func @_matmul_kernel(%arg0: i32, %arg1: i32, %arg2: i32, %arg3: memref<2x384xbf16, #tpu.memory_space<vmem>>, %arg4: memref<384x512xbf16, #tpu.memory_space<vmem>>, %arg5: memref<1x512xf32, #tpu.memory_space<vmem>>, %arg6: memref<2x512xbf16, #tpu.memory_space<vmem>>, %arg7: memref<2x512xf32, #tpu.memory_space<vmem>>) attributes {dimension_semantics = [#tpu.dimension_semantics<parallel>, #tpu.dimension_semantics<parallel>, #tpu.dimension_semantics<arbitrary>], iteration_bounds = array<i64: 1, 1, 6>, scalar_prefetch = 0 : i64, scratch_operands = 1 : i64, tpu.core_type = #tpu.core_type<tc>, window_params = [{transform_indices = @transform_0, window_bounds = array<i64: 2, 384>}, {transform_indices = @transform_1, window_bounds = array<i64: 384, 512>}, {transform_indices = @transform_2, window_bounds = array<i64: 1, 512>}, {transform_indices = @transform_3, window_bounds = array<i64: 2, 512>}]} {
    %c0_i32 = arith.constant 0 : i32
    %0 = arith.cmpi eq, %arg2, %c0_i32 : i32
    %1 = arith.extui %0 : i1 to i32
    %c0_i32_0 = arith.constant 0 : i32
    %2 = arith.cmpi ne, %1, %c0_i32_0 : i32
    scf.if %2 {
      %cst_9 = arith.constant 0.000000e+00 : f32
      %12 = vector.broadcast %cst_9 : f32 to vector<2x512xf32>
      %c0_10 = arith.constant 0 : index
      %c0_11 = arith.constant 0 : index
      %13 = vector.load %arg7[%c0_10, %c0_11] : memref<2x512xf32, #tpu.memory_space<vmem>>, vector<2x512xf32>
      tpu.vector_store %arg7[%c0_10, %c0_11], %12 {strides = array<i32>} : memref<2x512xf32, #tpu.memory_space<vmem>>, vector<2x512xf32>,
    } else {
    }
    %c0 = arith.constant 0 : index
    %c0_1 = arith.constant 0 : index
    %3 = vector.load %arg7[%c0, %c0_1] : memref<2x512xf32, #tpu.memory_space<vmem>>, vector<2x512xf32>
    %c0_2 = arith.constant 0 : index
    %c0_3 = arith.constant 0 : index
    %4 = vector.load %arg3[%c0_2, %c0_3] : memref<2x384xbf16, #tpu.memory_space<vmem>>, vector<2x384xbf16>
    %c0_4 = arith.constant 0 : index
    %c0_5 = arith.constant 0 : index
    %5 = vector.load %arg4[%c0_4, %c0_5] : memref<384x512xbf16, #tpu.memory_space<vmem>>, vector<384x512xbf16>
    %cst = arith.constant dense<0.000000e+00> : vector<2x512xf32>
    %6 = tpu.matmul %4, %5, %cst {dimension_numbers = #tpu.dot_dimension_numbers<[1], [0], [0], [1], [0, 0, 1, 1], [], []>} : vector<2x384xbf16>, vector<384x512xbf16>, vector<2x512xf32> -> vector<2x512xf32>
    %7 = arith.addf %3, %6 : vector<2x512xf32>
    %c0_6 = arith.constant 0 : index
    %c0_7 = arith.constant 0 : index
    %8 = vector.load %arg7[%c0_6, %c0_7] : memref<2x512xf32, #tpu.memory_space<vmem>>, vector<2x512xf32>
    tpu.vector_store %arg7[%c0_6, %c0_7], %7 {strides = array<i32>} : memref<2x512xf32, #tpu.memory_space<vmem>>, vector<2x512xf32>,
    %c5_i32 = arith.constant 5 : i32
    %9 = arith.cmpi eq, %arg2, %c5_i32 : i32
    %10 = arith.extui %9 : i1 to i32
    %c0_i32_8 = arith.constant 0 : i32
    %11 = arith.cmpi ne, %10, %c0_i32_8 : i32
    scf.if %11 {
      %c0_9 = arith.constant 0 : index
      %c0_10 = arith.constant 0 : index
      %12 = vector.load %arg7[%c0_9, %c0_10] : memref<2x512xf32, #tpu.memory_space<vmem>>, vector<2x512xf32>
      %c0_11 = arith.constant 0 : index
      %c0_12 = arith.constant 0 : index
      %13 = vector.load %arg5[%c0_11, %c0_12] : memref<1x512xf32, #tpu.memory_space<vmem>>, vector<1x512xf32>
      %14 = vector.broadcast %13 : vector<1x512xf32> to vector<2x512xf32>
      %15 = arith.addf %12, %14 : vector<2x512xf32>
      %cst_13 = arith.constant 0.000000e+00 : f32
      %16 = vector.broadcast %cst_13 : f32 to vector<2x512xf32>
      %17 = arith.maximumf %15, %16 : vector<2x512xf32>
      %18 = arith.truncf %17 : vector<2x512xf32> to vector<2x512xbf16>
      %c0_14 = arith.constant 0 : index
      %c0_15 = arith.constant 0 : index
      %19 = vector.load %arg6[%c0_14, %c0_15] : memref<2x512xbf16, #tpu.memory_space<vmem>>, vector<2x512xbf16>
      tpu.vector_store %arg6[%c0_14, %c0_15], %18 {strides = array<i32>} : memref<2x512xbf16, #tpu.memory_space<vmem>>, vector<2x512xbf16>,
    } else {
    }
    return
  }
  func.func @transform_0(%arg0: i32, %arg1: i32, %arg2: i32) -> (i32, i32) {
    %c0_i32 = arith.constant 0 : i32
    return %arg0, %arg2 : i32, i32
  }
  func.func @transform_1(%arg0: i32, %arg1: i32, %arg2: i32) -> (i32, i32) {
    %c0_i32 = arith.constant 0 : i32
    return %arg2, %arg1 : i32, i32
  }
  func.func @transform_2(%arg0: i32, %arg1: i32, %arg2: i32) -> (i32, i32) {
    %c0_i32 = arith.constant 0 : i32
    %c0_i32_0 = arith.constant 0 : i32
    return %c0_i32, %arg1 : i32, i32
  }
  func.func @transform_3(%arg0: i32, %arg1: i32, %arg2: i32) -> (i32, i32) {
    %c0_i32 = arith.constant 0 : i32
    return %arg0, %arg1 : i32, i32
  }
}

module attributes {stable_mosaic.version = 11 : i64} {
  func.func @_matmul_kernel(%arg0: i32, %arg1: i32, %arg2: i32, %arg3: memref<2x256xbf16, #tpu.memory_space<vmem>>, %arg4: memref<256x512xbf16, #tpu.memory_space<vmem>>, %arg5: memref<1x512xf32, #tpu.memory_space<vmem>>, %arg6: memref<2x512xbf16, #tpu.memory_space<vmem>>, %arg7: memref<2x512xf32, #tpu.memory_space<vmem>>) attributes {dimension_semantics = [#tpu.dimension_semantics<parallel>, #tpu.dimension_semantics<parallel>, #tpu.dimension_semantics<arbitrary>], iteration_bounds = array<i64: 1, 1, 1>, scalar_prefetch = 0 : i64, scratch_operands = 1 : i64, tpu.core_type = #tpu.core_type<tc>, window_params = [{transform_indices = @transform_0, window_bounds = array<i64: 2, 256>}, {transform_indices = @transform_1, window_bounds = array<i64: 256, 512>}, {transform_indices = @transform_2, window_bounds = array<i64: 1, 512>}, {transform_indices = @transform_3, window_bounds = array<i64: 2, 512>}]} {
    %c0_i32 = arith.constant 0 : i32
    %0 = arith.cmpi eq, %arg2, %c0_i32 : i32
    %1 = arith.extui %0 : i1 to i32
    %c0_i32_0 = arith.constant 0 : i32
    %2 = arith.cmpi ne, %1, %c0_i32_0 : i32
    scf.if %2 {
      %cst_10 = arith.constant 0.000000e+00 : f32
      %12 = vector.broadcast %cst_10 : f32 to vector<2x512xf32>
      %c0_11 = arith.constant 0 : index
      %c0_12 = arith.constant 0 : index
      %13 = vector.load %arg7[%c0_11, %c0_12] : memref<2x512xf32, #tpu.memory_space<vmem>>, vector<2x512xf32>
      tpu.vector_store %arg7[%c0_11, %c0_12], %12 {strides = array<i32>} : memref<2x512xf32, #tpu.memory_space<vmem>>, vector<2x512xf32>,
    } else {
    }
    %c0 = arith.constant 0 : index
    %c0_1 = arith.constant 0 : index
    %3 = vector.load %arg7[%c0, %c0_1] : memref<2x512xf32, #tpu.memory_space<vmem>>, vector<2x512xf32>
    %c0_2 = arith.constant 0 : index
    %c0_3 = arith.constant 0 : index
    %4 = vector.load %arg3[%c0_2, %c0_3] : memref<2x256xbf16, #tpu.memory_space<vmem>>, vector<2x256xbf16>
    %c0_4 = arith.constant 0 : index
    %c0_5 = arith.constant 0 : index
    %5 = vector.load %arg4[%c0_4, %c0_5] : memref<256x512xbf16, #tpu.memory_space<vmem>>, vector<256x512xbf16>
    %cst = arith.constant dense<0.000000e+00> : vector<2x512xf32>
    %6 = tpu.matmul %4, %5, %cst {dimension_numbers = #tpu.dot_dimension_numbers<[1], [0], [0], [1], [0, 0, 1, 1], [], []>} : vector<2x256xbf16>, vector<256x512xbf16>, vector<2x512xf32> -> vector<2x512xf32>
    %7 = arith.addf %3, %6 : vector<2x512xf32>
    %c0_6 = arith.constant 0 : index
    %c0_7 = arith.constant 0 : index
    %8 = vector.load %arg7[%c0_6, %c0_7] : memref<2x512xf32, #tpu.memory_space<vmem>>, vector<2x512xf32>
    tpu.vector_store %arg7[%c0_6, %c0_7], %7 {strides = array<i32>} : memref<2x512xf32, #tpu.memory_space<vmem>>, vector<2x512xf32>,
    %c0_i32_8 = arith.constant 0 : i32
    %9 = arith.cmpi eq, %arg2, %c0_i32_8 : i32
    %10 = arith.extui %9 : i1 to i32
    %c0_i32_9 = arith.constant 0 : i32
    %11 = arith.cmpi ne, %10, %c0_i32_9 : i32
    scf.if %11 {
      %c0_10 = arith.constant 0 : index
      %c0_11 = arith.constant 0 : index
      %12 = vector.load %arg7[%c0_10, %c0_11] : memref<2x512xf32, #tpu.memory_space<vmem>>, vector<2x512xf32>
      %c0_12 = arith.constant 0 : index
      %c0_13 = arith.constant 0 : index
      %13 = vector.load %arg5[%c0_12, %c0_13] : memref<1x512xf32, #tpu.memory_space<vmem>>, vector<1x512xf32>
      %14 = vector.broadcast %13 : vector<1x512xf32> to vector<2x512xf32>
      %15 = arith.addf %12, %14 : vector<2x512xf32>
      %16 = arith.truncf %15 : vector<2x512xf32> to vector<2x512xbf16>
      %c0_14 = arith.constant 0 : index
      %c0_15 = arith.constant 0 : index
      %17 = vector.load %arg6[%c0_14, %c0_15] : memref<2x512xbf16, #tpu.memory_space<vmem>>, vector<2x512xbf16>
      tpu.vector_store %arg6[%c0_14, %c0_15], %16 {strides = array<i32>} : memref<2x512xbf16, #tpu.memory_space<vmem>>, vector<2x512xbf16>,
    } else {
    }
    return
  }
  func.func @transform_0(%arg0: i32, %arg1: i32, %arg2: i32) -> (i32, i32) {
    %c0_i32 = arith.constant 0 : i32
    return %arg0, %arg2 : i32, i32
  }
  func.func @transform_1(%arg0: i32, %arg1: i32, %arg2: i32) -> (i32, i32) {
    %c0_i32 = arith.constant 0 : i32
    return %arg2, %arg1 : i32, i32
  }
  func.func @transform_2(%arg0: i32, %arg1: i32, %arg2: i32) -> (i32, i32) {
    %c0_i32 = arith.constant 0 : i32
    %c0_i32_0 = arith.constant 0 : i32
    return %c0_i32, %arg1 : i32, i32
  }
  func.func @transform_3(%arg0: i32, %arg1: i32, %arg2: i32) -> (i32, i32) {
    %c0_i32 = arith.constant 0 : i32
    return %arg0, %arg1 : i32, i32
  }
}

module attributes {stable_mosaic.version = 11 : i64} {
  func.func @_matmul_kernel(%arg0: i32, %arg1: i32, %arg2: i32, %arg3: memref<2x512xbf16, #tpu.memory_space<vmem>>, %arg4: memref<512x512xbf16, #tpu.memory_space<vmem>>, %arg5: memref<1x512xf32, #tpu.memory_space<vmem>>, %arg6: memref<2x512xbf16, #tpu.memory_space<vmem>>, %arg7: memref<2x512xf32, #tpu.memory_space<vmem>>) attributes {dimension_semantics = [#tpu.dimension_semantics<parallel>, #tpu.dimension_semantics<parallel>, #tpu.dimension_semantics<arbitrary>], iteration_bounds = array<i64: 1, 1, 9>, scalar_prefetch = 0 : i64, scratch_operands = 1 : i64, tpu.core_type = #tpu.core_type<tc>, window_params = [{transform_indices = @transform_0, window_bounds = array<i64: 2, 512>}, {transform_indices = @transform_1, window_bounds = array<i64: 512, 512>}, {transform_indices = @transform_2, window_bounds = array<i64: 1, 512>}, {transform_indices = @transform_3, window_bounds = array<i64: 2, 512>}]} {
    %c0_i32 = arith.constant 0 : i32
    %0 = arith.cmpi eq, %arg2, %c0_i32 : i32
    %1 = arith.extui %0 : i1 to i32
    %c0_i32_0 = arith.constant 0 : i32
    %2 = arith.cmpi ne, %1, %c0_i32_0 : i32
    scf.if %2 {
      %cst_9 = arith.constant 0.000000e+00 : f32
      %12 = vector.broadcast %cst_9 : f32 to vector<2x512xf32>
      %c0_10 = arith.constant 0 : index
      %c0_11 = arith.constant 0 : index
      %13 = vector.load %arg7[%c0_10, %c0_11] : memref<2x512xf32, #tpu.memory_space<vmem>>, vector<2x512xf32>
      tpu.vector_store %arg7[%c0_10, %c0_11], %12 {strides = array<i32>} : memref<2x512xf32, #tpu.memory_space<vmem>>, vector<2x512xf32>,
    } else {
    }
    %c0 = arith.constant 0 : index
    %c0_1 = arith.constant 0 : index
    %3 = vector.load %arg7[%c0, %c0_1] : memref<2x512xf32, #tpu.memory_space<vmem>>, vector<2x512xf32>
    %c0_2 = arith.constant 0 : index
    %c0_3 = arith.constant 0 : index
    %4 = vector.load %arg3[%c0_2, %c0_3] : memref<2x512xbf16, #tpu.memory_space<vmem>>, vector<2x512xbf16>
    %c0_4 = arith.constant 0 : index
    %c0_5 = arith.constant 0 : index
    %5 = vector.load %arg4[%c0_4, %c0_5] : memref<512x512xbf16, #tpu.memory_space<vmem>>, vector<512x512xbf16>
    %cst = arith.constant dense<0.000000e+00> : vector<2x512xf32>
    %6 = tpu.matmul %4, %5, %cst {dimension_numbers = #tpu.dot_dimension_numbers<[1], [0], [0], [1], [0, 0, 1, 1], [], []>} : vector<2x512xbf16>, vector<512x512xbf16>, vector<2x512xf32> -> vector<2x512xf32>
    %7 = arith.addf %3, %6 : vector<2x512xf32>
    %c0_6 = arith.constant 0 : index
    %c0_7 = arith.constant 0 : index
    %8 = vector.load %arg7[%c0_6, %c0_7] : memref<2x512xf32, #tpu.memory_space<vmem>>, vector<2x512xf32>
    tpu.vector_store %arg7[%c0_6, %c0_7], %7 {strides = array<i32>} : memref<2x512xf32, #tpu.memory_space<vmem>>, vector<2x512xf32>,
    %c8_i32 = arith.constant 8 : i32
    %9 = arith.cmpi eq, %arg2, %c8_i32 : i32
    %10 = arith.extui %9 : i1 to i32
    %c0_i32_8 = arith.constant 0 : i32
    %11 = arith.cmpi ne, %10, %c0_i32_8 : i32
    scf.if %11 {
      %c0_9 = arith.constant 0 : index
      %c0_10 = arith.constant 0 : index
      %12 = vector.load %arg7[%c0_9, %c0_10] : memref<2x512xf32, #tpu.memory_space<vmem>>, vector<2x512xf32>
      %c0_11 = arith.constant 0 : index
      %c0_12 = arith.constant 0 : index
      %13 = vector.load %arg5[%c0_11, %c0_12] : memref<1x512xf32, #tpu.memory_space<vmem>>, vector<1x512xf32>
      %14 = vector.broadcast %13 : vector<1x512xf32> to vector<2x512xf32>
      %15 = arith.addf %12, %14 : vector<2x512xf32>
      %cst_13 = arith.constant 0.000000e+00 : f32
      %16 = vector.broadcast %cst_13 : f32 to vector<2x512xf32>
      %17 = arith.maximumf %15, %16 : vector<2x512xf32>
      %18 = arith.truncf %17 : vector<2x512xf32> to vector<2x512xbf16>
      %c0_14 = arith.constant 0 : index
      %c0_15 = arith.constant 0 : index
      %19 = vector.load %arg6[%c0_14, %c0_15] : memref<2x512xbf16, #tpu.memory_space<vmem>>, vector<2x512xbf16>
      tpu.vector_store %arg6[%c0_14, %c0_15], %18 {strides = array<i32>} : memref<2x512xbf16, #tpu.memory_space<vmem>>, vector<2x512xbf16>,
    } else {
    }
    return
  }
  func.func @transform_0(%arg0: i32, %arg1: i32, %arg2: i32) -> (i32, i32) {
    %c0_i32 = arith.constant 0 : i32
    return %arg0, %arg2 : i32, i32
  }
  func.func @transform_1(%arg0: i32, %arg1: i32, %arg2: i32) -> (i32, i32) {
    %c0_i32 = arith.constant 0 : i32
    return %arg2, %arg1 : i32, i32
  }
  func.func @transform_2(%arg0: i32, %arg1: i32, %arg2: i32) -> (i32, i32) {
    %c0_i32 = arith.constant 0 : i32
    %c0_i32_0 = arith.constant 0 : i32
    return %c0_i32, %arg1 : i32, i32
  }
  func.func @transform_3(%arg0: i32, %arg1: i32, %arg2: i32) -> (i32, i32) {
    %c0_i32 = arith.constant 0 : i32
    return %arg0, %arg1 : i32, i32
  }
}

module attributes {stable_mosaic.version = 11 : i64} {
  func.func @_matmul_kernel(%arg0: i32, %arg1: i32, %arg2: i32, %arg3: memref<2x512xbf16, #tpu.memory_space<vmem>>, %arg4: memref<512x512xbf16, #tpu.memory_space<vmem>>, %arg5: memref<1x512xf32, #tpu.memory_space<vmem>>, %arg6: memref<2x512xbf16, #tpu.memory_space<vmem>>, %arg7: memref<2x512xbf16, #tpu.memory_space<vmem>>, %arg8: memref<2x512xf32, #tpu.memory_space<vmem>>) attributes {dimension_semantics = [#tpu.dimension_semantics<parallel>, #tpu.dimension_semantics<parallel>, #tpu.dimension_semantics<arbitrary>], iteration_bounds = array<i64: 1, 1, 9>, scalar_prefetch = 0 : i64, scratch_operands = 1 : i64, tpu.core_type = #tpu.core_type<tc>, window_params = [{transform_indices = @transform_0, window_bounds = array<i64: 2, 512>}, {transform_indices = @transform_1, window_bounds = array<i64: 512, 512>}, {transform_indices = @transform_2, window_bounds = array<i64: 1, 512>}, {transform_indices = @transform_3, window_bounds = array<i64: 2, 512>}, {transform_indices = @transform_4, window_bounds = array<i64: 2, 512>}]} {
    %c0_i32 = arith.constant 0 : i32
    %0 = arith.cmpi eq, %arg2, %c0_i32 : i32
    %1 = arith.extui %0 : i1 to i32
    %c0_i32_0 = arith.constant 0 : i32
    %2 = arith.cmpi ne, %1, %c0_i32_0 : i32
    scf.if %2 {
      %cst_9 = arith.constant 0.000000e+00 : f32
      %12 = vector.broadcast %cst_9 : f32 to vector<2x512xf32>
      %c0_10 = arith.constant 0 : index
      %c0_11 = arith.constant 0 : index
      %13 = vector.load %arg8[%c0_10, %c0_11] : memref<2x512xf32, #tpu.memory_space<vmem>>, vector<2x512xf32>
      tpu.vector_store %arg8[%c0_10, %c0_11], %12 {strides = array<i32>} : memref<2x512xf32, #tpu.memory_space<vmem>>, vector<2x512xf32>,
    } else {
    }
    %c0 = arith.constant 0 : index
    %c0_1 = arith.constant 0 : index
    %3 = vector.load %arg8[%c0, %c0_1] : memref<2x512xf32, #tpu.memory_space<vmem>>, vector<2x512xf32>
    %c0_2 = arith.constant 0 : index
    %c0_3 = arith.constant 0 : index
    %4 = vector.load %arg3[%c0_2, %c0_3] : memref<2x512xbf16, #tpu.memory_space<vmem>>, vector<2x512xbf16>
    %c0_4 = arith.constant 0 : index
    %c0_5 = arith.constant 0 : index
    %5 = vector.load %arg4[%c0_4, %c0_5] : memref<512x512xbf16, #tpu.memory_space<vmem>>, vector<512x512xbf16>
    %cst = arith.constant dense<0.000000e+00> : vector<2x512xf32>
    %6 = tpu.matmul %4, %5, %cst {dimension_numbers = #tpu.dot_dimension_numbers<[1], [0], [0], [1], [0, 0, 1, 1], [], []>} : vector<2x512xbf16>, vector<512x512xbf16>, vector<2x512xf32> -> vector<2x512xf32>
    %7 = arith.addf %3, %6 : vector<2x512xf32>
    %c0_6 = arith.constant 0 : index
    %c0_7 = arith.constant 0 : index
    %8 = vector.load %arg8[%c0_6, %c0_7] : memref<2x512xf32, #tpu.memory_space<vmem>>, vector<2x512xf32>
    tpu.vector_store %arg8[%c0_6, %c0_7], %7 {strides = array<i32>} : memref<2x512xf32, #tpu.memory_space<vmem>>, vector<2x512xf32>,
    %c8_i32 = arith.constant 8 : i32
    %9 = arith.cmpi eq, %arg2, %c8_i32 : i32
    %10 = arith.extui %9 : i1 to i32
    %c0_i32_8 = arith.constant 0 : i32
    %11 = arith.cmpi ne, %10, %c0_i32_8 : i32
    scf.if %11 {
      %c0_9 = arith.constant 0 : index
      %c0_10 = arith.constant 0 : index
      %12 = vector.load %arg8[%c0_9, %c0_10] : memref<2x512xf32, #tpu.memory_space<vmem>>, vector<2x512xf32>
      %c0_11 = arith.constant 0 : index
      %c0_12 = arith.constant 0 : index
      %13 = vector.load %arg5[%c0_11, %c0_12] : memref<1x512xf32, #tpu.memory_space<vmem>>, vector<1x512xf32>
      %14 = vector.broadcast %13 : vector<1x512xf32> to vector<2x512xf32>
      %15 = arith.addf %12, %14 : vector<2x512xf32>
      %c0_13 = arith.constant 0 : index
      %c0_14 = arith.constant 0 : index
      %16 = vector.load %arg6[%c0_13, %c0_14] : memref<2x512xbf16, #tpu.memory_space<vmem>>, vector<2x512xbf16>
      %17 = arith.extf %16 : vector<2x512xbf16> to vector<2x512xf32>
      %18 = arith.addf %15, %17 : vector<2x512xf32>
      %cst_15 = arith.constant 0.000000e+00 : f32
      %19 = vector.broadcast %cst_15 : f32 to vector<2x512xf32>
      %20 = arith.maximumf %18, %19 : vector<2x512xf32>
      %21 = arith.truncf %20 : vector<2x512xf32> to vector<2x512xbf16>
      %c0_16 = arith.constant 0 : index
      %c0_17 = arith.constant 0 : index
      %22 = vector.load %arg7[%c0_16, %c0_17] : memref<2x512xbf16, #tpu.memory_space<vmem>>, vector<2x512xbf16>
      tpu.vector_store %arg7[%c0_16, %c0_17], %21 {strides = array<i32>} : memref<2x512xbf16, #tpu.memory_space<vmem>>, vector<2x512xbf16>,
    } else {
    }
    return
  }
  func.func @transform_0(%arg0: i32, %arg1: i32, %arg2: i32) -> (i32, i32) {
    %c0_i32 = arith.constant 0 : i32
    return %arg0, %arg2 : i32, i32
  }
  func.func @transform_1(%arg0: i32, %arg1: i32, %arg2: i32) -> (i32, i32) {
    %c0_i32 = arith.constant 0 : i32
    return %arg2, %arg1 : i32, i32
  }
  func.func @transform_2(%arg0: i32, %arg1: i32, %arg2: i32) -> (i32, i32) {
    %c0_i32 = arith.constant 0 : i32
    %c0_i32_0 = arith.constant 0 : i32
    return %c0_i32, %arg1 : i32, i32
  }
  func.func @transform_3(%arg0: i32, %arg1: i32, %arg2: i32) -> (i32, i32) {
    %c0_i32 = arith.constant 0 : i32
    return %arg0, %arg1 : i32, i32
  }
  func.func @transform_4(%arg0: i32, %arg1: i32, %arg2: i32) -> (i32, i32) {
    %c0_i32 = arith.constant 0 : i32
    return %arg0, %arg1 : i32, i32
  }
}

module attributes {stable_mosaic.version = 11 : i64} {
  func.func @_avgpool_kernel(%arg0: i32, %arg1: memref<2x1x512xbf16, #tpu.memory_space<vmem>>, %arg2: memref<2x512xf32, #tpu.memory_space<vmem>>) attributes {dimension_semantics = [#tpu.dimension_semantics<arbitrary>], iteration_bounds = array<i64: 1>, scalar_prefetch = 0 : i64, scratch_operands = 0 : i64, tpu.core_type = #tpu.core_type<tc>, window_params = [{transform_indices = @transform_0, window_bounds = array<i64: 2, 1, 512>}, {pipeline_mode = #tpu.pipeline_mode<synchronous>, transform_indices = @transform_1, window_bounds = array<i64: 2, 512>}]} {
    %c0_i32 = arith.constant 0 : i32
    %0 = arith.cmpi eq, %arg0, %c0_i32 : i32
    %1 = arith.extui %0 : i1 to i32
    %c0_i32_0 = arith.constant 0 : i32
    %2 = arith.cmpi ne, %1, %c0_i32_0 : i32
    scf.if %2 {
      %cst_9 = arith.constant 0.000000e+00 : f32
      %12 = vector.broadcast %cst_9 : f32 to vector<2x512xf32>
      %c0_10 = arith.constant 0 : index
      %c0_11 = arith.constant 0 : index
      %13 = vector.load %arg2[%c0_10, %c0_11] : memref<2x512xf32, #tpu.memory_space<vmem>>, vector<2x512xf32>
      tpu.vector_store %arg2[%c0_10, %c0_11], %12 {strides = array<i32>} : memref<2x512xf32, #tpu.memory_space<vmem>>, vector<2x512xf32>,
    } else {
    }
    %c0 = arith.constant 0 : index
    %c0_1 = arith.constant 0 : index
    %3 = vector.load %arg2[%c0, %c0_1] : memref<2x512xf32, #tpu.memory_space<vmem>>, vector<2x512xf32>
    %c0_2 = arith.constant 0 : index
    %c0_3 = arith.constant 0 : index
    %c0_4 = arith.constant 0 : index
    %4 = vector.load %arg1[%c0_2, %c0_3, %c0_4] : memref<2x1x512xbf16, #tpu.memory_space<vmem>>, vector<2x1x512xbf16>
    %5 = arith.extf %4 : vector<2x1x512xbf16> to vector<2x1x512xf32>
    %cst = arith.constant dense<0.000000e+00> : vector<2x512xf32>
    %6 = vector.multi_reduction <add>, %5, %cst [1] : vector<2x1x512xf32> to vector<2x512xf32>
    %7 = arith.addf %3, %6 : vector<2x512xf32>
    %c0_5 = arith.constant 0 : index
    %c0_6 = arith.constant 0 : index
    %8 = vector.load %arg2[%c0_5, %c0_6] : memref<2x512xf32, #tpu.memory_space<vmem>>, vector<2x512xf32>
    tpu.vector_store %arg2[%c0_5, %c0_6], %7 {strides = array<i32>} : memref<2x512xf32, #tpu.memory_space<vmem>>, vector<2x512xf32>,
    %c0_i32_7 = arith.constant 0 : i32
    %9 = arith.cmpi eq, %arg0, %c0_i32_7 : i32
    %10 = arith.extui %9 : i1 to i32
    %c0_i32_8 = arith.constant 0 : i32
    %11 = arith.cmpi ne, %10, %c0_i32_8 : i32
    scf.if %11 {
      %c0_9 = arith.constant 0 : index
      %c0_10 = arith.constant 0 : index
      %12 = vector.load %arg2[%c0_9, %c0_10] : memref<2x512xf32, #tpu.memory_space<vmem>>, vector<2x512xf32>
      %cst_11 = arith.constant 1.000000e+00 : f32
      %13 = vector.broadcast %cst_11 : f32 to vector<2x512xf32>
      %14 = arith.mulf %12, %13 : vector<2x512xf32>
      %c0_12 = arith.constant 0 : index
      %c0_13 = arith.constant 0 : index
      %15 = vector.load %arg2[%c0_12, %c0_13] : memref<2x512xf32, #tpu.memory_space<vmem>>, vector<2x512xf32>
      tpu.vector_store %arg2[%c0_12, %c0_13], %14 {strides = array<i32>} : memref<2x512xf32, #tpu.memory_space<vmem>>, vector<2x512xf32>,
    } else {
    }
    return
  }
  func.func @transform_0(%arg0: i32) -> (i32, i32, i32) {
    %c0_i32 = arith.constant 0 : i32
    %c0_i32_0 = arith.constant 0 : i32
    %c0_i32_1 = arith.constant 0 : i32
    return %c0_i32, %arg0, %c0_i32_0 : i32, i32, i32
  }
  func.func @transform_1(%arg0: i32) -> (i32, i32) {
    %c0_i32 = arith.constant 0 : i32
    %c0_i32_0 = arith.constant 0 : i32
    %c0_i32_1 = arith.constant 0 : i32
    return %c0_i32, %c0_i32_0 : i32, i32
  }
}

module attributes {stable_mosaic.version = 11 : i64} {
  func.func @_matmul_kernel(%arg0: i32, %arg1: i32, %arg2: i32, %arg3: memref<2x512xbf16, #tpu.memory_space<vmem>>, %arg4: memref<512x512xbf16, #tpu.memory_space<vmem>>, %arg5: memref<1x512xf32, #tpu.memory_space<vmem>>, %arg6: memref<2x512xbf16, #tpu.memory_space<vmem>>, %arg7: memref<2x512xf32, #tpu.memory_space<vmem>>) attributes {dimension_semantics = [#tpu.dimension_semantics<parallel>, #tpu.dimension_semantics<parallel>, #tpu.dimension_semantics<arbitrary>], iteration_bounds = array<i64: 1, 1, 1>, scalar_prefetch = 0 : i64, scratch_operands = 1 : i64, tpu.core_type = #tpu.core_type<tc>, window_params = [{transform_indices = @transform_0, window_bounds = array<i64: 2, 512>}, {transform_indices = @transform_1, window_bounds = array<i64: 512, 512>}, {transform_indices = @transform_2, window_bounds = array<i64: 1, 512>}, {transform_indices = @transform_3, window_bounds = array<i64: 2, 512>}]} {
    %c0_i32 = arith.constant 0 : i32
    %0 = arith.cmpi eq, %arg2, %c0_i32 : i32
    %1 = arith.extui %0 : i1 to i32
    %c0_i32_0 = arith.constant 0 : i32
    %2 = arith.cmpi ne, %1, %c0_i32_0 : i32
    scf.if %2 {
      %cst_10 = arith.constant 0.000000e+00 : f32
      %12 = vector.broadcast %cst_10 : f32 to vector<2x512xf32>
      %c0_11 = arith.constant 0 : index
      %c0_12 = arith.constant 0 : index
      %13 = vector.load %arg7[%c0_11, %c0_12] : memref<2x512xf32, #tpu.memory_space<vmem>>, vector<2x512xf32>
      tpu.vector_store %arg7[%c0_11, %c0_12], %12 {strides = array<i32>} : memref<2x512xf32, #tpu.memory_space<vmem>>, vector<2x512xf32>,
    } else {
    }
    %c0 = arith.constant 0 : index
    %c0_1 = arith.constant 0 : index
    %3 = vector.load %arg7[%c0, %c0_1] : memref<2x512xf32, #tpu.memory_space<vmem>>, vector<2x512xf32>
    %c0_2 = arith.constant 0 : index
    %c0_3 = arith.constant 0 : index
    %4 = vector.load %arg3[%c0_2, %c0_3] : memref<2x512xbf16, #tpu.memory_space<vmem>>, vector<2x512xbf16>
    %c0_4 = arith.constant 0 : index
    %c0_5 = arith.constant 0 : index
    %5 = vector.load %arg4[%c0_4, %c0_5] : memref<512x512xbf16, #tpu.memory_space<vmem>>, vector<512x512xbf16>
    %cst = arith.constant dense<0.000000e+00> : vector<2x512xf32>
    %6 = tpu.matmul %4, %5, %cst {dimension_numbers = #tpu.dot_dimension_numbers<[1], [0], [0], [1], [0, 0, 1, 1], [], []>} : vector<2x512xbf16>, vector<512x512xbf16>, vector<2x512xf32> -> vector<2x512xf32>
    %7 = arith.addf %3, %6 : vector<2x512xf32>
    %c0_6 = arith.constant 0 : index
    %c0_7 = arith.constant 0 : index
    %8 = vector.load %arg7[%c0_6, %c0_7] : memref<2x512xf32, #tpu.memory_space<vmem>>, vector<2x512xf32>
    tpu.vector_store %arg7[%c0_6, %c0_7], %7 {strides = array<i32>} : memref<2x512xf32, #tpu.memory_space<vmem>>, vector<2x512xf32>,
    %c0_i32_8 = arith.constant 0 : i32
    %9 = arith.cmpi eq, %arg2, %c0_i32_8 : i32
    %10 = arith.extui %9 : i1 to i32
    %c0_i32_9 = arith.constant 0 : i32
    %11 = arith.cmpi ne, %10, %c0_i32_9 : i32
    scf.if %11 {
      %c0_10 = arith.constant 0 : index
      %c0_11 = arith.constant 0 : index
      %12 = vector.load %arg7[%c0_10, %c0_11] : memref<2x512xf32, #tpu.memory_space<vmem>>, vector<2x512xf32>
      %c0_12 = arith.constant 0 : index
      %c0_13 = arith.constant 0 : index
      %13 = vector.load %arg5[%c0_12, %c0_13] : memref<1x512xf32, #tpu.memory_space<vmem>>, vector<1x512xf32>
      %14 = vector.broadcast %13 : vector<1x512xf32> to vector<2x512xf32>
      %15 = arith.addf %12, %14 : vector<2x512xf32>
      %cst_14 = arith.constant 0.000000e+00 : f32
      %16 = vector.broadcast %cst_14 : f32 to vector<2x512xf32>
      %17 = arith.maximumf %15, %16 : vector<2x512xf32>
      %18 = arith.truncf %17 : vector<2x512xf32> to vector<2x512xbf16>
      %c0_15 = arith.constant 0 : index
      %c0_16 = arith.constant 0 : index
      %19 = vector.load %arg6[%c0_15, %c0_16] : memref<2x512xbf16, #tpu.memory_space<vmem>>, vector<2x512xbf16>
      tpu.vector_store %arg6[%c0_15, %c0_16], %18 {strides = array<i32>} : memref<2x512xbf16, #tpu.memory_space<vmem>>, vector<2x512xbf16>,
    } else {
    }
    return
  }
  func.func @transform_0(%arg0: i32, %arg1: i32, %arg2: i32) -> (i32, i32) {
    %c0_i32 = arith.constant 0 : i32
    return %arg0, %arg2 : i32, i32
  }
  func.func @transform_1(%arg0: i32, %arg1: i32, %arg2: i32) -> (i32, i32) {
    %c0_i32 = arith.constant 0 : i32
    return %arg2, %arg1 : i32, i32
  }
  func.func @transform_2(%arg0: i32, %arg1: i32, %arg2: i32) -> (i32, i32) {
    %c0_i32 = arith.constant 0 : i32
    %c0_i32_0 = arith.constant 0 : i32
    return %c0_i32, %arg1 : i32, i32
  }
  func.func @transform_3(%arg0: i32, %arg1: i32, %arg2: i32) -> (i32, i32) {
    %c0_i32 = arith.constant 0 : i32
    return %arg0, %arg1 : i32, i32
  }
}

module attributes {stable_mosaic.version = 11 : i64} {
  func.func @_matmul_kernel(%arg0: i32, %arg1: i32, %arg2: i32, %arg3: memref<2x512xbf16, #tpu.memory_space<vmem>>, %arg4: memref<512x1xbf16, #tpu.memory_space<vmem>>, %arg5: memref<1x1xf32, #tpu.memory_space<vmem>>, %arg6: memref<2x1xf32, #tpu.memory_space<vmem>>, %arg7: memref<2x1xf32, #tpu.memory_space<vmem>>) attributes {dimension_semantics = [#tpu.dimension_semantics<parallel>, #tpu.dimension_semantics<parallel>, #tpu.dimension_semantics<arbitrary>], iteration_bounds = array<i64: 1, 1, 1>, scalar_prefetch = 0 : i64, scratch_operands = 1 : i64, tpu.core_type = #tpu.core_type<tc>, window_params = [{transform_indices = @transform_0, window_bounds = array<i64: 2, 512>}, {transform_indices = @transform_1, window_bounds = array<i64: 512, 1>}, {transform_indices = @transform_2, window_bounds = array<i64: 1, 1>}, {transform_indices = @transform_3, window_bounds = array<i64: 2, 1>}]} {
    %c0_i32 = arith.constant 0 : i32
    %0 = arith.cmpi eq, %arg2, %c0_i32 : i32
    %1 = arith.extui %0 : i1 to i32
    %c0_i32_0 = arith.constant 0 : i32
    %2 = arith.cmpi ne, %1, %c0_i32_0 : i32
    scf.if %2 {
      %cst_10 = arith.constant 0.000000e+00 : f32
      %12 = vector.broadcast %cst_10 : f32 to vector<2x1xf32>
      %c0_11 = arith.constant 0 : index
      %c0_12 = arith.constant 0 : index
      %13 = vector.load %arg7[%c0_11, %c0_12] : memref<2x1xf32, #tpu.memory_space<vmem>>, vector<2x1xf32>
      tpu.vector_store %arg7[%c0_11, %c0_12], %12 {strides = array<i32>} : memref<2x1xf32, #tpu.memory_space<vmem>>, vector<2x1xf32>,
    } else {
    }
    %c0 = arith.constant 0 : index
    %c0_1 = arith.constant 0 : index
    %3 = vector.load %arg7[%c0, %c0_1] : memref<2x1xf32, #tpu.memory_space<vmem>>, vector<2x1xf32>
    %c0_2 = arith.constant 0 : index
    %c0_3 = arith.constant 0 : index
    %4 = vector.load %arg3[%c0_2, %c0_3] : memref<2x512xbf16, #tpu.memory_space<vmem>>, vector<2x512xbf16>
    %c0_4 = arith.constant 0 : index
    %c0_5 = arith.constant 0 : index
    %5 = vector.load %arg4[%c0_4, %c0_5] : memref<512x1xbf16, #tpu.memory_space<vmem>>, vector<512x1xbf16>
    %cst = arith.constant dense<0.000000e+00> : vector<2x1xf32>
    %6 = tpu.matmul %4, %5, %cst {dimension_numbers = #tpu.dot_dimension_numbers<[1], [0], [0], [1], [0, 0, 1, 1], [], []>} : vector<2x512xbf16>, vector<512x1xbf16>, vector<2x1xf32> -> vector<2x1xf32>
    %7 = arith.addf %3, %6 : vector<2x1xf32>
    %c0_6 = arith.constant 0 : index
    %c0_7 = arith.constant 0 : index
    %8 = vector.load %arg7[%c0_6, %c0_7] : memref<2x1xf32, #tpu.memory_space<vmem>>, vector<2x1xf32>
    tpu.vector_store %arg7[%c0_6, %c0_7], %7 {strides = array<i32>} : memref<2x1xf32, #tpu.memory_space<vmem>>, vector<2x1xf32>,
    %c0_i32_8 = arith.constant 0 : i32
    %9 = arith.cmpi eq, %arg2, %c0_i32_8 : i32
    %10 = arith.extui %9 : i1 to i32
    %c0_i32_9 = arith.constant 0 : i32
    %11 = arith.cmpi ne, %10, %c0_i32_9 : i32
    scf.if %11 {
      %c0_10 = arith.constant 0 : index
      %c0_11 = arith.constant 0 : index
      %12 = vector.load %arg7[%c0_10, %c0_11] : memref<2x1xf32, #tpu.memory_space<vmem>>, vector<2x1xf32>
      %c0_12 = arith.constant 0 : index
      %c0_13 = arith.constant 0 : index
      %13 = vector.load %arg5[%c0_12, %c0_13] : memref<1x1xf32, #tpu.memory_space<vmem>>, vector<1x1xf32>
      %14 = vector.broadcast %13 : vector<1x1xf32> to vector<2x1xf32>
      %15 = arith.addf %12, %14 : vector<2x1xf32>
      %c0_14 = arith.constant 0 : index
      %c0_15 = arith.constant 0 : index
      %16 = vector.load %arg6[%c0_14, %c0_15] : memref<2x1xf32, #tpu.memory_space<vmem>>, vector<2x1xf32>
      tpu.vector_store %arg6[%c0_14, %c0_15], %15 {strides = array<i32>} : memref<2x1xf32, #tpu.memory_space<vmem>>, vector<2x1xf32>,
    } else {
    }
    return
  }
  func.func @transform_0(%arg0: i32, %arg1: i32, %arg2: i32) -> (i32, i32) {
    %c0_i32 = arith.constant 0 : i32
    return %arg0, %arg2 : i32, i32
  }
  func.func @transform_1(%arg0: i32, %arg1: i32, %arg2: i32) -> (i32, i32) {
    %c0_i32 = arith.constant 0 : i32
    return %arg2, %arg1 : i32, i32
  }
  func.func @transform_2(%arg0: i32, %arg1: i32, %arg2: i32) -> (i32, i32) {
    %c0_i32 = arith.constant 0 : i32
    %c0_i32_0 = arith.constant 0 : i32
    return %c0_i32, %arg1 : i32, i32
  }
  func.func @transform_3(%arg0: i32, %arg1: i32, %arg2: i32) -> (i32, i32) {
    %c0_i32 = arith.constant 0 : i32
    return %arg0, %arg1 : i32, i32
  }
}

</mosaic_0001>

<bundles_post_ra>
// kernel: cancer_classifier_forward.25
= control target key start
LH: loop header
LB: loop body
LE: loop exit
PB: predicated region body
PF: predicated region fallthrough
CT: control target
= control target key end

     0   :  { %s375_s6 = smov 0   ;;  %s377_s7 = smov 0   ;;  %s631_s0 = inlined_call_operand.vmem [shape: bf16[9,128,64], index: 0, kind: input, shape index: {}]   ;;  %s632_s1 = inlined_call_operand.vmem [shape: bf16[128,64], index: 1, kind: output, shape index: {}]  }
   0x1   :  { %s379_s8 = smov 0  }
   0x2 LB: > { %s20_s9 = sadd.s32 1, %s359_s7  ;;  %p307_p0 = scmp.ge.s32.totalorder %s363_s8, 1  ;;  %s363_s8 = sphi %s379_s8, %s11_s8   ;;  %s359_s7 = sphi %s377_s7, %s634_s7   ;;  %s355_s6 = sphi %s375_s6, %s633_s6  }
   0x3   : > { %p21_p1 = scmp.ge.s32.totalorder %s20_s9, 9  ;;  %p106_p2 = scmp.lt.s32.totalorder %s363_s8, 10 }
   0x5   : > { %s636_s9 = smov (%p21_p1, %s20_s9), 0  ;;  %p107_p3 = pnand %p307_p0, %p106_p2 }
   0x6   : > { %p131_p4 = scmp.lt.s32.totalorder (!%p107_p3), %s355_s6, 8  ;;  %p310_p5 = scmp.ne.s32.totalorder (!%p107_p3), %s355_s6, 0 }
   0x7   : > { %110 = sbr.rel (%p107_p3) target bundleno = 54 (0x36), region = 24 }
   0xc   : > { %s132_s10 = scalar_select %p131_p4, %s355_s6, 8 }
   0xe   : > { %s316_s11 = sshll.u32 %s132_s10, 6 }
   0xf   : > { %s138_s14 = scalar_lea.vmem %s631_s0, %s316_s11 }
  0x10   : > { %v146_v0 = vld [vmem:[%s138_s14] sm:$0xf]  ;;  %v147_v1 = vld [vmem:[%s138_s14 + $0x4] sm:$0xf]  ;;  %v148_v2 = vld [vmem:[%s138_s14 + $0x8] sm:$0xf] }
  0x11   : > { %v149_v3 = vld [vmem:[%s138_s14 + $0xc] sm:$0xf]  ;;  %v150_v4 = vld [vmem:[%s138_s14 + $0x10] sm:$0xf]  ;;  %v400_v5 = vld [vmem:[%s138_s14 + $0x14] sm:$0xf] }
  0x12   : > { %v402_v6 = vld [vmem:[%s138_s14 + $0x18] sm:$0xf]  ;;  %v404_v7 = vld [vmem:[%s138_s14 + $0x1c] sm:$0xf]  ;;  %v406_v8 = vld [vmem:[%s138_s14 + $0x20] sm:$0xf] }
  0x13   : > { %v408_v9 = vld [vmem:[%s138_s14 + $0x24] sm:$0xf]  ;;  %v410_v10 = vld [vmem:[%s138_s14 + $0x28] sm:$0xf]  ;;  %v412_v11 = vld [vmem:[%s138_s14 + $0x2c] sm:$0xf] }
  0x14   : > { %v414_v12 = vld [vmem:[%s138_s14 + $0x30] sm:$0xf]  ;;  %v416_v13 = vld [vmem:[%s138_s14 + $0x34] sm:$0xf]  ;;  %v418_v14 = vld [vmem:[%s138_s14 + $0x38] sm:$0xf] }
  0x15   : > { %v420_v15 = vld [vmem:[%s138_s14 + $0x3c] sm:$0xf]  ;;  %165 = sbr.rel (%p310_p5) target bundleno = 35 (0x23), region = 28 }
  0x1a   : > { %vm166_vm0 = vcmask 519168  }
  0x1b   : > { %167 = vst.msk [vmem:[%s632_s1] sm:$0xf] %vm166_vm0, %v146_v0  ;;  %168 = vst.msk [vmem:[%s632_s1 + $0x4] sm:$0xf] %vm166_vm0, %v147_v1 }
  0x1c   : > { %169 = vst.msk [vmem:[%s632_s1 + $0x8] sm:$0xf] %vm166_vm0, %v148_v2  ;;  %170 = vst.msk [vmem:[%s632_s1 + $0xc] sm:$0xf] %vm166_vm0, %v149_v3 }
  0x1d   : > { %171 = vst.msk [vmem:[%s632_s1 + $0x10] sm:$0xf] %vm166_vm0, %v150_v4  ;;  %172 = vst.msk [vmem:[%s632_s1 + $0x14] sm:$0xf] %vm166_vm0, %v400_v5 }
  0x1e   : > { %173 = vst.msk [vmem:[%s632_s1 + $0x18] sm:$0xf] %vm166_vm0, %v402_v6  ;;  %174 = vst.msk [vmem:[%s632_s1 + $0x1c] sm:$0xf] %vm166_vm0, %v404_v7 }
  0x1f   : > { %175 = vst.msk [vmem:[%s632_s1 + $0x20] sm:$0xf] %vm166_vm0, %v406_v8  ;;  %176 = vst.msk [vmem:[%s632_s1 + $0x24] sm:$0xf] %vm166_vm0, %v408_v9 }
  0x20   : > { %177 = vst.msk [vmem:[%s632_s1 + $0x28] sm:$0xf] %vm166_vm0, %v410_v10  ;;  %178 = vst.msk [vmem:[%s632_s1 + $0x2c] sm:$0xf] %vm166_vm0, %v412_v11 }
  0x21   : > { %179 = vst.msk [vmem:[%s632_s1 + $0x30] sm:$0xf] %vm166_vm0, %v414_v12  ;;  %180 = vst.msk [vmem:[%s632_s1 + $0x34] sm:$0xf] %vm166_vm0, %v416_v13 }
  0x22   : > { %181 = vst.msk [vmem:[%s632_s1 + $0x38] sm:$0xf] %vm166_vm0, %v418_v14  ;;  %182 = vst.msk [vmem:[%s632_s1 + $0x3c] sm:$0xf] %vm166_vm0, %v420_v15 }
  0x23 PF: > { %p311_p6 = scmp.le.s32.totalorder %s355_s6, 0 }
  0x25   : > { %186 = sbr.rel (%p311_p6) target bundleno = 54 (0x36), region = 32 }
  0x2a   : > { %v187_v16 = vld [vmem:[%s632_s1] sm:$0xf]  ;;  %vm219_vm1 = vcmask 519168   ;;  %v188_v17 = vld [vmem:[%s632_s1 + $0x4] sm:$0xf] }
  0x2b   : > { %v203_v18 = vmax.bf16 %v187_v16, %v146_v0  ;;  %v204_v19 = vmax.bf16 %v188_v17, %v147_v1  ;;  %v189_v20 = vld [vmem:[%s632_s1 + $0x8] sm:$0xf]  ;;  %v190_v21 = vld [vmem:[%s632_s1 + $0xc] sm:$0xf]  ;;  %v191_v22 = vld [vmem:[%s632_s1 + $0x10] sm:$0xf] }
  0x2c   : > { %v205_v23 = vmax.bf16 %v189_v20, %v148_v2  ;;  %v206_v24 = vmax.bf16 %v190_v21, %v149_v3  ;;  %v207_v25 = vmax.bf16 %v191_v22, %v150_v4  ;;  %v192_v26 = vld [vmem:[%s632_s1 + $0x14] sm:$0xf]  ;;  %v193_v27 = vld [vmem:[%s632_s1 + $0x18] sm:$0xf]  ;;  %v194_v28 = vld [vmem:[%s632_s1 + $0x1c] sm:$0xf] }
  0x2d   : > { %220 = vst.msk [vmem:[%s632_s1] sm:$0xf] %vm219_vm1, %v203_v18  ;;  %221 = vst.msk [vmem:[%s632_s1 + $0x4] sm:$0xf] %vm219_vm1, %v204_v19  ;;  %v208_v29 = vmax.bf16 %v192_v26, %v400_v5  ;;  %v209_v30 = vmax.bf16 %v193_v27, %v402_v6  ;;  %v210_v31 = vmax.bf16 %v194_v28, %v404_v7  ;;  %v195_v32 = vld [vmem:[%s632_s1 + $0x20] sm:$0xf] }
  0x2e   : > { %v196_v33 = vld [vmem:[%s632_s1 + $0x24] sm:$0xf]  ;;  %v197_v34 = vld [vmem:[%s632_s1 + $0x28] sm:$0xf]  ;;  %222 = vst.msk [vmem:[%s632_s1 + $0x8] sm:$0xf] %vm219_vm1, %v205_v23  ;;  %v211_v35 = vmax.bf16 %v195_v32, %v406_v8 }
  0x2f   : > { %223 = vst.msk [vmem:[%s632_s1 + $0xc] sm:$0xf] %vm219_vm1, %v206_v24  ;;  %224 = vst.msk [vmem:[%s632_s1 + $0x10] sm:$0xf] %vm219_vm1, %v207_v25  ;;  %v212_v36 = vmax.bf16 %v196_v33, %v408_v9  ;;  %v213_v37 = vmax.bf16 %v197_v34, %v410_v10  ;;  %v198_v38 = vld [vmem:[%s632_s1 + $0x2c] sm:$0xf] }
  0x30   : > { %v199_v39 = vld [vmem:[%s632_s1 + $0x30] sm:$0xf]  ;;  %v200_v40 = vld [vmem:[%s632_s1 + $0x34] sm:$0xf]  ;;  %225 = vst.msk [vmem:[%s632_s1 + $0x14] sm:$0xf] %vm219_vm1, %v208_v29  ;;  %v214_v41 = vmax.bf16 %v198_v38, %v412_v11 }
  0x31   : > { %226 = vst.msk [vmem:[%s632_s1 + $0x18] sm:$0xf] %vm219_vm1, %v209_v30  ;;  %227 = vst.msk [vmem:[%s632_s1 + $0x1c] sm:$0xf] %vm219_vm1, %v210_v31  ;;  %v215_v42 = vmax.bf16 %v199_v39, %v414_v12  ;;  %v216_v43 = vmax.bf16 %v200_v40, %v416_v13  ;;  %v201_v44 = vld [vmem:[%s632_s1 + $0x38] sm:$0xf] }
  0x32   : > { %v202_v45 = vld [vmem:[%s632_s1 + $0x3c] sm:$0xf]  ;;  %228 = vst.msk [vmem:[%s632_s1 + $0x20] sm:$0xf] %vm219_vm1, %v211_v35  ;;  %229 = vst.msk [vmem:[%s632_s1 + $0x24] sm:$0xf] %vm219_vm1, %v212_v36  ;;  %v217_v46 = vmax.bf16 %v201_v44, %v418_v14 }
  0x33   : > { %230 = vst.msk [vmem:[%s632_s1 + $0x28] sm:$0xf] %vm219_vm1, %v213_v37  ;;  %v218_v47 = vmax.bf16 %v202_v45, %v420_v15  ;;  %231 = vst.msk [vmem:[%s632_s1 + $0x2c] sm:$0xf] %vm219_vm1, %v214_v41 }
  0x34   : > { %232 = vst.msk [vmem:[%s632_s1 + $0x30] sm:$0xf] %vm219_vm1, %v215_v42  ;;  %233 = vst.msk [vmem:[%s632_s1 + $0x34] sm:$0xf] %vm219_vm1, %v216_v43 }
  0x35   : > { %234 = vst.msk [vmem:[%s632_s1 + $0x38] sm:$0xf] %vm219_vm1, %v217_v46  ;;  %235 = vst.msk [vmem:[%s632_s1 + $0x3c] sm:$0xf] %vm219_vm1, %v218_v47 }
  0x36 PF: > { %s11_s8 = sadd.s32 1, %s363_s8   ;;  %s633_s6 = smov %s359_s7 }
  0x37   : > { %p8_p7 = scmp.ge.s32.totalorder %s11_s8, 11   ;;  %s634_s7 = smov %s636_s9 }
  0x39   :  { %10 = sbr.rel (!%p8_p7) target bundleno = 2 (0x2), region = 62 }

// kernel: cancer_classifier_forward.24
= control target key start
LH: loop header
LB: loop body
LE: loop exit
PB: predicated region body
PF: predicated region fallthrough
CT: control target
= control target key end

     0   :  { %s1654_s12 = smov 0   ;;  %s1656_s13 = smov 0   ;;  %s1940_s0 = inlined_call_operand.vmem [shape: bf16[512,256], index: 0, kind: input, shape index: {}]   ;;  %s1941_s1 = inlined_call_operand.vmem [shape: bf16[256,64], index: 1, kind: input, shape index: {}]   ;;  %s1942_s2 = inlined_call_operand.vmem [shape: f32[1,64], index: 2, kind: input, shape index: {}]   ;;  %s1943_s3 = inlined_call_operand.vmem [shape: bf16[512,64], index: 3, kind: output, shape index: {}]  }
   0x1   :  { %s1658_s14 = smov 0  }
   0x2 LB: > { %s32_s15 = sadd.s32 1, %s1627_s13  ;;  %p1270_p0 = scmp.ge.s32.totalorder %s1631_s14, 1  ;;  %s1631_s14 = sphi %s1658_s14, %s13_s14   ;;  %s1627_s13 = sphi %s1656_s13, %s1945_s13   ;;  %s1623_s12 = sphi %s1654_s12, %s1944_s12  }
   0x3   : > { %p34_p1 = scmp.ge.s32.totalorder %s32_s15, 2  ;;  %p191_p2 = scmp.lt.s32.totalorder %s1631_s14, 3 }
   0x5   : > { %s1947_s15 = smov (%p34_p1, %s32_s15), 0  ;;  %p192_p3 = pnand %p1270_p0, %p191_p2 }
   0x6   : > { %s1271_s18 = sshll.u32 (!%p192_p3), %s1623_s12, 5 }
   0x7   : > { %195 = sbr.rel (%p192_p3) target bundleno = 320 (0x140), region = 32  ;;  %p236_p4 = scmp.lt.s32.totalorder (!%p192_p3), %s1271_s18, 63 }
   0xc   : > { %v1545_v0 = vld [vmem:[%s1941_s1 + $0x78] sm:$0xff]   ;;  %v1547_v2 = vld [vmem:[%s1941_s1 + $0x70] sm:$0xff]   ;;  %v1549_v4 = vld [vmem:[%s1941_s1 + $0x68] sm:$0xff]   ;;  %s1949_s18 = smov (!%p236_p4, %s1271_s18), 63  ;;  %vm272_vm0 = vcmask 523264   ;;  %v1633_v48 = vmov 0.0  }
   0xd   : > { %v1546_v1 = vld [vmem:[%s1941_s1 + $0x38] sm:$0xff]   ;;  %1392 = vmatprep.subr.bf16.mxu0 %v1545_v0  ;;  %1504 = vmatprep.subr.bf16.mxu1 %v1545_v0  ;;  %v1548_v3 = vld [vmem:[%s1941_s1 + $0x30] sm:$0xff]   ;;  %v1550_v5 = vld [vmem:[%s1941_s1 + $0x28] sm:$0xff]   ;;  %s1359_s6 = sshll.u32 %s1949_s18, 3  ;;  %273 = vst.msk [vmem:[#allocation2] sm:$0xff] %vm272_vm0, %v1633_v48  ;;  %s1275_s5 = sshll.u32 %s1949_s18, 2 }
   0xe   : > { %1393 = vmatpush3.bf16.msra.mxu0 %v1546_v1  ;;  %1512 = vmatpush3.bf16.msra.mxu1 %v1546_v1  ;;  %v1551_v6 = vld [vmem:[%s1941_s1 + $0x60] sm:$0xff]   ;;  %v1553_v8 = vld [vmem:[%s1941_s1 + $0x58] sm:$0xff]   ;;  %s1705_s11 = scalar_lea.vmem %s1940_s0, %s1359_s6  ;;  %v1555_v10 = vld [vmem:[%s1941_s1 + $0x50] sm:$0xff]   ;;  %274 = vst.msk [vmem:[#allocation2 + $0x8] sm:$0xff] %vm272_vm0, %v1633_v48  ;;  %s1809_s18 = scalar_lea.vmem %s1943_s3, %s1275_s5  ;;  %vm1117_vm1 = vcmask 519168  }
   0xf   : > { %1394 = vmatprep.subr.bf16.mxu0 %v1547_v2  ;;  %1505 = vmatprep.subr.bf16.mxu1 %v1547_v2  ;;  %v1552_v7 = vld [vmem:[%s1941_s1 + $0x20] sm:$0xff]   ;;  %v1554_v9 = vld [vmem:[%s1941_s1 + $0x18] sm:$0xff]   ;;  %v1556_v13 = vld [vmem:[%s1941_s1 + $0x10] sm:$0xff]   ;;  %275 = vst.msk [vmem:[#allocation2 + $0x10] sm:$0xff] %vm272_vm0, %v1633_v48 }
  0x10   : > { %v1563_v11 = vld [vmem:[%s1705_s11 + $0x4] ss:$8 sps:$4 sm:$0xff]   ;;  %v1561_v18 = vld [vmem:[%s1705_s11] ss:$8 sps:$4 sm:$0xff]   ;;  %v1567_v20 = vld [vmem:[%s1705_s11 + $0x14] ss:$8 sps:$4 sm:$0xff]  }
  0x11   : > { %v1566_v12 = vld [vmem:[%s1705_s11 + $0x84] ss:$8 sps:$4 sm:$0xff]   ;;  %689 = vmatprep.mubr.bf16.mxu0 %v1563_v11  ;;  %v1564_v19 = vld [vmem:[%s1705_s11 + $0x80] ss:$8 sps:$4 sm:$0xff]   ;;  %v1569_v21 = vld [vmem:[%s1705_s11 + $0x94] ss:$8 sps:$4 sm:$0xff]  }
  0x12   : > { %1395 = vmatpush3.bf16.msra.mxu0 %v1548_v3  ;;  %1513 = vmatpush3.bf16.msra.mxu1 %v1548_v3  ;;  %v1557_v14 = vld [vmem:[%s1941_s1 + $0x48] sm:$0xff]   ;;  %v1559_v16 = vld [vmem:[%s1941_s1 + $0x40] sm:$0xff]   ;;  %v1571_v22 = vld [vmem:[%s1705_s11 + $0x10] ss:$8 sps:$4 sm:$0xff]   ;;  %276 = vst.msk [vmem:[#allocation2 + $0x18] sm:$0xff] %vm272_vm0, %v1633_v48 }
  0x13   : > { %1396 = vmatprep.subr.bf16.mxu0 %v1549_v4  ;;  %1506 = vmatprep.subr.bf16.mxu1 %v1549_v4  ;;  %v1558_v15 = vld [vmem:[%s1941_s1 + $0x8] sm:$0xff]   ;;  %v1560_v17 = vld [vmem:[%s1941_s1] sm:$0xff]   ;;  %v1572_v23 = vld [vmem:[%s1705_s11 + $0x90] ss:$8 sps:$4 sm:$0xff]   ;;  %277 = vst.msk [vmem:[#allocation2 + $0x20] sm:$0xff] %vm272_vm0, %v1633_v48 }
  0x14   : > { %753 = vmatprep.mubr.bf16.mxu1 %v1566_v12  ;;  %v1573_v24 = vld [vmem:[%s1705_s11 + $0x24] ss:$8 sps:$4 sm:$0xff]   ;;  %v1577_v26 = vld [vmem:[%s1705_s11 + $0x20] ss:$8 sps:$4 sm:$0xff]   ;;  %v1579_v28 = vld [vmem:[%s1705_s11 + $0x34] ss:$8 sps:$4 sm:$0xff]  }
  0x15   : > { %v1575_v25 = vld [vmem:[%s1705_s11 + $0xa4] ss:$8 sps:$4 sm:$0xff]   ;;  %v1578_v27 = vld [vmem:[%s1705_s11 + $0xa0] ss:$8 sps:$4 sm:$0xff]   ;;  %v1581_v29 = vld [vmem:[%s1705_s11 + $0xb4] ss:$8 sps:$4 sm:$0xff]  }
  0x16   : > { %1397 = vmatpush3.bf16.msra.mxu0 %v1550_v5  ;;  %1514 = vmatpush3.bf16.msra.mxu1 %v1550_v5  ;;  %v1583_v30 = vld [vmem:[%s1705_s11 + $0x30] ss:$8 sps:$4 sm:$0xff]   ;;  %v1585_v32 = vld [vmem:[%s1705_s11 + $0x44] ss:$8 sps:$4 sm:$0xff]   ;;  %v1589_v34 = vld [vmem:[%s1705_s11 + $0x40] ss:$8 sps:$4 sm:$0xff]  }
  0x17   : > { %1398 = vmatprep.subr.bf16.mxu0 %v1551_v6  ;;  %1507 = vmatprep.subr.bf16.mxu1 %v1551_v6  ;;  %v1584_v31 = vld [vmem:[%s1705_s11 + $0xb0] ss:$8 sps:$4 sm:$0xff]   ;;  %v1587_v33 = vld [vmem:[%s1705_s11 + $0xc4] ss:$8 sps:$4 sm:$0xff]   ;;  %v1590_v35 = vld [vmem:[%s1705_s11 + $0xc0] ss:$8 sps:$4 sm:$0xff]  }
  0x18   : > { %v1591_v36 = vld [vmem:[%s1705_s11 + $0x54] ss:$8 sps:$4 sm:$0xff]   ;;  %v1595_v38 = vld [vmem:[%s1705_s11 + $0x50] ss:$8 sps:$4 sm:$0xff]   ;;  %v1597_v40 = vld [vmem:[%s1705_s11 + $0x64] ss:$8 sps:$4 sm:$0xff]  }
  0x19   : > { %v1593_v37 = vld [vmem:[%s1705_s11 + $0xd4] ss:$8 sps:$4 sm:$0xff]   ;;  %v1596_v39 = vld [vmem:[%s1705_s11 + $0xd0] ss:$8 sps:$4 sm:$0xff]   ;;  %v1599_v41 = vld [vmem:[%s1705_s11 + $0xe4] ss:$8 sps:$4 sm:$0xff]  }
  0x1a   : > { %1399 = vmatpush3.bf16.msra.mxu0 %v1552_v7  ;;  %1515 = vmatpush3.bf16.msra.mxu1 %v1552_v7  ;;  %v1601_v42 = vld [vmem:[%s1705_s11 + $0x60] ss:$8 sps:$4 sm:$0xff]   ;;  %v1603_v44 = vld [vmem:[%s1705_s11 + $0x74] ss:$8 sps:$4 sm:$0xff]   ;;  %v1607_v46 = vld [vmem:[%s1705_s11 + $0x70] ss:$8 sps:$4 sm:$0xff]  }
  0x1b   : > { %1400 = vmatprep.subr.bf16.mxu0 %v1553_v8  ;;  %1508 = vmatprep.subr.bf16.mxu1 %v1553_v8  ;;  %v1602_v43 = vld [vmem:[%s1705_s11 + $0xe0] ss:$8 sps:$4 sm:$0xff]   ;;  %v1605_v45 = vld [vmem:[%s1705_s11 + $0xf4] ss:$8 sps:$4 sm:$0xff]   ;;  %v1608_v47 = vld [vmem:[%s1705_s11 + $0xf0] ss:$8 sps:$4 sm:$0xff]  }
  0x1c   : > { %278 = vst.msk [vmem:[#allocation2 + $0x28] sm:$0xff] %vm272_vm0, %v1633_v48  ;;  %279 = vst.msk [vmem:[#allocation2 + $0x30] sm:$0xff] %vm272_vm0, %v1633_v48  ;;  %v305_v51 = vld [vmem:[#allocation2] sm:$0xff]  ;;  %v306_v61 = vld [vmem:[#allocation2 + $0x8] sm:$0xff] }
  0x1d   : > { %280 = vst.msk [vmem:[#allocation2 + $0x38] sm:$0xff] %vm272_vm0, %v1633_v48  ;;  %281 = vst.msk [vmem:[#allocation2 + $0x40] sm:$0xff] %vm272_vm0, %v1633_v48  ;;  %v307_v7 = vld [vmem:[#allocation2 + $0x10] sm:$0xff] }
  0x1e   : > { %1401 = vmatpush3.bf16.msra.mxu0 %v1554_v9  ;;  %1516 = vmatpush3.bf16.msra.mxu1 %v1554_v9  ;;  %282 = vst.msk [vmem:[#allocation2 + $0x48] sm:$0xff] %vm272_vm0, %v1633_v48  ;;  %283 = vst.msk [vmem:[#allocation2 + $0x50] sm:$0xff] %vm272_vm0, %v1633_v48 }
  0x1f   : > { %1402 = vmatprep.subr.bf16.mxu0 %v1555_v10  ;;  %1509 = vmatprep.subr.bf16.mxu1 %v1555_v10  ;;  %284 = vst.msk [vmem:[#allocation2 + $0x58] sm:$0xff] %vm272_vm0, %v1633_v48  ;;  %285 = vst.msk [vmem:[#allocation2 + $0x60] sm:$0xff] %vm272_vm0, %v1633_v48 }
  0x20   : > { %286 = vst.msk [vmem:[#allocation2 + $0x68] sm:$0xff] %vm272_vm0, %v1633_v48  ;;  %287 = vst.msk [vmem:[#allocation2 + $0x70] sm:$0xff] %vm272_vm0, %v1633_v48 }
  0x21   : > { %288 = vst.msk [vmem:[#allocation2 + $0x78] sm:$0xff] %vm272_vm0, %v1633_v48  ;;  %289 = vst.msk [vmem:[#allocation2 + $0x80] sm:$0xff] %vm272_vm0, %v1633_v48 }
  0x22   : > { %1403 = vmatpush3.bf16.msra.mxu0 %v1556_v13  ;;  %1517 = vmatpush3.bf16.msra.mxu1 %v1556_v13  ;;  %290 = vst.msk [vmem:[#allocation2 + $0x88] sm:$0xff] %vm272_vm0, %v1633_v48  ;;  %291 = vst.msk [vmem:[#allocation2 + $0x90] sm:$0xff] %vm272_vm0, %v1633_v48  ;;  %v1799_v13 = vld [vmem:[%s1942_s2] ss:$0 sm:$0xff] }
  0x23   : > { %1404 = vmatprep.subr.bf16.mxu0 %v1557_v14  ;;  %1510 = vmatprep.subr.bf16.mxu1 %v1557_v14  ;;  %292 = vst.msk [vmem:[#allocation2 + $0x98] sm:$0xff] %vm272_vm0, %v1633_v48  ;;  %293 = vst.msk [vmem:[#allocation2 + $0xa0] sm:$0xff] %vm272_vm0, %v1633_v48 }
  0x24   : > { %294 = vst.msk [vmem:[#allocation2 + $0xa8] sm:$0xff] %vm272_vm0, %v1633_v48  ;;  %295 = vst.msk [vmem:[#allocation2 + $0xb0] sm:$0xff] %vm272_vm0, %v1633_v48 }
  0x25   : > { %296 = vst.msk [vmem:[#allocation2 + $0xb8] sm:$0xff] %vm272_vm0, %v1633_v48  ;;  %297 = vst.msk [vmem:[#allocation2 + $0xc0] sm:$0xff] %vm272_vm0, %v1633_v48 }
  0x26   : > { %1405 = vmatpush3.bf16.msra.mxu0 %v1558_v15  ;;  %1518 = vmatpush3.bf16.msra.mxu1 %v1558_v15  ;;  %298 = vst.msk [vmem:[#allocation2 + $0xc8] sm:$0xff] %vm272_vm0, %v1633_v48  ;;  %299 = vst.msk [vmem:[#allocation2 + $0xd0] sm:$0xff] %vm272_vm0, %v1633_v48 }
  0x27   : > { %1406 = vmatprep.subr.bf16.mxu0 %v1559_v16  ;;  %1511 = vmatprep.subr.bf16.mxu1 %v1559_v16  ;;  %300 = vst.msk [vmem:[#allocation2 + $0xd8] sm:$0xff] %vm272_vm0, %v1633_v48  ;;  %301 = vst.msk [vmem:[#allocation2 + $0xe0] sm:$0xff] %vm272_vm0, %v1633_v48 }
  0x28   : > { %302 = vst.msk [vmem:[#allocation2 + $0xe8] sm:$0xff] %vm272_vm0, %v1633_v48  ;;  %303 = vst.msk [vmem:[#allocation2 + $0xf0] sm:$0xff] %vm272_vm0, %v1633_v48  ;;  %v321_v53 = vld [vmem:[#allocation2 + $0x80] sm:$0xff] }
  0x29   : > { %304 = vst.msk [vmem:[#allocation2 + $0xf8] sm:$0xff] %vm272_vm0, %v1633_v48  ;;  %v322_v63 = vld [vmem:[#allocation2 + $0x88] sm:$0xff]  ;;  %v323_v9 = vld [vmem:[#allocation2 + $0x90] sm:$0xff] }
  0x2a   : > { %1407 = vmatpush3.bf16.msra.mxu0 %v1560_v17  ;;  %1519 = vmatpush3.bf16.msra.mxu1 %v1560_v17 }
  0x2d   : > { %690 = vmatmul.mubr.bf16.vlgmr.msra.gmra.mxu0 %v1561_v18  ;;  %754 = vmatmul.mubr.bf16.vlgmr.msra.gmra.mxu1 %v1564_v19  ;;  %v308_v18 = vld [vmem:[#allocation2 + $0x18] sm:$0xff] }
  0x2e   : > { %697 = vmatprep.mubr.bf16.mxu0 %v1567_v20  ;;  %761 = vmatprep.mubr.bf16.mxu1 %v1569_v21 }
  0x35   : > { %698 = vmatmul.mubr.bf16.gmra.mxu0 %v1571_v22  ;;  %762 = vmatmul.mubr.bf16.gmra.mxu1 %v1572_v23  ;;  %v324_v22 = vld [vmem:[#allocation2 + $0x98] sm:$0xff] }
  0x36   : > { %705 = vmatprep.mubr.bf16.mxu0 %v1573_v24  ;;  %769 = vmatprep.mubr.bf16.mxu1 %v1575_v25 }
  0x3d   : > { %706 = vmatmul.mubr.bf16.gmra.mxu0 %v1577_v26  ;;  %770 = vmatmul.mubr.bf16.gmra.mxu1 %v1578_v27 }
  0x3e   : > { %713 = vmatprep.mubr.bf16.mxu0 %v1579_v28  ;;  %777 = vmatprep.mubr.bf16.mxu1 %v1581_v29 }
  0x45   : > { %714 = vmatmul.mubr.bf16.gmra.mxu0 %v1583_v30  ;;  %778 = vmatmul.mubr.bf16.gmra.mxu1 %v1584_v31 }
  0x46   : > { %721 = vmatprep.mubr.bf16.mxu0 %v1585_v32  ;;  %785 = vmatprep.mubr.bf16.mxu1 %v1587_v33 }
  0x4d   : > { %722 = vmatmul.mubr.bf16.gmra.mxu0 %v1589_v34  ;;  %786 = vmatmul.mubr.bf16.gmra.mxu1 %v1590_v35 }
  0x4e   : > { %729 = vmatprep.mubr.bf16.mxu0 %v1591_v36  ;;  %793 = vmatprep.mubr.bf16.mxu1 %v1593_v37 }
  0x55   : > { %730 = vmatmul.mubr.bf16.gmra.mxu0 %v1595_v38  ;;  %794 = vmatmul.mubr.bf16.gmra.mxu1 %v1596_v39 }
  0x56   : > { %737 = vmatprep.mubr.bf16.mxu0 %v1597_v40  ;;  %801 = vmatprep.mubr.bf16.mxu1 %v1599_v41 }
  0x5d   : > { %738 = vmatmul.mubr.bf16.gmra.mxu0 %v1601_v42  ;;  %802 = vmatmul.mubr.bf16.gmra.mxu1 %v1602_v43  ;;  %v309_v42 = vld [vmem:[#allocation2 + $0x20] sm:$0xff] }
  0x5e   : > { %745 = vmatprep.mubr.bf16.mxu0 %v1603_v44  ;;  %809 = vmatprep.mubr.bf16.mxu1 %v1605_v45  ;;  %v325_v43 = vld [vmem:[#allocation2 + $0xa0] sm:$0xff] }
  0x65   : > { %746 = vmatmul.mubr.bf16.gmra.mxu0 %v1607_v46  ;;  %810 = vmatmul.mubr.bf16.gmra.mxu1 %v1608_v47 }
  0xed   : > { %v1408_v49 = vpop.f32.mrf.mxu0  ;;  %v1456_v50 = vpop.f32.mrf.mxu1 }
  0xef   : > { %v1409_v52 = vpop.f32.mrf.mxu0  ;;  %v1457_v54 = vpop.f32.mrf.mxu1 }
  0xf0   : > { %v1410_v55 = vadd.f32 %v1409_v52, %v1408_v49  ;;  %v1458_v56 = vadd.f32 %v1457_v54, %v1456_v50 }
  0xf1   : > { %v1411_v57 = vpop.f32.mrf.mxu0  ;;  %v1459_v58 = vpop.f32.mrf.mxu1 }
  0xf2   : > { %v818_v59 = vadd.f32 %v1410_v55, %v305_v51  ;;  %v834_v60 = vadd.f32 %v1458_v56, %v321_v53 }
  0xf3   : > { %v1412_v62 = vpop.f32.mrf.mxu0  ;;  %v1460_v0 = vpop.f32.mrf.mxu1 }
  0xf4   : > { %851 = vst.msk [vmem:[#allocation2] sm:$0xff] %vm272_vm0, %v818_v59  ;;  %867 = vst.msk [vmem:[#allocation2 + $0x80] sm:$0xff] %vm272_vm0, %v834_v60  ;;  %v1413_v1 = vadd.f32 %v1412_v62, %v1411_v57  ;;  %v1461_v2 = vadd.f32 %v1460_v0, %v1459_v58  ;;  %v310_v60 = vld [vmem:[#allocation2 + $0x28] sm:$0xff] }
  0xf5   : > { %v1414_v3 = vpop.f32.mrf.mxu0  ;;  %v1462_v4 = vpop.f32.mrf.mxu1 }
  0xf6   : > { %v819_v5 = vadd.f32 %v1413_v1, %v306_v61  ;;  %v835_v6 = vadd.f32 %v1461_v2, %v322_v63  ;;  %v326_v61 = vld [vmem:[#allocation2 + $0xa8] sm:$0xff] }
  0xf7   : > { %v1415_v8 = vpop.f32.mrf.mxu0  ;;  %v1463_v10 = vpop.f32.mrf.mxu1 }
  0xf8   : > { %852 = vst.msk [vmem:[#allocation2 + $0x8] sm:$0xff] %vm272_vm0, %v819_v5  ;;  %868 = vst.msk [vmem:[#allocation2 + $0x88] sm:$0xff] %vm272_vm0, %v835_v6  ;;  %v1416_v11 = vadd.f32 %v1415_v8, %v1414_v3  ;;  %v1464_v12 = vadd.f32 %v1463_v10, %v1462_v4 }
  0xf9   : > { %v1417_v14 = vpop.f32.mrf.mxu0  ;;  %v1465_v15 = vpop.f32.mrf.mxu1 }
  0xfa   : > { %v820_v16 = vadd.f32 %v1416_v11, %v307_v7  ;;  %v836_v17 = vadd.f32 %v1464_v12, %v323_v9 }
  0xfb   : > { %v886_v19 = vld [vmem:[#allocation2] sm:$0xff]  ;;  %v1418_v21 = vpop.f32.mrf.mxu0  ;;  %v1466_v23 = vpop.f32.mrf.mxu1 }
  0xfc   : > { %v902_v20 = vld [vmem:[#allocation2 + $0x80] sm:$0xff]  ;;  %v925_v24 = vadd.f32 %v1799_v13, %v886_v19  ;;  %853 = vst.msk [vmem:[#allocation2 + $0x10] sm:$0xff] %vm272_vm0, %v820_v16  ;;  %869 = vst.msk [vmem:[#allocation2 + $0x90] sm:$0xff] %vm272_vm0, %v836_v17  ;;  %v1419_v26 = vadd.f32 %v1418_v21, %v1417_v14  ;;  %v1467_v27 = vadd.f32 %v1466_v23, %v1465_v15  ;;  %v311_v15 = vld [vmem:[#allocation2 + $0x30] sm:$0xff] }
  0xfd   : > { %v941_v25 = vadd.f32 %v1799_v13, %v902_v20  ;;  %v1420_v28 = vpop.f32.mrf.mxu0  ;;  %v1468_v29 = vpop.f32.mrf.mxu1  ;;  %v327_v16 = vld [vmem:[#allocation2 + $0xb0] sm:$0xff] }
  0xfe   : > { %v957_v30 = vmax.f32 %v925_v24, 0.0  ;;  %v821_v32 = vadd.f32 %v1419_v26, %v308_v18  ;;  %v837_v33 = vadd.f32 %v1467_v27, %v324_v22  ;;  %v328_v27 = vld [vmem:[#allocation2 + $0xb8] sm:$0xff] }
  0xff   : > { %v973_v31 = vmax.f32 %v941_v25, 0.0  ;;  %v887_v34 = vld [vmem:[#allocation2 + $0x8] sm:$0xff]  ;;  %v1421_v36 = vpop.f32.mrf.mxu0  ;;  %v1469_v37 = vpop.f32.mrf.mxu1  ;;  %v312_v25 = vld [vmem:[#allocation2 + $0x38] sm:$0xff] }
 0x100   : > { %v903_v35 = vld [vmem:[#allocation2 + $0x88] sm:$0xff]  ;;  %v1360_v38 = vpack.c.bf16 %v957_v30, %v957_v30  ;;  %v926_v40 = vadd.f32 %v1799_v13, %v887_v34  ;;  %854 = vst.msk [vmem:[#allocation2 + $0x18] sm:$0xff] %vm272_vm0, %v821_v32  ;;  %870 = vst.msk [vmem:[#allocation2 + $0x98] sm:$0xff] %vm272_vm0, %v837_v33  ;;  %v1422_v44 = vadd.f32 %v1421_v36, %v1420_v28 }
 0x101   : > { %v1376_v39 = vpack.c.bf16 %v973_v31, %v973_v31  ;;  %v942_v41 = vadd.f32 %v1799_v13, %v903_v35  ;;  %v1470_v45 = vadd.f32 %v1469_v37, %v1468_v29  ;;  %v1423_v46 = vpop.f32.mrf.mxu0  ;;  %v1471_v47 = vpop.f32.mrf.mxu1 }
 0x102   : > { %1118 = vst.msk [vmem:[%s1809_s18] sm:$0xf] %vm1117_vm1, %v1360_v38  ;;  %v958_v48 = vmax.f32 %v926_v40, 0.0  ;;  %v822_v52 = vadd.f32 %v1422_v44, %v309_v42 }
 0x103   : > { %1134 = vst.msk [vmem:[%s1809_s18 + $0x40] sm:$0xf] %vm1117_vm1, %v1376_v39  ;;  %v974_v49 = vmax.f32 %v942_v41, 0.0  ;;  %v888_v50 = vld [vmem:[#allocation2 + $0x10] sm:$0xff]  ;;  %v838_v53 = vadd.f32 %v1470_v45, %v325_v43  ;;  %v1424_v54 = vpop.f32.mrf.mxu0  ;;  %v1472_v55 = vpop.f32.mrf.mxu1  ;;  %v313_v43 = vld [vmem:[#allocation2 + $0x40] sm:$0xff] }
 0x104   : > { %v904_v51 = vld [vmem:[#allocation2 + $0x90] sm:$0xff]  ;;  %v1361_v56 = vpack.c.bf16 %v958_v48, %v958_v48  ;;  %v927_v58 = vadd.f32 %v1799_v13, %v888_v50  ;;  %855 = vst.msk [vmem:[#allocation2 + $0x20] sm:$0xff] %vm272_vm0, %v822_v52  ;;  %v1425_v62 = vadd.f32 %v1424_v54, %v1423_v46  ;;  %v1473_v63 = vadd.f32 %v1472_v55, %v1471_v47  ;;  %v329_v45 = vld [vmem:[#allocation2 + $0xc0] sm:$0xff] }
 0x105   : > { %v1377_v57 = vpack.c.bf16 %v974_v49, %v974_v49  ;;  %v943_v59 = vadd.f32 %v1799_v13, %v904_v51  ;;  %871 = vst.msk [vmem:[#allocation2 + $0xa0] sm:$0xff] %vm272_vm0, %v838_v53  ;;  %v1426_v0 = vpop.f32.mrf.mxu0  ;;  %v1474_v1 = vpop.f32.mrf.mxu1 }
 0x106   : > { %1119 = vst.msk [vmem:[%s1809_s18 + $0x4] sm:$0xf] %vm1117_vm1, %v1361_v56  ;;  %v959_v2 = vmax.f32 %v927_v58, 0.0  ;;  %v823_v6 = vadd.f32 %v1425_v62, %v310_v60  ;;  %v839_v7 = vadd.f32 %v1473_v63, %v326_v61  ;;  %v314_v61 = vld [vmem:[#allocation2 + $0x48] sm:$0xff] }
 0x107   : > { %1135 = vst.msk [vmem:[%s1809_s18 + $0x44] sm:$0xf] %vm1117_vm1, %v1377_v57  ;;  %v975_v3 = vmax.f32 %v943_v59, 0.0  ;;  %v889_v4 = vld [vmem:[#allocation2 + $0x18] sm:$0xff]  ;;  %v1427_v8 = vpop.f32.mrf.mxu0  ;;  %v1475_v9 = vpop.f32.mrf.mxu1  ;;  %v330_v63 = vld [vmem:[#allocation2 + $0xc8] sm:$0xff] }
 0x108   : > { %v905_v5 = vld [vmem:[#allocation2 + $0x98] sm:$0xff]  ;;  %v1362_v10 = vpack.c.bf16 %v959_v2, %v959_v2  ;;  %v928_v12 = vadd.f32 %v1799_v13, %v889_v4  ;;  %856 = vst.msk [vmem:[#allocation2 + $0x28] sm:$0xff] %vm272_vm0, %v823_v6  ;;  %872 = vst.msk [vmem:[#allocation2 + $0xa8] sm:$0xff] %vm272_vm0, %v839_v7  ;;  %v1428_v17 = vadd.f32 %v1427_v8, %v1426_v0 }
 0x109   : > { %v1378_v11 = vpack.c.bf16 %v975_v3, %v975_v3  ;;  %v944_v14 = vadd.f32 %v1799_v13, %v905_v5  ;;  %v1476_v18 = vadd.f32 %v1475_v9, %v1474_v1  ;;  %v1429_v19 = vpop.f32.mrf.mxu0  ;;  %v1477_v20 = vpop.f32.mrf.mxu1 }
 0x10a   : > { %1120 = vst.msk [vmem:[%s1809_s18 + $0x8] sm:$0xf] %vm1117_vm1, %v1362_v10  ;;  %v960_v21 = vmax.f32 %v928_v12, 0.0  ;;  %v824_v23 = vadd.f32 %v1428_v17, %v311_v15 }
 0x10b   : > { %1136 = vst.msk [vmem:[%s1809_s18 + $0x48] sm:$0xf] %vm1117_vm1, %v1378_v11  ;;  %v976_v22 = vmax.f32 %v944_v14, 0.0  ;;  %v840_v24 = vadd.f32 %v1476_v18, %v327_v16  ;;  %v1430_v26 = vpop.f32.mrf.mxu0  ;;  %v1478_v28 = vpop.f32.mrf.mxu1  ;;  %v890_v31 = vld [vmem:[#allocation2 + $0x20] sm:$0xff]  ;;  %v315_v14 = vld [vmem:[#allocation2 + $0x50] sm:$0xff] }
 0x10c   : > { %v1363_v29 = vpack.c.bf16 %v960_v21, %v960_v21  ;;  %v906_v32 = vld [vmem:[#allocation2 + $0xa0] sm:$0xff]  ;;  %v1431_v33 = vadd.f32 %v1430_v26, %v1429_v19  ;;  %v1479_v34 = vadd.f32 %v1478_v28, %v1477_v20  ;;  %v929_v35 = vadd.f32 %v1799_v13, %v890_v31  ;;  %857 = vst.msk [vmem:[#allocation2 + $0x30] sm:$0xff] %vm272_vm0, %v824_v23  ;;  %v331_v20 = vld [vmem:[#allocation2 + $0xd0] sm:$0xff] }
 0x10d   : > { %v1379_v30 = vpack.c.bf16 %v976_v22, %v976_v22  ;;  %v945_v36 = vadd.f32 %v1799_v13, %v906_v32  ;;  %873 = vst.msk [vmem:[#allocation2 + $0xb0] sm:$0xff] %vm272_vm0, %v840_v24  ;;  %v1432_v37 = vpop.f32.mrf.mxu0  ;;  %v1480_v38 = vpop.f32.mrf.mxu1 }
 0x10e   : > { %1121 = vst.msk [vmem:[%s1809_s18 + $0xc] sm:$0xf] %vm1117_vm1, %v1363_v29  ;;  %v825_v39 = vadd.f32 %v1431_v33, %v312_v25  ;;  %v841_v40 = vadd.f32 %v1479_v34, %v328_v27  ;;  %v961_v41 = vmax.f32 %v929_v35, 0.0 }
 0x10f   : > { %1137 = vst.msk [vmem:[%s1809_s18 + $0x4c] sm:$0xf] %vm1117_vm1, %v1379_v30  ;;  %v977_v42 = vmax.f32 %v945_v36, 0.0  ;;  %v1433_v44 = vpop.f32.mrf.mxu0  ;;  %v1481_v46 = vpop.f32.mrf.mxu1  ;;  %v891_v47 = vld [vmem:[#allocation2 + $0x28] sm:$0xff] }
 0x110   : > { %v907_v48 = vld [vmem:[#allocation2 + $0xa8] sm:$0xff]  ;;  %858 = vst.msk [vmem:[#allocation2 + $0x38] sm:$0xff] %vm272_vm0, %v825_v39  ;;  %874 = vst.msk [vmem:[#allocation2 + $0xb8] sm:$0xff] %vm272_vm0, %v841_v40  ;;  %v1434_v49 = vadd.f32 %v1433_v44, %v1432_v37  ;;  %v1482_v50 = vadd.f32 %v1481_v46, %v1480_v38  ;;  %v1364_v51 = vpack.c.bf16 %v961_v41, %v961_v41 }
 0x111   : > { %v1380_v52 = vpack.c.bf16 %v977_v42, %v977_v42  ;;  %v930_v53 = vadd.f32 %v1799_v13, %v891_v47  ;;  %v946_v54 = vadd.f32 %v1799_v13, %v907_v48  ;;  %v1435_v55 = vpop.f32.mrf.mxu0  ;;  %v1483_v56 = vpop.f32.mrf.mxu1  ;;  %v316_v42 = vld [vmem:[#allocation2 + $0x58] sm:$0xff] }
 0x112   : > { %v826_v57 = vadd.f32 %v1434_v49, %v313_v43  ;;  %v842_v58 = vadd.f32 %v1482_v50, %v329_v45  ;;  %1122 = vst.msk [vmem:[%s1809_s18 + $0x10] sm:$0xf] %vm1117_vm1, %v1364_v51  ;;  %v332_v43 = vld [vmem:[#allocation2 + $0xd8] sm:$0xff] }
 0x113   : > { %1138 = vst.msk [vmem:[%s1809_s18 + $0x50] sm:$0xf] %vm1117_vm1, %v1380_v52  ;;  %v962_v59 = vmax.f32 %v930_v53, 0.0  ;;  %v978_v60 = vmax.f32 %v946_v54, 0.0  ;;  %v1436_v62 = vpop.f32.mrf.mxu0  ;;  %v1484_v0 = vpop.f32.mrf.mxu1  ;;  %v892_v1 = vld [vmem:[#allocation2 + $0x30] sm:$0xff] }
 0x114   : > { %v908_v2 = vld [vmem:[#allocation2 + $0xb0] sm:$0xff]  ;;  %859 = vst.msk [vmem:[#allocation2 + $0x40] sm:$0xff] %vm272_vm0, %v826_v57  ;;  %875 = vst.msk [vmem:[#allocation2 + $0xc0] sm:$0xff] %vm272_vm0, %v842_v58  ;;  %v1437_v3 = vadd.f32 %v1436_v62, %v1435_v55  ;;  %v1485_v4 = vadd.f32 %v1484_v0, %v1483_v56  ;;  %v931_v7 = vadd.f32 %v1799_v13, %v892_v1 }
 0x115   : > { %v1365_v5 = vpack.c.bf16 %v962_v59, %v962_v59  ;;  %v1381_v6 = vpack.c.bf16 %v978_v60, %v978_v60  ;;  %v947_v8 = vadd.f32 %v1799_v13, %v908_v2  ;;  %v1438_v9 = vpop.f32.mrf.mxu0  ;;  %v1486_v10 = vpop.f32.mrf.mxu1  ;;  %v317_v60 = vld [vmem:[#allocation2 + $0x60] sm:$0xff] }
 0x116   : > { %v827_v11 = vadd.f32 %v1437_v3, %v314_v61  ;;  %v843_v12 = vadd.f32 %v1485_v4, %v330_v63  ;;  %v963_v15 = vmax.f32 %v931_v7, 0.0  ;;  %v333_v61 = vld [vmem:[#allocation2 + $0xe0] sm:$0xff] }
 0x117   : > { %1123 = vst.msk [vmem:[%s1809_s18 + $0x14] sm:$0xf] %vm1117_vm1, %v1365_v5  ;;  %1139 = vst.msk [vmem:[%s1809_s18 + $0x54] sm:$0xf] %vm1117_vm1, %v1381_v6  ;;  %v979_v16 = vmax.f32 %v947_v8, 0.0  ;;  %v893_v17 = vld [vmem:[#allocation2 + $0x38] sm:$0xff]  ;;  %v1439_v19 = vpop.f32.mrf.mxu0  ;;  %v1487_v21 = vpop.f32.mrf.mxu1 }
 0x118   : > { %v909_v18 = vld [vmem:[#allocation2 + $0xb8] sm:$0xff]  ;;  %v932_v22 = vadd.f32 %v1799_v13, %v893_v17  ;;  %860 = vst.msk [vmem:[#allocation2 + $0x48] sm:$0xff] %vm272_vm0, %v827_v11  ;;  %876 = vst.msk [vmem:[#allocation2 + $0xc8] sm:$0xff] %vm272_vm0, %v843_v12  ;;  %v1440_v24 = vadd.f32 %v1439_v19, %v1438_v9  ;;  %v1488_v25 = vadd.f32 %v1487_v21, %v1486_v10 }
 0x119   : > { %v948_v23 = vadd.f32 %v1799_v13, %v909_v18  ;;  %v1366_v26 = vpack.c.bf16 %v963_v15, %v963_v15  ;;  %v1382_v27 = vpack.c.bf16 %v979_v16, %v979_v16  ;;  %v1441_v28 = vpop.f32.mrf.mxu0  ;;  %v1489_v29 = vpop.f32.mrf.mxu1  ;;  %v318_v15 = vld [vmem:[#allocation2 + $0x68] sm:$0xff] }
 0x11a   : > { %v964_v30 = vmax.f32 %v932_v22, 0.0  ;;  %v828_v32 = vadd.f32 %v1440_v24, %v315_v14  ;;  %v844_v33 = vadd.f32 %v1488_v25, %v331_v20  ;;  %v334_v16 = vld [vmem:[#allocation2 + $0xe8] sm:$0xff]  ;;  %v319_v25 = vld [vmem:[#allocation2 + $0x70] sm:$0xff] }
 0x11b   : > { %v980_v31 = vmax.f32 %v948_v23, 0.0  ;;  %1124 = vst.msk [vmem:[%s1809_s18 + $0x18] sm:$0xf] %vm1117_vm1, %v1366_v26  ;;  %1140 = vst.msk [vmem:[%s1809_s18 + $0x58] sm:$0xf] %vm1117_vm1, %v1382_v27  ;;  %v894_v34 = vld [vmem:[#allocation2 + $0x40] sm:$0xff]  ;;  %v1442_v36 = vpop.f32.mrf.mxu0  ;;  %v1490_v37 = vpop.f32.mrf.mxu1 }
 0x11c   : > { %v910_v35 = vld [vmem:[#allocation2 + $0xc0] sm:$0xff]  ;;  %v1367_v38 = vpack.c.bf16 %v964_v30, %v964_v30  ;;  %v933_v40 = vadd.f32 %v1799_v13, %v894_v34  ;;  %861 = vst.msk [vmem:[#allocation2 + $0x50] sm:$0xff] %vm272_vm0, %v828_v32  ;;  %877 = vst.msk [vmem:[#allocation2 + $0xd0] sm:$0xff] %vm272_vm0, %v844_v33  ;;  %v1443_v44 = vadd.f32 %v1442_v36, %v1441_v28  ;;  %v335_v27 = vld [vmem:[#allocation2 + $0xf0] sm:$0xff] }
 0x11d   : > { %v1383_v39 = vpack.c.bf16 %v980_v31, %v980_v31  ;;  %v949_v41 = vadd.f32 %v1799_v13, %v910_v35  ;;  %v1491_v45 = vadd.f32 %v1490_v37, %v1489_v29  ;;  %v1444_v46 = vpop.f32.mrf.mxu0  ;;  %v1492_v47 = vpop.f32.mrf.mxu1 }
 0x11e   : > { %1125 = vst.msk [vmem:[%s1809_s18 + $0x1c] sm:$0xf] %vm1117_vm1, %v1367_v38  ;;  %v965_v48 = vmax.f32 %v933_v40, 0.0  ;;  %v829_v52 = vadd.f32 %v1443_v44, %v316_v42 }
 0x11f   : > { %1141 = vst.msk [vmem:[%s1809_s18 + $0x5c] sm:$0xf] %vm1117_vm1, %v1383_v39  ;;  %v981_v49 = vmax.f32 %v949_v41, 0.0  ;;  %v895_v50 = vld [vmem:[#allocation2 + $0x48] sm:$0xff]  ;;  %v845_v53 = vadd.f32 %v1491_v45, %v332_v43  ;;  %v1445_v54 = vpop.f32.mrf.mxu0  ;;  %v1493_v55 = vpop.f32.mrf.mxu1  ;;  %v320_v43 = vld [vmem:[#allocation2 + $0x78] sm:$0xff] }
 0x120   : > { %v911_v51 = vld [vmem:[#allocation2 + $0xc8] sm:$0xff]  ;;  %v1368_v56 = vpack.c.bf16 %v965_v48, %v965_v48  ;;  %v934_v58 = vadd.f32 %v1799_v13, %v895_v50  ;;  %862 = vst.msk [vmem:[#allocation2 + $0x58] sm:$0xff] %vm272_vm0, %v829_v52  ;;  %v1446_v62 = vadd.f32 %v1445_v54, %v1444_v46  ;;  %v1494_v63 = vadd.f32 %v1493_v55, %v1492_v47  ;;  %v336_v45 = vld [vmem:[#allocation2 + $0xf8] sm:$0xff] }
 0x121   : > { %v1384_v57 = vpack.c.bf16 %v981_v49, %v981_v49  ;;  %v950_v59 = vadd.f32 %v1799_v13, %v911_v51  ;;  %878 = vst.msk [vmem:[#allocation2 + $0xd8] sm:$0xff] %vm272_vm0, %v845_v53  ;;  %v1447_v0 = vpop.f32.mrf.mxu0  ;;  %v1495_v1 = vpop.f32.mrf.mxu1 }
 0x122   : > { %1126 = vst.msk [vmem:[%s1809_s18 + $0x20] sm:$0xf] %vm1117_vm1, %v1368_v56  ;;  %v966_v2 = vmax.f32 %v934_v58, 0.0  ;;  %v830_v6 = vadd.f32 %v1446_v62, %v317_v60  ;;  %v846_v7 = vadd.f32 %v1494_v63, %v333_v61 }
 0x123   : > { %1142 = vst.msk [vmem:[%s1809_s18 + $0x60] sm:$0xf] %vm1117_vm1, %v1384_v57  ;;  %v982_v3 = vmax.f32 %v950_v59, 0.0  ;;  %v896_v4 = vld [vmem:[#allocation2 + $0x50] sm:$0xff]  ;;  %v1448_v8 = vpop.f32.mrf.mxu0  ;;  %v1496_v9 = vpop.f32.mrf.mxu1 }
 0x124   : > { %v912_v5 = vld [vmem:[#allocation2 + $0xd0] sm:$0xff]  ;;  %v1369_v10 = vpack.c.bf16 %v966_v2, %v966_v2  ;;  %v935_v12 = vadd.f32 %v1799_v13, %v896_v4  ;;  %863 = vst.msk [vmem:[#allocation2 + $0x60] sm:$0xff] %vm272_vm0, %v830_v6  ;;  %879 = vst.msk [vmem:[#allocation2 + $0xe0] sm:$0xff] %vm272_vm0, %v846_v7  ;;  %v1449_v17 = vadd.f32 %v1448_v8, %v1447_v0 }
 0x125   : > { %v1385_v11 = vpack.c.bf16 %v982_v3, %v982_v3  ;;  %v951_v14 = vadd.f32 %v1799_v13, %v912_v5  ;;  %v1497_v18 = vadd.f32 %v1496_v9, %v1495_v1  ;;  %v1450_v19 = vpop.f32.mrf.mxu0  ;;  %v1498_v20 = vpop.f32.mrf.mxu1 }
 0x126   : > { %1127 = vst.msk [vmem:[%s1809_s18 + $0x24] sm:$0xf] %vm1117_vm1, %v1369_v10  ;;  %v967_v21 = vmax.f32 %v935_v12, 0.0  ;;  %v831_v23 = vadd.f32 %v1449_v17, %v318_v15 }
 0x127   : > { %1143 = vst.msk [vmem:[%s1809_s18 + $0x64] sm:$0xf] %vm1117_vm1, %v1385_v11  ;;  %v983_v22 = vmax.f32 %v951_v14, 0.0  ;;  %v847_v24 = vadd.f32 %v1497_v18, %v334_v16  ;;  %v1451_v26 = vpop.f32.mrf.mxu0  ;;  %v1499_v28 = vpop.f32.mrf.mxu1  ;;  %v897_v31 = vld [vmem:[#allocation2 + $0x58] sm:$0xff] }
 0x128   : > { %v1370_v29 = vpack.c.bf16 %v967_v21, %v967_v21  ;;  %v913_v32 = vld [vmem:[#allocation2 + $0xd8] sm:$0xff]  ;;  %v1452_v33 = vadd.f32 %v1451_v26, %v1450_v19  ;;  %v1500_v34 = vadd.f32 %v1499_v28, %v1498_v20  ;;  %v936_v35 = vadd.f32 %v1799_v13, %v897_v31  ;;  %864 = vst.msk [vmem:[#allocation2 + $0x68] sm:$0xff] %vm272_vm0, %v831_v23 }
 0x129   : > { %v1386_v30 = vpack.c.bf16 %v983_v22, %v983_v22  ;;  %v952_v36 = vadd.f32 %v1799_v13, %v913_v32  ;;  %880 = vst.msk [vmem:[#allocation2 + $0xe8] sm:$0xff] %vm272_vm0, %v847_v24  ;;  %v1453_v37 = vpop.f32.mrf.mxu0  ;;  %v1501_v38 = vpop.f32.mrf.mxu1 }
 0x12a   : > { %1128 = vst.msk [vmem:[%s1809_s18 + $0x28] sm:$0xf] %vm1117_vm1, %v1370_v29  ;;  %v832_v39 = vadd.f32 %v1452_v33, %v319_v25  ;;  %v848_v40 = vadd.f32 %v1500_v34, %v335_v27  ;;  %v968_v41 = vmax.f32 %v936_v35, 0.0 }
 0x12b   : > { %1144 = vst.msk [vmem:[%s1809_s18 + $0x68] sm:$0xf] %vm1117_vm1, %v1386_v30  ;;  %v984_v42 = vmax.f32 %v952_v36, 0.0  ;;  %v1454_v44 = vpop.f32.mrf.mxu0  ;;  %v1502_v46 = vpop.f32.mrf.mxu1  ;;  %v898_v47 = vld [vmem:[#allocation2 + $0x60] sm:$0xff] }
 0x12c   : > { %v914_v48 = vld [vmem:[#allocation2 + $0xe0] sm:$0xff]  ;;  %865 = vst.msk [vmem:[#allocation2 + $0x70] sm:$0xff] %vm272_vm0, %v832_v39  ;;  %881 = vst.msk [vmem:[#allocation2 + $0xf0] sm:$0xff] %vm272_vm0, %v848_v40  ;;  %v1455_v49 = vadd.f32 %v1454_v44, %v1453_v37  ;;  %v1503_v50 = vadd.f32 %v1502_v46, %v1501_v38  ;;  %v1371_v51 = vpack.c.bf16 %v968_v41, %v968_v41 }
 0x12d   : > { %v1387_v52 = vpack.c.bf16 %v984_v42, %v984_v42  ;;  %v937_v53 = vadd.f32 %v1799_v13, %v898_v47  ;;  %v953_v54 = vadd.f32 %v1799_v13, %v914_v48 }
 0x12e   : > { %v833_v55 = vadd.f32 %v1455_v49, %v320_v43  ;;  %v849_v56 = vadd.f32 %v1503_v50, %v336_v45  ;;  %1129 = vst.msk [vmem:[%s1809_s18 + $0x2c] sm:$0xf] %vm1117_vm1, %v1371_v51 }
 0x12f   : > { %1145 = vst.msk [vmem:[%s1809_s18 + $0x6c] sm:$0xf] %vm1117_vm1, %v1387_v52  ;;  %v969_v57 = vmax.f32 %v937_v53, 0.0  ;;  %v985_v58 = vmax.f32 %v953_v54, 0.0  ;;  %v899_v59 = vld [vmem:[#allocation2 + $0x68] sm:$0xff] }
 0x130   : > { %v915_v60 = vld [vmem:[#allocation2 + $0xe8] sm:$0xff]  ;;  %866 = vst.msk [vmem:[#allocation2 + $0x78] sm:$0xff] %vm272_vm0, %v833_v55  ;;  %882 = vst.msk [vmem:[#allocation2 + $0xf8] sm:$0xff] %vm272_vm0, %v849_v56  ;;  %v938_v63 = vadd.f32 %v1799_v13, %v899_v59 }
 0x131   : > { %v1372_v61 = vpack.c.bf16 %v969_v57, %v969_v57  ;;  %v1388_v62 = vpack.c.bf16 %v985_v58, %v985_v58  ;;  %v954_v0 = vadd.f32 %v1799_v13, %v915_v60 }
 0x132   : > { %v970_v1 = vmax.f32 %v938_v63, 0.0 }
 0x133   : > { %1130 = vst.msk [vmem:[%s1809_s18 + $0x30] sm:$0xf] %vm1117_vm1, %v1372_v61  ;;  %1146 = vst.msk [vmem:[%s1809_s18 + $0x70] sm:$0xf] %vm1117_vm1, %v1388_v62  ;;  %v986_v2 = vmax.f32 %v954_v0, 0.0  ;;  %v900_v3 = vld [vmem:[#allocation2 + $0x70] sm:$0xff] }
 0x134   : > { %v916_v4 = vld [vmem:[#allocation2 + $0xf0] sm:$0xff]  ;;  %v939_v5 = vadd.f32 %v1799_v13, %v900_v3  ;;  %v1373_v7 = vpack.c.bf16 %v970_v1, %v970_v1 }
 0x135   : > { %v955_v6 = vadd.f32 %v1799_v13, %v916_v4  ;;  %v1389_v8 = vpack.c.bf16 %v986_v2, %v986_v2 }
 0x136   : > { %v971_v9 = vmax.f32 %v939_v5, 0.0  ;;  %1131 = vst.msk [vmem:[%s1809_s18 + $0x34] sm:$0xf] %vm1117_vm1, %v1373_v7 }
 0x137   : > { %v987_v10 = vmax.f32 %v955_v6, 0.0  ;;  %1147 = vst.msk [vmem:[%s1809_s18 + $0x74] sm:$0xf] %vm1117_vm1, %v1389_v8  ;;  %v901_v11 = vld [vmem:[#allocation2 + $0x78] sm:$0xff] }
 0x138   : > { %v917_v12 = vld [vmem:[#allocation2 + $0xf8] sm:$0xff]  ;;  %v1374_v14 = vpack.c.bf16 %v971_v9, %v971_v9  ;;  %v940_v16 = vadd.f32 %v1799_v13, %v901_v11 }
 0x139   : > { %v1390_v15 = vpack.c.bf16 %v987_v10, %v987_v10  ;;  %v956_v17 = vadd.f32 %v1799_v13, %v917_v12 }
 0x13a   : > { %1132 = vst.msk [vmem:[%s1809_s18 + $0x38] sm:$0xf] %vm1117_vm1, %v1374_v14  ;;  %v972_v18 = vmax.f32 %v940_v16, 0.0 }
 0x13b   : > { %1148 = vst.msk [vmem:[%s1809_s18 + $0x78] sm:$0xf] %vm1117_vm1, %v1390_v15  ;;  %v988_v19 = vmax.f32 %v956_v17, 0.0 }
 0x13c   : > { %v1375_v20 = vpack.c.bf16 %v972_v18, %v972_v18 }
 0x13d   : > { %v1391_v21 = vpack.c.bf16 %v988_v19, %v988_v19 }
 0x13e   : > { %1133 = vst.msk [vmem:[%s1809_s18 + $0x3c] sm:$0xf] %vm1117_vm1, %v1375_v20 }
 0x13f   : > { %1149 = vst.msk [vmem:[%s1809_s18 + $0x7c] sm:$0xf] %vm1117_vm1, %v1391_v21 }
 0x140 PF: > { %s13_s14 = sadd.s32 1, %s1631_s14   ;;  %s1944_s12 = smov %s1627_s13 }
 0x141   : > { %p10_p5 = scmp.ge.s32.totalorder %s13_s14, 4   ;;  %s1945_s13 = smov %s1947_s15 }
 0x143   :  { %12 = sbr.rel (!%p10_p5) target bundleno = 2 (0x2), region = 76 }

// kernel: cancer_classifier_forward.27
= control target key start
LH: loop header
LB: loop body
LE: loop exit
PB: predicated region body
PF: predicated region fallthrough
CT: control target
= control target key end

     0   :  { %vm22_vm0 = vcmask 523264   ;;  %vm1125_vm1 = vcmask 519168   ;;  %s2208_s1 = inlined_call_operand.vmem [shape: bf16[640,64], index: 1, kind: input, shape index: {}]   ;;  %s2209_s0 = inlined_call_operand.vmem [shape: bf16[128,640], index: 0, kind: input, shape index: {}]   ;;  %s2210_s3 = inlined_call_operand.vmem [shape: bf16[128,64], index: 3, kind: input, shape index: {}]   ;;  %s2211_s2 = inlined_call_operand.vmem [shape: f32[1,64], index: 2, kind: input, shape index: {}]   ;;  %s2212_s4 = inlined_call_operand.vmem [shape: bf16[128,64], index: 4, kind: output, shape index: {}]  }
   0x1   :  { %v1491_v0 = vld [vmem:[%s2208_s1 + $0x78] sm:$0xff]   ;;  %v1495_v4 = vld [vmem:[%s2208_s1 + $0x70] sm:$0xff]   ;;  %v1499_v8 = vld [vmem:[%s2208_s1 + $0x68] sm:$0xff]  }
   0x2   :  { %v1492_v1 = vld [vmem:[%s2208_s1 + $0xf8] sm:$0xff]   ;;  %1298 = vmatprep.subr.bf16.mxu0 %v1491_v0  ;;  %v1496_v5 = vld [vmem:[%s2208_s1 + $0xf0] sm:$0xff]   ;;  %v1500_v9 = vld [vmem:[%s2208_s1 + $0xe8] sm:$0xff]  }
   0x3   :  { %v1493_v2 = vld [vmem:[%s2208_s1 + $0x38] sm:$0xff]   ;;  %1362 = vmatprep.subr.bf16.mxu1 %v1492_v1  ;;  %v1497_v6 = vld [vmem:[%s2208_s1 + $0x30] sm:$0xff]   ;;  %v1501_v10 = vld [vmem:[%s2208_s1 + $0x28] sm:$0xff]  }
   0x4   :  { %v1494_v3 = vld [vmem:[%s2208_s1 + $0xb8] sm:$0xff]   ;;  %1299 = vmatpush3.bf16.msra.mxu0 %v1493_v2  ;;  %v1498_v7 = vld [vmem:[%s2208_s1 + $0xb0] sm:$0xff]   ;;  %v1502_v11 = vld [vmem:[%s2208_s1 + $0xa8] sm:$0xff]  }
   0x5   :  { %1363 = vmatpush3.bf16.msra.mxu1 %v1494_v3  ;;  %1300 = vmatprep.subr.bf16.mxu0 %v1495_v4  ;;  %v1503_v12 = vld [vmem:[%s2208_s1 + $0x60] sm:$0xff]   ;;  %v1507_v16 = vld [vmem:[%s2208_s1 + $0x58] sm:$0xff]   ;;  %v1511_v20 = vld [vmem:[%s2208_s1 + $0x50] sm:$0xff]  }
   0x6   :  { %1364 = vmatprep.subr.bf16.mxu1 %v1496_v5  ;;  %v1504_v13 = vld [vmem:[%s2208_s1 + $0xe0] sm:$0xff]   ;;  %v1508_v17 = vld [vmem:[%s2208_s1 + $0xd8] sm:$0xff]   ;;  %v1512_v21 = vld [vmem:[%s2208_s1 + $0xd0] sm:$0xff]  }
   0x7   :  { %v1505_v14 = vld [vmem:[%s2208_s1 + $0x20] sm:$0xff]   ;;  %v1509_v18 = vld [vmem:[%s2208_s1 + $0x18] sm:$0xff]   ;;  %v1513_v22 = vld [vmem:[%s2208_s1 + $0x10] sm:$0xff]  }
   0x8   :  { %1301 = vmatpush3.bf16.msra.mxu0 %v1497_v6  ;;  %v1506_v15 = vld [vmem:[%s2208_s1 + $0xa0] sm:$0xff]   ;;  %v1510_v19 = vld [vmem:[%s2208_s1 + $0x98] sm:$0xff]   ;;  %v1514_v23 = vld [vmem:[%s2208_s1 + $0x90] sm:$0xff]  }
   0x9   :  { %1365 = vmatpush3.bf16.msra.mxu1 %v1498_v7  ;;  %1302 = vmatprep.subr.bf16.mxu0 %v1499_v8  ;;  %v1515_v24 = vld [vmem:[%s2208_s1 + $0x48] sm:$0xff]   ;;  %v1519_v28 = vld [vmem:[%s2208_s1 + $0x40] sm:$0xff]   ;;  %v1529_v36 = vld [vmem:[%s2208_s1 + $0x138] sm:$0xff]  }
   0xa   :  { %1366 = vmatprep.subr.bf16.mxu1 %v1500_v9  ;;  %v1516_v25 = vld [vmem:[%s2208_s1 + $0xc8] sm:$0xff]   ;;  %v1520_v29 = vld [vmem:[%s2208_s1 + $0xc0] sm:$0xff]   ;;  %v1536_v39 = vld [vmem:[%s2208_s1 + $0x130] sm:$0xff]  }
   0xb   :  { %v1517_v26 = vld [vmem:[%s2208_s1 + $0x8] sm:$0xff]   ;;  %v1521_v30 = vld [vmem:[%s2208_s1] sm:$0xff]   ;;  %v1539_v43 = vld [vmem:[%s2209_s0 + $0x5c] ss:$20 sps:$4 sm:$0xff]  }
   0xc   :  { %1303 = vmatpush3.bf16.msra.mxu0 %v1501_v10  ;;  %v1518_v27 = vld [vmem:[%s2208_s1 + $0x88] sm:$0xff]   ;;  %v1522_v31 = vld [vmem:[%s2208_s1 + $0x80] sm:$0xff]   ;;  %v1544_v48 = vld [vmem:[%s2209_s0 + $0x7c] ss:$20 sps:$4 sm:$0xff]  }
   0xd   :  { %1367 = vmatpush3.bf16.msra.mxu1 %v1502_v11  ;;  %1304 = vmatprep.subr.bf16.mxu0 %v1503_v12  ;;  %v1523_v32 = vld [vmem:[%s2209_s0] ss:$20 sps:$4 sm:$0xff]   ;;  %v1525_v33 = vld [vmem:[%s2209_s0 + $0x4] ss:$20 sps:$4 sm:$0xff]   ;;  %v1526_v34 = vld [vmem:[%s2209_s0 + $0x8] ss:$20 sps:$4 sm:$0xff]  }
   0xe   :  { %1368 = vmatprep.subr.bf16.mxu1 %v1504_v13  ;;  %v1528_v35 = vld [vmem:[%s2209_s0 + $0xc] ss:$20 sps:$4 sm:$0xff]   ;;  %663 = vmatprep.mubr.bf16.mxu0 %v1525_v33  ;;  %v1532_v38 = vld [vmem:[%s2209_s0 + $0x34] ss:$20 sps:$4 sm:$0xff]   ;;  %v1535_v41 = vld [vmem:[%s2209_s0 + $0x30] ss:$20 sps:$4 sm:$0xff]  }
   0xf   :  { %760 = vmatprep.mubr.bf16.mxu1 %v1528_v35  ;;  %v1530_v37 = vld [vmem:[%s2209_s0 + $0x2c] ss:$20 sps:$4 sm:$0xff]   ;;  %v1534_v40 = vld [vmem:[%s2209_s0 + $0x28] ss:$20 sps:$4 sm:$0xff]   ;;  %v1541_v46 = vld [vmem:[%s2209_s0 + $0x50] ss:$20 sps:$4 sm:$0xff]  }
  0x10   :  { %1305 = vmatpush3.bf16.msra.mxu0 %v1505_v14  ;;  %v1537_v42 = vld [vmem:[%s2209_s0 + $0x54] ss:$20 sps:$4 sm:$0xff]   ;;  %v1550_v45 = vld [vmem:[%s2208_s1 + $0x120] sm:$0xff]   ;;  %v1542_v47 = vld [vmem:[%s2209_s0 + $0x58] ss:$20 sps:$4 sm:$0xff]  }
  0x11   :  { %1369 = vmatpush3.bf16.msra.mxu1 %v1506_v15  ;;  %1306 = vmatprep.subr.bf16.mxu0 %v1507_v16  ;;  %v1543_v44 = vld [vmem:[%s2208_s1 + $0x128] sm:$0xff]   ;;  %v1546_v49 = vld [vmem:[%s2209_s0 + $0x84] ss:$20 sps:$4 sm:$0xff]   ;;  %v1564_v51 = vld [vmem:[%s2208_s1 + $0x110] sm:$0xff]   ;;  %v1587_v16 = vmov 0.0  }
  0x12   :  { %1370 = vmatprep.subr.bf16.mxu1 %v1508_v17  ;;  %v1557_v50 = vld [vmem:[%s2208_s1 + $0x118] sm:$0xff]   ;;  %v1549_v53 = vld [vmem:[%s2209_s0 + $0x80] ss:$20 sps:$4 sm:$0xff]   ;;  %v1571_v55 = vld [vmem:[%s2208_s1 + $0x108] sm:$0xff]   ;;  %25 = vst.msk [vmem:[#allocation2 + $0x10] sm:$0xff] %vm22_vm0, %v1587_v16 }
  0x13   :  { %v1548_v52 = vld [vmem:[%s2209_s0 + $0x78] ss:$20 sps:$4 sm:$0xff]   ;;  %v1578_v57 = vld [vmem:[%s2208_s1 + $0x100] sm:$0xff]   ;;  %v1556_v59 = vld [vmem:[%s2209_s0 + $0xa8] ss:$20 sps:$4 sm:$0xff]   ;;  %23 = vst.msk [vmem:[#allocation2] sm:$0xff] %vm22_vm0, %v1587_v16 }
  0x14   :  { %1307 = vmatpush3.bf16.msra.mxu0 %v1509_v18  ;;  %v1551_v54 = vld [vmem:[%s2209_s0 + $0xa4] ss:$20 sps:$4 sm:$0xff]   ;;  %v1553_v56 = vld [vmem:[%s2209_s0 + $0xac] ss:$20 sps:$4 sm:$0xff]   ;;  %v1560_v61 = vld [vmem:[%s2209_s0 + $0xd4] ss:$20 sps:$4 sm:$0xff]  }
  0x15   :  { %1371 = vmatpush3.bf16.msra.mxu1 %v1510_v19  ;;  %1308 = vmatprep.subr.bf16.mxu0 %v1511_v20  ;;  %v1555_v58 = vld [vmem:[%s2209_s0 + $0xa0] ss:$20 sps:$4 sm:$0xff]   ;;  %v1562_v62 = vld [vmem:[%s2209_s0 + $0xc8] ss:$20 sps:$4 sm:$0xff]   ;;  %v1563_v63 = vld [vmem:[%s2209_s0 + $0xd0] ss:$20 sps:$4 sm:$0xff]  }
  0x16   :  { %1372 = vmatprep.subr.bf16.mxu1 %v1512_v21  ;;  %v1558_v60 = vld [vmem:[%s2209_s0 + $0xcc] ss:$20 sps:$4 sm:$0xff]   ;;  %v1565_v0 = vld [vmem:[%s2209_s0 + $0xf4] ss:$20 sps:$4 sm:$0xff]   ;;  %v1567_v1 = vld [vmem:[%s2209_s0 + $0xfc] ss:$20 sps:$4 sm:$0xff]  }
  0x17   :  { %v1569_v2 = vld [vmem:[%s2209_s0 + $0xf0] ss:$20 sps:$4 sm:$0xff]   ;;  %v1570_v3 = vld [vmem:[%s2209_s0 + $0xf8] ss:$20 sps:$4 sm:$0xff]   ;;  %v1577_v7 = vld [vmem:[%s2209_s0 + $0x120] ss:$20 sps:$4 sm:$0xff]  }
  0x18   :  { %1309 = vmatpush3.bf16.msra.mxu0 %v1513_v22  ;;  %v1572_v4 = vld [vmem:[%s2209_s0 + $0x11c] ss:$20 sps:$4 sm:$0xff]   ;;  %v1574_v5 = vld [vmem:[%s2209_s0 + $0x124] ss:$20 sps:$4 sm:$0xff]   ;;  %v1583_v12 = vld [vmem:[%s2209_s0 + $0x60] ss:$20 sps:$4 sm:$0xff]  }
  0x19   :  { %1373 = vmatpush3.bf16.msra.mxu1 %v1514_v23  ;;  %1310 = vmatprep.subr.bf16.mxu0 %v1515_v24  ;;  %v1576_v6 = vld [vmem:[%s2209_s0 + $0x118] ss:$20 sps:$4 sm:$0xff]   ;;  %v1579_v8 = vld [vmem:[%s2209_s0 + $0x10] ss:$20 sps:$4 sm:$0xff]   ;;  %v1584_v13 = vld [vmem:[%s2209_s0 + $0x100] ss:$20 sps:$4 sm:$0xff]  }
  0x1a   :  { %1374 = vmatprep.subr.bf16.mxu1 %v1516_v25  ;;  %v1580_v9 = vld [vmem:[%s2209_s0 + $0xb0] ss:$20 sps:$4 sm:$0xff]   ;;  %v1581_v10 = vld [vmem:[%s2209_s0 + $0x38] ss:$20 sps:$4 sm:$0xff]   ;;  %v1585_v14 = vld [vmem:[%s2209_s0 + $0x88] ss:$20 sps:$4 sm:$0xff]  }
  0x1b   :  { %v1582_v11 = vld [vmem:[%s2209_s0 + $0xd8] ss:$20 sps:$4 sm:$0xff]   ;;  %v1586_v15 = vld [vmem:[%s2209_s0 + $0x128] ss:$20 sps:$4 sm:$0xff]   ;;  %24 = vst.msk [vmem:[#allocation2 + $0x8] sm:$0xff] %vm22_vm0, %v1587_v16  ;;  %26 = vst.msk [vmem:[#allocation2 + $0x18] sm:$0xff] %vm22_vm0, %v1587_v16 }
  0x1c   :  { %1311 = vmatpush3.bf16.msra.mxu0 %v1517_v26  ;;  %27 = vst.msk [vmem:[#allocation2 + $0x20] sm:$0xff] %vm22_vm0, %v1587_v16  ;;  %28 = vst.msk [vmem:[#allocation2 + $0x28] sm:$0xff] %vm22_vm0, %v1587_v16 }
  0x1d   :  { %1375 = vmatpush3.bf16.msra.mxu1 %v1518_v27  ;;  %1312 = vmatprep.subr.bf16.mxu0 %v1519_v28  ;;  %29 = vst.msk [vmem:[#allocation2 + $0x30] sm:$0xff] %vm22_vm0, %v1587_v16  ;;  %30 = vst.msk [vmem:[#allocation2 + $0x38] sm:$0xff] %vm22_vm0, %v1587_v16 }
  0x1e   :  { %1376 = vmatprep.subr.bf16.mxu1 %v1520_v29  ;;  %31 = vst.msk [vmem:[#allocation2 + $0x40] sm:$0xff] %vm22_vm0, %v1587_v16  ;;  %32 = vst.msk [vmem:[#allocation2 + $0x48] sm:$0xff] %vm22_vm0, %v1587_v16 }
  0x1f   :  { %33 = vst.msk [vmem:[#allocation2 + $0x50] sm:$0xff] %vm22_vm0, %v1587_v16  ;;  %34 = vst.msk [vmem:[#allocation2 + $0x58] sm:$0xff] %vm22_vm0, %v1587_v16 }
  0x20   :  { %1313 = vmatpush3.bf16.msra.mxu0 %v1521_v30  ;;  %35 = vst.msk [vmem:[#allocation2 + $0x60] sm:$0xff] %vm22_vm0, %v1587_v16  ;;  %36 = vst.msk [vmem:[#allocation2 + $0x68] sm:$0xff] %vm22_vm0, %v1587_v16 }
  0x21   :  { %1377 = vmatpush3.bf16.msra.mxu1 %v1522_v31  ;;  %1442 = vmatprep.subr.bf16.mxu0 %v1529_v36  ;;  %37 = vst.msk [vmem:[#allocation2 + $0x70] sm:$0xff] %vm22_vm0, %v1587_v16  ;;  %38 = vst.msk [vmem:[#allocation2 + $0x78] sm:$0xff] %vm22_vm0, %v1587_v16 }
  0x22   :  { %1474 = vmatprep.subr.bf16.mxu1 %v1529_v36 }
  0x23   :  { %664 = vmatmul.mubr.bf16.vlgmr.msra.gmra.mxu0 %v1523_v32 }
  0x24   :  { %761 = vmatmul.mubr.bf16.vlgmr.msra.gmra.mxu1 %v1526_v34  ;;  %1443 = vmatpush3.bf16.msra.mxu0 %v1529_v36 }
  0x25   :  { %1482 = vmatpush3.bf16.msra.mxu1 %v1529_v36  ;;  %671 = vmatprep.mubr.bf16.mxu0 %v1530_v37 }
  0x26   :  { %768 = vmatprep.mubr.bf16.mxu1 %v1532_v38  ;;  %1444 = vmatprep.subr.bf16.mxu0 %v1536_v39 }
  0x27   :  { %1475 = vmatprep.subr.bf16.mxu1 %v1536_v39 }
  0x28   :  { %1445 = vmatpush3.bf16.msra.mxu0 %v1536_v39 }
  0x29   :  { %1483 = vmatpush3.bf16.msra.mxu1 %v1536_v39  ;;  %1446 = vmatprep.subr.bf16.mxu0 %v1543_v44 }
  0x2a   :  { %1476 = vmatprep.subr.bf16.mxu1 %v1543_v44 }
  0x2b   :  { %672 = vmatmul.mubr.bf16.gmra.mxu0 %v1534_v40 }
  0x2c   :  { %769 = vmatmul.mubr.bf16.gmra.mxu1 %v1535_v41  ;;  %679 = vmatprep.mubr.bf16.mxu0 %v1537_v42 }
  0x2d   :  { %776 = vmatprep.mubr.bf16.mxu1 %v1539_v43  ;;  %1447 = vmatpush3.bf16.msra.mxu0 %v1543_v44 }
  0x2e   :  { %1484 = vmatpush3.bf16.msra.mxu1 %v1543_v44  ;;  %1448 = vmatprep.subr.bf16.mxu0 %v1550_v45 }
  0x2f   :  { %1477 = vmatprep.subr.bf16.mxu1 %v1550_v45 }
  0x31   :  { %1449 = vmatpush3.bf16.msra.mxu0 %v1550_v45 }
  0x32   :  { %1485 = vmatpush3.bf16.msra.mxu1 %v1550_v45  ;;  %1450 = vmatprep.subr.bf16.mxu0 %v1557_v50 }
  0x33   :  { %680 = vmatmul.mubr.bf16.gmra.mxu0 %v1541_v46  ;;  %1478 = vmatprep.subr.bf16.mxu1 %v1557_v50 }
  0x34   :  { %777 = vmatmul.mubr.bf16.gmra.mxu1 %v1542_v47  ;;  %687 = vmatprep.mubr.bf16.mxu0 %v1544_v48 }
  0x35   :  { %784 = vmatprep.mubr.bf16.mxu1 %v1546_v49  ;;  %1451 = vmatpush3.bf16.msra.mxu0 %v1557_v50 }
  0x36   :  { %1486 = vmatpush3.bf16.msra.mxu1 %v1557_v50  ;;  %1452 = vmatprep.subr.bf16.mxu0 %v1564_v51 }
  0x37   :  { %1479 = vmatprep.subr.bf16.mxu1 %v1564_v51 }
  0x39   :  { %1453 = vmatpush3.bf16.msra.mxu0 %v1564_v51 }
  0x3a   :  { %1487 = vmatpush3.bf16.msra.mxu1 %v1564_v51  ;;  %1454 = vmatprep.subr.bf16.mxu0 %v1571_v55 }
  0x3b   :  { %688 = vmatmul.mubr.bf16.gmra.mxu0 %v1548_v52  ;;  %1480 = vmatprep.subr.bf16.mxu1 %v1571_v55 }
  0x3c   :  { %785 = vmatmul.mubr.bf16.gmra.mxu1 %v1549_v53  ;;  %695 = vmatprep.mubr.bf16.mxu0 %v1551_v54 }
  0x3d   :  { %792 = vmatprep.mubr.bf16.mxu1 %v1553_v56  ;;  %1455 = vmatpush3.bf16.msra.mxu0 %v1571_v55 }
  0x3e   :  { %1488 = vmatpush3.bf16.msra.mxu1 %v1571_v55  ;;  %1456 = vmatprep.subr.bf16.mxu0 %v1578_v57 }
  0x3f   :  { %1481 = vmatprep.subr.bf16.mxu1 %v1578_v57 }
  0x41   :  { %1457 = vmatpush3.bf16.msra.mxu0 %v1578_v57 }
  0x42   :  { %1489 = vmatpush3.bf16.msra.mxu1 %v1578_v57 }
  0x43   :  { %696 = vmatmul.mubr.bf16.gmra.mxu0 %v1555_v58 }
  0x44   :  { %793 = vmatmul.mubr.bf16.gmra.mxu1 %v1556_v59  ;;  %703 = vmatprep.mubr.bf16.mxu0 %v1558_v60 }
  0x45   :  { %800 = vmatprep.mubr.bf16.mxu1 %v1560_v61 }
  0x4b   :  { %704 = vmatmul.mubr.bf16.gmra.mxu0 %v1562_v62 }
  0x4c   :  { %801 = vmatmul.mubr.bf16.gmra.mxu1 %v1563_v63  ;;  %711 = vmatprep.mubr.bf16.mxu0 %v1565_v0 }
  0x4d   :  { %808 = vmatprep.mubr.bf16.mxu1 %v1567_v1 }
  0x53   :  { %712 = vmatmul.mubr.bf16.gmra.mxu0 %v1569_v2 }
  0x54   :  { %809 = vmatmul.mubr.bf16.gmra.mxu1 %v1570_v3  ;;  %719 = vmatprep.mubr.bf16.mxu0 %v1572_v4 }
  0x55   :  { %816 = vmatprep.mubr.bf16.mxu1 %v1574_v5 }
  0x5b   :  { %720 = vmatmul.mubr.bf16.gmra.mxu0 %v1576_v6  ;;  %v1958_v6 = vld [vmem:[%s2210_s3 + $0x8] sm:$0xff]  }
  0x5c   :  { %817 = vmatmul.mubr.bf16.gmra.mxu1 %v1577_v7  ;;  %1458 = vmatprep.mubr.bf16.mxu0 %v1579_v8  ;;  %v1965_v8 = vld [vmem:[%s2210_s3 + $0x28] sm:$0xff]  }
  0x5d   :  { %1466 = vmatprep.mubr.bf16.mxu1 %v1580_v9  ;;  %v1970_v9 = vld [vmem:[%s2210_s3] sm:$0xff]  }
  0x5e   :  { %2224 = vst [vmem:[#allocation10_spill] sm:$0xff] %v1970_v9 }
  0x63   :  { %1459 = vmatmul.mubr.bf16.vlgmr.msra.gmra.mxu0 %v1581_v10  ;;  %v1975_v10 = vld [vmem:[%s2210_s3 + $0x20] sm:$0xff]  }
  0x64   :  { %1467 = vmatmul.mubr.bf16.vlgmr.msra.gmra.mxu1 %v1582_v11  ;;  %1462 = vmatprep.mubr.bf16.mxu0 %v1583_v12  ;;  %2225 = vst [vmem:[#allocation11_spill] sm:$0xff] %v1975_v10 }
  0x65   :  { %1470 = vmatprep.mubr.bf16.mxu1 %v1584_v13  ;;  %v1984_v13 = vld [vmem:[%s2210_s3 + $0x18] sm:$0xff]  }
  0x6b   :  { %1463 = vmatmul.mubr.bf16.gmra.mxu0 %v1585_v14  ;;  %v1989_v14 = vld [vmem:[%s2210_s3 + $0x38] sm:$0xff]  }
  0x6c   :  { %1471 = vmatmul.mubr.bf16.gmra.mxu1 %v1586_v15 }
  0xe3   :  { %v1869_v17 = vpop.f32.mrf.mxu0 }
  0xe4   :  { %v1871_v18 = vpop.f32.mrf.mxu1 }
  0xe5   :  { %v1873_v19 = vpop.f32.mrf.mxu0 }
  0xe6   :  { %v1875_v20 = vpop.f32.mrf.mxu1 }
  0xe7   :  { %v1877_v21 = vpop.f32.mrf.mxu0 }
  0xe8   :  { %v1879_v22 = vpop.f32.mrf.mxu1 }
  0xe9   :  { %v1881_v23 = vpop.f32.mrf.mxu0 }
  0xea   :  { %v1883_v24 = vpop.f32.mrf.mxu1 }
  0xeb   :  { %v1885_v25 = vpop.f32.mrf.mxu0  ;;  %v1383_v16 = vadd.f32 %v1883_v24, %v1879_v22 }
  0xec   :  { %v1887_v26 = vpop.f32.mrf.mxu1 }
  0xed   :  { %v1889_v27 = vpop.f32.mrf.mxu0 }
  0xee   :  { %v1891_v28 = vpop.f32.mrf.mxu1  ;;  %v1322_v10 = vadd.f32 %v1889_v27, %v1885_v25 }
  0xef   :  { %v1893_v29 = vpop.f32.mrf.mxu0 }
  0xf0   :  { %v1895_v30 = vpop.f32.mrf.mxu1 }
  0xf1   :  { %v1897_v31 = vpop.f32.mrf.mxu0 }
  0xf2   :  { %v1899_v32 = vpop.f32.mrf.mxu1 }
  0xf3   :  { %v1901_v33 = vpop.f32.mrf.mxu0  ;;  %v1389_v22 = vadd.f32 %v1899_v32, %v1895_v30 }
  0xf4   :  { %v1903_v34 = vpop.f32.mrf.mxu1 }
  0xf5   :  { %v1905_v35 = vpop.f32.mrf.mxu0 }
  0xf6   :  { %v1907_v36 = vpop.f32.mrf.mxu1 }
  0xf7   :  { %v1909_v37 = vpop.f32.mrf.mxu0  ;;  %v1392_v24 = vadd.f32 %v1907_v36, %v1903_v34 }
  0xf8   :  { %v1911_v38 = vpop.f32.mrf.mxu1 }
  0xf9   :  { %2217 = vst [vmem:[#allocation3_spill] sm:$0xff] %v1911_v38  ;;  %v1913_v39 = vpop.f32.mrf.mxu0  ;;  %v1380_v38 = vadd.f32 %v1875_v20, %v1871_v18 }
  0xfa   :  { %v1915_v40 = vpop.f32.mrf.mxu1 }
  0xfb   :  { %2218 = vst [vmem:[#allocation4_spill] sm:$0xff] %v1915_v40  ;;  %v1917_v41 = vpop.f32.mrf.mxu0 }
  0xfc   :  { %v1919_v42 = vpop.f32.mrf.mxu1 }
  0xfd   :  { %v1921_v43 = vpop.f32.mrf.mxu0 }
  0xfe   :  { %v1923_v44 = vpop.f32.mrf.mxu1  ;;  %v1334_v30 = vadd.f32 %v1921_v43, %v1917_v41 }
  0xff   :  { %v1925_v45 = vpop.f32.mrf.mxu0  ;;  %v1398_v34 = vadd.f32 %v1923_v44, %v1919_v42 }
 0x100   :  { %v1927_v46 = vpop.f32.mrf.mxu1 }
 0x101   :  { %2219 = vst [vmem:[#allocation5_spill] sm:$0xff] %v1927_v46  ;;  %v1929_v47 = vpop.f32.mrf.mxu0 }
 0x102   :  { %2220 = vst [vmem:[#allocation6_spill] sm:$0xff] %v1929_v47  ;;  %v1931_v48 = vpop.f32.mrf.mxu1  ;;  %v2002_v47 = vld [vmem:[%s2210_s3 + $0x10] sm:$0xff]  }
 0x103   :  { %2221 = vst [vmem:[#allocation7_spill] sm:$0xff] %v1931_v48  ;;  %v1933_v49 = vpop.f32.mrf.mxu0  ;;  %v1269_v48 = vunpack.c.l.bf16 %v2002_v47 }
 0x104   :  { %v1935_v50 = vpop.f32.mrf.mxu1 }
 0x105   :  { %v1339_v51 = vpop.f32.mrf.mxu0 }
 0x106   :  { %v1403_v52 = vpop.f32.mrf.mxu1 }
 0x107   :  { %v1937_v53 = vpop.f32.mrf.mxu0  ;;  %v1404_v27 = vadd.f32 %v1403_v52, %v1935_v50  ;;  %v2047_v52 = vadd.f32 %v1913_v39, %v1909_v37 }
 0x108   :  { %v1939_v54 = vpop.f32.mrf.mxu1 }
 0x109   :  { %v1941_v55 = vpop.f32.mrf.mxu0 }
 0x10a   :  { %v1943_v56 = vpop.f32.mrf.mxu1 }
 0x10b   :  { %v1344_v57 = vpop.f32.mrf.mxu0  ;;  %v1407_v42 = vadd.f32 %v1943_v56, %v1939_v54  ;;  %v50_v56 = vld [vmem:[#allocation2 + $0x58] sm:$0xff] }
 0x10c   :  { %v1408_v58 = vpop.f32.mrf.mxu1 }
 0x10d   :  { %v1345_v59 = vpop.f32.mrf.mxu0 }
 0x10e   :  { %v1409_v60 = vpop.f32.mrf.mxu1  ;;  %v1346_v9 = vadd.f32 %v1345_v59, %v1344_v57  ;;  %v1274_v57 = vunpack.c.h.bf16 %v1984_v13 }
 0x10f   :  { %v1347_v61 = vpop.f32.mrf.mxu0  ;;  %v1410_v18 = vadd.f32 %v1409_v60, %v1408_v58  ;;  %v49_v60 = vld [vmem:[#allocation2 + $0x50] sm:$0xff] }
 0x110   :  { %v1411_v62 = vpop.f32.mrf.mxu1 }
 0x111   :  { %v1348_v63 = vpop.f32.mrf.mxu0  ;;  %v803_v50 = vadd.f32 %v1410_v18, %v1346_v9  ;;  %v47_v9 = vld [vmem:[#allocation2 + $0x40] sm:$0xff] }
 0x112   :  { %v1412_v0 = vpop.f32.mrf.mxu1  ;;  %v1349_v36 = vadd.f32 %v1348_v63, %v1347_v61  ;;  %v39_v61 = vld [vmem:[#allocation2] sm:$0xff] }
 0x113   :  { %v1945_v1 = vpop.f32.mrf.mxu0  ;;  %v1413_v58 = vadd.f32 %v1412_v0, %v1411_v62 }
 0x114   :  { %v1947_v2 = vpop.f32.mrf.mxu1 }
 0x115   :  { %v1949_v3 = vpop.f32.mrf.mxu0 }
 0x116   :  { %v1951_v4 = vpop.f32.mrf.mxu1 }
 0x117   :  { %v1953_v5 = vpop.f32.mrf.mxu0  ;;  %v1416_v54 = vadd.f32 %v1951_v4, %v1947_v2 }
 0x118   :  { %2222 = vst [vmem:[#allocation8_spill] sm:$0xff] %v1953_v5  ;;  %v1960_v7 = vpop.f32.mrf.mxu1  ;;  %v2007_v5 = vld [vmem:[%s2210_s3 + $0x30] sm:$0xff]  }
 0x119   :  { %2223 = vst [vmem:[#allocation9_spill] sm:$0xff] %v1960_v7  ;;  %v1977_v11 = vpop.f32.mrf.mxu0  ;;  %v1319_v7 = vadd.f32 %v1881_v23, %v1877_v21  ;;  %v1285_v46 = vunpack.c.l.bf16 %v2007_v5  ;;  %v1325_v21 = vadd.f32 %v1897_v31, %v1893_v29  ;;  %v1328_v23 = vadd.f32 %v1905_v35, %v1901_v33 }
 0x11a   :  { %2226 = vst [vmem:[#allocation12_spill] sm:$0xff] %v1977_v11  ;;  %v1979_v12 = vpop.f32.mrf.mxu1  ;;  %v1316_v11 = vadd.f32 %v1873_v19, %v1869_v17  ;;  %v1386_v17 = vadd.f32 %v1891_v28, %v1887_v26  ;;  %v1340_v26 = vadd.f32 %v1339_v51, %v1933_v49  ;;  %v41_v49 = vld [vmem:[#allocation2 + $0x10] sm:$0xff] }
 0x11b   :  { %2227 = vst [vmem:[#allocation13_spill] sm:$0xff] %v1979_v12  ;;  %v1356_v15 = vpop.f32.mrf.mxu0  ;;  %v766_v35 = vadd.f32 %v1383_v16, %v1319_v7  ;;  %v774_v41 = vadd.f32 %v1389_v22, %v1325_v21  ;;  %v2049_v43 = vadd.f32 %v1392_v24, %v1328_v23  ;;  %v806_v21 = vadd.f32 %v1413_v58, %v1349_v36 }
 0x11c   :  { %v1420_v12 = vpop.f32.mrf.mxu1  ;;  %v771_v32 = vadd.f32 %v1386_v17, %v1322_v10  ;;  %v763_v33 = vadd.f32 %v1380_v38, %v1316_v11  ;;  %v1343_v38 = vadd.f32 %v1941_v55, %v1937_v53  ;;  %v795_v63 = vadd.f32 %v1404_v27, %v1340_v26  ;;  %v42_v17 = vld [vmem:[#allocation2 + $0x18] sm:$0xff]  ;;  %v40_v26 = vld [vmem:[#allocation2 + $0x8] sm:$0xff] }
 0x11d   :  { %v1357_v40 = vpop.f32.mrf.mxu0  ;;  %v787_v22 = vadd.f32 %v1398_v34, %v1334_v30  ;;  %v1352_v53 = vadd.f32 %v1949_v3, %v1945_v1  ;;  %v2229_v1 = vld [vmem:[#allocation5_spill] sm:$0xff]  ;;  %v2230_v3 = vld [vmem:[#allocation7_spill] sm:$0xff] }
 0x11e   :  { %v1421_v19 = vpop.f32.mrf.mxu1  ;;  %v1358_v0 = vadd.f32 %v1357_v40, %v1356_v15  ;;  %v2228_v15 = vld [vmem:[#allocation6_spill] sm:$0xff]  ;;  %v1401_v30 = vadd.f32 %v2230_v3, %v2229_v1 }
 0x11f   :  { %v2023_v20 = vpop.f32.mrf.mxu0  ;;  %v1422_v7 = vadd.f32 %v1421_v19, %v1420_v12  ;;  %v1337_v19 = vadd.f32 %v2228_v15, %v1925_v45 }
 0x120   :  { %v2035_v25 = vpop.f32.mrf.mxu1 }
 0x121   :  { %v1360_v28 = vpop.f32.mrf.mxu0  ;;  %v819_v34 = vadd.f32 %v1422_v7, %v1358_v0  ;;  %v2079_v0 = vld [vmem:[%s2211_s2] ss:$0 sm:$0xff] }
 0x122   :  { %v1424_v31 = vpop.f32.mrf.mxu1  ;;  %v1361_v36 = vadd.f32 %v1360_v28, %v2023_v20  ;;  %v2234_v20 = vld [vmem:[#allocation12_spill] sm:$0xff] }
 0x123   :  { %v1460_v51 = vpop.f32.mrf.mxu0  ;;  %v1425_v45 = vadd.f32 %v1424_v31, %v2035_v25  ;;  %v2235_v25 = vld [vmem:[#allocation9_spill] sm:$0xff] }
 0x124   :  { %v868_v59 = vadd.f32 %v1460_v51, %v771_v32  ;;  %v1468_v29 = vpop.f32.mrf.mxu1  ;;  %v48_v32 = vld [vmem:[#allocation2 + $0x48] sm:$0xff]  ;;  %v45_v51 = vld [vmem:[#allocation2 + $0x30] sm:$0xff] }
 0x125   :  { %v900_v44 = vadd.f32 %v1468_v29, %v803_v50  ;;  %v859_v62 = vpop.f32.mrf.mxu0  ;;  %v798_v29 = vadd.f32 %v1407_v42, %v1343_v38  ;;  %v53_v42 = vld [vmem:[#allocation2 + $0x70] sm:$0xff] }
 0x126   :  { %v924_v37 = vadd.f32 %v868_v59, %v41_v49  ;;  %v860_v39 = vadd.f32 %v859_v62, %v763_v33  ;;  %v891_v10 = vpop.f32.mrf.mxu1  ;;  %v2231_v59 = vld [vmem:[#allocation3_spill] sm:$0xff]  ;;  %v2233_v62 = vld [vmem:[#allocation8_spill] sm:$0xff]  ;;  %v2236_v31 = vld [vmem:[#allocation13_spill] sm:$0xff] }
 0x127   :  { %v932_v11 = vadd.f32 %v900_v44, %v49_v60  ;;  %v892_v16 = vadd.f32 %v891_v10, %v795_v63  ;;  %v1461_v18 = vpop.f32.mrf.mxu0  ;;  %v2232_v60 = vld [vmem:[#allocation4_spill] sm:$0xff]  ;;  %v1355_v28 = vadd.f32 %v2234_v20, %v2233_v62  ;;  %v1419_v63 = vadd.f32 %v2236_v31, %v2235_v25 }
 0x128   :  { %941 = vst.msk [vmem:[#allocation2 + $0x10] sm:$0xff] %vm22_vm0, %v924_v37  ;;  %v922_v40 = vadd.f32 %v860_v39, %v39_v61  ;;  %v871_v55 = vadd.f32 %v1461_v18, %v774_v41  ;;  %v1469_v12 = vpop.f32.mrf.mxu1  ;;  %v1395_v41 = vadd.f32 %v2232_v60, %v2231_v59  ;;  %v811_v61 = vadd.f32 %v1416_v54, %v1352_v53  ;;  %v43_v39 = vld [vmem:[#allocation2 + $0x20] sm:$0xff] }
 0x129   :  { %949 = vst.msk [vmem:[#allocation2 + $0x50] sm:$0xff] %vm22_vm0, %v932_v11  ;;  %v930_v23 = vadd.f32 %v892_v16, %v47_v9  ;;  %v903_v24 = vadd.f32 %v1469_v12, %v806_v21  ;;  %v862_v27 = vpop.f32.mrf.mxu0  ;;  %v51_v16 = vld [vmem:[#allocation2 + $0x60] sm:$0xff]  ;;  %v790_v18 = vadd.f32 %v1401_v30, %v1337_v19  ;;  %v1270_v21 = vunpack.c.h.bf16 %v2002_v47  ;;  %v54_v19 = vld [vmem:[#allocation2 + $0x78] sm:$0xff] }
 0x12a   :  { %939 = vst.msk [vmem:[#allocation2] sm:$0xff] %vm22_vm0, %v922_v40  ;;  %v925_v2 = vadd.f32 %v871_v55, %v42_v17  ;;  %v863_v4 = vadd.f32 %v862_v27, %v766_v35  ;;  %v894_v33 = vpop.f32.mrf.mxu1  ;;  %v46_v40 = vld [vmem:[#allocation2 + $0x38] sm:$0xff]  ;;  %v1286_v12 = vunpack.c.h.bf16 %v2007_v5  ;;  %v782_v27 = vadd.f32 %v1395_v41, %v2047_v52 }
 0x12b   :  { %947 = vst.msk [vmem:[#allocation2 + $0x40] sm:$0xff] %vm22_vm0, %v930_v23  ;;  %v933_v58 = vadd.f32 %v903_v24, %v50_v56  ;;  %v895_v49 = vadd.f32 %v894_v33, %v798_v29  ;;  %v1464_v50 = vpop.f32.mrf.mxu0  ;;  %v822_v56 = vadd.f32 %v1425_v45, %v1361_v36  ;;  %v2237_v33 = vunpack.c.l.bf16 %v1958_v6 }
 0x12c   :  { %942 = vst.msk [vmem:[#allocation2 + $0x18] sm:$0xff] %vm22_vm0, %v925_v2  ;;  %v923_v38 = vadd.f32 %v863_v4, %v40_v26  ;;  %v884_v35 = vadd.f32 %v1464_v50, %v787_v22  ;;  %v1472_v44 = vpop.f32.mrf.mxu1  ;;  %v44_v2 = vld [vmem:[#allocation2 + $0x28] sm:$0xff]  ;;  %v2238_v50 = vunpack.c.l.bf16 %v1965_v8 }
 0x12d   :  { %950 = vst.msk [vmem:[#allocation2 + $0x58] sm:$0xff] %vm22_vm0, %v933_v58  ;;  %v931_v7 = vadd.f32 %v895_v49, %v48_v32  ;;  %v916_v37 = vadd.f32 %v1472_v44, %v819_v34  ;;  %v875_v9 = vpop.f32.mrf.mxu0  ;;  %v814_v32 = vadd.f32 %v1419_v63, %v1355_v28  ;;  %v52_v49 = vld [vmem:[#allocation2 + $0x68] sm:$0xff]  ;;  %v2239_v44 = vld [vmem:[#allocation10_spill] sm:$0xff]  ;;  %v2241_v63 = vld [vmem:[#allocation11_spill] sm:$0xff] }
 0x12e   :  { %940 = vst.msk [vmem:[#allocation2 + $0x8] sm:$0xff] %vm22_vm0, %v923_v38  ;;  %v928_v10 = vadd.f32 %v884_v35, %v45_v51  ;;  %v876_v11 = vadd.f32 %v875_v9, %v2049_v43  ;;  %v907_v17 = vpop.f32.mrf.mxu1 }
 0x12f   :  { %v960_v22 = vld [vmem:[#allocation2 + $0x10] sm:$0xff]  ;;  %948 = vst.msk [vmem:[#allocation2 + $0x48] sm:$0xff] %vm22_vm0, %v931_v7  ;;  %v936_v53 = vadd.f32 %v916_v37, %v53_v42  ;;  %v908_v54 = vadd.f32 %v907_v17, %v811_v61  ;;  %v1465_v55 = vpop.f32.mrf.mxu0  ;;  %v2240_v61 = vunpack.c.l.bf16 %v2239_v44  ;;  %v2242_v7 = vunpack.c.l.bf16 %v2241_v63 }
 0x130   :  { %v983_v15 = vadd.f32 %v2079_v0, %v960_v22  ;;  %v968_v23 = vld [vmem:[#allocation2 + $0x50] sm:$0xff]  ;;  %945 = vst.msk [vmem:[#allocation2 + $0x30] sm:$0xff] %vm22_vm0, %v928_v10  ;;  %v926_v43 = vadd.f32 %v876_v11, %v43_v39  ;;  %v887_v24 = vadd.f32 %v1465_v55, %v790_v18  ;;  %v1473_v26 = vpop.f32.mrf.mxu1  ;;  %v2243_v17 = vunpack.c.h.bf16 %v1958_v6 }
 0x131   :  { %v991_v29 = vadd.f32 %v2079_v0, %v968_v23  ;;  %v958_v1 = vld [vmem:[#allocation2] sm:$0xff]  ;;  %953 = vst.msk [vmem:[#allocation2 + $0x70] sm:$0xff] %vm22_vm0, %v936_v53  ;;  %v934_v3 = vadd.f32 %v908_v54, %v51_v16  ;;  %v919_v30 = vadd.f32 %v1473_v26, %v822_v56  ;;  %v878_v4 = vpop.f32.mrf.mxu0  ;;  %v2244_v55 = vunpack.c.h.bf16 %v1965_v8 }
 0x132   :  { %v1031_v34 = vadd.f32 %v2237_v33, %v983_v15  ;;  %v981_v36 = vadd.f32 %v2079_v0, %v958_v1  ;;  %v966_v45 = vld [vmem:[#allocation2 + $0x40] sm:$0xff]  ;;  %943 = vst.msk [vmem:[#allocation2 + $0x20] sm:$0xff] %vm22_vm0, %v926_v43  ;;  %v929_v58 = vadd.f32 %v887_v24, %v46_v40  ;;  %v879_v52 = vadd.f32 %v878_v4, %v782_v27  ;;  %v910_v51 = vpop.f32.mrf.mxu1 }
 0x133   :  { %v1039_v59 = vadd.f32 %v2238_v50, %v991_v29  ;;  %v989_v60 = vadd.f32 %v2079_v0, %v966_v45  ;;  %v961_v41 = vld [vmem:[#allocation2 + $0x18] sm:$0xff]  ;;  %951 = vst.msk [vmem:[#allocation2 + $0x60] sm:$0xff] %vm22_vm0, %v934_v3  ;;  %v937_v38 = vadd.f32 %v919_v30, %v54_v19  ;;  %v911_v35 = vadd.f32 %v910_v51, %v814_v32 }
 0x134   :  { %v1047_v42 = vmax.f32 %v1031_v34, 0.0  ;;  %v1029_v62 = vadd.f32 %v2240_v61, %v981_v36  ;;  %v984_v20 = vadd.f32 %v2079_v0, %v961_v41  ;;  %v969_v28 = vld [vmem:[#allocation2 + $0x58] sm:$0xff]  ;;  %946 = vst.msk [vmem:[#allocation2 + $0x38] sm:$0xff] %vm22_vm0, %v929_v58  ;;  %v927_v25 = vadd.f32 %v879_v52, %v44_v2 }
 0x135   :  { %v1055_v31 = vmax.f32 %v1039_v59, 0.0  ;;  %v1037_v37 = vadd.f32 %v2242_v7, %v989_v60  ;;  %v992_v39 = vadd.f32 %v2079_v0, %v969_v28  ;;  %v959_v9 = vld [vmem:[#allocation2 + $0x8] sm:$0xff]  ;;  %954 = vst.msk [vmem:[#allocation2 + $0x78] sm:$0xff] %vm22_vm0, %v937_v38  ;;  %v935_v10 = vadd.f32 %v911_v35, %v52_v49 }
 0x136   :  { %v1245_v11 = vpack.c.bf16 %v1047_v42, %v1047_v42  ;;  %v1045_v16 = vmax.f32 %v1029_v62, 0.0  ;;  %v1032_v18 = vadd.f32 %v2243_v17, %v984_v20  ;;  %v982_v22 = vadd.f32 %v2079_v0, %v959_v9  ;;  %v967_v53 = vld [vmem:[#allocation2 + $0x48] sm:$0xff]  ;;  %944 = vst.msk [vmem:[#allocation2 + $0x28] sm:$0xff] %vm22_vm0, %v927_v25 }
 0x137   :  { %v1253_v54 = vpack.c.bf16 %v1055_v31, %v1055_v31  ;;  %v1053_v40 = vmax.f32 %v1037_v37, 0.0  ;;  %v1040_v56 = vadd.f32 %v2244_v55, %v992_v39  ;;  %v990_v15 = vadd.f32 %v2079_v0, %v967_v53  ;;  %v964_v23 = vld [vmem:[#allocation2 + $0x30] sm:$0xff]  ;;  %952 = vst.msk [vmem:[#allocation2 + $0x68] sm:$0xff] %vm22_vm0, %v935_v10 }
 0x138   :  { %1128 = vst.msk [vmem:[%s2212_s4 + $0x8] sm:$0xf] %vm1125_vm1, %v1245_v11  ;;  %v1243_v6 = vpack.c.bf16 %v1045_v16, %v1045_v16  ;;  %v1048_v43 = vmax.f32 %v1032_v18, 0.0  ;;  %v2245_v24 = vunpack.c.h.bf16 %v2239_v44  ;;  %v987_v26 = vadd.f32 %v2079_v0, %v964_v23  ;;  %v972_v27 = vld [vmem:[#allocation2 + $0x70] sm:$0xff] }
 0x139   :  { %1136 = vst.msk [vmem:[%s2212_s4 + $0x28] sm:$0xf] %vm1125_vm1, %v1253_v54  ;;  %v1251_v8 = vpack.c.bf16 %v1053_v40, %v1053_v40  ;;  %v1056_v29 = vmax.f32 %v1040_v56, 0.0  ;;  %v2246_v1 = vunpack.c.h.bf16 %v2241_v63  ;;  %v995_v30 = vadd.f32 %v2079_v0, %v972_v27  ;;  %v962_v2 = vld [vmem:[#allocation2 + $0x20] sm:$0xff] }
 0x13a   :  { %v1030_v19 = vadd.f32 %v2245_v24, %v982_v22  ;;  %1126 = vst.msk [vmem:[%s2212_s4] sm:$0xf] %vm1125_vm1, %v1243_v6  ;;  %v1246_v4 = vpack.c.bf16 %v1048_v43, %v1048_v43  ;;  %v2247_v33 = vunpack.c.l.bf16 %v1984_v13  ;;  %v985_v36 = vadd.f32 %v2079_v0, %v962_v2  ;;  %v970_v45 = vld [vmem:[#allocation2 + $0x60] sm:$0xff] }
 0x13b   :  { %v1038_v3 = vadd.f32 %v2246_v1, %v990_v15  ;;  %1134 = vst.msk [vmem:[%s2212_s4 + $0x20] sm:$0xf] %vm1125_vm1, %v1251_v8  ;;  %v1254_v58 = vpack.c.bf16 %v1056_v29, %v1056_v29  ;;  %v2248_v49 = vunpack.c.l.bf16 %v1989_v14  ;;  %v993_v50 = vadd.f32 %v2079_v0, %v970_v45  ;;  %v965_v59 = vld [vmem:[#allocation2 + $0x38] sm:$0xff] }
 0x13c   :  { %v1046_v32 = vmax.f32 %v1030_v19, 0.0  ;;  %v1035_v34 = vadd.f32 %v2247_v33, %v987_v26  ;;  %1129 = vst.msk [vmem:[%s2212_s4 + $0xc] sm:$0xf] %vm1125_vm1, %v1246_v4  ;;  %v1033_v38 = vadd.f32 %v1269_v48, %v985_v36  ;;  %v988_v35 = vadd.f32 %v2079_v0, %v965_v59  ;;  %v973_v42 = vld [vmem:[#allocation2 + $0x78] sm:$0xff] }
 0x13d   :  { %v1054_v52 = vmax.f32 %v1038_v3, 0.0  ;;  %v1043_v51 = vadd.f32 %v2248_v49, %v995_v30  ;;  %1137 = vst.msk [vmem:[%s2212_s4 + $0x2c] sm:$0xf] %vm1125_vm1, %v1254_v58  ;;  %v1041_v62 = vadd.f32 %v1285_v46, %v993_v50  ;;  %v996_v20 = vadd.f32 %v2079_v0, %v973_v42  ;;  %v963_v28 = vld [vmem:[#allocation2 + $0x28] sm:$0xff] }
 0x13e   :  { %v1244_v60 = vpack.c.bf16 %v1046_v32, %v1046_v32  ;;  %v1051_v41 = vmax.f32 %v1035_v34, 0.0  ;;  %v1049_v25 = vmax.f32 %v1033_v38, 0.0  ;;  %v1036_v31 = vadd.f32 %v1274_v57, %v988_v35  ;;  %v971_v7 = vld [vmem:[#allocation2 + $0x68] sm:$0xff] }
 0x13f   :  { %v1252_v44 = vpack.c.bf16 %v1054_v52, %v1054_v52  ;;  %v1059_v61 = vmax.f32 %v1043_v51, 0.0  ;;  %v986_v63 = vadd.f32 %v2079_v0, %v963_v28  ;;  %v1057_v37 = vmax.f32 %v1041_v62, 0.0 }
 0x140   :  { %1127 = vst.msk [vmem:[%s2212_s4 + $0x4] sm:$0xf] %vm1125_vm1, %v1244_v60  ;;  %v1249_v48 = vpack.c.bf16 %v1051_v41, %v1051_v41  ;;  %v2249_v39 = vunpack.c.h.bf16 %v1989_v14  ;;  %v994_v10 = vadd.f32 %v2079_v0, %v971_v7  ;;  %v1247_v13 = vpack.c.bf16 %v1049_v25, %v1049_v25 }
 0x141   :  { %1135 = vst.msk [vmem:[%s2212_s4 + $0x24] sm:$0xf] %vm1125_vm1, %v1252_v44  ;;  %v1257_v46 = vpack.c.bf16 %v1059_v61, %v1059_v61  ;;  %v1052_v57 = vmax.f32 %v1036_v31, 0.0  ;;  %v1034_v11 = vadd.f32 %v1270_v21, %v986_v63  ;;  %v1255_v16 = vpack.c.bf16 %v1057_v37, %v1057_v37 }
 0x142   :  { %v1044_v9 = vadd.f32 %v2249_v39, %v996_v20  ;;  %1132 = vst.msk [vmem:[%s2212_s4 + $0x18] sm:$0xf] %vm1125_vm1, %v1249_v48  ;;  %v1042_v0 = vadd.f32 %v1286_v12, %v994_v10  ;;  %1130 = vst.msk [vmem:[%s2212_s4 + $0x10] sm:$0xf] %vm1125_vm1, %v1247_v13 }
 0x143   :  { %1140 = vst.msk [vmem:[%s2212_s4 + $0x38] sm:$0xf] %vm1125_vm1, %v1257_v46  ;;  %v1250_v17 = vpack.c.bf16 %v1052_v57, %v1052_v57  ;;  %v1050_v18 = vmax.f32 %v1034_v11, 0.0  ;;  %1138 = vst.msk [vmem:[%s2212_s4 + $0x30] sm:$0xf] %vm1125_vm1, %v1255_v16 }
 0x144   :  { %v1060_v14 = vmax.f32 %v1044_v9, 0.0  ;;  %v1058_v21 = vmax.f32 %v1042_v0, 0.0 }
 0x145   :  { %1133 = vst.msk [vmem:[%s2212_s4 + $0x1c] sm:$0xf] %vm1125_vm1, %v1250_v17  ;;  %v1248_v5 = vpack.c.bf16 %v1050_v18, %v1050_v18 }
 0x146   :  { %v1258_v47 = vpack.c.bf16 %v1060_v14, %v1060_v14  ;;  %v1256_v12 = vpack.c.bf16 %v1058_v21, %v1058_v21 }
 0x147   :  { %1131 = vst.msk [vmem:[%s2212_s4 + $0x14] sm:$0xf] %vm1125_vm1, %v1248_v5 }
 0x148   :  { %1141 = vst.msk [vmem:[%s2212_s4 + $0x3c] sm:$0xf] %vm1125_vm1, %v1258_v47  ;;  %1139 = vst.msk [vmem:[%s2212_s4 + $0x34] sm:$0xf] %vm1125_vm1, %v1256_v12 }

// kernel: cancer_classifier_forward.26
= control target key start
LH: loop header
LB: loop body
LE: loop exit
PB: predicated region body
PF: predicated region fallthrough
CT: control target
= control target key end

     0   :  { %vm19_vm0 = vcmask 523264   ;;  %vm1074_vm1 = vcmask 519168   ;;  %s1926_s1 = inlined_call_operand.vmem [shape: bf16[640,64], index: 1, kind: input, shape index: {}]   ;;  %s1927_s0 = inlined_call_operand.vmem [shape: bf16[128,640], index: 0, kind: input, shape index: {}]   ;;  %s1928_s2 = inlined_call_operand.vmem [shape: f32[1,64], index: 2, kind: input, shape index: {}]   ;;  %s1929_s3 = inlined_call_operand.vmem [shape: bf16[128,64], index: 3, kind: output, shape index: {}]  }
   0x1   :  { %v1401_v0 = vld [vmem:[%s1926_s1 + $0x78] sm:$0xff]   ;;  %v1405_v4 = vld [vmem:[%s1926_s1 + $0x70] sm:$0xff]   ;;  %v1409_v8 = vld [vmem:[%s1926_s1 + $0x68] sm:$0xff]  }
   0x2   :  { %v1402_v1 = vld [vmem:[%s1926_s1 + $0xf8] sm:$0xff]   ;;  %1208 = vmatprep.subr.bf16.mxu0 %v1401_v0  ;;  %v1406_v5 = vld [vmem:[%s1926_s1 + $0xf0] sm:$0xff]   ;;  %v1410_v9 = vld [vmem:[%s1926_s1 + $0xe8] sm:$0xff]  }
   0x3   :  { %v1403_v2 = vld [vmem:[%s1926_s1 + $0x38] sm:$0xff]   ;;  %1272 = vmatprep.subr.bf16.mxu1 %v1402_v1  ;;  %v1407_v6 = vld [vmem:[%s1926_s1 + $0x30] sm:$0xff]   ;;  %v1411_v10 = vld [vmem:[%s1926_s1 + $0x28] sm:$0xff]  }
   0x4   :  { %v1404_v3 = vld [vmem:[%s1926_s1 + $0xb8] sm:$0xff]   ;;  %1209 = vmatpush3.bf16.msra.mxu0 %v1403_v2  ;;  %v1408_v7 = vld [vmem:[%s1926_s1 + $0xb0] sm:$0xff]   ;;  %v1412_v11 = vld [vmem:[%s1926_s1 + $0xa8] sm:$0xff]  }
   0x5   :  { %1273 = vmatpush3.bf16.msra.mxu1 %v1404_v3  ;;  %1210 = vmatprep.subr.bf16.mxu0 %v1405_v4  ;;  %v1413_v12 = vld [vmem:[%s1926_s1 + $0x60] sm:$0xff]   ;;  %v1417_v16 = vld [vmem:[%s1926_s1 + $0x58] sm:$0xff]   ;;  %v1421_v20 = vld [vmem:[%s1926_s1 + $0x50] sm:$0xff]  }
   0x6   :  { %1274 = vmatprep.subr.bf16.mxu1 %v1406_v5  ;;  %v1414_v13 = vld [vmem:[%s1926_s1 + $0xe0] sm:$0xff]   ;;  %v1418_v17 = vld [vmem:[%s1926_s1 + $0xd8] sm:$0xff]   ;;  %v1422_v21 = vld [vmem:[%s1926_s1 + $0xd0] sm:$0xff]  }
   0x7   :  { %v1415_v14 = vld [vmem:[%s1926_s1 + $0x20] sm:$0xff]   ;;  %v1419_v18 = vld [vmem:[%s1926_s1 + $0x18] sm:$0xff]   ;;  %v1423_v22 = vld [vmem:[%s1926_s1 + $0x10] sm:$0xff]  }
   0x8   :  { %1211 = vmatpush3.bf16.msra.mxu0 %v1407_v6  ;;  %v1416_v15 = vld [vmem:[%s1926_s1 + $0xa0] sm:$0xff]   ;;  %v1420_v19 = vld [vmem:[%s1926_s1 + $0x98] sm:$0xff]   ;;  %v1424_v23 = vld [vmem:[%s1926_s1 + $0x90] sm:$0xff]  }
   0x9   :  { %1275 = vmatpush3.bf16.msra.mxu1 %v1408_v7  ;;  %1212 = vmatprep.subr.bf16.mxu0 %v1409_v8  ;;  %v1425_v24 = vld [vmem:[%s1926_s1 + $0x48] sm:$0xff]   ;;  %v1429_v28 = vld [vmem:[%s1926_s1 + $0x40] sm:$0xff]   ;;  %v1439_v36 = vld [vmem:[%s1926_s1 + $0x138] sm:$0xff]  }
   0xa   :  { %1276 = vmatprep.subr.bf16.mxu1 %v1410_v9  ;;  %v1426_v25 = vld [vmem:[%s1926_s1 + $0xc8] sm:$0xff]   ;;  %v1430_v29 = vld [vmem:[%s1926_s1 + $0xc0] sm:$0xff]   ;;  %v1446_v39 = vld [vmem:[%s1926_s1 + $0x130] sm:$0xff]  }
   0xb   :  { %v1427_v26 = vld [vmem:[%s1926_s1 + $0x8] sm:$0xff]   ;;  %v1431_v30 = vld [vmem:[%s1926_s1] sm:$0xff]   ;;  %v1449_v43 = vld [vmem:[%s1927_s0 + $0x5c] ss:$20 sps:$4 sm:$0xff]  }
   0xc   :  { %1213 = vmatpush3.bf16.msra.mxu0 %v1411_v10  ;;  %v1428_v27 = vld [vmem:[%s1926_s1 + $0x88] sm:$0xff]   ;;  %v1432_v31 = vld [vmem:[%s1926_s1 + $0x80] sm:$0xff]   ;;  %v1454_v48 = vld [vmem:[%s1927_s0 + $0x7c] ss:$20 sps:$4 sm:$0xff]  }
   0xd   :  { %1277 = vmatpush3.bf16.msra.mxu1 %v1412_v11  ;;  %1214 = vmatprep.subr.bf16.mxu0 %v1413_v12  ;;  %v1433_v32 = vld [vmem:[%s1927_s0] ss:$20 sps:$4 sm:$0xff]   ;;  %v1435_v33 = vld [vmem:[%s1927_s0 + $0x4] ss:$20 sps:$4 sm:$0xff]   ;;  %v1436_v34 = vld [vmem:[%s1927_s0 + $0x8] ss:$20 sps:$4 sm:$0xff]  }
   0xe   :  { %1278 = vmatprep.subr.bf16.mxu1 %v1414_v13  ;;  %v1438_v35 = vld [vmem:[%s1927_s0 + $0xc] ss:$20 sps:$4 sm:$0xff]   ;;  %660 = vmatprep.mubr.bf16.mxu0 %v1435_v33  ;;  %v1442_v38 = vld [vmem:[%s1927_s0 + $0x34] ss:$20 sps:$4 sm:$0xff]   ;;  %v1445_v41 = vld [vmem:[%s1927_s0 + $0x30] ss:$20 sps:$4 sm:$0xff]  }
   0xf   :  { %757 = vmatprep.mubr.bf16.mxu1 %v1438_v35  ;;  %v1440_v37 = vld [vmem:[%s1927_s0 + $0x2c] ss:$20 sps:$4 sm:$0xff]   ;;  %v1444_v40 = vld [vmem:[%s1927_s0 + $0x28] ss:$20 sps:$4 sm:$0xff]   ;;  %v1451_v46 = vld [vmem:[%s1927_s0 + $0x50] ss:$20 sps:$4 sm:$0xff]  }
  0x10   :  { %1215 = vmatpush3.bf16.msra.mxu0 %v1415_v14  ;;  %v1447_v42 = vld [vmem:[%s1927_s0 + $0x54] ss:$20 sps:$4 sm:$0xff]   ;;  %v1460_v45 = vld [vmem:[%s1926_s1 + $0x120] sm:$0xff]   ;;  %v1452_v47 = vld [vmem:[%s1927_s0 + $0x58] ss:$20 sps:$4 sm:$0xff]  }
  0x11   :  { %1279 = vmatpush3.bf16.msra.mxu1 %v1416_v15  ;;  %1216 = vmatprep.subr.bf16.mxu0 %v1417_v16  ;;  %v1453_v44 = vld [vmem:[%s1926_s1 + $0x128] sm:$0xff]   ;;  %v1456_v49 = vld [vmem:[%s1927_s0 + $0x84] ss:$20 sps:$4 sm:$0xff]   ;;  %v1474_v51 = vld [vmem:[%s1926_s1 + $0x110] sm:$0xff]   ;;  %v1497_v16 = vmov 0.0  }
  0x12   :  { %1280 = vmatprep.subr.bf16.mxu1 %v1418_v17  ;;  %v1467_v50 = vld [vmem:[%s1926_s1 + $0x118] sm:$0xff]   ;;  %v1459_v53 = vld [vmem:[%s1927_s0 + $0x80] ss:$20 sps:$4 sm:$0xff]   ;;  %v1481_v55 = vld [vmem:[%s1926_s1 + $0x108] sm:$0xff]   ;;  %22 = vst.msk [vmem:[#allocation2 + $0x10] sm:$0xff] %vm19_vm0, %v1497_v16 }
  0x13   :  { %v1458_v52 = vld [vmem:[%s1927_s0 + $0x78] ss:$20 sps:$4 sm:$0xff]   ;;  %v1488_v57 = vld [vmem:[%s1926_s1 + $0x100] sm:$0xff]   ;;  %v1466_v59 = vld [vmem:[%s1927_s0 + $0xa8] ss:$20 sps:$4 sm:$0xff]   ;;  %20 = vst.msk [vmem:[#allocation2] sm:$0xff] %vm19_vm0, %v1497_v16 }
  0x14   :  { %1217 = vmatpush3.bf16.msra.mxu0 %v1419_v18  ;;  %v1461_v54 = vld [vmem:[%s1927_s0 + $0xa4] ss:$20 sps:$4 sm:$0xff]   ;;  %v1463_v56 = vld [vmem:[%s1927_s0 + $0xac] ss:$20 sps:$4 sm:$0xff]   ;;  %v1470_v61 = vld [vmem:[%s1927_s0 + $0xd4] ss:$20 sps:$4 sm:$0xff]  }
  0x15   :  { %1281 = vmatpush3.bf16.msra.mxu1 %v1420_v19  ;;  %1218 = vmatprep.subr.bf16.mxu0 %v1421_v20  ;;  %v1465_v58 = vld [vmem:[%s1927_s0 + $0xa0] ss:$20 sps:$4 sm:$0xff]   ;;  %v1472_v62 = vld [vmem:[%s1927_s0 + $0xc8] ss:$20 sps:$4 sm:$0xff]   ;;  %v1473_v63 = vld [vmem:[%s1927_s0 + $0xd0] ss:$20 sps:$4 sm:$0xff]  }
  0x16   :  { %1282 = vmatprep.subr.bf16.mxu1 %v1422_v21  ;;  %v1468_v60 = vld [vmem:[%s1927_s0 + $0xcc] ss:$20 sps:$4 sm:$0xff]   ;;  %v1475_v0 = vld [vmem:[%s1927_s0 + $0xf4] ss:$20 sps:$4 sm:$0xff]   ;;  %v1477_v1 = vld [vmem:[%s1927_s0 + $0xfc] ss:$20 sps:$4 sm:$0xff]  }
  0x17   :  { %v1479_v2 = vld [vmem:[%s1927_s0 + $0xf0] ss:$20 sps:$4 sm:$0xff]   ;;  %v1480_v3 = vld [vmem:[%s1927_s0 + $0xf8] ss:$20 sps:$4 sm:$0xff]   ;;  %v1487_v7 = vld [vmem:[%s1927_s0 + $0x120] ss:$20 sps:$4 sm:$0xff]  }
  0x18   :  { %1219 = vmatpush3.bf16.msra.mxu0 %v1423_v22  ;;  %v1482_v4 = vld [vmem:[%s1927_s0 + $0x11c] ss:$20 sps:$4 sm:$0xff]   ;;  %v1484_v5 = vld [vmem:[%s1927_s0 + $0x124] ss:$20 sps:$4 sm:$0xff]   ;;  %v1493_v12 = vld [vmem:[%s1927_s0 + $0x60] ss:$20 sps:$4 sm:$0xff]  }
  0x19   :  { %1283 = vmatpush3.bf16.msra.mxu1 %v1424_v23  ;;  %1220 = vmatprep.subr.bf16.mxu0 %v1425_v24  ;;  %v1486_v6 = vld [vmem:[%s1927_s0 + $0x118] ss:$20 sps:$4 sm:$0xff]   ;;  %v1489_v8 = vld [vmem:[%s1927_s0 + $0x10] ss:$20 sps:$4 sm:$0xff]   ;;  %v1494_v13 = vld [vmem:[%s1927_s0 + $0x100] ss:$20 sps:$4 sm:$0xff]  }
  0x1a   :  { %1284 = vmatprep.subr.bf16.mxu1 %v1426_v25  ;;  %v1490_v9 = vld [vmem:[%s1927_s0 + $0xb0] ss:$20 sps:$4 sm:$0xff]   ;;  %v1491_v10 = vld [vmem:[%s1927_s0 + $0x38] ss:$20 sps:$4 sm:$0xff]   ;;  %v1495_v14 = vld [vmem:[%s1927_s0 + $0x88] ss:$20 sps:$4 sm:$0xff]  }
  0x1b   :  { %v1492_v11 = vld [vmem:[%s1927_s0 + $0xd8] ss:$20 sps:$4 sm:$0xff]   ;;  %v1496_v15 = vld [vmem:[%s1927_s0 + $0x128] ss:$20 sps:$4 sm:$0xff]   ;;  %21 = vst.msk [vmem:[#allocation2 + $0x8] sm:$0xff] %vm19_vm0, %v1497_v16  ;;  %23 = vst.msk [vmem:[#allocation2 + $0x18] sm:$0xff] %vm19_vm0, %v1497_v16 }
  0x1c   :  { %1221 = vmatpush3.bf16.msra.mxu0 %v1427_v26  ;;  %24 = vst.msk [vmem:[#allocation2 + $0x20] sm:$0xff] %vm19_vm0, %v1497_v16  ;;  %25 = vst.msk [vmem:[#allocation2 + $0x28] sm:$0xff] %vm19_vm0, %v1497_v16 }
  0x1d   :  { %1285 = vmatpush3.bf16.msra.mxu1 %v1428_v27  ;;  %1222 = vmatprep.subr.bf16.mxu0 %v1429_v28  ;;  %26 = vst.msk [vmem:[#allocation2 + $0x30] sm:$0xff] %vm19_vm0, %v1497_v16  ;;  %27 = vst.msk [vmem:[#allocation2 + $0x38] sm:$0xff] %vm19_vm0, %v1497_v16 }
  0x1e   :  { %1286 = vmatprep.subr.bf16.mxu1 %v1430_v29  ;;  %28 = vst.msk [vmem:[#allocation2 + $0x40] sm:$0xff] %vm19_vm0, %v1497_v16  ;;  %29 = vst.msk [vmem:[#allocation2 + $0x48] sm:$0xff] %vm19_vm0, %v1497_v16 }
  0x1f   :  { %30 = vst.msk [vmem:[#allocation2 + $0x50] sm:$0xff] %vm19_vm0, %v1497_v16  ;;  %31 = vst.msk [vmem:[#allocation2 + $0x58] sm:$0xff] %vm19_vm0, %v1497_v16 }
  0x20   :  { %1223 = vmatpush3.bf16.msra.mxu0 %v1431_v30  ;;  %32 = vst.msk [vmem:[#allocation2 + $0x60] sm:$0xff] %vm19_vm0, %v1497_v16  ;;  %33 = vst.msk [vmem:[#allocation2 + $0x68] sm:$0xff] %vm19_vm0, %v1497_v16 }
  0x21   :  { %1287 = vmatpush3.bf16.msra.mxu1 %v1432_v31  ;;  %1352 = vmatprep.subr.bf16.mxu0 %v1439_v36  ;;  %34 = vst.msk [vmem:[#allocation2 + $0x70] sm:$0xff] %vm19_vm0, %v1497_v16  ;;  %35 = vst.msk [vmem:[#allocation2 + $0x78] sm:$0xff] %vm19_vm0, %v1497_v16 }
  0x22   :  { %1384 = vmatprep.subr.bf16.mxu1 %v1439_v36 }
  0x23   :  { %661 = vmatmul.mubr.bf16.vlgmr.msra.gmra.mxu0 %v1433_v32 }
  0x24   :  { %758 = vmatmul.mubr.bf16.vlgmr.msra.gmra.mxu1 %v1436_v34  ;;  %1353 = vmatpush3.bf16.msra.mxu0 %v1439_v36 }
  0x25   :  { %1392 = vmatpush3.bf16.msra.mxu1 %v1439_v36  ;;  %668 = vmatprep.mubr.bf16.mxu0 %v1440_v37 }
  0x26   :  { %765 = vmatprep.mubr.bf16.mxu1 %v1442_v38  ;;  %1354 = vmatprep.subr.bf16.mxu0 %v1446_v39 }
  0x27   :  { %1385 = vmatprep.subr.bf16.mxu1 %v1446_v39 }
  0x28   :  { %1355 = vmatpush3.bf16.msra.mxu0 %v1446_v39 }
  0x29   :  { %1393 = vmatpush3.bf16.msra.mxu1 %v1446_v39  ;;  %1356 = vmatprep.subr.bf16.mxu0 %v1453_v44 }
  0x2a   :  { %1386 = vmatprep.subr.bf16.mxu1 %v1453_v44 }
  0x2b   :  { %669 = vmatmul.mubr.bf16.gmra.mxu0 %v1444_v40 }
  0x2c   :  { %766 = vmatmul.mubr.bf16.gmra.mxu1 %v1445_v41  ;;  %676 = vmatprep.mubr.bf16.mxu0 %v1447_v42 }
  0x2d   :  { %773 = vmatprep.mubr.bf16.mxu1 %v1449_v43  ;;  %1357 = vmatpush3.bf16.msra.mxu0 %v1453_v44 }
  0x2e   :  { %1394 = vmatpush3.bf16.msra.mxu1 %v1453_v44  ;;  %1358 = vmatprep.subr.bf16.mxu0 %v1460_v45 }
  0x2f   :  { %1387 = vmatprep.subr.bf16.mxu1 %v1460_v45 }
  0x31   :  { %1359 = vmatpush3.bf16.msra.mxu0 %v1460_v45 }
  0x32   :  { %1395 = vmatpush3.bf16.msra.mxu1 %v1460_v45  ;;  %1360 = vmatprep.subr.bf16.mxu0 %v1467_v50 }
  0x33   :  { %677 = vmatmul.mubr.bf16.gmra.mxu0 %v1451_v46  ;;  %1388 = vmatprep.subr.bf16.mxu1 %v1467_v50 }
  0x34   :  { %774 = vmatmul.mubr.bf16.gmra.mxu1 %v1452_v47  ;;  %684 = vmatprep.mubr.bf16.mxu0 %v1454_v48 }
  0x35   :  { %781 = vmatprep.mubr.bf16.mxu1 %v1456_v49  ;;  %1361 = vmatpush3.bf16.msra.mxu0 %v1467_v50 }
  0x36   :  { %1396 = vmatpush3.bf16.msra.mxu1 %v1467_v50  ;;  %1362 = vmatprep.subr.bf16.mxu0 %v1474_v51 }
  0x37   :  { %1389 = vmatprep.subr.bf16.mxu1 %v1474_v51 }
  0x39   :  { %1363 = vmatpush3.bf16.msra.mxu0 %v1474_v51 }
  0x3a   :  { %1397 = vmatpush3.bf16.msra.mxu1 %v1474_v51  ;;  %1364 = vmatprep.subr.bf16.mxu0 %v1481_v55 }
  0x3b   :  { %685 = vmatmul.mubr.bf16.gmra.mxu0 %v1458_v52  ;;  %1390 = vmatprep.subr.bf16.mxu1 %v1481_v55 }
  0x3c   :  { %782 = vmatmul.mubr.bf16.gmra.mxu1 %v1459_v53  ;;  %692 = vmatprep.mubr.bf16.mxu0 %v1461_v54 }
  0x3d   :  { %789 = vmatprep.mubr.bf16.mxu1 %v1463_v56  ;;  %1365 = vmatpush3.bf16.msra.mxu0 %v1481_v55 }
  0x3e   :  { %1398 = vmatpush3.bf16.msra.mxu1 %v1481_v55  ;;  %1366 = vmatprep.subr.bf16.mxu0 %v1488_v57 }
  0x3f   :  { %1391 = vmatprep.subr.bf16.mxu1 %v1488_v57 }
  0x41   :  { %1367 = vmatpush3.bf16.msra.mxu0 %v1488_v57 }
  0x42   :  { %1399 = vmatpush3.bf16.msra.mxu1 %v1488_v57 }
  0x43   :  { %693 = vmatmul.mubr.bf16.gmra.mxu0 %v1465_v58 }
  0x44   :  { %790 = vmatmul.mubr.bf16.gmra.mxu1 %v1466_v59  ;;  %700 = vmatprep.mubr.bf16.mxu0 %v1468_v60 }
  0x45   :  { %797 = vmatprep.mubr.bf16.mxu1 %v1470_v61 }
  0x4b   :  { %701 = vmatmul.mubr.bf16.gmra.mxu0 %v1472_v62 }
  0x4c   :  { %798 = vmatmul.mubr.bf16.gmra.mxu1 %v1473_v63  ;;  %708 = vmatprep.mubr.bf16.mxu0 %v1475_v0 }
  0x4d   :  { %805 = vmatprep.mubr.bf16.mxu1 %v1477_v1 }
  0x53   :  { %709 = vmatmul.mubr.bf16.gmra.mxu0 %v1479_v2 }
  0x54   :  { %806 = vmatmul.mubr.bf16.gmra.mxu1 %v1480_v3  ;;  %716 = vmatprep.mubr.bf16.mxu0 %v1482_v4 }
  0x55   :  { %813 = vmatprep.mubr.bf16.mxu1 %v1484_v5 }
  0x5b   :  { %717 = vmatmul.mubr.bf16.gmra.mxu0 %v1486_v6 }
  0x5c   :  { %814 = vmatmul.mubr.bf16.gmra.mxu1 %v1487_v7  ;;  %1368 = vmatprep.mubr.bf16.mxu0 %v1489_v8 }
  0x5d   :  { %1376 = vmatprep.mubr.bf16.mxu1 %v1490_v9 }
  0x63   :  { %1369 = vmatmul.mubr.bf16.vlgmr.msra.gmra.mxu0 %v1491_v10 }
  0x64   :  { %1377 = vmatmul.mubr.bf16.vlgmr.msra.gmra.mxu1 %v1492_v11  ;;  %1372 = vmatprep.mubr.bf16.mxu0 %v1493_v12 }
  0x65   :  { %1380 = vmatprep.mubr.bf16.mxu1 %v1494_v13 }
  0x6b   :  { %1373 = vmatmul.mubr.bf16.gmra.mxu0 %v1495_v14 }
  0x6c   :  { %1381 = vmatmul.mubr.bf16.gmra.mxu1 %v1496_v15 }
  0xe3   :  { %v1224_v17 = vpop.f32.mrf.mxu0 }
  0xe4   :  { %v1288_v18 = vpop.f32.mrf.mxu1 }
  0xe5   :  { %v1225_v19 = vpop.f32.mrf.mxu0 }
  0xe6   :  { %v1289_v20 = vpop.f32.mrf.mxu1  ;;  %v1226_v11 = vadd.f32 %v1225_v19, %v1224_v17 }
  0xe7   :  { %v1227_v21 = vpop.f32.mrf.mxu0  ;;  %v1290_v12 = vadd.f32 %v1289_v20, %v1288_v18 }
  0xe8   :  { %v1291_v22 = vpop.f32.mrf.mxu1 }
  0xe9   :  { %v1228_v23 = vpop.f32.mrf.mxu0  ;;  %v760_v20 = vadd.f32 %v1290_v12, %v1226_v11 }
  0xea   :  { %v1292_v24 = vpop.f32.mrf.mxu1  ;;  %v1229_v14 = vadd.f32 %v1228_v23, %v1227_v21 }
  0xeb   :  { %v1230_v25 = vpop.f32.mrf.mxu0  ;;  %v1293_v15 = vadd.f32 %v1292_v24, %v1291_v22 }
  0xec   :  { %v1294_v26 = vpop.f32.mrf.mxu1 }
  0xed   :  { %v1231_v27 = vpop.f32.mrf.mxu0  ;;  %v763_v21 = vadd.f32 %v1293_v15, %v1229_v14 }
  0xee   :  { %v1295_v28 = vpop.f32.mrf.mxu1  ;;  %v1232_v16 = vadd.f32 %v1231_v27, %v1230_v25  ;;  %v38_v25 = vld [vmem:[#allocation2 + $0x10] sm:$0xff] }
  0xef   :  { %v1233_v29 = vpop.f32.mrf.mxu0 }
  0xf0   :  { %v1297_v30 = vpop.f32.mrf.mxu1 }
  0xf1   :  { %v1234_v31 = vpop.f32.mrf.mxu0 }
  0xf2   :  { %v1298_v32 = vpop.f32.mrf.mxu1 }
  0xf3   :  { %v1236_v33 = vpop.f32.mrf.mxu0 }
  0xf4   :  { %v1300_v34 = vpop.f32.mrf.mxu1 }
  0xf5   :  { %v1237_v35 = vpop.f32.mrf.mxu0 }
  0xf6   :  { %v1301_v36 = vpop.f32.mrf.mxu1 }
  0xf7   :  { %v1774_v37 = vpop.f32.mrf.mxu0 }
  0xf8   :  { %v1776_v38 = vpop.f32.mrf.mxu1 }
  0xf9   :  { %1930 = vst [vmem:[#allocation3_spill] sm:$0xff] %v1776_v38  ;;  %v1778_v39 = vpop.f32.mrf.mxu0 }
  0xfa   :  { %1931 = vst [vmem:[#allocation4_spill] sm:$0xff] %v1778_v39  ;;  %v1780_v40 = vpop.f32.mrf.mxu1 }
  0xfb   :  { %1932 = vst [vmem:[#allocation5_spill] sm:$0xff] %v1780_v40  ;;  %v1242_v41 = vpop.f32.mrf.mxu0  ;;  %v1296_v40 = vadd.f32 %v1295_v28, %v1294_v26 }
  0xfc   :  { %v1306_v42 = vpop.f32.mrf.mxu1 }
  0xfd   :  { %v1243_v43 = vpop.f32.mrf.mxu0  ;;  %v768_v19 = vadd.f32 %v1296_v40, %v1232_v16 }
  0xfe   :  { %v1307_v44 = vpop.f32.mrf.mxu1  ;;  %v1244_v17 = vadd.f32 %v1243_v43, %v1242_v41  ;;  %v36_v41 = vld [vmem:[#allocation2] sm:$0xff] }
  0xff   :  { %v1782_v45 = vpop.f32.mrf.mxu0  ;;  %v1308_v22 = vadd.f32 %v1307_v44, %v1306_v42 }
 0x100   :  { %1933 = vst [vmem:[#allocation6_spill] sm:$0xff] %v1782_v45  ;;  %v1784_v46 = vpop.f32.mrf.mxu1  ;;  %v1238_v45 = vadd.f32 %v1237_v35, %v1236_v33 }
 0x101   :  { %1934 = vst [vmem:[#allocation7_spill] sm:$0xff] %v1784_v46  ;;  %v1786_v47 = vpop.f32.mrf.mxu0  ;;  %v1943_v28 = vld [vmem:[#allocation4_spill] sm:$0xff] }
 0x102   :  { %1935 = vst [vmem:[#allocation8_spill] sm:$0xff] %v1786_v47  ;;  %v1788_v48 = vpop.f32.mrf.mxu1 }
 0x103   :  { %1936 = vst [vmem:[#allocation9_spill] sm:$0xff] %v1788_v48  ;;  %v1248_v49 = vpop.f32.mrf.mxu0 }
 0x104   :  { %v1312_v50 = vpop.f32.mrf.mxu1 }
 0x105   :  { %v1249_v51 = vpop.f32.mrf.mxu0 }
 0x106   :  { %v1313_v52 = vpop.f32.mrf.mxu1 }
 0x107   :  { %v1251_v53 = vpop.f32.mrf.mxu0 }
 0x108   :  { %v1315_v54 = vpop.f32.mrf.mxu1 }
 0x109   :  { %v1252_v55 = vpop.f32.mrf.mxu0 }
 0x10a   :  { %v1316_v56 = vpop.f32.mrf.mxu1  ;;  %v1253_v35 = vadd.f32 %v1252_v55, %v1251_v53 }
 0x10b   :  { %v1254_v57 = vpop.f32.mrf.mxu0 }
 0x10c   :  { %v1318_v58 = vpop.f32.mrf.mxu1 }
 0x10d   :  { %v1255_v59 = vpop.f32.mrf.mxu0 }
 0x10e   :  { %v1319_v60 = vpop.f32.mrf.mxu1  ;;  %v1256_v48 = vadd.f32 %v1255_v59, %v1254_v57  ;;  %v39_v57 = vld [vmem:[#allocation2 + $0x18] sm:$0xff] }
 0x10f   :  { %v1257_v61 = vpop.f32.mrf.mxu0  ;;  %v1320_v46 = vadd.f32 %v1319_v60, %v1318_v58  ;;  %v784_v60 = vadd.f32 %v1308_v22, %v1244_v17  ;;  %v42_v22 = vld [vmem:[#allocation2 + $0x30] sm:$0xff] }
 0x110   :  { %v1321_v62 = vpop.f32.mrf.mxu1 }
 0x111   :  { %v1258_v63 = vpop.f32.mrf.mxu0  ;;  %v800_v27 = vadd.f32 %v1320_v46, %v1256_v48  ;;  %v44_v48 = vld [vmem:[#allocation2 + $0x40] sm:$0xff] }
 0x112   :  { %v1322_v0 = vpop.f32.mrf.mxu1  ;;  %v1259_v23 = vadd.f32 %v1258_v63, %v1257_v61  ;;  %v1946_v63 = vld [vmem:[#allocation6_spill] sm:$0xff] }
 0x113   :  { %v1790_v1 = vpop.f32.mrf.mxu0  ;;  %v1323_v24 = vadd.f32 %v1322_v0, %v1321_v62  ;;  %v47_v62 = vld [vmem:[#allocation2 + $0x58] sm:$0xff]  ;;  %v1947_v0 = vld [vmem:[#allocation8_spill] sm:$0xff] }
 0x114   :  { %1937 = vst [vmem:[#allocation10_spill] sm:$0xff] %v1790_v1  ;;  %v1792_v2 = vpop.f32.mrf.mxu1  ;;  %v1314_v1 = vadd.f32 %v1313_v52, %v1312_v50 }
 0x115   :  { %1938 = vst [vmem:[#allocation11_spill] sm:$0xff] %v1792_v2  ;;  %v1261_v3 = vpop.f32.mrf.mxu0  ;;  %v803_v59 = vadd.f32 %v1323_v24, %v1259_v23  ;;  %v1950_v24 = vld [vmem:[#allocation3_spill] sm:$0xff] }
 0x116   :  { %v1325_v4 = vpop.f32.mrf.mxu1 }
 0x117   :  { %v1794_v5 = vpop.f32.mrf.mxu0 }
 0x118   :  { %1939 = vst [vmem:[#allocation12_spill] sm:$0xff] %v1794_v5  ;;  %v1796_v6 = vpop.f32.mrf.mxu1  ;;  %v1235_v5 = vadd.f32 %v1234_v31, %v1233_v29  ;;  %v1806_v29 = vadd.f32 %v1943_v28, %v1774_v37  ;;  %v46_v31 = vld [vmem:[#allocation2 + $0x50] sm:$0xff] }
 0x119   :  { %1940 = vst [vmem:[#allocation13_spill] sm:$0xff] %v1796_v6  ;;  %v1798_v7 = vpop.f32.mrf.mxu0  ;;  %v1299_v6 = vadd.f32 %v1298_v32, %v1297_v30 }
 0x11a   :  { %1941 = vst [vmem:[#allocation14_spill] sm:$0xff] %v1798_v7  ;;  %v1800_v8 = vpop.f32.mrf.mxu1  ;;  %v1302_v7 = vadd.f32 %v1301_v36, %v1300_v34  ;;  %v1317_v36 = vadd.f32 %v1316_v56, %v1315_v54 }
 0x11b   :  { %1942 = vst [vmem:[#allocation15_spill] sm:$0xff] %v1800_v8  ;;  %v1266_v9 = vpop.f32.mrf.mxu0  ;;  %v1250_v8 = vadd.f32 %v1249_v51, %v1248_v49  ;;  %v771_v33 = vadd.f32 %v1299_v6, %v1235_v5 }
 0x11c   :  { %v1330_v10 = vpop.f32.mrf.mxu1  ;;  %v1808_v34 = vadd.f32 %v1302_v7, %v1238_v45  ;;  %v1944_v45 = vld [vmem:[#allocation10_spill] sm:$0xff]  ;;  %v1945_v53 = vld [vmem:[#allocation11_spill] sm:$0xff]  ;;  %v37_v7 = vld [vmem:[#allocation2 + $0x8] sm:$0xff] }
 0x11d   :  { %v1267_v13 = vpop.f32.mrf.mxu0  ;;  %v792_v43 = vadd.f32 %v1314_v1, %v1250_v8  ;;  %v1262_v61 = vadd.f32 %v1261_v3, %v1944_v45  ;;  %v1326_v54 = vadd.f32 %v1325_v4, %v1945_v53  ;;  %v1247_v1 = vadd.f32 %v1947_v0, %v1946_v63  ;;  %v1949_v3 = vld [vmem:[#allocation9_spill] sm:$0xff]  ;;  %v41_v63 = vld [vmem:[#allocation2 + $0x28] sm:$0xff] }
 0x11e   :  { %v1331_v38 = vpop.f32.mrf.mxu1  ;;  %v1268_v44 = vadd.f32 %v1267_v13, %v1266_v9  ;;  %v795_v9 = vadd.f32 %v1317_v36, %v1253_v35  ;;  %v45_v13 = vld [vmem:[#allocation2 + $0x48] sm:$0xff]  ;;  %v1831_v35 = vld [vmem:[%s1928_s2] ss:$0 sm:$0xff] }
 0x11f   :  { %v1802_v47 = vpop.f32.mrf.mxu0  ;;  %v1332_v49 = vadd.f32 %v1331_v38, %v1330_v10  ;;  %v1948_v10 = vld [vmem:[#allocation7_spill] sm:$0xff] }
 0x120   :  { %v1333_v2 = vpop.f32.mrf.mxu1  ;;  %v1311_v11 = vadd.f32 %v1949_v3, %v1948_v10  ;;  %v49_v10 = vld [vmem:[#allocation2 + $0x68] sm:$0xff] }
 0x121   :  { %v1270_v39 = vpop.f32.mrf.mxu0  ;;  %v816_v15 = vadd.f32 %v1332_v49, %v1268_v44  ;;  %v48_v49 = vld [vmem:[#allocation2 + $0x60] sm:$0xff] }
 0x122   :  { %v1334_v18 = vpop.f32.mrf.mxu1  ;;  %v1271_v16 = vadd.f32 %v1270_v39, %v1802_v47  ;;  %v1954_v47 = vld [vmem:[#allocation13_spill] sm:$0xff] }
 0x123   :  { %v1370_v26 = vpop.f32.mrf.mxu0  ;;  %v1335_v17 = vadd.f32 %v1334_v18, %v1333_v2  ;;  %v1955_v2 = vld [vmem:[#allocation15_spill] sm:$0xff] }
 0x124   :  { %v865_v30 = vadd.f32 %v1370_v26, %v768_v19  ;;  %v1378_v32 = vpop.f32.mrf.mxu1  ;;  %v1329_v18 = vadd.f32 %v1955_v2, %v1954_v47 }
 0x125   :  { %v897_v40 = vadd.f32 %v1378_v32, %v800_v27  ;;  %v856_v42 = vpop.f32.mrf.mxu0  ;;  %v1952_v32 = vld [vmem:[#allocation12_spill] sm:$0xff] }
 0x126   :  { %v921_v50 = vadd.f32 %v865_v30, %v38_v25  ;;  %v857_v46 = vadd.f32 %v856_v42, %v760_v20  ;;  %v888_v51 = vpop.f32.mrf.mxu1  ;;  %v1951_v25 = vld [vmem:[#allocation5_spill] sm:$0xff] }
 0x127   :  { %v929_v37 = vadd.f32 %v897_v40, %v46_v31  ;;  %v889_v52 = vadd.f32 %v888_v51, %v792_v43  ;;  %v1371_v58 = vpop.f32.mrf.mxu0  ;;  %v1305_v26 = vadd.f32 %v1951_v25, %v1950_v24  ;;  %v808_v31 = vadd.f32 %v1326_v54, %v1262_v61 }
 0x128   :  { %938 = vst.msk [vmem:[#allocation2 + $0x10] sm:$0xff] %vm19_vm0, %v921_v50  ;;  %v919_v55 = vadd.f32 %v857_v46, %v36_v41  ;;  %v868_v56 = vadd.f32 %v1371_v58, %v771_v33  ;;  %v1379_v38 = vpop.f32.mrf.mxu1  ;;  %v1953_v33 = vld [vmem:[#allocation14_spill] sm:$0xff]  ;;  %v40_v41 = vld [vmem:[#allocation2 + $0x20] sm:$0xff]  ;;  %v787_v46 = vadd.f32 %v1311_v11, %v1247_v1  ;;  %v819_v58 = vadd.f32 %v1335_v17, %v1271_v16 }
 0x129   :  { %946 = vst.msk [vmem:[#allocation2 + $0x50] sm:$0xff] %vm19_vm0, %v929_v37  ;;  %v927_v5 = vadd.f32 %v889_v52, %v44_v48  ;;  %v900_v6 = vadd.f32 %v1379_v38, %v803_v59  ;;  %v859_v8 = vpop.f32.mrf.mxu0  ;;  %v1265_v39 = vadd.f32 %v1953_v33, %v1952_v32  ;;  %v43_v52 = vld [vmem:[#allocation2 + $0x38] sm:$0xff]  ;;  %v779_v54 = vadd.f32 %v1305_v26, %v1806_v29 }
 0x12a   :  { %936 = vst.msk [vmem:[#allocation2] sm:$0xff] %vm19_vm0, %v919_v55  ;;  %v922_v4 = vadd.f32 %v868_v56, %v39_v57  ;;  %v860_v12 = vadd.f32 %v859_v8, %v763_v21  ;;  %v891_v14 = vpop.f32.mrf.mxu1  ;;  %v50_v21 = vld [vmem:[#allocation2 + $0x70] sm:$0xff] }
 0x12b   :  { %944 = vst.msk [vmem:[#allocation2 + $0x40] sm:$0xff] %vm19_vm0, %v927_v5  ;;  %v930_v19 = vadd.f32 %v900_v6, %v47_v62  ;;  %v892_v20 = vadd.f32 %v891_v14, %v795_v9  ;;  %v1374_v23 = vpop.f32.mrf.mxu0  ;;  %v811_v1 = vadd.f32 %v1329_v18, %v1265_v39 }
 0x12c   :  { %939 = vst.msk [vmem:[#allocation2 + $0x18] sm:$0xff] %vm19_vm0, %v922_v4  ;;  %v920_v27 = vadd.f32 %v860_v12, %v37_v7  ;;  %v881_v28 = vadd.f32 %v1374_v23, %v784_v60  ;;  %v1382_v30 = vpop.f32.mrf.mxu1 }
 0x12d   :  { %947 = vst.msk [vmem:[#allocation2 + $0x58] sm:$0xff] %vm19_vm0, %v930_v19  ;;  %v928_v36 = vadd.f32 %v892_v20, %v45_v13  ;;  %v913_v40 = vadd.f32 %v1382_v30, %v816_v15  ;;  %v872_v42 = vpop.f32.mrf.mxu0 }
 0x12e   :  { %937 = vst.msk [vmem:[#allocation2 + $0x8] sm:$0xff] %vm19_vm0, %v920_v27  ;;  %v925_v43 = vadd.f32 %v881_v28, %v42_v22  ;;  %v873_v44 = vadd.f32 %v872_v42, %v1808_v34  ;;  %v904_v50 = vpop.f32.mrf.mxu1  ;;  %v51_v34 = vld [vmem:[#allocation2 + $0x78] sm:$0xff] }
 0x12f   :  { %v957_v48 = vld [vmem:[#allocation2 + $0x10] sm:$0xff]  ;;  %945 = vst.msk [vmem:[#allocation2 + $0x48] sm:$0xff] %vm19_vm0, %v928_v36  ;;  %v933_v51 = vadd.f32 %v913_v40, %v50_v21  ;;  %v905_v37 = vadd.f32 %v904_v50, %v808_v31  ;;  %v1375_v57 = vpop.f32.mrf.mxu0 }
 0x130   :  { %v980_v59 = vadd.f32 %v1831_v35, %v957_v48  ;;  %v965_v60 = vld [vmem:[#allocation2 + $0x50] sm:$0xff]  ;;  %942 = vst.msk [vmem:[#allocation2 + $0x30] sm:$0xff] %vm19_vm0, %v925_v43  ;;  %v923_v45 = vadd.f32 %v873_v44, %v40_v41  ;;  %v884_v61 = vadd.f32 %v1375_v57, %v787_v46  ;;  %v1383_v53 = vpop.f32.mrf.mxu1 }
 0x131   :  { %v988_v55 = vadd.f32 %v1831_v35, %v965_v60  ;;  %v955_v56 = vld [vmem:[#allocation2] sm:$0xff]  ;;  %950 = vst.msk [vmem:[#allocation2 + $0x70] sm:$0xff] %vm19_vm0, %v933_v51  ;;  %v931_v62 = vadd.f32 %v905_v37, %v48_v49  ;;  %v916_v38 = vadd.f32 %v1383_v53, %v819_v58  ;;  %v875_v0 = vpop.f32.mrf.mxu0 }
 0x132   :  { %v996_v5 = vmax.f32 %v980_v59, 0.0  ;;  %v978_v6 = vadd.f32 %v1831_v35, %v955_v56  ;;  %v963_v7 = vld [vmem:[#allocation2 + $0x40] sm:$0xff]  ;;  %940 = vst.msk [vmem:[#allocation2 + $0x20] sm:$0xff] %vm19_vm0, %v923_v45  ;;  %v926_v8 = vadd.f32 %v884_v61, %v43_v52  ;;  %v876_v9 = vadd.f32 %v875_v0, %v779_v54  ;;  %v907_v29 = vpop.f32.mrf.mxu1 }
 0x133   :  { %v1004_v3 = vmax.f32 %v988_v55, 0.0  ;;  %v986_v11 = vadd.f32 %v1831_v35, %v963_v7  ;;  %v958_v4 = vld [vmem:[#allocation2 + $0x18] sm:$0xff]  ;;  %948 = vst.msk [vmem:[#allocation2 + $0x60] sm:$0xff] %vm19_vm0, %v931_v62  ;;  %v934_v12 = vadd.f32 %v916_v38, %v51_v34  ;;  %v908_v13 = vadd.f32 %v907_v29, %v811_v1 }
 0x134   :  { %v1194_v14 = vpack.c.bf16 %v996_v5, %v996_v5  ;;  %v994_v15 = vmax.f32 %v978_v6, 0.0  ;;  %v981_v16 = vadd.f32 %v1831_v35, %v958_v4  ;;  %v966_v17 = vld [vmem:[#allocation2 + $0x58] sm:$0xff]  ;;  %943 = vst.msk [vmem:[#allocation2 + $0x38] sm:$0xff] %vm19_vm0, %v926_v8  ;;  %v924_v19 = vadd.f32 %v876_v9, %v41_v63 }
 0x135   :  { %v1202_v20 = vpack.c.bf16 %v1004_v3, %v1004_v3  ;;  %v1002_v22 = vmax.f32 %v986_v11, 0.0  ;;  %v989_v23 = vadd.f32 %v1831_v35, %v966_v17  ;;  %v956_v24 = vld [vmem:[#allocation2 + $0x8] sm:$0xff]  ;;  %951 = vst.msk [vmem:[#allocation2 + $0x78] sm:$0xff] %vm19_vm0, %v934_v12  ;;  %v932_v25 = vadd.f32 %v908_v13, %v49_v10 }
 0x136   :  { %1077 = vst.msk [vmem:[%s1929_s3 + $0x8] sm:$0xf] %vm1074_vm1, %v1194_v14  ;;  %v1192_v26 = vpack.c.bf16 %v994_v15, %v994_v15  ;;  %v997_v27 = vmax.f32 %v981_v16, 0.0  ;;  %v979_v28 = vadd.f32 %v1831_v35, %v956_v24  ;;  %v964_v21 = vld [vmem:[#allocation2 + $0x48] sm:$0xff] }
 0x137   :  { %941 = vst.msk [vmem:[#allocation2 + $0x28] sm:$0xff] %vm19_vm0, %v924_v19  ;;  %v1200_v30 = vpack.c.bf16 %v1002_v22, %v1002_v22  ;;  %v1005_v31 = vmax.f32 %v989_v23, 0.0  ;;  %v987_v32 = vadd.f32 %v1831_v35, %v964_v21  ;;  %v961_v33 = vld [vmem:[#allocation2 + $0x30] sm:$0xff]  ;;  %949 = vst.msk [vmem:[#allocation2 + $0x68] sm:$0xff] %vm19_vm0, %v932_v25 }
 0x138   :  { %1085 = vst.msk [vmem:[%s1929_s3 + $0x28] sm:$0xf] %vm1074_vm1, %v1202_v20  ;;  %1075 = vst.msk [vmem:[%s1929_s3] sm:$0xf] %vm1074_vm1, %v1192_v26  ;;  %v1195_v39 = vpack.c.bf16 %v997_v27, %v997_v27  ;;  %v995_v47 = vmax.f32 %v979_v28, 0.0  ;;  %v984_v2 = vadd.f32 %v1831_v35, %v961_v33  ;;  %v969_v18 = vld [vmem:[#allocation2 + $0x70] sm:$0xff] }
 0x139   :  { %1083 = vst.msk [vmem:[%s1929_s3 + $0x20] sm:$0xf] %vm1074_vm1, %v1200_v30  ;;  %v1203_v36 = vpack.c.bf16 %v1005_v31, %v1005_v31  ;;  %v1003_v40 = vmax.f32 %v987_v32, 0.0  ;;  %v992_v41 = vadd.f32 %v1831_v35, %v969_v18  ;;  %v959_v42 = vld [vmem:[#allocation2 + $0x20] sm:$0xff] }
 0x13a   :  { %1078 = vst.msk [vmem:[%s1929_s3 + $0xc] sm:$0xf] %vm1074_vm1, %v1195_v39  ;;  %v1193_v43 = vpack.c.bf16 %v995_v47, %v995_v47  ;;  %v1000_v44 = vmax.f32 %v984_v2, 0.0  ;;  %v982_v49 = vadd.f32 %v1831_v35, %v959_v42  ;;  %v967_v50 = vld [vmem:[#allocation2 + $0x60] sm:$0xff] }
 0x13b   :  { %1086 = vst.msk [vmem:[%s1929_s3 + $0x2c] sm:$0xf] %vm1074_vm1, %v1203_v36  ;;  %v1201_v46 = vpack.c.bf16 %v1003_v40, %v1003_v40  ;;  %v1008_v48 = vmax.f32 %v992_v41, 0.0  ;;  %v990_v51 = vadd.f32 %v1831_v35, %v967_v50  ;;  %v962_v37 = vld [vmem:[#allocation2 + $0x38] sm:$0xff] }
 0x13c   :  { %1076 = vst.msk [vmem:[%s1929_s3 + $0x4] sm:$0xf] %vm1074_vm1, %v1193_v43  ;;  %v1198_v52 = vpack.c.bf16 %v1000_v44, %v1000_v44  ;;  %v998_v57 = vmax.f32 %v982_v49, 0.0  ;;  %v985_v58 = vadd.f32 %v1831_v35, %v962_v37  ;;  %v970_v59 = vld [vmem:[#allocation2 + $0x78] sm:$0xff] }
 0x13d   :  { %1084 = vst.msk [vmem:[%s1929_s3 + $0x24] sm:$0xf] %vm1074_vm1, %v1201_v46  ;;  %v1206_v60 = vpack.c.bf16 %v1008_v48, %v1008_v48  ;;  %v1006_v45 = vmax.f32 %v990_v51, 0.0  ;;  %v993_v61 = vadd.f32 %v1831_v35, %v970_v59 }
 0x13e   :  { %v960_v34 = vld [vmem:[#allocation2 + $0x28] sm:$0xff]  ;;  %1081 = vst.msk [vmem:[%s1929_s3 + $0x18] sm:$0xf] %vm1074_vm1, %v1198_v52  ;;  %v1196_v53 = vpack.c.bf16 %v998_v57, %v998_v57  ;;  %v1001_v54 = vmax.f32 %v985_v58, 0.0 }
 0x13f   :  { %v983_v55 = vadd.f32 %v1831_v35, %v960_v34  ;;  %v968_v56 = vld [vmem:[#allocation2 + $0x68] sm:$0xff]  ;;  %1089 = vst.msk [vmem:[%s1929_s3 + $0x38] sm:$0xf] %vm1074_vm1, %v1206_v60  ;;  %v1204_v62 = vpack.c.bf16 %v1006_v45, %v1006_v45  ;;  %v1009_v38 = vmax.f32 %v993_v61, 0.0 }
 0x140   :  { %v991_v63 = vadd.f32 %v1831_v35, %v968_v56  ;;  %1079 = vst.msk [vmem:[%s1929_s3 + $0x10] sm:$0xf] %vm1074_vm1, %v1196_v53  ;;  %v1199_v0 = vpack.c.bf16 %v1001_v54, %v1001_v54 }
 0x141   :  { %v999_v1 = vmax.f32 %v983_v55, 0.0  ;;  %1087 = vst.msk [vmem:[%s1929_s3 + $0x30] sm:$0xf] %vm1074_vm1, %v1204_v62  ;;  %v1207_v5 = vpack.c.bf16 %v1009_v38, %v1009_v38 }
 0x142   :  { %v1007_v6 = vmax.f32 %v991_v63, 0.0  ;;  %1082 = vst.msk [vmem:[%s1929_s3 + $0x1c] sm:$0xf] %vm1074_vm1, %v1199_v0 }
 0x143   :  { %v1197_v35 = vpack.c.bf16 %v999_v1, %v999_v1  ;;  %1090 = vst.msk [vmem:[%s1929_s3 + $0x3c] sm:$0xf] %vm1074_vm1, %v1207_v5 }
 0x144   :  { %v1205_v7 = vpack.c.bf16 %v1007_v6, %v1007_v6 }
 0x145   :  { %1080 = vst.msk [vmem:[%s1929_s3 + $0x14] sm:$0xf] %vm1074_vm1, %v1197_v35 }
 0x146   :  { %1088 = vst.msk [vmem:[%s1929_s3 + $0x34] sm:$0xf] %vm1074_vm1, %v1205_v7 }

// kernel: cancer_classifier_forward.30
= control target key start
LH: loop header
LB: loop body
LE: loop exit
PB: predicated region body
PF: predicated region fallthrough
CT: control target
= control target key end

     0   :  { %s1001_s1 = inlined_call_operand.vmem [shape: bf16[640,128], index: 1, kind: input, shape index: {}]   ;;  %s1002_s0 = inlined_call_operand.vmem [shape: bf16[32,640], index: 0, kind: input, shape index: {}]   ;;  %s1003_s2 = inlined_call_operand.vmem [shape: f32[1,128], index: 2, kind: input, shape index: {}]   ;;  %s1004_s3 = inlined_call_operand.vmem [shape: bf16[32,128], index: 3, kind: output, shape index: {}]  }
   0x1   :  { %v768_v0 = vld [vmem:[%s1001_s1 + $0x78] sm:$0xff]   ;;  %v772_v4 = vld [vmem:[%s1001_s1 + $0x70] sm:$0xff]   ;;  %v776_v8 = vld [vmem:[%s1001_s1 + $0x68] sm:$0xff]  }
   0x2   :  { %v769_v1 = vld [vmem:[%s1001_s1 + $0xf8] sm:$0xff]   ;;  %682 = vmatprep.subr.bf16.mxu0 %v768_v0  ;;  %v773_v5 = vld [vmem:[%s1001_s1 + $0xf0] sm:$0xff]   ;;  %v777_v9 = vld [vmem:[%s1001_s1 + $0xe8] sm:$0xff]  }
   0x3   :  { %v770_v2 = vld [vmem:[%s1001_s1 + $0x38] sm:$0xff]   ;;  %710 = vmatprep.subr.bf16.mxu1 %v769_v1  ;;  %v774_v6 = vld [vmem:[%s1001_s1 + $0x30] sm:$0xff]   ;;  %v778_v10 = vld [vmem:[%s1001_s1 + $0x28] sm:$0xff]  }
   0x4   :  { %v771_v3 = vld [vmem:[%s1001_s1 + $0xb8] sm:$0xff]   ;;  %683 = vmatpush3.bf16.msra.mxu0 %v770_v2  ;;  %v775_v7 = vld [vmem:[%s1001_s1 + $0xb0] sm:$0xff]   ;;  %v779_v11 = vld [vmem:[%s1001_s1 + $0xa8] sm:$0xff]  }
   0x5   :  { %711 = vmatpush3.bf16.msra.mxu1 %v771_v3  ;;  %684 = vmatprep.subr.bf16.mxu0 %v772_v4  ;;  %v780_v12 = vld [vmem:[%s1001_s1 + $0x60] sm:$0xff]   ;;  %v784_v16 = vld [vmem:[%s1001_s1 + $0x58] sm:$0xff]   ;;  %v788_v20 = vld [vmem:[%s1001_s1 + $0x50] sm:$0xff]  }
   0x6   :  { %712 = vmatprep.subr.bf16.mxu1 %v773_v5  ;;  %v781_v13 = vld [vmem:[%s1001_s1 + $0xe0] sm:$0xff]   ;;  %v785_v17 = vld [vmem:[%s1001_s1 + $0xd8] sm:$0xff]   ;;  %v789_v21 = vld [vmem:[%s1001_s1 + $0xd0] sm:$0xff]  }
   0x7   :  { %v782_v14 = vld [vmem:[%s1001_s1 + $0x20] sm:$0xff]   ;;  %v786_v18 = vld [vmem:[%s1001_s1 + $0x18] sm:$0xff]   ;;  %v790_v22 = vld [vmem:[%s1001_s1 + $0x10] sm:$0xff]  }
   0x8   :  { %685 = vmatpush3.bf16.msra.mxu0 %v774_v6  ;;  %v783_v15 = vld [vmem:[%s1001_s1 + $0xa0] sm:$0xff]   ;;  %v787_v19 = vld [vmem:[%s1001_s1 + $0x98] sm:$0xff]   ;;  %v791_v23 = vld [vmem:[%s1001_s1 + $0x90] sm:$0xff]  }
   0x9   :  { %713 = vmatpush3.bf16.msra.mxu1 %v775_v7  ;;  %686 = vmatprep.subr.bf16.mxu0 %v776_v8  ;;  %v792_v24 = vld [vmem:[%s1001_s1 + $0x48] sm:$0xff]   ;;  %v796_v28 = vld [vmem:[%s1001_s1 + $0x40] sm:$0xff]   ;;  %v806_v36 = vld [vmem:[%s1001_s1 + $0x138] sm:$0xff]  }
   0xa   :  { %714 = vmatprep.subr.bf16.mxu1 %v777_v9  ;;  %v793_v25 = vld [vmem:[%s1001_s1 + $0xc8] sm:$0xff]   ;;  %v797_v29 = vld [vmem:[%s1001_s1 + $0xc0] sm:$0xff]   ;;  %v807_v37 = vld [vmem:[%s1001_s1 + $0x130] sm:$0xff]  }
   0xb   :  { %v794_v26 = vld [vmem:[%s1001_s1 + $0x8] sm:$0xff]   ;;  %v798_v30 = vld [vmem:[%s1001_s1] sm:$0xff]   ;;  %v810_v45 = vld [vmem:[%s1001_s1 + $0x118] sm:$0xff]  }
   0xc   :  { %687 = vmatpush3.bf16.msra.mxu0 %v778_v10  ;;  %v795_v27 = vld [vmem:[%s1001_s1 + $0x88] sm:$0xff]   ;;  %v799_v31 = vld [vmem:[%s1001_s1 + $0x80] sm:$0xff]   ;;  %v817_v46 = vld [vmem:[%s1001_s1 + $0x110] sm:$0xff]  }
   0xd   :  { %715 = vmatpush3.bf16.msra.mxu1 %v779_v11  ;;  %688 = vmatprep.subr.bf16.mxu0 %v780_v12  ;;  %v800_v32 = vld [vmem:[%s1002_s0] ss:$20 sps:$4 sm:$0xff]   ;;  %v802_v33 = vld [vmem:[%s1002_s0 + $0x4] ss:$20 sps:$4 sm:$0xff]   ;;  %v803_v34 = vld [vmem:[%s1002_s0 + $0x8] ss:$20 sps:$4 sm:$0xff]  }
   0xe   :  { %716 = vmatprep.subr.bf16.mxu1 %v781_v13  ;;  %v805_v35 = vld [vmem:[%s1002_s0 + $0xc] ss:$20 sps:$4 sm:$0xff]   ;;  %443 = vmatprep.mubr.bf16.mxu0 %v802_v33  ;;  %v813_v40 = vld [vmem:[%s1002_s0 + $0x34] ss:$20 sps:$4 sm:$0xff]   ;;  %v816_v42 = vld [vmem:[%s1002_s0 + $0x30] ss:$20 sps:$4 sm:$0xff]  }
   0xf   :  { %492 = vmatprep.mubr.bf16.mxu1 %v805_v35  ;;  %v808_v38 = vld [vmem:[%s1001_s1 + $0x128] sm:$0xff]   ;;  %v809_v43 = vld [vmem:[%s1001_s1 + $0x120] sm:$0xff]  }
  0x10   :  { %689 = vmatpush3.bf16.msra.mxu0 %v782_v14  ;;  %v811_v39 = vld [vmem:[%s1002_s0 + $0x2c] ss:$20 sps:$4 sm:$0xff]   ;;  %v815_v41 = vld [vmem:[%s1002_s0 + $0x28] ss:$20 sps:$4 sm:$0xff]   ;;  %v820_v44 = vld [vmem:[%s1002_s0 + $0x10] ss:$20 sps:$4 sm:$0xff]  }
  0x11   :  { %717 = vmatpush3.bf16.msra.mxu1 %v783_v15  ;;  %690 = vmatprep.subr.bf16.mxu0 %v784_v16  ;;  %v818_v47 = vld [vmem:[%s1001_s1 + $0x108] sm:$0xff]   ;;  %v819_v48 = vld [vmem:[%s1001_s1 + $0x100] sm:$0xff]  }
  0x12   :  { %718 = vmatprep.subr.bf16.mxu1 %v785_v17  ;;  %v821_v49 = vld [vmem:[%s1002_s0 + $0x38] ss:$20 sps:$4 sm:$0xff]   ;;  %v662_v14 = vld [vmem:[%s1003_s2] ss:$0 sm:$0xff] }
  0x14   :  { %691 = vmatpush3.bf16.msra.mxu0 %v786_v18 }
  0x15   :  { %719 = vmatpush3.bf16.msra.mxu1 %v787_v19  ;;  %692 = vmatprep.subr.bf16.mxu0 %v788_v20 }
  0x16   :  { %720 = vmatprep.subr.bf16.mxu1 %v789_v21 }
  0x18   :  { %693 = vmatpush3.bf16.msra.mxu0 %v790_v22 }
  0x19   :  { %721 = vmatpush3.bf16.msra.mxu1 %v791_v23  ;;  %694 = vmatprep.subr.bf16.mxu0 %v792_v24 }
  0x1a   :  { %722 = vmatprep.subr.bf16.mxu1 %v793_v25 }
  0x1c   :  { %695 = vmatpush3.bf16.msra.mxu0 %v794_v26 }
  0x1d   :  { %723 = vmatpush3.bf16.msra.mxu1 %v795_v27  ;;  %696 = vmatprep.subr.bf16.mxu0 %v796_v28 }
  0x1e   :  { %724 = vmatprep.subr.bf16.mxu1 %v797_v29 }
  0x20   :  { %697 = vmatpush3.bf16.msra.mxu0 %v798_v30 }
  0x21   :  { %725 = vmatpush3.bf16.msra.mxu1 %v799_v31  ;;  %748 = vmatprep.subr.bf16.mxu0 %v806_v36 }
  0x23   :  { %444 = vmatmul.mubr.bf16.vlgmr.msra.gmra.mxu0 %v800_v32 }
  0x24   :  { %493 = vmatmul.mubr.bf16.vlgmr.msra.gmra.mxu1 %v803_v34  ;;  %749 = vmatpush3.bf16.msra.mxu0 %v806_v36 }
  0x25   :  { %750 = vmatprep.subr.bf16.mxu0 %v807_v37  ;;  %451 = vmatprep.mubr.bf16.mxu0 %v811_v39 }
  0x26   :  { %500 = vmatprep.mubr.bf16.mxu1 %v813_v40 }
  0x28   :  { %751 = vmatpush3.bf16.msra.mxu0 %v807_v37 }
  0x29   :  { %752 = vmatprep.subr.bf16.mxu0 %v808_v38 }
  0x2b   :  { %452 = vmatmul.mubr.bf16.gmra.mxu0 %v815_v41 }
  0x2c   :  { %501 = vmatmul.mubr.bf16.gmra.mxu1 %v816_v42  ;;  %753 = vmatpush3.bf16.msra.mxu0 %v808_v38 }
  0x2d   :  { %754 = vmatprep.subr.bf16.mxu0 %v809_v43  ;;  %764 = vmatprep.mubr.bf16.mxu0 %v820_v44 }
  0x30   :  { %755 = vmatpush3.bf16.msra.mxu0 %v809_v43 }
  0x31   :  { %756 = vmatprep.subr.bf16.mxu0 %v810_v45 }
  0x34   :  { %757 = vmatpush3.bf16.msra.mxu0 %v810_v45 }
  0x35   :  { %758 = vmatprep.subr.bf16.mxu0 %v817_v46 }
  0x38   :  { %759 = vmatpush3.bf16.msra.mxu0 %v817_v46 }
  0x39   :  { %760 = vmatprep.subr.bf16.mxu0 %v818_v47 }
  0x3c   :  { %761 = vmatpush3.bf16.msra.mxu0 %v818_v47 }
  0x3d   :  { %762 = vmatprep.subr.bf16.mxu0 %v819_v48 }
  0x40   :  { %763 = vmatpush3.bf16.msra.mxu0 %v819_v48 }
  0x43   :  { %765 = vmatmul.mubr.bf16.vlgmr.msra.gmra.mxu0 %v821_v49 }
  0xe3   :  { %v698_v50 = vpop.f32.mrf.mxu0 }
  0xe4   :  { %v726_v51 = vpop.f32.mrf.mxu1 }
  0xe5   :  { %v699_v52 = vpop.f32.mrf.mxu0 }
  0xe6   :  { %v727_v53 = vpop.f32.mrf.mxu1  ;;  %v700_v4 = vadd.f32 %v699_v52, %v698_v50 }
  0xe7   :  { %v701_v54 = vpop.f32.mrf.mxu0  ;;  %v728_v5 = vadd.f32 %v727_v53, %v726_v51 }
  0xe8   :  { %v729_v55 = vpop.f32.mrf.mxu1 }
  0xe9   :  { %v702_v56 = vpop.f32.mrf.mxu0  ;;  %v495_v13 = vadd.f32 %v728_v5, %v700_v4 }
  0xea   :  { %v730_v57 = vpop.f32.mrf.mxu1  ;;  %v703_v10 = vadd.f32 %v702_v56, %v701_v54 }
  0xeb   :  { %v704_v58 = vpop.f32.mrf.mxu0  ;;  %v731_v11 = vadd.f32 %v730_v57, %v729_v55 }
  0xec   :  { %v732_v59 = vpop.f32.mrf.mxu1 }
  0xed   :  { %v705_v60 = vpop.f32.mrf.mxu0  ;;  %v498_v21 = vadd.f32 %v731_v11, %v703_v10 }
  0xee   :  { %v733_v61 = vpop.f32.mrf.mxu1  ;;  %v706_v0 = vadd.f32 %v705_v60, %v704_v58 }
  0xef   :  { %v707_v62 = vpop.f32.mrf.mxu0  ;;  %v734_v1 = vadd.f32 %v733_v61, %v732_v59 }
  0xf0   :  { %v735_v63 = vpop.f32.mrf.mxu1 }
  0xf1   :  { %v708_v2 = vpop.f32.mrf.mxu0  ;;  %v503_v8 = vadd.f32 %v734_v1, %v706_v0 }
  0xf2   :  { %v736_v3 = vpop.f32.mrf.mxu1  ;;  %v709_v6 = vadd.f32 %v708_v2, %v707_v62 }
  0xf3   :  { %v737_v7 = vadd.f32 %v736_v3, %v735_v63 }
  0xf5   :  { %v506_v17 = vadd.f32 %v737_v7, %v709_v6 }
 0x103   :  { %v766_v9 = vpop.f32.mrf.mxu0 }
 0x104   :  { %v552_v12 = vadd.f32 %v766_v9, %v503_v8 }
 0x105   :  { %v543_v15 = vpop.f32.mrf.mxu0 }
 0x106   :  { %v544_v16 = vadd.f32 %v543_v15, %v495_v13  ;;  %v582_v19 = vadd.f32 %v662_v14, %v552_v12 }
 0x107   :  { %v767_v18 = vpop.f32.mrf.mxu0 }
 0x108   :  { %v555_v20 = vadd.f32 %v767_v18, %v506_v17  ;;  %v580_v23 = vadd.f32 %v662_v14, %v544_v16  ;;  %v586_v26 = vmax.f32 %v582_v19, 0.0 }
 0x109   :  { %v546_v22 = vpop.f32.mrf.mxu0 }
 0x10a   :  { %v583_v24 = vadd.f32 %v662_v14, %v555_v20  ;;  %v547_v25 = vadd.f32 %v546_v22, %v498_v21  ;;  %v584_v29 = vmax.f32 %v580_v23, 0.0 }
 0x10c   :  { %v587_v27 = vmax.f32 %v583_v24, 0.0  ;;  %v581_v28 = vadd.f32 %v662_v14, %v547_v25 }
 0x10e   :  { %v679_v30 = vpack.c.bf16 %v587_v27, %v586_v26  ;;  %v585_v31 = vmax.f32 %v581_v28, 0.0 }
 0x110   :  { %681 = vst [vmem:[%s1004_s3 + $0x8] sm:$0xff] %v679_v30   ;;  %v674_v32 = vpack.c.bf16 %v585_v31, %v584_v29 }
 0x112   :  { %675 = vst [vmem:[%s1004_s3] sm:$0xff] %v674_v32  }

// kernel: cancer_classifier_forward.33
= control target key start
LH: loop header
LB: loop body
LE: loop exit
PB: predicated region body
PF: predicated region fallthrough
CT: control target
= control target key end

     0   :  { %s1072_s12 = smov 0   ;;  %s1074_s13 = smov 0   ;;  %s1182_s0 = inlined_call_operand.vmem [shape: bf16[32,1152], index: 0, kind: input, shape index: {}]   ;;  %s1183_s1 = inlined_call_operand.vmem [shape: bf16[1152,128], index: 1, kind: input, shape index: {}]   ;;  %s1184_s2 = inlined_call_operand.vmem [shape: f32[1,128], index: 2, kind: input, shape index: {}]   ;;  %s1185_s3 = inlined_call_operand.vmem [shape: bf16[32,128], index: 3, kind: output, shape index: {}]  }
   0x1   :  { %s1076_s14 = smov 0   ;;  %s1078_s15 = smov 0  }
   0x2   :  { %s1080_s16 = smov 0  }
   0x3 LB: > { %s25_s17 = sadd.s32 1, %s1045_s15  ;;  %p48_p1 = scmp.ne.s32.totalorder %s1037_s13, %s1033_s12  ;;  %s1049_s16 = sphi %s1080_s16, %s13_s16   ;;  %s1045_s15 = sphi %s1078_s15, %s1189_s15   ;;  %s1041_s14 = sphi %s1076_s14, %s1188_s14   ;;  %s1037_s13 = sphi %s1074_s13, %s1187_s13   ;;  %s1033_s12 = sphi %s1072_s12, %s1186_s12  }
   0x4   : > { %p26_p0 = scmp.ge.s32.totalorder %s25_s17, 3  ;;  %p49_p2 = scmp.eq.s32.totalorder %s1049_s16, 0 }
   0x5   : > { %s41_s19 = sadd.s32 1, %s1037_s13  ;;  %p809_p5 = scmp.ge.s32.totalorder %s1049_s16, 3 }
   0x6   : > { %s1191_s17 = smov (%p26_p0, %s25_s17), 0  ;;  %p50_p3 = por %p49_p2, %p48_p1 }
   0x7   : > { %s37_s18 = ssub.s32 %s1045_s15, %s1191_s17  ;;  %162 = sbr.rel (%p809_p5) target bundleno = 21 (0x15), region = 20 }
   0x8   : > { %p39_p4 = scmp.eq.s32.totalorder %s37_s18, 0 }
   0xa   : > { %s1107_s20 = scalar_select %p39_p4, %s1037_s13, %s41_s19  }
   0xc   : > { %165 = sbr.rel (!%p50_p3) target bundleno = 21 (0x15), region = 24  ;;  %s167_s21 = sand.u32 (%p50_p3), 1, %s1037_s13  }
   0xd   : > { %s862_s22 = smul.u32 (%p50_p3), 12, %s1045_s15 }
   0xe   : > { %s936_s23 = smul.u32 (%p50_p3), 48, %s167_s21 }
   0xf   : > { %s175_s26 = scalar_lea.vmem (%p50_p3), %s1182_s0, %s862_s22 }
  0x10   : > { %v190_v0 = vld [vmem:[%s175_s26] sm:$0xff] (%p50_p3)  ;;  %v194_v2 = vld [vmem:[%s175_s26 + $0x48] sm:$0xff] (%p50_p3)  ;;  %s169_s27 = scalar_lea.vmem (%p50_p3), [#allocation3], %s936_s23  ;;  %v815_v6 = vld [vmem:[%s175_s26 + $0x50] sm:$0xf] (%p50_p3) }
  0x11   : > { %v192_v1 = vld [vmem:[%s175_s26 + $0x24] sm:$0xff]  ;;  %191 = vst [vmem:[%s169_s27] sm:$0xff] %v190_v0  ;;  %195 = vst [vmem:[%s169_s27 + $0x18] sm:$0xff] %v194_v2  ;;  %v196_v3 = vld [vmem:[%s175_s26 + $0x6c] sm:$0xff] }
  0x12   : > { %193 = vst [vmem:[%s169_s27 + $0xc] sm:$0xff] %v192_v1  ;;  %v811_v4 = vld [vmem:[%s175_s26 + $0x8] sm:$0xf]  ;;  %v813_v5 = vld [vmem:[%s175_s26 + $0x2c] sm:$0xf]  ;;  %197 = vst [vmem:[%s169_s27 + $0x24] sm:$0xff] %v196_v3 }
  0x13   : > { %812 = vst [vmem:[%s169_s27 + $0x8] sm:$0xf] %v811_v4  ;;  %814 = vst [vmem:[%s169_s27 + $0x14] sm:$0xf] %v813_v5  ;;  %v817_v7 = vld [vmem:[%s175_s26 + $0x74] sm:$0xf] }
  0x14   : > { %816 = vst [vmem:[%s169_s27 + $0x20] sm:$0xf] %v815_v6  ;;  %818 = vst [vmem:[%s169_s27 + $0x2c] sm:$0xf] %v817_v7 }
  0x15 PF: > { %p819_p6 = scmp.ge.s32.totalorder %s1049_s16, 1  ;;  %p230_p7 = scmp.lt.s32.totalorder %s1049_s16, 4 }
  0x17   : > { %p231_p8 = pnand %p819_p6, %p230_p7 }
  0x18   : > { %s237_s28 = sand.u32 (!%p231_p8), 1, %s1033_s12   ;;  %s276_s29 = smul.u32 (!%p231_p8), 48, %s1041_s14 }
  0x19   : > { %234 = sbr.rel (%p231_p8) target bundleno = 299 (0x12b), region = 54  ;;  %p821_p10 = scmp.ne.s32.totalorder (!%p231_p8), %s1041_s14, 0 }
  0x1a   : > { %s937_s30 = smul.u32 (!%p231_p8), 48, %s237_s28  ;;  %p277_p9 = scmp.lt.s32.totalorder (!%p231_p8), %s276_s29, 143 }
  0x1c   : > { %s1124_s8 = scalar_lea.vmem (!%p231_p8), [#allocation3], %s937_s30 }
  0x1e   : > { %s1193_s29 = smov (!%p277_p9, %s276_s29), 143  ;;  %301 = sbr.rel (%p821_p10) target bundleno = 38 (0x26), region = 62 }
  0x1f   : > { %s820_s4 = sshll.u32 %s1193_s29, 2 }
  0x20   : > { %s1122_s7 = scalar_lea.vmem %s1183_s1, %s820_s4 }
  0x23   : > { %v1051_v8 = vmov 0.0  }
  0x24   : > { %302 = vst [vmem:[#allocation2 + $0x10] sm:$0xff] %v1051_v8  ;;  %303 = vst [vmem:[#allocation2] sm:$0xff] %v1051_v8 }
  0x25   : > { %304 = vst [vmem:[#allocation2 + $0x18] sm:$0xff] %v1051_v8  ;;  %305 = vst [vmem:[#allocation2 + $0x8] sm:$0xff] %v1051_v8 }
  0x26 PF: > { %v979_v9 = vld [vmem:[%s1122_s7 + $0x78] sm:$0xff]   ;;  %v982_v12 = vld [vmem:[%s1122_s7 + $0x70] sm:$0xff]   ;;  %v985_v15 = vld [vmem:[%s1122_s7 + $0x68] sm:$0xff]   ;;  %p852_p11 = scmp.ne.s32.totalorder %s1041_s14, 2 }
  0x27   : > { %v980_v10 = vld [vmem:[%s1122_s7 + $0x38] sm:$0xff]   ;;  %878 = vmatprep.subr.bf16.mxu0 %v979_v9  ;;  %v983_v13 = vld [vmem:[%s1122_s7 + $0x30] sm:$0xff]   ;;  %v986_v16 = vld [vmem:[%s1122_s7 + $0x28] sm:$0xff]  }
  0x28   : > { %v981_v11 = vld [vmem:[%s1122_s7 + $0xb8] sm:$0xff]   ;;  %879 = vmatpush3.bf16.msra.mxu0 %v980_v10  ;;  %v984_v14 = vld [vmem:[%s1122_s7 + $0xb0] sm:$0xff]   ;;  %v987_v17 = vld [vmem:[%s1122_s7 + $0xa8] sm:$0xff]  }
  0x29   : > { %916 = vmatprep.subr.bf16.mxu1 %v981_v11  ;;  %880 = vmatprep.subr.bf16.mxu0 %v982_v12  ;;  %v988_v18 = vld [vmem:[%s1122_s7 + $0x60] sm:$0xff]   ;;  %v991_v21 = vld [vmem:[%s1122_s7 + $0x58] sm:$0xff]   ;;  %v994_v24 = vld [vmem:[%s1122_s7 + $0x50] sm:$0xff]  }
  0x2a   : > { %917 = vmatpush3.bf16.msra.mxu1 %v981_v11  ;;  %v989_v19 = vld [vmem:[%s1122_s7 + $0x20] sm:$0xff]   ;;  %v993_v22 = vld [vmem:[%s1122_s7 + $0x98] sm:$0xff]   ;;  %v996_v25 = vld [vmem:[%s1122_s7 + $0x90] sm:$0xff]  }
  0x2b   : > { %918 = vmatprep.subr.bf16.mxu1 %v984_v14  ;;  %v990_v20 = vld [vmem:[%s1122_s7 + $0xa0] sm:$0xff]   ;;  %v992_v23 = vld [vmem:[%s1122_s7 + $0x18] sm:$0xff]   ;;  %v995_v26 = vld [vmem:[%s1122_s7 + $0x10] sm:$0xff]  }
  0x2c   : > { %881 = vmatpush3.bf16.msra.mxu0 %v983_v13  ;;  %v997_v27 = vld [vmem:[%s1122_s7 + $0x48] sm:$0xff]   ;;  %v1000_v30 = vld [vmem:[%s1122_s7 + $0x40] sm:$0xff]   ;;  %v306_v44 = vld [vmem:[#allocation2 + $0x10] sm:$0xff] }
  0x2d   : > { %882 = vmatprep.subr.bf16.mxu0 %v985_v15  ;;  %v998_v28 = vld [vmem:[%s1122_s7 + $0x8] sm:$0xff]   ;;  %v1002_v31 = vld [vmem:[%s1122_s7 + $0x80] sm:$0xff]   ;;  %v308_v58 = vld [vmem:[#allocation2 + $0x18] sm:$0xff] }
  0x2e   : > { %919 = vmatpush3.bf16.msra.mxu1 %v984_v14  ;;  %v999_v29 = vld [vmem:[%s1122_s7 + $0x88] sm:$0xff]   ;;  %v1005_v32 = vld [vmem:[%s1124_s8 + $0x4] ss:$12 sps:$4 sm:$0xff]  }
  0x2f   : > { %920 = vmatprep.subr.bf16.mxu1 %v987_v17  ;;  %v1006_v33 = vld [vmem:[%s1124_s8 + $0x8] ss:$12 sps:$4 sm:$0xff]   ;;  %574 = vmatprep.mubr.bf16.mxu0 %v1005_v32  ;;  %v1003_v35 = vld [vmem:[%s1124_s8] ss:$12 sps:$4 sm:$0xff]   ;;  %v1010_v38 = vld [vmem:[%s1124_s8 + $0x18] ss:$12 sps:$4 sm:$0xff]  }
  0x30   : > { %883 = vmatpush3.bf16.msra.mxu0 %v986_v16  ;;  %v1001_v34 = vld [vmem:[%s1122_s7] sm:$0xff]   ;;  %932 = vmatprep.mubr.bf16.mxu1 %v1006_v33  ;;  %v1008_v36 = vld [vmem:[%s1124_s8 + $0x1c] ss:$12 sps:$4 sm:$0xff]  }
  0x31   : > { %884 = vmatprep.subr.bf16.mxu0 %v988_v18  ;;  %v1007_v37 = vld [vmem:[%s1124_s8 + $0x20] ss:$12 sps:$4 sm:$0xff]  }
  0x32   : > { %921 = vmatpush3.bf16.msra.mxu1 %v987_v17  ;;  %v307_v52 = vld [vmem:[#allocation2] sm:$0xff]  ;;  %v309_v0 = vld [vmem:[#allocation2 + $0x8] sm:$0xff] }
  0x33   : > { %922 = vmatprep.subr.bf16.mxu1 %v990_v20 }
  0x34   : > { %885 = vmatpush3.bf16.msra.mxu0 %v989_v19 }
  0x35   : > { %886 = vmatprep.subr.bf16.mxu0 %v991_v21 }
  0x36   : > { %923 = vmatpush3.bf16.msra.mxu1 %v990_v20 }
  0x37   : > { %924 = vmatprep.subr.bf16.mxu1 %v993_v22 }
  0x38   : > { %887 = vmatpush3.bf16.msra.mxu0 %v992_v23 }
  0x39   : > { %888 = vmatprep.subr.bf16.mxu0 %v994_v24 }
  0x3a   : > { %925 = vmatpush3.bf16.msra.mxu1 %v993_v22 }
  0x3b   : > { %926 = vmatprep.subr.bf16.mxu1 %v996_v25 }
  0x3c   : > { %889 = vmatpush3.bf16.msra.mxu0 %v995_v26 }
  0x3d   : > { %890 = vmatprep.subr.bf16.mxu0 %v997_v27 }
  0x3e   : > { %927 = vmatpush3.bf16.msra.mxu1 %v996_v25 }
  0x3f   : > { %928 = vmatprep.subr.bf16.mxu1 %v999_v29 }
  0x40   : > { %891 = vmatpush3.bf16.msra.mxu0 %v998_v28 }
  0x41   : > { %892 = vmatprep.subr.bf16.mxu0 %v1000_v30 }
  0x42   : > { %929 = vmatpush3.bf16.msra.mxu1 %v999_v29 }
  0x43   : > { %930 = vmatprep.subr.bf16.mxu1 %v1002_v31 }
  0x44   : > { %893 = vmatpush3.bf16.msra.mxu0 %v1001_v34 }
  0x46   : > { %931 = vmatpush3.bf16.msra.mxu1 %v1002_v31 }
  0x47   : > { %575 = vmatmul.mubr.bf16.vlgmr.msra.gmra.mxu0 %v1003_v35 }
  0x48   : > { %582 = vmatprep.mubr.bf16.mxu0 %v1008_v36 }
  0x49   : > { %933 = vmatmul.mubr.bf16.vlgmr.msra.gmra.mxu1 %v1007_v37 }
  0x4f   : > { %583 = vmatmul.mubr.bf16.gmra.mxu0 %v1010_v38 }
 0x107   : > { %v894_v39 = vpop.f32.mrf.mxu0 }
 0x109   : > { %v895_v40 = vpop.f32.mrf.mxu0  ;;  %v934_v41 = vpop.f32.mrf.mxu1 }
 0x10a   : > { %v896_v42 = vadd.f32 %v895_v40, %v894_v39 }
 0x10b   : > { %v897_v43 = vpop.f32.mrf.mxu0  ;;  %v625_v45 = vpop.f32.mrf.mxu1 }
 0x10c   : > { %v626_v46 = vadd.f32 %v896_v42, %v625_v45 }
 0x10d   : > { %v898_v47 = vpop.f32.mrf.mxu0  ;;  %v935_v48 = vpop.f32.mrf.mxu1 }
 0x10e   : > { %v640_v49 = vadd.f32 %v626_v46, %v306_v44  ;;  %v899_v50 = vadd.f32 %v898_v47, %v897_v43 }
 0x10f   : > { %v900_v51 = vpop.f32.mrf.mxu0  ;;  %v628_v53 = vpop.f32.mrf.mxu1 }
 0x110   : > { %644 = vst [vmem:[#allocation2 + $0x10] sm:$0xff] %v640_v49  ;;  %v629_v54 = vadd.f32 %v899_v50, %v628_v53 }
 0x111   : > { %v901_v55 = vpop.f32.mrf.mxu0 }
 0x112   : > { %v641_v56 = vadd.f32 %v629_v54, %v307_v52  ;;  %v902_v57 = vadd.f32 %v901_v55, %v900_v51 }
 0x113   : > { %v903_v59 = vpop.f32.mrf.mxu0 }
 0x114   : > { %645 = vst [vmem:[#allocation2] sm:$0xff] %v641_v56  ;;  %v634_v60 = vadd.f32 %v934_v41, %v902_v57 }
 0x115   : > { %v904_v61 = vpop.f32.mrf.mxu0 }
 0x116   : > { %v642_v62 = vadd.f32 %v634_v60, %v308_v58  ;;  %v905_v63 = vadd.f32 %v904_v61, %v903_v59 }
 0x118   : > { %646 = vst [vmem:[#allocation2 + $0x18] sm:$0xff] %v642_v62  ;;  %v637_v1 = vadd.f32 %v935_v48, %v905_v63  ;;  %651 = sbr.rel (%p852_p11) target bundleno = 299 (0x12b), region = 66 }
 0x11a   : > { %v643_v2 = vadd.f32 %v637_v1, %v309_v0 }
 0x11c   : > { %647 = vst [vmem:[#allocation2 + $0x8] sm:$0xff] %v643_v2 }
 0x11d   : > { %v652_v3 = vld [vmem:[#allocation2 + $0x10] sm:$0xff]  ;;  %v653_v4 = vld [vmem:[#allocation2] sm:$0xff] }
 0x11e   : > { %v853_v5 = vld [vmem:[%s1184_s2] ss:$0 sm:$0xff] }
 0x11f   : > { %v663_v6 = vadd.f32 %v853_v5, %v652_v3  ;;  %v664_v7 = vadd.f32 %v853_v5, %v653_v4  ;;  %v654_v8 = vld [vmem:[#allocation2 + $0x18] sm:$0xff] }
 0x120   : > { %v665_v10 = vadd.f32 %v853_v5, %v654_v8 }
 0x121   : > { %v667_v12 = vmax.f32 %v663_v6, 0.0  ;;  %v668_v13 = vmax.f32 %v664_v7, 0.0 }
 0x122   : > { %v669_v14 = vmax.f32 %v665_v10, 0.0 }
 0x123   : > { %v655_v9 = vld [vmem:[#allocation2 + $0x8] sm:$0xff]  ;;  %v870_v16 = vpack.c.bf16 %v668_v13, %v667_v12 }
 0x124   : > { %v666_v11 = vadd.f32 %v853_v5, %v655_v9 }
 0x125   : > { %871 = vst [vmem:[%s1185_s3] sm:$0xff] %v870_v16  }
 0x126   : > { %v670_v15 = vmax.f32 %v666_v11, 0.0 }
 0x128   : > { %v875_v17 = vpack.c.bf16 %v670_v15, %v669_v14 }
 0x12a   : > { %877 = vst [vmem:[%s1185_s3 + $0x8] sm:$0xff] %v875_v17  }
 0x12b PF: > { %s13_s16 = sadd.s32 1, %s1049_s16   ;;  %s1186_s12 = smov %s1037_s13 }
 0x12c   : > { %p10_p12 = scmp.ge.s32.totalorder %s13_s16, 5   ;;  %s1187_s13 = smov %s1107_s20 }
 0x12d   : > { %s1188_s14 = smov %s1045_s15  ;;  %s1189_s15 = smov %s1191_s17 }
 0x12e   :  { %12 = sbr.rel (!%p10_p12) target bundleno = 3 (0x3), region = 113 }

// kernel: cancer_classifier_forward.31
= control target key start
LH: loop header
LB: loop body
LE: loop exit
PB: predicated region body
PF: predicated region fallthrough
CT: control target
= control target key end

     0   :  { %s335_s1 = inlined_call_operand.vmem [shape: bf16[128,128], index: 1, kind: input, shape index: {}]   ;;  %s336_s0 = inlined_call_operand.vmem [shape: bf16[32,128], index: 0, kind: input, shape index: {}]   ;;  %s337_s2 = inlined_call_operand.vmem [shape: f32[1,128], index: 2, kind: input, shape index: {}]   ;;  %s338_s3 = inlined_call_operand.vmem [shape: bf16[32,128], index: 3, kind: output, shape index: {}]  }
   0x1   :  { %v266_v0 = vld [vmem:[%s335_s1 + $0x38] sm:$0xff]   ;;  %v267_v1 = vld [vmem:[%s335_s1 + $0x30] sm:$0xff]   ;;  %v268_v2 = vld [vmem:[%s335_s1 + $0x28] sm:$0xff]  }
   0x2   :  { %246 = vmatprep.subr.bf16.mxu0 %v266_v0  ;;  %v269_v3 = vld [vmem:[%s335_s1 + $0x20] sm:$0xff]   ;;  %v270_v5 = vld [vmem:[%s335_s1 + $0x18] sm:$0xff]   ;;  %v271_v6 = vld [vmem:[%s335_s1 + $0x10] sm:$0xff]  }
   0x3   :  { %247 = vmatpush3.bf16.msra.mxu0 %v266_v0  ;;  %v274_v4 = vld [vmem:[%s336_s0] sm:$0xff]   ;;  %v272_v7 = vld [vmem:[%s335_s1 + $0x8] sm:$0xff]  }
   0x4   :  { %248 = vmatprep.subr.bf16.mxu0 %v267_v1  ;;  %262 = vmatprep.mubr.bf16.mxu0 %v274_v4  ;;  %v273_v8 = vld [vmem:[%s335_s1] sm:$0xff]   ;;  %v275_v9 = vld [vmem:[%s336_s0 + $0x8] sm:$0xff]  }
   0x5   :  { %v216_v11 = vld [vmem:[%s337_s2] ss:$0 sm:$0xff] }
   0x7   :  { %249 = vmatpush3.bf16.msra.mxu0 %v267_v1 }
   0x8   :  { %250 = vmatprep.subr.bf16.mxu0 %v268_v2 }
   0xb   :  { %251 = vmatpush3.bf16.msra.mxu0 %v268_v2 }
   0xc   :  { %252 = vmatprep.subr.bf16.mxu0 %v269_v3 }
   0xf   :  { %253 = vmatpush3.bf16.msra.mxu0 %v269_v3 }
  0x10   :  { %254 = vmatprep.subr.bf16.mxu0 %v270_v5 }
  0x13   :  { %255 = vmatpush3.bf16.msra.mxu0 %v270_v5 }
  0x14   :  { %256 = vmatprep.subr.bf16.mxu0 %v271_v6 }
  0x17   :  { %257 = vmatpush3.bf16.msra.mxu0 %v271_v6 }
  0x18   :  { %258 = vmatprep.subr.bf16.mxu0 %v272_v7 }
  0x1b   :  { %259 = vmatpush3.bf16.msra.mxu0 %v272_v7 }
  0x1c   :  { %260 = vmatprep.subr.bf16.mxu0 %v273_v8 }
  0x1f   :  { %261 = vmatpush3.bf16.msra.mxu0 %v273_v8 }
  0x22   :  { %263 = vmatmul.mubr.bf16.vlgmr.msra.gmra.mxu0 %v275_v9 }
  0xe2   :  { %v264_v10 = vpop.f32.mrf.mxu0 }
  0xe3   :  { %v180_v14 = vadd.f32 %v264_v10, %v216_v11 }
  0xe4   :  { %v141_v12 = vpop.f32.mrf.mxu0 }
  0xe5   :  { %v178_v17 = vadd.f32 %v216_v11, %v141_v12 }
  0xe6   :  { %v265_v13 = vpop.f32.mrf.mxu0 }
  0xe7   :  { %v181_v15 = vadd.f32 %v265_v13, %v216_v11 }
  0xe8   :  { %v144_v16 = vpop.f32.mrf.mxu0 }
  0xe9   :  { %v233_v18 = vpack.c.bf16 %v181_v15, %v180_v14  ;;  %v179_v19 = vadd.f32 %v216_v11, %v144_v16 }
  0xeb   :  { %235 = vst [vmem:[%s338_s3 + $0x8] sm:$0xff] %v233_v18   ;;  %v228_v20 = vpack.c.bf16 %v179_v19, %v178_v17 }
  0xed   :  { %229 = vst [vmem:[%s338_s3] sm:$0xff] %v228_v20  }

// kernel: cancer_classifier_forward.32
= control target key start
LH: loop header
LB: loop body
LE: loop exit
PB: predicated region body
PF: predicated region fallthrough
CT: control target
= control target key end

     0   :  { %s1177_s15 = smov 0   ;;  %s1179_s16 = smov 0   ;;  %s1293_s0 = inlined_call_operand.vmem [shape: bf16[32,1152], index: 0, kind: input, shape index: {}]   ;;  %s1294_s1 = inlined_call_operand.vmem [shape: bf16[1152,128], index: 1, kind: input, shape index: {}]   ;;  %s1295_s2 = inlined_call_operand.vmem [shape: f32[1,128], index: 2, kind: input, shape index: {}]   ;;  %s1296_s3 = inlined_call_operand.vmem [shape: bf16[32,128], index: 3, kind: input, shape index: {}]   ;;  %s1297_s4 = inlined_call_operand.vmem [shape: bf16[32,128], index: 4, kind: output, shape index: {}]  }
   0x1   :  { %s1181_s17 = smov 0   ;;  %s1183_s18 = smov 0  }
   0x2   :  { %s1185_s19 = smov 0  }
   0x3 LB: > { %s26_s20 = sadd.s32 1, %s1145_s18  ;;  %p49_p1 = scmp.ne.s32.totalorder %s1137_s16, %s1133_s15  ;;  %s1149_s19 = sphi %s1185_s19, %s14_s19   ;;  %s1145_s18 = sphi %s1183_s18, %s1301_s18   ;;  %s1141_s17 = sphi %s1181_s17, %s1300_s17   ;;  %s1137_s16 = sphi %s1179_s16, %s1299_s16   ;;  %s1133_s15 = sphi %s1177_s15, %s1298_s15  }
   0x4   : > { %p27_p0 = scmp.ge.s32.totalorder %s26_s20, 3  ;;  %p50_p2 = scmp.eq.s32.totalorder %s1149_s19, 0 }
   0x5   : > { %s42_s22 = sadd.s32 1, %s1137_s16  ;;  %p900_p5 = scmp.ge.s32.totalorder %s1149_s19, 3 }
   0x6   : > { %s1303_s20 = smov (%p27_p0, %s26_s20), 0  ;;  %p51_p3 = por %p50_p2, %p49_p1 }
   0x7   : > { %s38_s21 = ssub.s32 %s1145_s18, %s1303_s20  ;;  %203 = sbr.rel (%p900_p5) target bundleno = 21 (0x15), region = 24 }
   0x8   : > { %p40_p4 = scmp.eq.s32.totalorder %s38_s21, 0 }
   0xa   : > { %s1212_s23 = scalar_select %p40_p4, %s1137_s16, %s42_s22  }
   0xc   : > { %206 = sbr.rel (!%p51_p3) target bundleno = 21 (0x15), region = 28  ;;  %s208_s24 = sand.u32 (%p51_p3), 1, %s1137_s16  }
   0xd   : > { %s953_s25 = smul.u32 (%p51_p3), 12, %s1145_s18 }
   0xe   : > { %s1036_s26 = smul.u32 (%p51_p3), 48, %s208_s24 }
   0xf   : > { %s216_s29 = scalar_lea.vmem (%p51_p3), %s1293_s0, %s953_s25 }
  0x10   : > { %v231_v0 = vld [vmem:[%s216_s29] sm:$0xff] (%p51_p3)  ;;  %v235_v2 = vld [vmem:[%s216_s29 + $0x48] sm:$0xff] (%p51_p3)  ;;  %s210_s30 = scalar_lea.vmem (%p51_p3), [#allocation3], %s1036_s26  ;;  %v906_v6 = vld [vmem:[%s216_s29 + $0x50] sm:$0xf] (%p51_p3) }
  0x11   : > { %v233_v1 = vld [vmem:[%s216_s29 + $0x24] sm:$0xff]  ;;  %232 = vst [vmem:[%s210_s30] sm:$0xff] %v231_v0  ;;  %236 = vst [vmem:[%s210_s30 + $0x18] sm:$0xff] %v235_v2  ;;  %v237_v3 = vld [vmem:[%s216_s29 + $0x6c] sm:$0xff] }
  0x12   : > { %234 = vst [vmem:[%s210_s30 + $0xc] sm:$0xff] %v233_v1  ;;  %v902_v4 = vld [vmem:[%s216_s29 + $0x8] sm:$0xf]  ;;  %v904_v5 = vld [vmem:[%s216_s29 + $0x2c] sm:$0xf]  ;;  %238 = vst [vmem:[%s210_s30 + $0x24] sm:$0xff] %v237_v3 }
  0x13   : > { %903 = vst [vmem:[%s210_s30 + $0x8] sm:$0xf] %v902_v4  ;;  %905 = vst [vmem:[%s210_s30 + $0x14] sm:$0xf] %v904_v5  ;;  %v908_v7 = vld [vmem:[%s216_s29 + $0x74] sm:$0xf] }
  0x14   : > { %907 = vst [vmem:[%s210_s30 + $0x20] sm:$0xf] %v906_v6  ;;  %909 = vst [vmem:[%s210_s30 + $0x2c] sm:$0xf] %v908_v7 }
  0x15 PF: > { %p910_p6 = scmp.ge.s32.totalorder %s1149_s19, 1  ;;  %p271_p7 = scmp.lt.s32.totalorder %s1149_s19, 4 }
  0x17   : > { %p272_p8 = pnand %p910_p6, %p271_p7 }
  0x18   : > { %s278_s5 = sand.u32 (!%p272_p8), 1, %s1133_s15   ;;  %s327_s6 = smul.u32 (!%p272_p8), 48, %s1141_s17 }
  0x19   : > { %275 = sbr.rel (%p272_p8) target bundleno = 301 (0x12d), region = 58  ;;  %p912_p10 = scmp.ne.s32.totalorder (!%p272_p8), %s1141_s17, 0 }
  0x1a   : > { %s1037_s7 = smul.u32 (!%p272_p8), 48, %s278_s5  ;;  %p328_p9 = scmp.lt.s32.totalorder (!%p272_p8), %s327_s6, 143 }
  0x1c   : > { %s1229_s12 = scalar_lea.vmem (!%p272_p8), [#allocation3], %s1037_s7 }
  0x1e   : > { %s1305_s6 = smov (!%p328_p9, %s327_s6), 143  ;;  %361 = sbr.rel (%p912_p10) target bundleno = 38 (0x26), region = 66 }
  0x1f   : > { %s911_s8 = sshll.u32 %s1305_s6, 2 }
  0x20   : > { %s1227_s11 = scalar_lea.vmem %s1294_s1, %s911_s8 }
  0x23   : > { %v1151_v8 = vmov 0.0  }
  0x24   : > { %362 = vst [vmem:[#allocation2 + $0x10] sm:$0xff] %v1151_v8  ;;  %363 = vst [vmem:[#allocation2] sm:$0xff] %v1151_v8 }
  0x25   : > { %364 = vst [vmem:[#allocation2 + $0x18] sm:$0xff] %v1151_v8  ;;  %365 = vst [vmem:[#allocation2 + $0x8] sm:$0xff] %v1151_v8 }
  0x26 PF: > { %v1079_v9 = vld [vmem:[%s1227_s11 + $0x78] sm:$0xff]   ;;  %v1082_v12 = vld [vmem:[%s1227_s11 + $0x70] sm:$0xff]   ;;  %v1085_v15 = vld [vmem:[%s1227_s11 + $0x68] sm:$0xff]   ;;  %p943_p11 = scmp.ne.s32.totalorder %s1141_s17, 2 }
  0x27   : > { %v1080_v10 = vld [vmem:[%s1227_s11 + $0x38] sm:$0xff]   ;;  %978 = vmatprep.subr.bf16.mxu0 %v1079_v9  ;;  %v1083_v13 = vld [vmem:[%s1227_s11 + $0x30] sm:$0xff]   ;;  %v1086_v16 = vld [vmem:[%s1227_s11 + $0x28] sm:$0xff]  }
  0x28   : > { %v1081_v11 = vld [vmem:[%s1227_s11 + $0xb8] sm:$0xff]   ;;  %979 = vmatpush3.bf16.msra.mxu0 %v1080_v10  ;;  %v1084_v14 = vld [vmem:[%s1227_s11 + $0xb0] sm:$0xff]   ;;  %v1087_v17 = vld [vmem:[%s1227_s11 + $0xa8] sm:$0xff]  }
  0x29   : > { %1016 = vmatprep.subr.bf16.mxu1 %v1081_v11  ;;  %980 = vmatprep.subr.bf16.mxu0 %v1082_v12  ;;  %v1088_v18 = vld [vmem:[%s1227_s11 + $0x60] sm:$0xff]   ;;  %v1091_v21 = vld [vmem:[%s1227_s11 + $0x58] sm:$0xff]   ;;  %v1094_v24 = vld [vmem:[%s1227_s11 + $0x50] sm:$0xff]  }
  0x2a   : > { %1017 = vmatpush3.bf16.msra.mxu1 %v1081_v11  ;;  %v1089_v19 = vld [vmem:[%s1227_s11 + $0x20] sm:$0xff]   ;;  %v1093_v22 = vld [vmem:[%s1227_s11 + $0x98] sm:$0xff]   ;;  %v1096_v25 = vld [vmem:[%s1227_s11 + $0x90] sm:$0xff]  }
  0x2b   : > { %1018 = vmatprep.subr.bf16.mxu1 %v1084_v14  ;;  %v1090_v20 = vld [vmem:[%s1227_s11 + $0xa0] sm:$0xff]   ;;  %v1092_v23 = vld [vmem:[%s1227_s11 + $0x18] sm:$0xff]   ;;  %v1095_v26 = vld [vmem:[%s1227_s11 + $0x10] sm:$0xff]  }
  0x2c   : > { %981 = vmatpush3.bf16.msra.mxu0 %v1083_v13  ;;  %v1097_v27 = vld [vmem:[%s1227_s11 + $0x48] sm:$0xff]   ;;  %v1100_v30 = vld [vmem:[%s1227_s11 + $0x40] sm:$0xff]   ;;  %v366_v44 = vld [vmem:[#allocation2 + $0x10] sm:$0xff] }
  0x2d   : > { %982 = vmatprep.subr.bf16.mxu0 %v1085_v15  ;;  %v1098_v28 = vld [vmem:[%s1227_s11 + $0x8] sm:$0xff]   ;;  %v1102_v31 = vld [vmem:[%s1227_s11 + $0x80] sm:$0xff]   ;;  %v368_v58 = vld [vmem:[#allocation2 + $0x18] sm:$0xff] }
  0x2e   : > { %1019 = vmatpush3.bf16.msra.mxu1 %v1084_v14  ;;  %v1099_v29 = vld [vmem:[%s1227_s11 + $0x88] sm:$0xff]   ;;  %v1105_v32 = vld [vmem:[%s1229_s12 + $0x4] ss:$12 sps:$4 sm:$0xff]  }
  0x2f   : > { %1020 = vmatprep.subr.bf16.mxu1 %v1087_v17  ;;  %v1106_v33 = vld [vmem:[%s1229_s12 + $0x8] ss:$12 sps:$4 sm:$0xff]   ;;  %634 = vmatprep.mubr.bf16.mxu0 %v1105_v32  ;;  %v1103_v35 = vld [vmem:[%s1229_s12] ss:$12 sps:$4 sm:$0xff]   ;;  %v1110_v38 = vld [vmem:[%s1229_s12 + $0x18] ss:$12 sps:$4 sm:$0xff]  }
  0x30   : > { %983 = vmatpush3.bf16.msra.mxu0 %v1086_v16  ;;  %v1101_v34 = vld [vmem:[%s1227_s11] sm:$0xff]   ;;  %1032 = vmatprep.mubr.bf16.mxu1 %v1106_v33  ;;  %v1108_v36 = vld [vmem:[%s1229_s12 + $0x1c] ss:$12 sps:$4 sm:$0xff]  }
  0x31   : > { %984 = vmatprep.subr.bf16.mxu0 %v1088_v18  ;;  %v1107_v37 = vld [vmem:[%s1229_s12 + $0x20] ss:$12 sps:$4 sm:$0xff]  }
  0x32   : > { %1021 = vmatpush3.bf16.msra.mxu1 %v1087_v17  ;;  %v367_v52 = vld [vmem:[#allocation2] sm:$0xff]  ;;  %v369_v0 = vld [vmem:[#allocation2 + $0x8] sm:$0xff] }
  0x33   : > { %1022 = vmatprep.subr.bf16.mxu1 %v1090_v20 }
  0x34   : > { %985 = vmatpush3.bf16.msra.mxu0 %v1089_v19 }
  0x35   : > { %986 = vmatprep.subr.bf16.mxu0 %v1091_v21 }
  0x36   : > { %1023 = vmatpush3.bf16.msra.mxu1 %v1090_v20 }
  0x37   : > { %1024 = vmatprep.subr.bf16.mxu1 %v1093_v22 }
  0x38   : > { %987 = vmatpush3.bf16.msra.mxu0 %v1092_v23 }
  0x39   : > { %988 = vmatprep.subr.bf16.mxu0 %v1094_v24 }
  0x3a   : > { %1025 = vmatpush3.bf16.msra.mxu1 %v1093_v22 }
  0x3b   : > { %1026 = vmatprep.subr.bf16.mxu1 %v1096_v25 }
  0x3c   : > { %989 = vmatpush3.bf16.msra.mxu0 %v1095_v26 }
  0x3d   : > { %990 = vmatprep.subr.bf16.mxu0 %v1097_v27 }
  0x3e   : > { %1027 = vmatpush3.bf16.msra.mxu1 %v1096_v25 }
  0x3f   : > { %1028 = vmatprep.subr.bf16.mxu1 %v1099_v29 }
  0x40   : > { %991 = vmatpush3.bf16.msra.mxu0 %v1098_v28 }
  0x41   : > { %992 = vmatprep.subr.bf16.mxu0 %v1100_v30 }
  0x42   : > { %1029 = vmatpush3.bf16.msra.mxu1 %v1099_v29 }
  0x43   : > { %1030 = vmatprep.subr.bf16.mxu1 %v1102_v31 }
  0x44   : > { %993 = vmatpush3.bf16.msra.mxu0 %v1101_v34 }
  0x46   : > { %1031 = vmatpush3.bf16.msra.mxu1 %v1102_v31 }
  0x47   : > { %635 = vmatmul.mubr.bf16.vlgmr.msra.gmra.mxu0 %v1103_v35 }
  0x48   : > { %642 = vmatprep.mubr.bf16.mxu0 %v1108_v36 }
  0x49   : > { %1033 = vmatmul.mubr.bf16.vlgmr.msra.gmra.mxu1 %v1107_v37 }
  0x4f   : > { %643 = vmatmul.mubr.bf16.gmra.mxu0 %v1110_v38 }
 0x107   : > { %v994_v39 = vpop.f32.mrf.mxu0 }
 0x109   : > { %v995_v40 = vpop.f32.mrf.mxu0  ;;  %v1034_v41 = vpop.f32.mrf.mxu1 }
 0x10a   : > { %v996_v42 = vadd.f32 %v995_v40, %v994_v39 }
 0x10b   : > { %v997_v43 = vpop.f32.mrf.mxu0  ;;  %v685_v45 = vpop.f32.mrf.mxu1 }
 0x10c   : > { %v686_v46 = vadd.f32 %v996_v42, %v685_v45 }
 0x10d   : > { %v998_v47 = vpop.f32.mrf.mxu0  ;;  %v1035_v48 = vpop.f32.mrf.mxu1 }
 0x10e   : > { %v700_v49 = vadd.f32 %v686_v46, %v366_v44  ;;  %v999_v50 = vadd.f32 %v998_v47, %v997_v43 }
 0x10f   : > { %v1000_v51 = vpop.f32.mrf.mxu0  ;;  %v688_v53 = vpop.f32.mrf.mxu1 }
 0x110   : > { %704 = vst [vmem:[#allocation2 + $0x10] sm:$0xff] %v700_v49  ;;  %v689_v54 = vadd.f32 %v999_v50, %v688_v53 }
 0x111   : > { %v1001_v55 = vpop.f32.mrf.mxu0 }
 0x112   : > { %v701_v56 = vadd.f32 %v689_v54, %v367_v52  ;;  %v1002_v57 = vadd.f32 %v1001_v55, %v1000_v51 }
 0x113   : > { %v1003_v59 = vpop.f32.mrf.mxu0 }
 0x114   : > { %705 = vst [vmem:[#allocation2] sm:$0xff] %v701_v56  ;;  %v694_v60 = vadd.f32 %v1034_v41, %v1002_v57 }
 0x115   : > { %v1004_v61 = vpop.f32.mrf.mxu0 }
 0x116   : > { %v702_v62 = vadd.f32 %v694_v60, %v368_v58  ;;  %v1005_v63 = vadd.f32 %v1004_v61, %v1003_v59 }
 0x118   : > { %706 = vst [vmem:[#allocation2 + $0x18] sm:$0xff] %v702_v62  ;;  %v697_v1 = vadd.f32 %v1035_v48, %v1005_v63  ;;  %711 = sbr.rel (%p943_p11) target bundleno = 301 (0x12d), region = 70 }
 0x11a   : > { %v703_v2 = vadd.f32 %v697_v1, %v369_v0 }
 0x11c   : > { %707 = vst [vmem:[#allocation2 + $0x8] sm:$0xff] %v703_v2 }
 0x11d   : > { %v712_v3 = vld [vmem:[#allocation2 + $0x10] sm:$0xff]  ;;  %v713_v4 = vld [vmem:[#allocation2] sm:$0xff]  ;;  %v976_v15 = vld [vmem:[%s1296_s3 + $0x8] sm:$0xff]  }
 0x11e   : > { %v944_v5 = vld [vmem:[%s1295_s2] ss:$0 sm:$0xff]  ;;  %v964_v16 = vunpack.c.l.bf16 %v976_v15  ;;  %v965_v17 = vunpack.c.h.bf16 %v976_v15 }
 0x11f   : > { %v723_v6 = vadd.f32 %v944_v5, %v712_v3  ;;  %v724_v7 = vadd.f32 %v944_v5, %v713_v4  ;;  %v959_v8 = vld [vmem:[%s1296_s3] sm:$0xff]   ;;  %v714_v9 = vld [vmem:[#allocation2 + $0x18] sm:$0xff] }
 0x120   : > { %v960_v11 = vunpack.c.l.bf16 %v959_v8  ;;  %v961_v12 = vunpack.c.h.bf16 %v959_v8  ;;  %v725_v13 = vadd.f32 %v944_v5, %v714_v9 }
 0x122   : > { %v735_v18 = vadd.f32 %v960_v11, %v723_v6  ;;  %v736_v19 = vadd.f32 %v961_v12, %v724_v7  ;;  %v737_v20 = vadd.f32 %v964_v16, %v725_v13 }
 0x123   : > { %v715_v10 = vld [vmem:[#allocation2 + $0x8] sm:$0xff] }
 0x124   : > { %v726_v14 = vadd.f32 %v944_v5, %v715_v10  ;;  %v739_v22 = vmax.f32 %v735_v18, 0.0  ;;  %v740_v23 = vmax.f32 %v736_v19, 0.0  ;;  %v741_v24 = vmax.f32 %v737_v20, 0.0 }
 0x126   : > { %v738_v21 = vadd.f32 %v965_v17, %v726_v14  ;;  %v969_v26 = vpack.c.bf16 %v740_v23, %v739_v22 }
 0x128   : > { %v742_v25 = vmax.f32 %v738_v21, 0.0  ;;  %970 = vst [vmem:[%s1297_s4] sm:$0xff] %v969_v26  }
 0x12a   : > { %v974_v27 = vpack.c.bf16 %v742_v25, %v741_v24 }
 0x12c   : > { %977 = vst [vmem:[%s1297_s4 + $0x8] sm:$0xff] %v974_v27  }
 0x12d PF: > { %s14_s19 = sadd.s32 1, %s1149_s19   ;;  %s1298_s15 = smov %s1137_s16 }
 0x12e   : > { %p11_p12 = scmp.ge.s32.totalorder %s14_s19, 5   ;;  %s1299_s16 = smov %s1212_s23 }
 0x12f   : > { %s1300_s17 = smov %s1145_s18  ;;  %s1301_s18 = smov %s1303_s20 }
 0x130   :  { %13 = sbr.rel (!%p11_p12) target bundleno = 3 (0x3), region = 120 }

// kernel: cancer_classifier_forward.35
= control target key start
LH: loop header
LB: loop body
LE: loop exit
PB: predicated region body
PF: predicated region fallthrough
CT: control target
= control target key end

     0   :  { %s1036_s12 = smov 0   ;;  %s1038_s13 = smov 0   ;;  %s1135_s0 = inlined_call_operand.vmem [shape: bf16[8,1152], index: 0, kind: input, shape index: {}]   ;;  %s1136_s1 = inlined_call_operand.vmem [shape: bf16[1152,256], index: 1, kind: input, shape index: {}]   ;;  %s1137_s2 = inlined_call_operand.vmem [shape: f32[1,256], index: 2, kind: input, shape index: {}]   ;;  %s1138_s3 = inlined_call_operand.vmem [shape: bf16[8,256], index: 3, kind: output, shape index: {}]  }
   0x1   :  { %s1040_s14 = smov 0  }
   0x2 LB: > { %s25_s15 = sadd.s32 1, %s1008_s13  ;;  %p825_p0 = scmp.ge.s32.totalorder %s1012_s14, 1  ;;  %s1012_s14 = sphi %s1040_s14, %s13_s14   ;;  %s1008_s13 = sphi %s1038_s13, %s1140_s13   ;;  %s1004_s12 = sphi %s1036_s12, %s1139_s12  }
   0x3   : > { %p26_p1 = scmp.ge.s32.totalorder %s25_s15, 3  ;;  %p194_p2 = scmp.lt.s32.totalorder %s1012_s14, 4 }
   0x5   : > { %s1142_s15 = smov (%p26_p1, %s25_s15), 0  ;;  %p195_p3 = pnand %p825_p0, %p194_p2 }
   0x6   : > { %s240_s16 = smul.u32 (!%p195_p3), 3, %s1004_s12  ;;  %p829_p6 = scmp.ne.s32.totalorder (!%p195_p3), %s1004_s12, 0 }
   0x7   : > { %198 = sbr.rel (%p195_p3) target bundleno = 302 (0x12e), region = 32 }
   0x8   : > { %s250_s17 = smul.u32 (!%p195_p3), 48, %s1004_s12  ;;  %p243_p4 = scmp.lt.s32.totalorder (!%p195_p3), %s240_s16, 8 }
   0xa   : > { %p252_p5 = scmp.lt.s32.totalorder (!%p195_p3), %s250_s17, 143 }
   0xc   : > { %s1144_s16 = smov (!%p243_p4, %s240_s16), 8  ;;  %s1146_s17 = smov (!%p252_p5, %s250_s17), 143 }
   0xd   : > { %s826_s18 = sshll.u32 %s1144_s16, 2  ;;  %s887_s22 = sshll.u32 %s1146_s17, 3 }
   0xe   : > { %s1061_s21 = scalar_lea.vmem %s1135_s0, %s826_s18  ;;  %s1066_s25 = scalar_lea.vmem %s1136_s1, %s887_s22 }
   0xf   : > { %281 = sbr.rel (%p829_p6) target bundleno = 22 (0x16), region = 36 }
  0x14   : > { %v1014_v0 = vmov 0.0  }
  0x15   : > { %282 = vst [vmem:[#allocation2] sm:$0xff] %v1014_v0  ;;  %283 = vst [vmem:[#allocation2 + $0x8] sm:$0xff] %v1014_v0 }
  0x16 PF: > { %v915_v1 = vld [vmem:[%s1066_s25 + $0x74] ss:$8 sps:$4 sm:$0xff]   ;;  %v917_v2 = vld [vmem:[%s1066_s25 + $0x70] ss:$8 sps:$4 sm:$0xff]   ;;  %v1015_v3 = vmov 0   ;;  %v286_v34 = vld [vmem:[%s1061_s21] sm:$0xff] }
  0x17   : > { %660 = vmatprep.mubr.bf16.mxu1 %v1015_v3  ;;  %587 = vmatprep.subr.bf16.mxu0 %v915_v1  ;;  %v918_v4 = vld [vmem:[%s1066_s25 + $0x64] ss:$8 sps:$4 sm:$0xff]   ;;  %v920_v5 = vld [vmem:[%s1066_s25 + $0x60] ss:$8 sps:$4 sm:$0xff]   ;;  %v921_v6 = vld [vmem:[%s1066_s25 + $0x54] ss:$8 sps:$4 sm:$0xff]   ;;  %v831_v36 = vcombine.high %v286_v34, %v286_v34  ;;  %v830_v53 = vcombine.low %v286_v34, %v286_v34 }
  0x18   : > { %588 = vmatpush1.bf16.msra.mxu0 %v917_v2  ;;  %v923_v7 = vld [vmem:[%s1066_s25 + $0x50] ss:$8 sps:$4 sm:$0xff]   ;;  %v924_v8 = vld [vmem:[%s1066_s25 + $0x44] ss:$8 sps:$4 sm:$0xff]   ;;  %v936_v9 = vld [vmem:[%s1066_s25 + $0x174] ss:$8 sps:$4 sm:$0xff]  }
  0x19   : > { %589 = vmatprep.subr.bf16.mxu0 %v918_v4  ;;  %v938_v10 = vld [vmem:[%s1066_s25 + $0x170] ss:$8 sps:$4 sm:$0xff]   ;;  %v926_v11 = vld [vmem:[%s1066_s25 + $0x40] ss:$8 sps:$4 sm:$0xff]   ;;  %v927_v12 = vld [vmem:[%s1066_s25 + $0x34] ss:$8 sps:$4 sm:$0xff]   ;;  %628 = vmatprep.subr.bf16.mxu1 %v936_v9 }
  0x1a   : > { %v942_v13 = vld [vmem:[%s1066_s25 + $0x164] ss:$8 sps:$4 sm:$0xff]   ;;  %629 = vmatpush1.bf16.msra.mxu1 %v938_v10  ;;  %v944_v14 = vld [vmem:[%s1066_s25 + $0x160] ss:$8 sps:$4 sm:$0xff]   ;;  %v929_v15 = vld [vmem:[%s1066_s25 + $0x30] ss:$8 sps:$4 sm:$0xff]   ;;  %619 = vmatprep.mubr.bf16.mxu0 %v831_v36 }
  0x1b   : > { %630 = vmatprep.subr.bf16.mxu1 %v942_v13  ;;  %v948_v16 = vld [vmem:[%s1066_s25 + $0x154] ss:$8 sps:$4 sm:$0xff]   ;;  %v930_v17 = vld [vmem:[%s1066_s25 + $0x24] ss:$8 sps:$4 sm:$0xff]   ;;  %v950_v18 = vld [vmem:[%s1066_s25 + $0x150] ss:$8 sps:$4 sm:$0xff]  }
  0x1c   : > { %590 = vmatpush1.bf16.msra.mxu0 %v920_v5  ;;  %v954_v19 = vld [vmem:[%s1066_s25 + $0x144] ss:$8 sps:$4 sm:$0xff]   ;;  %v932_v20 = vld [vmem:[%s1066_s25 + $0x20] ss:$8 sps:$4 sm:$0xff]   ;;  %v933_v21 = vld [vmem:[%s1066_s25 + $0x14] ss:$8 sps:$4 sm:$0xff]  }
  0x1d   : > { %591 = vmatprep.subr.bf16.mxu0 %v921_v6  ;;  %v956_v22 = vld [vmem:[%s1066_s25 + $0x140] ss:$8 sps:$4 sm:$0xff]   ;;  %v960_v23 = vld [vmem:[%s1066_s25 + $0x134] ss:$8 sps:$4 sm:$0xff]   ;;  %v935_v24 = vld [vmem:[%s1066_s25 + $0x10] ss:$8 sps:$4 sm:$0xff]  }
  0x1e   : > { %631 = vmatpush1.bf16.msra.mxu1 %v944_v14  ;;  %v939_v25 = vld [vmem:[%s1066_s25 + $0x4] ss:$8 sps:$4 sm:$0xff]   ;;  %v962_v26 = vld [vmem:[%s1066_s25 + $0x130] ss:$8 sps:$4 sm:$0xff]   ;;  %v941_v28 = vld [vmem:[%s1066_s25] ss:$8 sps:$4 sm:$0xff]  }
  0x1f   : > { %632 = vmatprep.subr.bf16.mxu1 %v948_v16  ;;  %v966_v27 = vld [vmem:[%s1066_s25 + $0x124] ss:$8 sps:$4 sm:$0xff]   ;;  %v945_v29 = vld [vmem:[%s1066_s25 + $0xf4] ss:$8 sps:$4 sm:$0xff]   ;;  %v968_v30 = vld [vmem:[%s1066_s25 + $0x120] ss:$8 sps:$4 sm:$0xff]  }
  0x20   : > { %592 = vmatpush1.bf16.msra.mxu0 %v923_v7  ;;  %v972_v31 = vld [vmem:[%s1066_s25 + $0x114] ss:$8 sps:$4 sm:$0xff]   ;;  %v947_v32 = vld [vmem:[%s1066_s25 + $0xf0] ss:$8 sps:$4 sm:$0xff]   ;;  %v951_v33 = vld [vmem:[%s1066_s25 + $0xe4] ss:$8 sps:$4 sm:$0xff]  }
  0x21   : > { %593 = vmatprep.subr.bf16.mxu0 %v924_v8  ;;  %v974_v35 = vld [vmem:[%s1066_s25 + $0x110] ss:$8 sps:$4 sm:$0xff]   ;;  %v978_v37 = vld [vmem:[%s1066_s25 + $0x104] ss:$8 sps:$4 sm:$0xff]   ;;  %v953_v38 = vld [vmem:[%s1066_s25 + $0xe0] ss:$8 sps:$4 sm:$0xff]  }
  0x22   : > { %633 = vmatpush1.bf16.msra.mxu1 %v950_v18  ;;  %v957_v39 = vld [vmem:[%s1066_s25 + $0xd4] ss:$8 sps:$4 sm:$0xff]   ;;  %v980_v40 = vld [vmem:[%s1066_s25 + $0x100] ss:$8 sps:$4 sm:$0xff]   ;;  %v959_v41 = vld [vmem:[%s1066_s25 + $0xd0] ss:$8 sps:$4 sm:$0xff]  }
  0x23   : > { %634 = vmatprep.subr.bf16.mxu1 %v954_v19  ;;  %v963_v42 = vld [vmem:[%s1066_s25 + $0xc4] ss:$8 sps:$4 sm:$0xff]   ;;  %v984_v43 = vld [vmem:[%s1061_s21 + $0x8] ss:$0 sps:$4 sm:$0xff]   ;;  %v969_v45 = vld [vmem:[%s1066_s25 + $0xb4] ss:$8 sps:$4 sm:$0xff]  }
  0x24   : > { %594 = vmatpush1.bf16.msra.mxu0 %v926_v11  ;;  %v965_v44 = vld [vmem:[%s1066_s25 + $0xc0] ss:$8 sps:$4 sm:$0xff]   ;;  %v971_v46 = vld [vmem:[%s1066_s25 + $0xb0] ss:$8 sps:$4 sm:$0xff]   ;;  %v975_v47 = vld [vmem:[%s1066_s25 + $0xa4] ss:$8 sps:$4 sm:$0xff]  }
  0x25   : > { %595 = vmatprep.subr.bf16.mxu0 %v927_v12  ;;  %v977_v48 = vld [vmem:[%s1066_s25 + $0xa0] ss:$8 sps:$4 sm:$0xff]   ;;  %v981_v49 = vld [vmem:[%s1066_s25 + $0x94] ss:$8 sps:$4 sm:$0xff]   ;;  %v983_v50 = vld [vmem:[%s1066_s25 + $0x90] ss:$8 sps:$4 sm:$0xff]  }
  0x26   : > { %635 = vmatpush1.bf16.msra.mxu1 %v956_v22  ;;  %v985_v51 = vld [vmem:[%s1066_s25 + $0x84] ss:$8 sps:$4 sm:$0xff]   ;;  %v987_v52 = vld [vmem:[%s1066_s25 + $0x80] ss:$8 sps:$4 sm:$0xff]   ;;  %p881_p7 = scmp.ne.s32.totalorder %s1004_s12, 2 }
  0x27   : > { %636 = vmatprep.subr.bf16.mxu1 %v960_v23  ;;  %v284_v58 = vld [vmem:[#allocation2] sm:$0xff]  ;;  %v285_v61 = vld [vmem:[#allocation2 + $0x8] sm:$0xff] }
  0x28   : > { %596 = vmatpush1.bf16.msra.mxu0 %v929_v15 }
  0x29   : > { %597 = vmatprep.subr.bf16.mxu0 %v930_v17 }
  0x2a   : > { %637 = vmatpush1.bf16.msra.mxu1 %v962_v26 }
  0x2b   : > { %638 = vmatprep.subr.bf16.mxu1 %v966_v27 }
  0x2c   : > { %598 = vmatpush1.bf16.msra.mxu0 %v932_v20 }
  0x2d   : > { %599 = vmatprep.subr.bf16.mxu0 %v933_v21 }
  0x2e   : > { %639 = vmatpush1.bf16.msra.mxu1 %v968_v30 }
  0x2f   : > { %640 = vmatprep.subr.bf16.mxu1 %v972_v31 }
  0x30   : > { %600 = vmatpush1.bf16.msra.mxu0 %v935_v24 }
  0x31   : > { %601 = vmatprep.subr.bf16.mxu0 %v939_v25 }
  0x32   : > { %641 = vmatpush1.bf16.msra.mxu1 %v974_v35 }
  0x33   : > { %642 = vmatprep.subr.bf16.mxu1 %v978_v37 }
  0x34   : > { %602 = vmatpush1.bf16.msra.mxu0 %v941_v28 }
  0x35   : > { %603 = vmatprep.subr.bf16.mxu0 %v945_v29 }
  0x36   : > { %643 = vmatpush1.bf16.msra.mxu1 %v980_v40 }
  0x38   : > { %604 = vmatpush2.bf16.msra.mxu0 %v947_v32 }
  0x39   : > { %605 = vmatprep.subr.bf16.mxu0 %v951_v33  ;;  %661 = vmatmul.mubr.bf16.vlgmr.msra.gmra.mxu1 %v984_v43 }
  0x3c   : > { %606 = vmatpush2.bf16.msra.mxu0 %v953_v38 }
  0x3d   : > { %607 = vmatprep.subr.bf16.mxu0 %v957_v39 }
  0x40   : > { %608 = vmatpush2.bf16.msra.mxu0 %v959_v41 }
  0x41   : > { %609 = vmatprep.subr.bf16.mxu0 %v963_v42 }
  0x44   : > { %610 = vmatpush2.bf16.msra.mxu0 %v965_v44 }
  0x45   : > { %611 = vmatprep.subr.bf16.mxu0 %v969_v45 }
  0x48   : > { %612 = vmatpush2.bf16.msra.mxu0 %v971_v46 }
  0x49   : > { %613 = vmatprep.subr.bf16.mxu0 %v975_v47 }
  0x4c   : > { %614 = vmatpush2.bf16.msra.mxu0 %v977_v48 }
  0x4d   : > { %615 = vmatprep.subr.bf16.mxu0 %v981_v49 }
  0x50   : > { %616 = vmatpush2.bf16.msra.mxu0 %v983_v50 }
  0x51   : > { %617 = vmatprep.subr.bf16.mxu0 %v985_v51 }
  0x54   : > { %618 = vmatpush2.bf16.msra.mxu0 %v987_v52 }
  0x57   : > { %620 = vmatmul.mubr.bf16.vlgmr.msra.gmra.mxu0 %v830_v53 }
  0xf9   : > { %v662_v54 = vpop.f32.mrf.mxu1 }
  0xfb   : > { %v664_v55 = vpop.f32.mrf.mxu1 }
  0xfd   : > { %v666_v56 = vpop.f32.mrf.mxu1 }
  0xff   : > { %v667_v57 = vpop.f32.mrf.mxu1 }
 0x117   : > { %v621_v59 = vpop.f32.mrf.mxu0 }
 0x118   : > { %v663_v60 = vadd.f32 %v662_v54, %v621_v59 }
 0x119   : > { %v623_v62 = vpop.f32.mrf.mxu0 }
 0x11a   : > { %v669_v63 = vadd.f32 %v663_v60, %v284_v58  ;;  %v665_v0 = vadd.f32 %v664_v55, %v623_v62  ;;  %676 = sbr.rel (%p881_p7) target bundleno = 302 (0x12e), region = 40 }
 0x11b   : > { %v625_v1 = vpop.f32.mrf.mxu0 }
 0x11c   : > { %671 = vst [vmem:[#allocation2] sm:$0xff] %v669_v63  ;;  %v670_v2 = vadd.f32 %v665_v0, %v285_v61 }
 0x11d   : > { %v626_v3 = vpop.f32.mrf.mxu0 }
 0x11e   : > { %672 = vst [vmem:[#allocation2 + $0x8] sm:$0xff] %v670_v2 }
 0x11f   : > { %v681_v4 = vlaneseq  ;;  %v679_v6 = vld [vmem:[%s1137_s2] sm:$0x3] }
 0x121   : > { %v682_v5 = vshrl.u32 %v681_v4, 7 }
 0x123   : > { %v683_v7 = vsub.s32 0, %v682_v5  ;;  %v687_v8 = vsub.s32 1, %v682_v5  ;;  %v677_v9 = vld [vmem:[#allocation2] sm:$0xff] }
 0x125   : > { %v678_v10 = vld [vmem:[#allocation2 + $0x8] sm:$0xff]  ;;  %v684_v11 = vrot.slane %v679_v6, %v683_v7  ;;  %v688_v12 = vrot.slane %v679_v6, %v687_v8 }
 0x127   : > { %v691_v13 = vadd.f32 %v684_v11, %v677_v9  ;;  %v692_v14 = vadd.f32 %v688_v12, %v678_v10 }
 0x129   : > { %v693_v15 = vmax.f32 %v691_v13, 0.0  ;;  %v694_v16 = vmax.f32 %v692_v14, 0.0 }
 0x12b   : > { %v888_v17 = vpack.c.bf16 %v694_v16, %v693_v15 }
 0x12d   : > { %703 = vst [vmem:[%s1138_s3] sm:$0xff] %v888_v17 }
 0x12e PF: > { %s13_s14 = sadd.s32 1, %s1012_s14   ;;  %s1139_s12 = smov %s1008_s13 }
 0x12f   : > { %p10_p8 = scmp.ge.s32.totalorder %s13_s14, 5   ;;  %s1140_s13 = smov %s1142_s15 }
 0x131   :  { %12 = sbr.rel (!%p10_p8) target bundleno = 2 (0x2), region = 76 }

// kernel: cancer_classifier_forward.36
= control target key start
LH: loop header
LB: loop body
LE: loop exit
PB: predicated region body
PF: predicated region fallthrough
CT: control target
= control target key end

     0   :  { %v240_v1 = vmov 0   ;;  %v172_v18 = vlaneseq  ;;  %s318_s1 = inlined_call_operand.vmem [shape: bf16[128,256], index: 1, kind: input, shape index: {}]   ;;  %s319_s0 = inlined_call_operand.vmem [shape: bf16[8,128], index: 0, kind: input, shape index: {}]   ;;  %s320_s2 = inlined_call_operand.vmem [shape: f32[1,256], index: 2, kind: input, shape index: {}]   ;;  %s321_s3 = inlined_call_operand.vmem [shape: bf16[8,256], index: 3, kind: output, shape index: {}]  }
   0x1   :  { %v216_v0 = vld [vmem:[%s318_s1 + $0x74] ss:$8 sps:$4 sm:$0xff]   ;;  %152 = vmatprep.mubr.bf16.mxu0 %v240_v1  ;;  %v218_v2 = vld [vmem:[%s318_s1 + $0x70] ss:$8 sps:$4 sm:$0xff]   ;;  %v219_v3 = vld [vmem:[%s318_s1 + $0x64] ss:$8 sps:$4 sm:$0xff]  }
   0x2   :  { %120 = vmatprep.subr.bf16.mxu0 %v216_v0  ;;  %v221_v4 = vld [vmem:[%s318_s1 + $0x60] ss:$8 sps:$4 sm:$0xff]   ;;  %v222_v5 = vld [vmem:[%s318_s1 + $0x54] ss:$8 sps:$4 sm:$0xff]   ;;  %v224_v6 = vld [vmem:[%s318_s1 + $0x50] ss:$8 sps:$4 sm:$0xff]  }
   0x3   :  { %121 = vmatpush1.bf16.msra.mxu0 %v218_v2  ;;  %v225_v7 = vld [vmem:[%s318_s1 + $0x44] ss:$8 sps:$4 sm:$0xff]   ;;  %v227_v8 = vld [vmem:[%s318_s1 + $0x40] ss:$8 sps:$4 sm:$0xff]   ;;  %v228_v9 = vld [vmem:[%s318_s1 + $0x34] ss:$8 sps:$4 sm:$0xff]  }
   0x4   :  { %122 = vmatprep.subr.bf16.mxu0 %v219_v3  ;;  %v230_v10 = vld [vmem:[%s318_s1 + $0x30] ss:$8 sps:$4 sm:$0xff]   ;;  %v231_v11 = vld [vmem:[%s318_s1 + $0x24] ss:$8 sps:$4 sm:$0xff]   ;;  %v233_v12 = vld [vmem:[%s318_s1 + $0x20] ss:$8 sps:$4 sm:$0xff]  }
   0x5   :  { %v234_v13 = vld [vmem:[%s318_s1 + $0x14] ss:$8 sps:$4 sm:$0xff]   ;;  %v236_v14 = vld [vmem:[%s318_s1 + $0x10] ss:$8 sps:$4 sm:$0xff]   ;;  %v237_v15 = vld [vmem:[%s318_s1 + $0x4] ss:$8 sps:$4 sm:$0xff]  }
   0x6   :  { %v239_v16 = vld [vmem:[%s318_s1] ss:$8 sps:$4 sm:$0xff]   ;;  %v173_v19 = vshrl.u32 %v172_v18, 7 }
   0x7   :  { %123 = vmatpush1.bf16.msra.mxu0 %v221_v4  ;;  %v23_v17 = vld [vmem:[%s319_s0] sm:$0xf] }
   0x8   :  { %124 = vmatprep.subr.bf16.mxu0 %v222_v5  ;;  %v174_v20 = vsub.s32 0, %v173_v19  ;;  %v178_v21 = vsub.s32 1, %v173_v19  ;;  %v170_v22 = vld [vmem:[%s320_s2] sm:$0x3] }
   0xa   :  { %v175_v23 = vrot.slane %v170_v22, %v174_v20  ;;  %v179_v24 = vrot.slane %v170_v22, %v178_v21 }
   0xb   :  { %125 = vmatpush1.bf16.msra.mxu0 %v224_v6 }
   0xc   :  { %126 = vmatprep.subr.bf16.mxu0 %v225_v7 }
   0xf   :  { %127 = vmatpush1.bf16.msra.mxu0 %v227_v8 }
  0x10   :  { %128 = vmatprep.subr.bf16.mxu0 %v228_v9 }
  0x13   :  { %129 = vmatpush1.bf16.msra.mxu0 %v230_v10 }
  0x14   :  { %130 = vmatprep.subr.bf16.mxu0 %v231_v11 }
  0x17   :  { %131 = vmatpush1.bf16.msra.mxu0 %v233_v12 }
  0x18   :  { %132 = vmatprep.subr.bf16.mxu0 %v234_v13 }
  0x1b   :  { %133 = vmatpush1.bf16.msra.mxu0 %v236_v14 }
  0x1c   :  { %134 = vmatprep.subr.bf16.mxu0 %v237_v15 }
  0x1f   :  { %135 = vmatpush1.bf16.msra.mxu0 %v239_v16 }
  0x22   :  { %153 = vmatmul.mubr.bf16.vlgmr.msra.gmra.mxu0 %v23_v17 }
  0xe2   :  { %v154_v25 = vpop.f32.mrf.mxu0 }
  0xe3   :  { %v182_v27 = vadd.f32 %v175_v23, %v154_v25 }
  0xe4   :  { %v156_v26 = vpop.f32.mrf.mxu0 }
  0xe5   :  { %v183_v28 = vadd.f32 %v179_v24, %v156_v26 }
  0xe6   :  { %v158_v29 = vpop.f32.mrf.mxu0 }
  0xe7   :  { %v214_v30 = vpack.c.bf16 %v183_v28, %v182_v27 }
  0xe8   :  { %v159_v31 = vpop.f32.mrf.mxu0 }
  0xe9   :  { %192 = vst [vmem:[%s321_s3] sm:$0xff] %v214_v30 }

// kernel: cancer_classifier_forward.38
= control target key start
LH: loop header
LB: loop body
LE: loop exit
PB: predicated region body
PF: predicated region fallthrough
CT: control target
= control target key end

     0   :  { %s1036_s12 = smov 0   ;;  %s1038_s13 = smov 0   ;;  %s1135_s0 = inlined_call_operand.vmem [shape: bf16[8,2304], index: 0, kind: input, shape index: {}]   ;;  %s1136_s1 = inlined_call_operand.vmem [shape: bf16[2304,256], index: 1, kind: input, shape index: {}]   ;;  %s1137_s2 = inlined_call_operand.vmem [shape: f32[1,256], index: 2, kind: input, shape index: {}]   ;;  %s1138_s3 = inlined_call_operand.vmem [shape: bf16[8,256], index: 3, kind: output, shape index: {}]  }
   0x1   :  { %s1040_s14 = smov 0  }
   0x2 LB: > { %s25_s15 = sadd.s32 1, %s1008_s13  ;;  %p825_p0 = scmp.ge.s32.totalorder %s1012_s14, 1  ;;  %s1012_s14 = sphi %s1040_s14, %s13_s14   ;;  %s1008_s13 = sphi %s1038_s13, %s1140_s13   ;;  %s1004_s12 = sphi %s1036_s12, %s1139_s12  }
   0x3   : > { %p26_p1 = scmp.ge.s32.totalorder %s25_s15, 6  ;;  %p194_p2 = scmp.lt.s32.totalorder %s1012_s14, 7 }
   0x5   : > { %s1142_s15 = smov (%p26_p1, %s25_s15), 0  ;;  %p195_p3 = pnand %p825_p0, %p194_p2 }
   0x6   : > { %s240_s16 = smul.u32 (!%p195_p3), 3, %s1004_s12  ;;  %p829_p6 = scmp.ne.s32.totalorder (!%p195_p3), %s1004_s12, 0 }
   0x7   : > { %198 = sbr.rel (%p195_p3) target bundleno = 302 (0x12e), region = 32 }
   0x8   : > { %s250_s17 = smul.u32 (!%p195_p3), 48, %s1004_s12  ;;  %p243_p4 = scmp.lt.s32.totalorder (!%p195_p3), %s240_s16, 17 }
   0xa   : > { %p252_p5 = scmp.lt.s32.totalorder (!%p195_p3), %s250_s17, 287 }
   0xc   : > { %s1144_s16 = smov (!%p243_p4, %s240_s16), 17  ;;  %s1146_s17 = smov (!%p252_p5, %s250_s17), 287 }
   0xd   : > { %s826_s18 = sshll.u32 %s1144_s16, 2  ;;  %s887_s22 = sshll.u32 %s1146_s17, 3 }
   0xe   : > { %s1061_s21 = scalar_lea.vmem %s1135_s0, %s826_s18  ;;  %s1066_s25 = scalar_lea.vmem %s1136_s1, %s887_s22 }
   0xf   : > { %281 = sbr.rel (%p829_p6) target bundleno = 22 (0x16), region = 36 }
  0x14   : > { %v1014_v0 = vmov 0.0  }
  0x15   : > { %282 = vst [vmem:[#allocation2] sm:$0xff] %v1014_v0  ;;  %283 = vst [vmem:[#allocation2 + $0x8] sm:$0xff] %v1014_v0 }
  0x16 PF: > { %v915_v1 = vld [vmem:[%s1066_s25 + $0x74] ss:$8 sps:$4 sm:$0xff]   ;;  %v917_v2 = vld [vmem:[%s1066_s25 + $0x70] ss:$8 sps:$4 sm:$0xff]   ;;  %v1015_v3 = vmov 0   ;;  %v286_v34 = vld [vmem:[%s1061_s21] sm:$0xff] }
  0x17   : > { %660 = vmatprep.mubr.bf16.mxu1 %v1015_v3  ;;  %587 = vmatprep.subr.bf16.mxu0 %v915_v1  ;;  %v918_v4 = vld [vmem:[%s1066_s25 + $0x64] ss:$8 sps:$4 sm:$0xff]   ;;  %v920_v5 = vld [vmem:[%s1066_s25 + $0x60] ss:$8 sps:$4 sm:$0xff]   ;;  %v921_v6 = vld [vmem:[%s1066_s25 + $0x54] ss:$8 sps:$4 sm:$0xff]   ;;  %v831_v36 = vcombine.high %v286_v34, %v286_v34  ;;  %v830_v53 = vcombine.low %v286_v34, %v286_v34 }
  0x18   : > { %588 = vmatpush1.bf16.msra.mxu0 %v917_v2  ;;  %v923_v7 = vld [vmem:[%s1066_s25 + $0x50] ss:$8 sps:$4 sm:$0xff]   ;;  %v924_v8 = vld [vmem:[%s1066_s25 + $0x44] ss:$8 sps:$4 sm:$0xff]   ;;  %v936_v9 = vld [vmem:[%s1066_s25 + $0x174] ss:$8 sps:$4 sm:$0xff]  }
  0x19   : > { %589 = vmatprep.subr.bf16.mxu0 %v918_v4  ;;  %v938_v10 = vld [vmem:[%s1066_s25 + $0x170] ss:$8 sps:$4 sm:$0xff]   ;;  %v926_v11 = vld [vmem:[%s1066_s25 + $0x40] ss:$8 sps:$4 sm:$0xff]   ;;  %v927_v12 = vld [vmem:[%s1066_s25 + $0x34] ss:$8 sps:$4 sm:$0xff]   ;;  %628 = vmatprep.subr.bf16.mxu1 %v936_v9 }
  0x1a   : > { %v942_v13 = vld [vmem:[%s1066_s25 + $0x164] ss:$8 sps:$4 sm:$0xff]   ;;  %629 = vmatpush1.bf16.msra.mxu1 %v938_v10  ;;  %v944_v14 = vld [vmem:[%s1066_s25 + $0x160] ss:$8 sps:$4 sm:$0xff]   ;;  %v929_v15 = vld [vmem:[%s1066_s25 + $0x30] ss:$8 sps:$4 sm:$0xff]   ;;  %619 = vmatprep.mubr.bf16.mxu0 %v831_v36 }
  0x1b   : > { %630 = vmatprep.subr.bf16.mxu1 %v942_v13  ;;  %v948_v16 = vld [vmem:[%s1066_s25 + $0x154] ss:$8 sps:$4 sm:$0xff]   ;;  %v930_v17 = vld [vmem:[%s1066_s25 + $0x24] ss:$8 sps:$4 sm:$0xff]   ;;  %v950_v18 = vld [vmem:[%s1066_s25 + $0x150] ss:$8 sps:$4 sm:$0xff]  }
  0x1c   : > { %590 = vmatpush1.bf16.msra.mxu0 %v920_v5  ;;  %v954_v19 = vld [vmem:[%s1066_s25 + $0x144] ss:$8 sps:$4 sm:$0xff]   ;;  %v932_v20 = vld [vmem:[%s1066_s25 + $0x20] ss:$8 sps:$4 sm:$0xff]   ;;  %v933_v21 = vld [vmem:[%s1066_s25 + $0x14] ss:$8 sps:$4 sm:$0xff]  }
  0x1d   : > { %591 = vmatprep.subr.bf16.mxu0 %v921_v6  ;;  %v956_v22 = vld [vmem:[%s1066_s25 + $0x140] ss:$8 sps:$4 sm:$0xff]   ;;  %v960_v23 = vld [vmem:[%s1066_s25 + $0x134] ss:$8 sps:$4 sm:$0xff]   ;;  %v935_v24 = vld [vmem:[%s1066_s25 + $0x10] ss:$8 sps:$4 sm:$0xff]  }
  0x1e   : > { %631 = vmatpush1.bf16.msra.mxu1 %v944_v14  ;;  %v939_v25 = vld [vmem:[%s1066_s25 + $0x4] ss:$8 sps:$4 sm:$0xff]   ;;  %v962_v26 = vld [vmem:[%s1066_s25 + $0x130] ss:$8 sps:$4 sm:$0xff]   ;;  %v941_v28 = vld [vmem:[%s1066_s25] ss:$8 sps:$4 sm:$0xff]  }
  0x1f   : > { %632 = vmatprep.subr.bf16.mxu1 %v948_v16  ;;  %v966_v27 = vld [vmem:[%s1066_s25 + $0x124] ss:$8 sps:$4 sm:$0xff]   ;;  %v945_v29 = vld [vmem:[%s1066_s25 + $0xf4] ss:$8 sps:$4 sm:$0xff]   ;;  %v968_v30 = vld [vmem:[%s1066_s25 + $0x120] ss:$8 sps:$4 sm:$0xff]  }
  0x20   : > { %592 = vmatpush1.bf16.msra.mxu0 %v923_v7  ;;  %v972_v31 = vld [vmem:[%s1066_s25 + $0x114] ss:$8 sps:$4 sm:$0xff]   ;;  %v947_v32 = vld [vmem:[%s1066_s25 + $0xf0] ss:$8 sps:$4 sm:$0xff]   ;;  %v951_v33 = vld [vmem:[%s1066_s25 + $0xe4] ss:$8 sps:$4 sm:$0xff]  }
  0x21   : > { %593 = vmatprep.subr.bf16.mxu0 %v924_v8  ;;  %v974_v35 = vld [vmem:[%s1066_s25 + $0x110] ss:$8 sps:$4 sm:$0xff]   ;;  %v978_v37 = vld [vmem:[%s1066_s25 + $0x104] ss:$8 sps:$4 sm:$0xff]   ;;  %v953_v38 = vld [vmem:[%s1066_s25 + $0xe0] ss:$8 sps:$4 sm:$0xff]  }
  0x22   : > { %633 = vmatpush1.bf16.msra.mxu1 %v950_v18  ;;  %v957_v39 = vld [vmem:[%s1066_s25 + $0xd4] ss:$8 sps:$4 sm:$0xff]   ;;  %v980_v40 = vld [vmem:[%s1066_s25 + $0x100] ss:$8 sps:$4 sm:$0xff]   ;;  %v959_v41 = vld [vmem:[%s1066_s25 + $0xd0] ss:$8 sps:$4 sm:$0xff]  }
  0x23   : > { %634 = vmatprep.subr.bf16.mxu1 %v954_v19  ;;  %v963_v42 = vld [vmem:[%s1066_s25 + $0xc4] ss:$8 sps:$4 sm:$0xff]   ;;  %v984_v43 = vld [vmem:[%s1061_s21 + $0x8] ss:$0 sps:$4 sm:$0xff]   ;;  %v969_v45 = vld [vmem:[%s1066_s25 + $0xb4] ss:$8 sps:$4 sm:$0xff]  }
  0x24   : > { %594 = vmatpush1.bf16.msra.mxu0 %v926_v11  ;;  %v965_v44 = vld [vmem:[%s1066_s25 + $0xc0] ss:$8 sps:$4 sm:$0xff]   ;;  %v971_v46 = vld [vmem:[%s1066_s25 + $0xb0] ss:$8 sps:$4 sm:$0xff]   ;;  %v975_v47 = vld [vmem:[%s1066_s25 + $0xa4] ss:$8 sps:$4 sm:$0xff]  }
  0x25   : > { %595 = vmatprep.subr.bf16.mxu0 %v927_v12  ;;  %v977_v48 = vld [vmem:[%s1066_s25 + $0xa0] ss:$8 sps:$4 sm:$0xff]   ;;  %v981_v49 = vld [vmem:[%s1066_s25 + $0x94] ss:$8 sps:$4 sm:$0xff]   ;;  %v983_v50 = vld [vmem:[%s1066_s25 + $0x90] ss:$8 sps:$4 sm:$0xff]  }
  0x26   : > { %635 = vmatpush1.bf16.msra.mxu1 %v956_v22  ;;  %v985_v51 = vld [vmem:[%s1066_s25 + $0x84] ss:$8 sps:$4 sm:$0xff]   ;;  %v987_v52 = vld [vmem:[%s1066_s25 + $0x80] ss:$8 sps:$4 sm:$0xff]   ;;  %p881_p7 = scmp.ne.s32.totalorder %s1004_s12, 5 }
  0x27   : > { %636 = vmatprep.subr.bf16.mxu1 %v960_v23  ;;  %v284_v58 = vld [vmem:[#allocation2] sm:$0xff]  ;;  %v285_v61 = vld [vmem:[#allocation2 + $0x8] sm:$0xff] }
  0x28   : > { %596 = vmatpush1.bf16.msra.mxu0 %v929_v15 }
  0x29   : > { %597 = vmatprep.subr.bf16.mxu0 %v930_v17 }
  0x2a   : > { %637 = vmatpush1.bf16.msra.mxu1 %v962_v26 }
  0x2b   : > { %638 = vmatprep.subr.bf16.mxu1 %v966_v27 }
  0x2c   : > { %598 = vmatpush1.bf16.msra.mxu0 %v932_v20 }
  0x2d   : > { %599 = vmatprep.subr.bf16.mxu0 %v933_v21 }
  0x2e   : > { %639 = vmatpush1.bf16.msra.mxu1 %v968_v30 }
  0x2f   : > { %640 = vmatprep.subr.bf16.mxu1 %v972_v31 }
  0x30   : > { %600 = vmatpush1.bf16.msra.mxu0 %v935_v24 }
  0x31   : > { %601 = vmatprep.subr.bf16.mxu0 %v939_v25 }
  0x32   : > { %641 = vmatpush1.bf16.msra.mxu1 %v974_v35 }
  0x33   : > { %642 = vmatprep.subr.bf16.mxu1 %v978_v37 }
  0x34   : > { %602 = vmatpush1.bf16.msra.mxu0 %v941_v28 }
  0x35   : > { %603 = vmatprep.subr.bf16.mxu0 %v945_v29 }
  0x36   : > { %643 = vmatpush1.bf16.msra.mxu1 %v980_v40 }
  0x38   : > { %604 = vmatpush2.bf16.msra.mxu0 %v947_v32 }
  0x39   : > { %605 = vmatprep.subr.bf16.mxu0 %v951_v33  ;;  %661 = vmatmul.mubr.bf16.vlgmr.msra.gmra.mxu1 %v984_v43 }
  0x3c   : > { %606 = vmatpush2.bf16.msra.mxu0 %v953_v38 }
  0x3d   : > { %607 = vmatprep.subr.bf16.mxu0 %v957_v39 }
  0x40   : > { %608 = vmatpush2.bf16.msra.mxu0 %v959_v41 }
  0x41   : > { %609 = vmatprep.subr.bf16.mxu0 %v963_v42 }
  0x44   : > { %610 = vmatpush2.bf16.msra.mxu0 %v965_v44 }
  0x45   : > { %611 = vmatprep.subr.bf16.mxu0 %v969_v45 }
  0x48   : > { %612 = vmatpush2.bf16.msra.mxu0 %v971_v46 }
  0x49   : > { %613 = vmatprep.subr.bf16.mxu0 %v975_v47 }
  0x4c   : > { %614 = vmatpush2.bf16.msra.mxu0 %v977_v48 }
  0x4d   : > { %615 = vmatprep.subr.bf16.mxu0 %v981_v49 }
  0x50   : > { %616 = vmatpush2.bf16.msra.mxu0 %v983_v50 }
  0x51   : > { %617 = vmatprep.subr.bf16.mxu0 %v985_v51 }
  0x54   : > { %618 = vmatpush2.bf16.msra.mxu0 %v987_v52 }
  0x57   : > { %620 = vmatmul.mubr.bf16.vlgmr.msra.gmra.mxu0 %v830_v53 }
  0xf9   : > { %v662_v54 = vpop.f32.mrf.mxu1 }
  0xfb   : > { %v664_v55 = vpop.f32.mrf.mxu1 }
  0xfd   : > { %v666_v56 = vpop.f32.mrf.mxu1 }
  0xff   : > { %v667_v57 = vpop.f32.mrf.mxu1 }
 0x117   : > { %v621_v59 = vpop.f32.mrf.mxu0 }
 0x118   : > { %v663_v60 = vadd.f32 %v662_v54, %v621_v59 }
 0x119   : > { %v623_v62 = vpop.f32.mrf.mxu0 }
 0x11a   : > { %v669_v63 = vadd.f32 %v663_v60, %v284_v58  ;;  %v665_v0 = vadd.f32 %v664_v55, %v623_v62  ;;  %676 = sbr.rel (%p881_p7) target bundleno = 302 (0x12e), region = 40 }
 0x11b   : > { %v625_v1 = vpop.f32.mrf.mxu0 }
 0x11c   : > { %671 = vst [vmem:[#allocation2] sm:$0xff] %v669_v63  ;;  %v670_v2 = vadd.f32 %v665_v0, %v285_v61 }
 0x11d   : > { %v626_v3 = vpop.f32.mrf.mxu0 }
 0x11e   : > { %672 = vst [vmem:[#allocation2 + $0x8] sm:$0xff] %v670_v2 }
 0x11f   : > { %v681_v4 = vlaneseq  ;;  %v679_v6 = vld [vmem:[%s1137_s2] sm:$0x3] }
 0x121   : > { %v682_v5 = vshrl.u32 %v681_v4, 7 }
 0x123   : > { %v683_v7 = vsub.s32 0, %v682_v5  ;;  %v687_v8 = vsub.s32 1, %v682_v5  ;;  %v677_v9 = vld [vmem:[#allocation2] sm:$0xff] }
 0x125   : > { %v678_v10 = vld [vmem:[#allocation2 + $0x8] sm:$0xff]  ;;  %v684_v11 = vrot.slane %v679_v6, %v683_v7  ;;  %v688_v12 = vrot.slane %v679_v6, %v687_v8 }
 0x127   : > { %v691_v13 = vadd.f32 %v684_v11, %v677_v9  ;;  %v692_v14 = vadd.f32 %v688_v12, %v678_v10 }
 0x129   : > { %v693_v15 = vmax.f32 %v691_v13, 0.0  ;;  %v694_v16 = vmax.f32 %v692_v14, 0.0 }
 0x12b   : > { %v888_v17 = vpack.c.bf16 %v694_v16, %v693_v15 }
 0x12d   : > { %703 = vst [vmem:[%s1138_s3] sm:$0xff] %v888_v17 }
 0x12e PF: > { %s13_s14 = sadd.s32 1, %s1012_s14   ;;  %s1139_s12 = smov %s1008_s13 }
 0x12f   : > { %p10_p8 = scmp.ge.s32.totalorder %s13_s14, 8   ;;  %s1140_s13 = smov %s1142_s15 }
 0x131   :  { %12 = sbr.rel (!%p10_p8) target bundleno = 2 (0x2), region = 76 }

// kernel: cancer_classifier_forward.37
= control target key start
LH: loop header
LB: loop body
LE: loop exit
PB: predicated region body
PF: predicated region fallthrough
CT: control target
= control target key end

     0   :  { %s1131_s15 = smov 0   ;;  %s1133_s16 = smov 0   ;;  %s1233_s0 = inlined_call_operand.vmem [shape: bf16[8,2304], index: 0, kind: input, shape index: {}]   ;;  %s1234_s1 = inlined_call_operand.vmem [shape: bf16[2304,256], index: 1, kind: input, shape index: {}]   ;;  %s1235_s2 = inlined_call_operand.vmem [shape: f32[1,256], index: 2, kind: input, shape index: {}]   ;;  %s1236_s3 = inlined_call_operand.vmem [shape: bf16[8,256], index: 3, kind: input, shape index: {}]   ;;  %s1237_s4 = inlined_call_operand.vmem [shape: bf16[8,256], index: 4, kind: output, shape index: {}]  }
   0x1   :  { %s1135_s17 = smov 0  }
   0x2 LB: > { %s26_s18 = sadd.s32 1, %s1098_s16  ;;  %p915_p0 = scmp.ge.s32.totalorder %s1102_s17, 1  ;;  %s1102_s17 = sphi %s1135_s17, %s14_s17   ;;  %s1098_s16 = sphi %s1133_s16, %s1239_s16   ;;  %s1094_s15 = sphi %s1131_s15, %s1238_s15  }
   0x3   : > { %p27_p1 = scmp.ge.s32.totalorder %s26_s18, 6  ;;  %p236_p2 = scmp.lt.s32.totalorder %s1102_s17, 7 }
   0x5   : > { %s1241_s18 = smov (%p27_p1, %s26_s18), 0  ;;  %p237_p3 = pnand %p915_p0, %p236_p2 }
   0x6   : > { %s293_s19 = smul.u32 (!%p237_p3), 3, %s1094_s15  ;;  %p919_p6 = scmp.ne.s32.totalorder (!%p237_p3), %s1094_s15, 0 }
   0x7   : > { %240 = sbr.rel (%p237_p3) target bundleno = 304 (0x130), region = 36 }
   0x8   : > { %s303_s20 = smul.u32 (!%p237_p3), 48, %s1094_s15  ;;  %p296_p4 = scmp.lt.s32.totalorder (!%p237_p3), %s293_s19, 17 }
   0xa   : > { %p305_p5 = scmp.lt.s32.totalorder (!%p237_p3), %s303_s20, 287 }
   0xc   : > { %s1243_s19 = smov (!%p296_p4, %s293_s19), 17  ;;  %s1245_s20 = smov (!%p305_p5, %s303_s20), 287 }
   0xd   : > { %s916_s21 = sshll.u32 %s1243_s19, 2  ;;  %s977_s25 = sshll.u32 %s1245_s20, 3 }
   0xe   : > { %s1156_s24 = scalar_lea.vmem %s1233_s0, %s916_s21  ;;  %s1161_s28 = scalar_lea.vmem %s1234_s1, %s977_s25 }
   0xf   : > { %344 = sbr.rel (%p919_p6) target bundleno = 22 (0x16), region = 40 }
  0x14   : > { %v1104_v0 = vmov 0.0  }
  0x15   : > { %345 = vst [vmem:[#allocation2] sm:$0xff] %v1104_v0  ;;  %346 = vst [vmem:[#allocation2 + $0x8] sm:$0xff] %v1104_v0 }
  0x16 PF: > { %v1005_v1 = vld [vmem:[%s1161_s28 + $0x74] ss:$8 sps:$4 sm:$0xff]   ;;  %v1007_v2 = vld [vmem:[%s1161_s28 + $0x70] ss:$8 sps:$4 sm:$0xff]   ;;  %v1105_v3 = vmov 0   ;;  %v349_v34 = vld [vmem:[%s1156_s24] sm:$0xff] }
  0x17   : > { %723 = vmatprep.mubr.bf16.mxu1 %v1105_v3  ;;  %650 = vmatprep.subr.bf16.mxu0 %v1005_v1  ;;  %v1008_v4 = vld [vmem:[%s1161_s28 + $0x64] ss:$8 sps:$4 sm:$0xff]   ;;  %v1010_v5 = vld [vmem:[%s1161_s28 + $0x60] ss:$8 sps:$4 sm:$0xff]   ;;  %v1011_v6 = vld [vmem:[%s1161_s28 + $0x54] ss:$8 sps:$4 sm:$0xff]   ;;  %v921_v36 = vcombine.high %v349_v34, %v349_v34  ;;  %v920_v53 = vcombine.low %v349_v34, %v349_v34 }
  0x18   : > { %651 = vmatpush1.bf16.msra.mxu0 %v1007_v2  ;;  %v1013_v7 = vld [vmem:[%s1161_s28 + $0x50] ss:$8 sps:$4 sm:$0xff]   ;;  %v1014_v8 = vld [vmem:[%s1161_s28 + $0x44] ss:$8 sps:$4 sm:$0xff]   ;;  %v1026_v9 = vld [vmem:[%s1161_s28 + $0x174] ss:$8 sps:$4 sm:$0xff]  }
  0x19   : > { %652 = vmatprep.subr.bf16.mxu0 %v1008_v4  ;;  %v1028_v10 = vld [vmem:[%s1161_s28 + $0x170] ss:$8 sps:$4 sm:$0xff]   ;;  %v1016_v11 = vld [vmem:[%s1161_s28 + $0x40] ss:$8 sps:$4 sm:$0xff]   ;;  %v1017_v12 = vld [vmem:[%s1161_s28 + $0x34] ss:$8 sps:$4 sm:$0xff]   ;;  %691 = vmatprep.subr.bf16.mxu1 %v1026_v9 }
  0x1a   : > { %v1032_v13 = vld [vmem:[%s1161_s28 + $0x164] ss:$8 sps:$4 sm:$0xff]   ;;  %692 = vmatpush1.bf16.msra.mxu1 %v1028_v10  ;;  %v1034_v14 = vld [vmem:[%s1161_s28 + $0x160] ss:$8 sps:$4 sm:$0xff]   ;;  %v1019_v15 = vld [vmem:[%s1161_s28 + $0x30] ss:$8 sps:$4 sm:$0xff]   ;;  %682 = vmatprep.mubr.bf16.mxu0 %v921_v36 }
  0x1b   : > { %693 = vmatprep.subr.bf16.mxu1 %v1032_v13  ;;  %v1038_v16 = vld [vmem:[%s1161_s28 + $0x154] ss:$8 sps:$4 sm:$0xff]   ;;  %v1020_v17 = vld [vmem:[%s1161_s28 + $0x24] ss:$8 sps:$4 sm:$0xff]   ;;  %v1040_v18 = vld [vmem:[%s1161_s28 + $0x150] ss:$8 sps:$4 sm:$0xff]  }
  0x1c   : > { %653 = vmatpush1.bf16.msra.mxu0 %v1010_v5  ;;  %v1044_v19 = vld [vmem:[%s1161_s28 + $0x144] ss:$8 sps:$4 sm:$0xff]   ;;  %v1022_v20 = vld [vmem:[%s1161_s28 + $0x20] ss:$8 sps:$4 sm:$0xff]   ;;  %v1023_v21 = vld [vmem:[%s1161_s28 + $0x14] ss:$8 sps:$4 sm:$0xff]  }
  0x1d   : > { %654 = vmatprep.subr.bf16.mxu0 %v1011_v6  ;;  %v1046_v22 = vld [vmem:[%s1161_s28 + $0x140] ss:$8 sps:$4 sm:$0xff]   ;;  %v1050_v23 = vld [vmem:[%s1161_s28 + $0x134] ss:$8 sps:$4 sm:$0xff]   ;;  %v1025_v24 = vld [vmem:[%s1161_s28 + $0x10] ss:$8 sps:$4 sm:$0xff]  }
  0x1e   : > { %694 = vmatpush1.bf16.msra.mxu1 %v1034_v14  ;;  %v1029_v25 = vld [vmem:[%s1161_s28 + $0x4] ss:$8 sps:$4 sm:$0xff]   ;;  %v1052_v26 = vld [vmem:[%s1161_s28 + $0x130] ss:$8 sps:$4 sm:$0xff]   ;;  %v1031_v28 = vld [vmem:[%s1161_s28] ss:$8 sps:$4 sm:$0xff]  }
  0x1f   : > { %695 = vmatprep.subr.bf16.mxu1 %v1038_v16  ;;  %v1056_v27 = vld [vmem:[%s1161_s28 + $0x124] ss:$8 sps:$4 sm:$0xff]   ;;  %v1035_v29 = vld [vmem:[%s1161_s28 + $0xf4] ss:$8 sps:$4 sm:$0xff]   ;;  %v1058_v30 = vld [vmem:[%s1161_s28 + $0x120] ss:$8 sps:$4 sm:$0xff]  }
  0x20   : > { %655 = vmatpush1.bf16.msra.mxu0 %v1013_v7  ;;  %v1062_v31 = vld [vmem:[%s1161_s28 + $0x114] ss:$8 sps:$4 sm:$0xff]   ;;  %v1037_v32 = vld [vmem:[%s1161_s28 + $0xf0] ss:$8 sps:$4 sm:$0xff]   ;;  %v1041_v33 = vld [vmem:[%s1161_s28 + $0xe4] ss:$8 sps:$4 sm:$0xff]  }
  0x21   : > { %656 = vmatprep.subr.bf16.mxu0 %v1014_v8  ;;  %v1064_v35 = vld [vmem:[%s1161_s28 + $0x110] ss:$8 sps:$4 sm:$0xff]   ;;  %v1068_v37 = vld [vmem:[%s1161_s28 + $0x104] ss:$8 sps:$4 sm:$0xff]   ;;  %v1043_v38 = vld [vmem:[%s1161_s28 + $0xe0] ss:$8 sps:$4 sm:$0xff]  }
  0x22   : > { %696 = vmatpush1.bf16.msra.mxu1 %v1040_v18  ;;  %v1047_v39 = vld [vmem:[%s1161_s28 + $0xd4] ss:$8 sps:$4 sm:$0xff]   ;;  %v1070_v40 = vld [vmem:[%s1161_s28 + $0x100] ss:$8 sps:$4 sm:$0xff]   ;;  %v1049_v41 = vld [vmem:[%s1161_s28 + $0xd0] ss:$8 sps:$4 sm:$0xff]  }
  0x23   : > { %697 = vmatprep.subr.bf16.mxu1 %v1044_v19  ;;  %v1053_v42 = vld [vmem:[%s1161_s28 + $0xc4] ss:$8 sps:$4 sm:$0xff]   ;;  %v1074_v43 = vld [vmem:[%s1156_s24 + $0x8] ss:$0 sps:$4 sm:$0xff]   ;;  %v1059_v45 = vld [vmem:[%s1161_s28 + $0xb4] ss:$8 sps:$4 sm:$0xff]  }
  0x24   : > { %657 = vmatpush1.bf16.msra.mxu0 %v1016_v11  ;;  %v1055_v44 = vld [vmem:[%s1161_s28 + $0xc0] ss:$8 sps:$4 sm:$0xff]   ;;  %v1061_v46 = vld [vmem:[%s1161_s28 + $0xb0] ss:$8 sps:$4 sm:$0xff]   ;;  %v1065_v47 = vld [vmem:[%s1161_s28 + $0xa4] ss:$8 sps:$4 sm:$0xff]  }
  0x25   : > { %658 = vmatprep.subr.bf16.mxu0 %v1017_v12  ;;  %v1067_v48 = vld [vmem:[%s1161_s28 + $0xa0] ss:$8 sps:$4 sm:$0xff]   ;;  %v1071_v49 = vld [vmem:[%s1161_s28 + $0x94] ss:$8 sps:$4 sm:$0xff]   ;;  %v1073_v50 = vld [vmem:[%s1161_s28 + $0x90] ss:$8 sps:$4 sm:$0xff]  }
  0x26   : > { %698 = vmatpush1.bf16.msra.mxu1 %v1046_v22  ;;  %v1075_v51 = vld [vmem:[%s1161_s28 + $0x84] ss:$8 sps:$4 sm:$0xff]   ;;  %v1077_v52 = vld [vmem:[%s1161_s28 + $0x80] ss:$8 sps:$4 sm:$0xff]   ;;  %p971_p7 = scmp.ne.s32.totalorder %s1094_s15, 5 }
  0x27   : > { %699 = vmatprep.subr.bf16.mxu1 %v1050_v23  ;;  %v347_v58 = vld [vmem:[#allocation2] sm:$0xff]  ;;  %v348_v61 = vld [vmem:[#allocation2 + $0x8] sm:$0xff] }
  0x28   : > { %659 = vmatpush1.bf16.msra.mxu0 %v1019_v15 }
  0x29   : > { %660 = vmatprep.subr.bf16.mxu0 %v1020_v17 }
  0x2a   : > { %700 = vmatpush1.bf16.msra.mxu1 %v1052_v26 }
  0x2b   : > { %701 = vmatprep.subr.bf16.mxu1 %v1056_v27 }
  0x2c   : > { %661 = vmatpush1.bf16.msra.mxu0 %v1022_v20 }
  0x2d   : > { %662 = vmatprep.subr.bf16.mxu0 %v1023_v21 }
  0x2e   : > { %702 = vmatpush1.bf16.msra.mxu1 %v1058_v30 }
  0x2f   : > { %703 = vmatprep.subr.bf16.mxu1 %v1062_v31 }
  0x30   : > { %663 = vmatpush1.bf16.msra.mxu0 %v1025_v24 }
  0x31   : > { %664 = vmatprep.subr.bf16.mxu0 %v1029_v25 }
  0x32   : > { %704 = vmatpush1.bf16.msra.mxu1 %v1064_v35 }
  0x33   : > { %705 = vmatprep.subr.bf16.mxu1 %v1068_v37 }
  0x34   : > { %665 = vmatpush1.bf16.msra.mxu0 %v1031_v28 }
  0x35   : > { %666 = vmatprep.subr.bf16.mxu0 %v1035_v29 }
  0x36   : > { %706 = vmatpush1.bf16.msra.mxu1 %v1070_v40 }
  0x38   : > { %667 = vmatpush2.bf16.msra.mxu0 %v1037_v32 }
  0x39   : > { %668 = vmatprep.subr.bf16.mxu0 %v1041_v33  ;;  %724 = vmatmul.mubr.bf16.vlgmr.msra.gmra.mxu1 %v1074_v43 }
  0x3c   : > { %669 = vmatpush2.bf16.msra.mxu0 %v1043_v38 }
  0x3d   : > { %670 = vmatprep.subr.bf16.mxu0 %v1047_v39 }
  0x40   : > { %671 = vmatpush2.bf16.msra.mxu0 %v1049_v41 }
  0x41   : > { %672 = vmatprep.subr.bf16.mxu0 %v1053_v42 }
  0x44   : > { %673 = vmatpush2.bf16.msra.mxu0 %v1055_v44 }
  0x45   : > { %674 = vmatprep.subr.bf16.mxu0 %v1059_v45 }
  0x48   : > { %675 = vmatpush2.bf16.msra.mxu0 %v1061_v46 }
  0x49   : > { %676 = vmatprep.subr.bf16.mxu0 %v1065_v47 }
  0x4c   : > { %677 = vmatpush2.bf16.msra.mxu0 %v1067_v48 }
  0x4d   : > { %678 = vmatprep.subr.bf16.mxu0 %v1071_v49 }
  0x50   : > { %679 = vmatpush2.bf16.msra.mxu0 %v1073_v50 }
  0x51   : > { %680 = vmatprep.subr.bf16.mxu0 %v1075_v51 }
  0x54   : > { %681 = vmatpush2.bf16.msra.mxu0 %v1077_v52 }
  0x57   : > { %683 = vmatmul.mubr.bf16.vlgmr.msra.gmra.mxu0 %v920_v53 }
  0xf9   : > { %v725_v54 = vpop.f32.mrf.mxu1 }
  0xfb   : > { %v727_v55 = vpop.f32.mrf.mxu1 }
  0xfd   : > { %v729_v56 = vpop.f32.mrf.mxu1 }
  0xff   : > { %v730_v57 = vpop.f32.mrf.mxu1 }
 0x117   : > { %v684_v59 = vpop.f32.mrf.mxu0 }
 0x118   : > { %v726_v60 = vadd.f32 %v725_v54, %v684_v59 }
 0x119   : > { %v686_v62 = vpop.f32.mrf.mxu0 }
 0x11a   : > { %v732_v63 = vadd.f32 %v726_v60, %v347_v58  ;;  %v728_v0 = vadd.f32 %v727_v55, %v686_v62  ;;  %739 = sbr.rel (%p971_p7) target bundleno = 304 (0x130), region = 44 }
 0x11b   : > { %v688_v1 = vpop.f32.mrf.mxu0 }
 0x11c   : > { %734 = vst [vmem:[#allocation2] sm:$0xff] %v732_v63  ;;  %v733_v2 = vadd.f32 %v728_v0, %v348_v61 }
 0x11d   : > { %v689_v3 = vpop.f32.mrf.mxu0 }
 0x11e   : > { %735 = vst [vmem:[#allocation2 + $0x8] sm:$0xff] %v733_v2 }
 0x11f   : > { %v744_v4 = vlaneseq  ;;  %v742_v6 = vld [vmem:[%s1235_s2] sm:$0x3] }
 0x120   : > { %v756_v7 = vld [vmem:[%s1236_s3] sm:$0xff] }
 0x121   : > { %v745_v5 = vshrl.u32 %v744_v4, 7  ;;  %v757_v14 = vunpack.c.l.bf16 %v756_v7  ;;  %v758_v15 = vunpack.c.h.bf16 %v756_v7 }
 0x123   : > { %v746_v8 = vsub.s32 0, %v745_v5  ;;  %v750_v9 = vsub.s32 1, %v745_v5  ;;  %v740_v10 = vld [vmem:[#allocation2] sm:$0xff] }
 0x125   : > { %v741_v11 = vld [vmem:[#allocation2 + $0x8] sm:$0xff]  ;;  %v747_v12 = vrot.slane %v742_v6, %v746_v8  ;;  %v751_v13 = vrot.slane %v742_v6, %v750_v9 }
 0x127   : > { %v754_v16 = vadd.f32 %v747_v12, %v740_v10  ;;  %v755_v17 = vadd.f32 %v751_v13, %v741_v11 }
 0x129   : > { %v759_v18 = vadd.f32 %v757_v14, %v754_v16  ;;  %v760_v19 = vadd.f32 %v758_v15, %v755_v17 }
 0x12b   : > { %v761_v20 = vmax.f32 %v759_v18, 0.0  ;;  %v762_v21 = vmax.f32 %v760_v19, 0.0 }
 0x12d   : > { %v978_v22 = vpack.c.bf16 %v762_v21, %v761_v20 }
 0x12f   : > { %771 = vst [vmem:[%s1237_s4] sm:$0xff] %v978_v22 }
 0x130 PF: > { %s14_s17 = sadd.s32 1, %s1102_s17   ;;  %s1238_s15 = smov %s1098_s16 }
 0x131   : > { %p11_p8 = scmp.ge.s32.totalorder %s14_s17, 8   ;;  %s1239_s16 = smov %s1241_s18 }
 0x133   :  { %13 = sbr.rel (!%p11_p8) target bundleno = 2 (0x2), region = 83 }

// kernel: cancer_classifier_forward.41
= control target key start
LH: loop header
LB: loop body
LE: loop exit
PB: predicated region body
PF: predicated region fallthrough
CT: control target
= control target key end

     0   :  { %v803_v38 = vmov 1966171168   ;;  %v97_v40 = vlaneseq  ;;  %s1040_s1 = inlined_call_operand.vmem [shape: bf16[256,512], index: 1, kind: input, shape index: {}]   ;;  %s1041_s0 = inlined_call_operand.vmem [shape: bf16[2,256], index: 0, kind: input, shape index: {}]   ;;  %s1042_s2 = inlined_call_operand.vmem [shape: f32[1,512], index: 2, kind: input, shape index: {}]   ;;  %s1043_s3 = inlined_call_operand.vmem [shape: bf16[2,512], index: 3, kind: output, shape index: {}]  }
   0x1   :  { %v707_v0 = vld [vmem:[%s1040_s1 + $0xe4] ss:$16 sps:$4 sm:$0xff]   ;;  %v709_v1 = vld [vmem:[%s1040_s1 + $0xec] ss:$16 sps:$4 sm:$0xff]   ;;  %v711_v2 = vld [vmem:[%s1040_s1 + $0xe0] ss:$16 sps:$4 sm:$0xff]   ;;  %v95_v39 = vunpack.c.l.s4 %v803_v38 }
   0x2   :  { %430 = vmatprep.subr.bf16.mxu0 %v707_v0  ;;  %v712_v3 = vld [vmem:[%s1040_s1 + $0xe8] ss:$16 sps:$4 sm:$0xff]   ;;  %471 = vmatprep.subr.bf16.mxu1 %v709_v1  ;;  %v713_v4 = vld [vmem:[%s1040_s1 + $0xc4] ss:$16 sps:$4 sm:$0xff]   ;;  %v715_v5 = vld [vmem:[%s1040_s1 + $0xcc] ss:$16 sps:$4 sm:$0xff]  }
   0x3   :  { %431 = vmatpush1.bf16.msra.mxu0 %v711_v2  ;;  %472 = vmatpush1.bf16.msra.mxu1 %v712_v3  ;;  %v717_v6 = vld [vmem:[%s1040_s1 + $0xc0] ss:$16 sps:$4 sm:$0xff]   ;;  %v718_v7 = vld [vmem:[%s1040_s1 + $0xc8] ss:$16 sps:$4 sm:$0xff]   ;;  %v719_v8 = vld [vmem:[%s1040_s1 + $0xa4] ss:$16 sps:$4 sm:$0xff]   ;;  %v96_v45 = vunpack.c.0.s8 %v95_v39 }
   0x4   :  { %432 = vmatprep.subr.bf16.mxu0 %v713_v4  ;;  %473 = vmatprep.subr.bf16.mxu1 %v715_v5  ;;  %v721_v9 = vld [vmem:[%s1040_s1 + $0xac] ss:$16 sps:$4 sm:$0xff]   ;;  %v723_v10 = vld [vmem:[%s1040_s1 + $0xa0] ss:$16 sps:$4 sm:$0xff]   ;;  %v724_v11 = vld [vmem:[%s1040_s1 + $0xa8] ss:$16 sps:$4 sm:$0xff]  }
   0x5   :  { %v725_v12 = vld [vmem:[%s1040_s1 + $0x84] ss:$16 sps:$4 sm:$0xff]   ;;  %v727_v13 = vld [vmem:[%s1040_s1 + $0x8c] ss:$16 sps:$4 sm:$0xff]   ;;  %v729_v14 = vld [vmem:[%s1040_s1 + $0x80] ss:$16 sps:$4 sm:$0xff]  }
   0x6   :  { %v730_v15 = vld [vmem:[%s1040_s1 + $0x88] ss:$16 sps:$4 sm:$0xff]   ;;  %v731_v16 = vld [vmem:[%s1040_s1 + $0x64] ss:$16 sps:$4 sm:$0xff]   ;;  %v733_v17 = vld [vmem:[%s1040_s1 + $0x6c] ss:$16 sps:$4 sm:$0xff]  }
   0x7   :  { %433 = vmatpush1.bf16.msra.mxu0 %v717_v6  ;;  %474 = vmatpush1.bf16.msra.mxu1 %v718_v7  ;;  %v735_v18 = vld [vmem:[%s1040_s1 + $0x60] ss:$16 sps:$4 sm:$0xff]   ;;  %v736_v19 = vld [vmem:[%s1040_s1 + $0x68] ss:$16 sps:$4 sm:$0xff]   ;;  %v737_v20 = vld [vmem:[%s1040_s1 + $0x44] ss:$16 sps:$4 sm:$0xff]  }
   0x8   :  { %434 = vmatprep.subr.bf16.mxu0 %v719_v8  ;;  %475 = vmatprep.subr.bf16.mxu1 %v721_v9  ;;  %v739_v21 = vld [vmem:[%s1040_s1 + $0x4c] ss:$16 sps:$4 sm:$0xff]   ;;  %v741_v22 = vld [vmem:[%s1040_s1 + $0x40] ss:$16 sps:$4 sm:$0xff]   ;;  %v742_v23 = vld [vmem:[%s1040_s1 + $0x48] ss:$16 sps:$4 sm:$0xff]  }
   0x9   :  { %v743_v24 = vld [vmem:[%s1040_s1 + $0x24] ss:$16 sps:$4 sm:$0xff]   ;;  %v745_v25 = vld [vmem:[%s1040_s1 + $0x2c] ss:$16 sps:$4 sm:$0xff]   ;;  %v747_v26 = vld [vmem:[%s1040_s1 + $0x20] ss:$16 sps:$4 sm:$0xff]  }
   0xa   :  { %v748_v27 = vld [vmem:[%s1040_s1 + $0x28] ss:$16 sps:$4 sm:$0xff]   ;;  %v749_v28 = vld [vmem:[%s1040_s1 + $0x4] ss:$16 sps:$4 sm:$0xff]   ;;  %v751_v29 = vld [vmem:[%s1040_s1 + $0xc] ss:$16 sps:$4 sm:$0xff]  }
   0xb   :  { %435 = vmatpush1.bf16.msra.mxu0 %v723_v10  ;;  %476 = vmatpush1.bf16.msra.mxu1 %v724_v11  ;;  %v753_v30 = vld [vmem:[%s1040_s1] ss:$16 sps:$4 sm:$0xff]   ;;  %v754_v31 = vld [vmem:[%s1040_s1 + $0x8] ss:$16 sps:$4 sm:$0xff]   ;;  %v755_v32 = vld [vmem:[%s1040_s1 + $0x1e4] ss:$16 sps:$4 sm:$0xff]  }
   0xc   :  { %436 = vmatprep.subr.bf16.mxu0 %v725_v12  ;;  %477 = vmatprep.subr.bf16.mxu1 %v727_v13  ;;  %v757_v33 = vld [vmem:[%s1040_s1 + $0x1ec] ss:$16 sps:$4 sm:$0xff]   ;;  %v759_v34 = vld [vmem:[%s1040_s1 + $0x1e0] ss:$16 sps:$4 sm:$0xff]   ;;  %v760_v35 = vld [vmem:[%s1040_s1 + $0x1e8] ss:$16 sps:$4 sm:$0xff]  }
   0xd   :  { %v761_v36 = vld [vmem:[%s1040_s1 + $0x1c4] ss:$16 sps:$4 sm:$0xff]   ;;  %v763_v37 = vld [vmem:[%s1040_s1 + $0x1cc] ss:$16 sps:$4 sm:$0xff]   ;;  %v765_v41 = vld [vmem:[%s1040_s1 + $0x1c0] ss:$16 sps:$4 sm:$0xff]  }
   0xe   :  { %v766_v42 = vld [vmem:[%s1040_s1 + $0x1c8] ss:$16 sps:$4 sm:$0xff]   ;;  %v767_v43 = vld [vmem:[%s1040_s1 + $0x1a4] ss:$16 sps:$4 sm:$0xff]   ;;  %v769_v44 = vld [vmem:[%s1040_s1 + $0x1ac] ss:$16 sps:$4 sm:$0xff]  }
   0xf   :  { %437 = vmatpush1.bf16.msra.mxu0 %v729_v14  ;;  %478 = vmatpush1.bf16.msra.mxu1 %v730_v15  ;;  %v951_v46 = vshrl.u32 %v97_v40, 7  ;;  %v771_v47 = vld [vmem:[%s1040_s1 + $0x1a0] ss:$16 sps:$4 sm:$0xff]   ;;  %v772_v48 = vld [vmem:[%s1040_s1 + $0x1a8] ss:$16 sps:$4 sm:$0xff]  }
  0x10   :  { %438 = vmatprep.subr.bf16.mxu0 %v731_v16  ;;  %479 = vmatprep.subr.bf16.mxu1 %v733_v17  ;;  %v773_v49 = vld [vmem:[%s1040_s1 + $0x184] ss:$16 sps:$4 sm:$0xff]   ;;  %v775_v50 = vld [vmem:[%s1040_s1 + $0x18c] ss:$16 sps:$4 sm:$0xff]   ;;  %v777_v53 = vld [vmem:[%s1040_s1 + $0x180] ss:$16 sps:$4 sm:$0xff]  }
  0x11   :  { %v966_v51 = vsub.s32 %v96_v45, %v951_v46  ;;  %v637_v52 = vld.sshfl [vmem:[%s1041_s0] sm:$0x11 pattern:$0x75316420]  ;;  %v778_v54 = vld [vmem:[%s1040_s1 + $0x188] ss:$16 sps:$4 sm:$0xff]  }
  0x12   :  { %v93_v55 = vcombine.high %v637_v52, %v637_v52  ;;  %v779_v56 = vld [vmem:[%s1040_s1 + $0x164] ss:$16 sps:$4 sm:$0xff]   ;;  %v781_v57 = vld [vmem:[%s1040_s1 + $0x16c] ss:$16 sps:$4 sm:$0xff]   ;;  %v783_v59 = vld [vmem:[%s1040_s1 + $0x160] ss:$16 sps:$4 sm:$0xff]  }
  0x13   :  { %439 = vmatpush1.bf16.msra.mxu0 %v735_v18  ;;  %480 = vmatpush1.bf16.msra.mxu1 %v736_v19  ;;  %v784_v60 = vld [vmem:[%s1040_s1 + $0x168] ss:$16 sps:$4 sm:$0xff]   ;;  %v785_v61 = vld [vmem:[%s1040_s1 + $0x144] ss:$16 sps:$4 sm:$0xff]   ;;  %v787_v62 = vld [vmem:[%s1040_s1 + $0x14c] ss:$16 sps:$4 sm:$0xff]   ;;  %v100_v9 = vrot.slane %v637_v52, %v966_v51 }
  0x14   :  { %440 = vmatprep.subr.bf16.mxu0 %v737_v20  ;;  %481 = vmatprep.subr.bf16.mxu1 %v739_v21  ;;  %v107_v58 = vrot.slane %v93_v55, %v966_v51  ;;  %v789_v63 = vld [vmem:[%s1040_s1 + $0x140] ss:$16 sps:$4 sm:$0xff]   ;;  %v790_v0 = vld [vmem:[%s1040_s1 + $0x148] ss:$16 sps:$4 sm:$0xff]   ;;  %v791_v1 = vld [vmem:[%s1040_s1 + $0x124] ss:$16 sps:$4 sm:$0xff]  }
  0x15   :  { %v793_v2 = vld [vmem:[%s1040_s1 + $0x12c] ss:$16 sps:$4 sm:$0xff]   ;;  %v795_v3 = vld [vmem:[%s1040_s1 + $0x120] ss:$16 sps:$4 sm:$0xff]   ;;  %v796_v4 = vld [vmem:[%s1040_s1 + $0x128] ss:$16 sps:$4 sm:$0xff]  }
  0x16   :  { %462 = vmatprep.mubr.bf16.mxu0 %v107_v58  ;;  %503 = vmatprep.mubr.bf16.mxu1 %v107_v58  ;;  %v797_v5 = vld [vmem:[%s1040_s1 + $0x104] ss:$16 sps:$4 sm:$0xff]   ;;  %v799_v6 = vld [vmem:[%s1040_s1 + $0x10c] ss:$16 sps:$4 sm:$0xff]   ;;  %v801_v7 = vld [vmem:[%s1040_s1 + $0x100] ss:$16 sps:$4 sm:$0xff]  }
  0x17   :  { %441 = vmatpush1.bf16.msra.mxu0 %v741_v22  ;;  %482 = vmatpush1.bf16.msra.mxu1 %v742_v23  ;;  %v802_v8 = vld [vmem:[%s1040_s1 + $0x108] ss:$16 sps:$4 sm:$0xff]   ;;  %v804_v10 = vmov 1983009808   ;;  %v544_v12 = vsub.s32 0, %v951_v46  ;;  %v548_v13 = vsub.s32 1, %v951_v46 }
  0x18   :  { %442 = vmatprep.subr.bf16.mxu0 %v743_v24  ;;  %483 = vmatprep.subr.bf16.mxu1 %v745_v25  ;;  %v519_v11 = vunpack.c.l.s4 %v804_v10  ;;  %v552_v14 = vsub.s32 2, %v951_v46  ;;  %v556_v15 = vsub.s32 3, %v951_v46  ;;  %v540_v16 = vld [vmem:[%s1042_s2] sm:$0xf] }
  0x19   :  { %v545_v18 = vrot.slane %v540_v16, %v544_v12  ;;  %v549_v19 = vrot.slane %v540_v16, %v548_v13 }
  0x1a   :  { %v520_v17 = vunpack.c.0.s8 %v519_v11  ;;  %v553_v20 = vrot.slane %v540_v16, %v552_v14  ;;  %v557_v21 = vrot.slane %v540_v16, %v556_v15 }
  0x1b   :  { %443 = vmatpush1.bf16.msra.mxu0 %v747_v26  ;;  %484 = vmatpush1.bf16.msra.mxu1 %v748_v27  ;;  %v558_v23 = vcombine.low %v545_v18, %v549_v19 }
  0x1c   :  { %444 = vmatprep.subr.bf16.mxu0 %v749_v28  ;;  %485 = vmatprep.subr.bf16.mxu1 %v751_v29  ;;  %v523_v22 = vsub.s32 %v520_v17, %v951_v46  ;;  %v559_v24 = vcombine.low %v553_v20, %v557_v21 }
  0x1e   :  { %v566_v27 = vrot.slane %v558_v23, %v523_v22  ;;  %v573_v28 = vrot.slane %v559_v24, %v523_v22 }
  0x1f   :  { %445 = vmatpush1.bf16.msra.mxu0 %v753_v30  ;;  %486 = vmatpush1.bf16.msra.mxu1 %v754_v31 }
  0x20   :  { %446 = vmatprep.subr.bf16.mxu0 %v755_v32  ;;  %487 = vmatprep.subr.bf16.mxu1 %v757_v33 }
  0x23   :  { %447 = vmatpush2.bf16.msra.mxu0 %v759_v34  ;;  %488 = vmatpush2.bf16.msra.mxu1 %v760_v35 }
  0x24   :  { %448 = vmatprep.subr.bf16.mxu0 %v761_v36  ;;  %489 = vmatprep.subr.bf16.mxu1 %v763_v37  ;;  %v574_v37 = vcombine.low %v566_v27, %v573_v28 }
  0x27   :  { %449 = vmatpush2.bf16.msra.mxu0 %v765_v41  ;;  %490 = vmatpush2.bf16.msra.mxu1 %v766_v42 }
  0x28   :  { %450 = vmatprep.subr.bf16.mxu0 %v767_v43  ;;  %491 = vmatprep.subr.bf16.mxu1 %v769_v44 }
  0x2b   :  { %451 = vmatpush2.bf16.msra.mxu0 %v771_v47  ;;  %492 = vmatpush2.bf16.msra.mxu1 %v772_v48 }
  0x2c   :  { %452 = vmatprep.subr.bf16.mxu0 %v773_v49  ;;  %493 = vmatprep.subr.bf16.mxu1 %v775_v50 }
  0x2f   :  { %453 = vmatpush2.bf16.msra.mxu0 %v777_v53  ;;  %494 = vmatpush2.bf16.msra.mxu1 %v778_v54 }
  0x30   :  { %454 = vmatprep.subr.bf16.mxu0 %v779_v56  ;;  %495 = vmatprep.subr.bf16.mxu1 %v781_v57 }
  0x33   :  { %455 = vmatpush2.bf16.msra.mxu0 %v783_v59  ;;  %496 = vmatpush2.bf16.msra.mxu1 %v784_v60 }
  0x34   :  { %456 = vmatprep.subr.bf16.mxu0 %v785_v61  ;;  %497 = vmatprep.subr.bf16.mxu1 %v787_v62 }
  0x37   :  { %457 = vmatpush2.bf16.msra.mxu0 %v789_v63  ;;  %498 = vmatpush2.bf16.msra.mxu1 %v790_v0 }
  0x38   :  { %458 = vmatprep.subr.bf16.mxu0 %v791_v1  ;;  %499 = vmatprep.subr.bf16.mxu1 %v793_v2 }
  0x3b   :  { %459 = vmatpush2.bf16.msra.mxu0 %v795_v3  ;;  %500 = vmatpush2.bf16.msra.mxu1 %v796_v4 }
  0x3c   :  { %460 = vmatprep.subr.bf16.mxu0 %v797_v5  ;;  %501 = vmatprep.subr.bf16.mxu1 %v799_v6 }
  0x3f   :  { %461 = vmatpush2.bf16.msra.mxu0 %v801_v7  ;;  %502 = vmatpush2.bf16.msra.mxu1 %v802_v8 }
  0x42   :  { %463 = vmatmul.mubr.bf16.vlgmr.msra.gmra.mxu0 %v100_v9  ;;  %504 = vmatmul.mubr.bf16.vlgmr.msra.gmra.mxu1 %v100_v9 }
 0x102   :  { %v464_v25 = vpop.f32.mrf.mxu0  ;;  %v505_v26 = vpop.f32.mrf.mxu1 }
 0x104   :  { %v466_v29 = vpop.f32.mrf.mxu0  ;;  %v507_v30 = vpop.f32.mrf.mxu1 }
 0x105   :  { %v516_v31 = vcombine.low %v464_v25, %v466_v29  ;;  %v517_v32 = vcombine.low %v505_v26, %v507_v30 }
 0x106   :  { %v468_v33 = vpop.f32.mrf.mxu0  ;;  %v509_v34 = vpop.f32.mrf.mxu1 }
 0x107   :  { %v524_v35 = vrot.slane %v516_v31, %v523_v22  ;;  %v531_v36 = vrot.slane %v517_v32, %v523_v22 }
 0x108   :  { %v469_v38 = vpop.f32.mrf.mxu0  ;;  %v510_v39 = vpop.f32.mrf.mxu1 }
 0x109   :  { %v532_v40 = vcombine.low %v524_v35, %v531_v36 }
 0x10b   :  { %v576_v41 = vadd.f32 %v574_v37, %v532_v40 }
 0x10d   :  { %v578_v42 = vcombine.high %v576_v41, %v576_v41  ;;  %v585_v43 = vrot.slane %v576_v41, %v523_v22 }
 0x10f   :  { %v592_v44 = vrot.slane %v578_v42, %v523_v22  ;;  %v593_v45 = vcombine.high %v585_v43, %v585_v43 }
 0x111   :  { %v594_v46 = vcombine.high %v592_v44, %v592_v44  ;;  %v702_v47 = vpack.c.bf16 %v593_v45, %v585_v43 }
 0x113   :  { %v703_v48 = vpack.c.bf16 %v594_v46, %v592_v44  ;;  %v615_v49 = vrot.slane %v702_v47, %v966_v51 }
 0x115   :  { %v622_v50 = vrot.slane %v703_v48, %v966_v51 }
 0x117   :  { %v623_v52 = vcombine.low %v615_v49, %v622_v50 }
 0x119   :  { %704 = vst.sshfl [vmem:[%s1043_s3] sm:$0x55 pattern:$0x73625140] %v623_v52 }

// kernel: cancer_classifier_forward.40
= control target key start
LH: loop header
LB: loop body
LE: loop exit
PB: predicated region body
PF: predicated region fallthrough
CT: control target
= control target key end

     0   :  { %s1612_s12 = smov 0   ;;  %s1614_s13 = smov 0   ;;  %s1789_s0 = inlined_call_operand.vmem [shape: bf16[2,2304], index: 0, kind: input, shape index: {}]   ;;  %s1790_s1 = inlined_call_operand.vmem [shape: bf16[2304,512], index: 1, kind: input, shape index: {}]   ;;  %s1791_s2 = inlined_call_operand.vmem [shape: f32[1,512], index: 2, kind: input, shape index: {}]   ;;  %s1792_s3 = inlined_call_operand.vmem [shape: bf16[2,512], index: 3, kind: output, shape index: {}]  }
   0x1   :  { %s1616_s14 = smov 0  }
   0x2 LB: > { %s25_s15 = sadd.s32 1, %s1582_s13  ;;  %p1282_p0 = scmp.ge.s32.totalorder %s1586_s14, 1  ;;  %s1586_s14 = sphi %s1616_s14, %s13_s14   ;;  %s1582_s13 = sphi %s1614_s13, %s1794_s13   ;;  %s1578_s12 = sphi %s1612_s12, %s1793_s12  }
   0x3   : > { %p26_p1 = scmp.ge.s32.totalorder %s25_s15, 6  ;;  %p193_p2 = scmp.lt.s32.totalorder %s1586_s14, 7 }
   0x5   : > { %s1796_s15 = smov (%p26_p1, %s25_s15), 0  ;;  %p194_p3 = pnand %p1282_p0, %p193_p2 }
   0x6   : > { %s237_s16 = smul.u32 (!%p194_p3), 3, %s1578_s12  ;;  %p1285_p6 = scmp.ne.s32.totalorder (!%p194_p3), %s1578_s12, 0 }
   0x7   : > { %197 = sbr.rel (%p194_p3) target bundleno = 352 (0x160), region = 32 }
   0x8   : > { %s246_s17 = smul.u32 (!%p194_p3), 48, %s1578_s12  ;;  %p240_p4 = scmp.lt.s32.totalorder (!%p194_p3), %s237_s16, 17 }
   0xa   : > { %p248_p5 = scmp.lt.s32.totalorder (!%p194_p3), %s246_s17, 287 }
   0xc   : > { %s1798_s16 = smov (!%p240_p4, %s237_s16), 17  ;;  %s1800_s17 = smov (!%p248_p5, %s246_s17), 287 }
   0xd   : > { %s244_s20 = scalar_lea.vmem %s1789_s0, %s1798_s16  ;;  %s1391_s21 = sshll.u32 %s1800_s17, 4 }
   0xe   : > { %s1643_s24 = scalar_lea.vmem %s1790_s1, %s1391_s21  ;;  %276 = sbr.rel (%p1285_p6) target bundleno = 21 (0x15), region = 36 }
  0x13   : > { %v1588_v0 = vmov 0.0  }
  0x14   : > { %277 = vst [vmem:[#allocation2] sm:$0xff] %v1588_v0 }
  0x15 PF: > { %v1420_v1 = vld [vmem:[%s1643_s24 + $0xe4] ss:$16 sps:$4 sm:$0xff]   ;;  %v1589_v3 = vmov 0   ;;  %v1424_v4 = vld [vmem:[%s1643_s24 + $0xe0] ss:$16 sps:$4 sm:$0xff]   ;;  %v388_v24 = vlaneseq  ;;  %p1383_p7 = scmp.ne.s32.totalorder %s1578_s12, 5 }
  0x16   : > { %v1422_v2 = vld [vmem:[%s1643_s24 + $0x2e4] ss:$16 sps:$4 sm:$0xff]   ;;  %956 = vmatprep.mubr.bf16.mxu1 %v1589_v3  ;;  %883 = vmatprep.subr.bf16.mxu0 %v1420_v1  ;;  %v1425_v5 = vld [vmem:[%s1643_s24 + $0x2e0] ss:$16 sps:$4 sm:$0xff]   ;;  %v1590_v22 = vmov 1966171168  }
  0x17   : > { %924 = vmatprep.subr.bf16.mxu1 %v1422_v2  ;;  %v1426_v6 = vld [vmem:[%s1643_s24 + $0xc4] ss:$16 sps:$4 sm:$0xff]   ;;  %884 = vmatpush1.bf16.msra.mxu0 %v1424_v4  ;;  %v1430_v8 = vld [vmem:[%s1643_s24 + $0xc0] ss:$16 sps:$4 sm:$0xff]   ;;  %v386_v23 = vunpack.c.l.s4 %v1590_v22  ;;  %v1670_v29 = vshrl.u32 %v388_v24, 7 }
  0x18   : > { %925 = vmatpush1.bf16.msra.mxu1 %v1425_v5  ;;  %v1428_v7 = vld [vmem:[%s1643_s24 + $0x2c4] ss:$16 sps:$4 sm:$0xff]   ;;  %885 = vmatprep.subr.bf16.mxu0 %v1426_v6  ;;  %v1431_v9 = vld [vmem:[%s1643_s24 + $0x2c0] ss:$16 sps:$4 sm:$0xff]   ;;  %v1472_v45 = vld [vmem:[%s1643_s24 + $0xec] ss:$16 sps:$4 sm:$0xff]  }
  0x19   : > { %926 = vmatprep.subr.bf16.mxu1 %v1428_v7  ;;  %v1432_v10 = vld [vmem:[%s1643_s24 + $0xa4] ss:$16 sps:$4 sm:$0xff]   ;;  %v1436_v12 = vld [vmem:[%s1643_s24 + $0xa0] ss:$16 sps:$4 sm:$0xff]   ;;  %v387_v28 = vunpack.c.0.s8 %v386_v23  ;;  %v1470_v47 = vld [vmem:[%s1643_s24 + $0xe8] ss:$16 sps:$4 sm:$0xff]  }
  0x1a   : > { %v1434_v11 = vld [vmem:[%s1643_s24 + $0x2a4] ss:$16 sps:$4 sm:$0xff]   ;;  %v1437_v13 = vld [vmem:[%s1643_s24 + $0x2a0] ss:$16 sps:$4 sm:$0xff]   ;;  %v1478_v50 = vld [vmem:[%s1643_s24 + $0xcc] ss:$16 sps:$4 sm:$0xff]  }
  0x1b   : > { %886 = vmatpush1.bf16.msra.mxu0 %v1430_v8  ;;  %v1438_v14 = vld [vmem:[%s1643_s24 + $0x84] ss:$16 sps:$4 sm:$0xff]   ;;  %v1442_v16 = vld [vmem:[%s1643_s24 + $0x80] ss:$16 sps:$4 sm:$0xff]   ;;  %v1682_v35 = vsub.s32 %v387_v28, %v1670_v29  ;;  %v1476_v51 = vld [vmem:[%s1643_s24 + $0xc8] ss:$16 sps:$4 sm:$0xff]  }
  0x1c   : > { %927 = vmatpush1.bf16.msra.mxu1 %v1431_v9  ;;  %887 = vmatprep.subr.bf16.mxu0 %v1432_v10  ;;  %v1440_v15 = vld [vmem:[%s1643_s24 + $0x284] ss:$16 sps:$4 sm:$0xff]   ;;  %v1443_v17 = vld [vmem:[%s1643_s24 + $0x280] ss:$16 sps:$4 sm:$0xff]   ;;  %v1484_v54 = vld [vmem:[%s1643_s24 + $0xac] ss:$16 sps:$4 sm:$0xff]  }
  0x1d   : > { %928 = vmatprep.subr.bf16.mxu1 %v1434_v11  ;;  %v1444_v18 = vld [vmem:[%s1643_s24 + $0x64] ss:$16 sps:$4 sm:$0xff]   ;;  %v1448_v20 = vld [vmem:[%s1643_s24 + $0x60] ss:$16 sps:$4 sm:$0xff]   ;;  %v1482_v55 = vld [vmem:[%s1643_s24 + $0xa8] ss:$16 sps:$4 sm:$0xff]  }
  0x1e   : > { %v1446_v19 = vld [vmem:[%s1643_s24 + $0x264] ss:$16 sps:$4 sm:$0xff]   ;;  %v1449_v21 = vld [vmem:[%s1643_s24 + $0x260] ss:$16 sps:$4 sm:$0xff]   ;;  %v1490_v58 = vld [vmem:[%s1643_s24 + $0x8c] ss:$16 sps:$4 sm:$0xff]  }
  0x1f   : > { %888 = vmatpush1.bf16.msra.mxu0 %v1436_v12  ;;  %v1450_v25 = vld [vmem:[%s1643_s24 + $0x44] ss:$16 sps:$4 sm:$0xff]   ;;  %v1454_v27 = vld [vmem:[%s1643_s24 + $0x40] ss:$16 sps:$4 sm:$0xff]   ;;  %v1488_v59 = vld [vmem:[%s1643_s24 + $0x88] ss:$16 sps:$4 sm:$0xff]  }
  0x20   : > { %929 = vmatpush1.bf16.msra.mxu1 %v1437_v13  ;;  %889 = vmatprep.subr.bf16.mxu0 %v1438_v14  ;;  %v1452_v26 = vld [vmem:[%s1643_s24 + $0x244] ss:$16 sps:$4 sm:$0xff]   ;;  %v1455_v30 = vld [vmem:[%s1643_s24 + $0x240] ss:$16 sps:$4 sm:$0xff]   ;;  %v1496_v62 = vld [vmem:[%s1643_s24 + $0x6c] ss:$16 sps:$4 sm:$0xff]  }
  0x21   : > { %930 = vmatprep.subr.bf16.mxu1 %v1440_v15  ;;  %v1456_v31 = vld [vmem:[%s1643_s24 + $0x24] ss:$16 sps:$4 sm:$0xff]   ;;  %v1286_v33 = vld.sshfl [vmem:[%s244_s20] sm:$0x13 pattern:$0x75316420] }
  0x22   : > { %v1458_v32 = vld [vmem:[%s1643_s24 + $0x224] ss:$16 sps:$4 sm:$0xff]   ;;  %v1460_v34 = vld [vmem:[%s1643_s24 + $0x20] ss:$16 sps:$4 sm:$0xff]   ;;  %v384_v36 = vcombine.high %v1286_v33, %v1286_v33  ;;  %v1690_v42 = vrot.slane %v1286_v33, %v1682_v35  ;;  %v1494_v63 = vld [vmem:[%s1643_s24 + $0x68] ss:$16 sps:$4 sm:$0xff]  }
  0x23   : > { %890 = vmatpush1.bf16.msra.mxu0 %v1442_v16  ;;  %v1461_v37 = vld [vmem:[%s1643_s24 + $0x220] ss:$16 sps:$4 sm:$0xff]   ;;  %v1462_v38 = vld [vmem:[%s1643_s24 + $0x4] ss:$16 sps:$4 sm:$0xff]   ;;  %v1502_v2 = vld [vmem:[%s1643_s24 + $0x4c] ss:$16 sps:$4 sm:$0xff]  }
  0x24   : > { %931 = vmatpush1.bf16.msra.mxu1 %v1443_v17  ;;  %891 = vmatprep.subr.bf16.mxu0 %v1444_v18  ;;  %v1464_v39 = vld [vmem:[%s1643_s24 + $0x204] ss:$16 sps:$4 sm:$0xff]   ;;  %v398_v40 = vrot.slane %v384_v36, %v1682_v35  ;;  %v1466_v41 = vld [vmem:[%s1643_s24] ss:$16 sps:$4 sm:$0xff]   ;;  %v1697_v46 = vcombine.high %v1690_v42, %v1690_v42  ;;  %v1500_v4 = vld [vmem:[%s1643_s24 + $0x48] ss:$16 sps:$4 sm:$0xff]  }
  0x25   : > { %932 = vmatprep.subr.bf16.mxu1 %v1446_v19  ;;  %v1467_v43 = vld [vmem:[%s1643_s24 + $0x200] ss:$16 sps:$4 sm:$0xff]   ;;  %v1468_v44 = vld [vmem:[%s1643_s24 + $0x1e4] ss:$16 sps:$4 sm:$0xff]   ;;  %v1508_v7 = vld [vmem:[%s1643_s24 + $0x2c] ss:$16 sps:$4 sm:$0xff]  }
  0x26   : > { %915 = vmatprep.mubr.bf16.mxu0 %v398_v40  ;;  %v1473_v48 = vld [vmem:[%s1643_s24 + $0x1e0] ss:$16 sps:$4 sm:$0xff]   ;;  %v1474_v49 = vld [vmem:[%s1643_s24 + $0x1c4] ss:$16 sps:$4 sm:$0xff]   ;;  %v1506_v8 = vld [vmem:[%s1643_s24 + $0x28] ss:$16 sps:$4 sm:$0xff]  }
  0x27   : > { %892 = vmatpush1.bf16.msra.mxu0 %v1448_v20  ;;  %v1479_v52 = vld [vmem:[%s1643_s24 + $0x1c0] ss:$16 sps:$4 sm:$0xff]   ;;  %v1480_v53 = vld [vmem:[%s1643_s24 + $0x1a4] ss:$16 sps:$4 sm:$0xff]   ;;  %v1514_v11 = vld [vmem:[%s1643_s24 + $0xc] ss:$16 sps:$4 sm:$0xff]  }
  0x28   : > { %933 = vmatpush1.bf16.msra.mxu1 %v1449_v21  ;;  %893 = vmatprep.subr.bf16.mxu0 %v1450_v25  ;;  %v1485_v56 = vld [vmem:[%s1643_s24 + $0x1a0] ss:$16 sps:$4 sm:$0xff]   ;;  %v1486_v57 = vld [vmem:[%s1643_s24 + $0x184] ss:$16 sps:$4 sm:$0xff]   ;;  %v1512_v12 = vld [vmem:[%s1643_s24 + $0x8] ss:$16 sps:$4 sm:$0xff]  }
  0x29   : > { %934 = vmatprep.subr.bf16.mxu1 %v1452_v26  ;;  %v1491_v60 = vld [vmem:[%s1643_s24 + $0x180] ss:$16 sps:$4 sm:$0xff]   ;;  %v1492_v61 = vld [vmem:[%s1643_s24 + $0x164] ss:$16 sps:$4 sm:$0xff]   ;;  %v1518_v14 = vld [vmem:[%s1643_s24 + $0x1ec] ss:$16 sps:$4 sm:$0xff]  }
  0x2a   : > { %v1497_v0 = vld [vmem:[%s1643_s24 + $0x160] ss:$16 sps:$4 sm:$0xff]   ;;  %v1498_v1 = vld [vmem:[%s1643_s24 + $0x144] ss:$16 sps:$4 sm:$0xff]   ;;  %v1521_v15 = vld [vmem:[%s1643_s24 + $0x2ec] ss:$16 sps:$4 sm:$0xff]  }
  0x2b   : > { %894 = vmatpush1.bf16.msra.mxu0 %v1454_v27  ;;  %v1503_v5 = vld [vmem:[%s1643_s24 + $0x140] ss:$16 sps:$4 sm:$0xff]   ;;  %v1504_v6 = vld [vmem:[%s1643_s24 + $0x124] ss:$16 sps:$4 sm:$0xff]   ;;  %v1516_v16 = vld [vmem:[%s1643_s24 + $0x1e8] ss:$16 sps:$4 sm:$0xff]  }
  0x2c   : > { %935 = vmatpush1.bf16.msra.mxu1 %v1455_v30  ;;  %895 = vmatprep.subr.bf16.mxu0 %v1456_v31  ;;  %v1509_v9 = vld [vmem:[%s1643_s24 + $0x120] ss:$16 sps:$4 sm:$0xff]   ;;  %v1510_v10 = vld [vmem:[%s1643_s24 + $0x104] ss:$16 sps:$4 sm:$0xff]   ;;  %v1519_v17 = vld [vmem:[%s1643_s24 + $0x2e8] ss:$16 sps:$4 sm:$0xff]  }
  0x2d   : > { %936 = vmatprep.subr.bf16.mxu1 %v1458_v32  ;;  %v1515_v13 = vld [vmem:[%s1643_s24 + $0x100] ss:$16 sps:$4 sm:$0xff]   ;;  %v1524_v18 = vld [vmem:[%s1643_s24 + $0x1cc] ss:$16 sps:$4 sm:$0xff]   ;;  %v1522_v20 = vld [vmem:[%s1643_s24 + $0x1c8] ss:$16 sps:$4 sm:$0xff]  }
  0x2e   : > { %v1527_v19 = vld [vmem:[%s1643_s24 + $0x2cc] ss:$16 sps:$4 sm:$0xff]   ;;  %v1525_v21 = vld [vmem:[%s1643_s24 + $0x2c8] ss:$16 sps:$4 sm:$0xff]  }
  0x2f   : > { %896 = vmatpush1.bf16.msra.mxu0 %v1460_v34  ;;  %v1530_v22 = vld [vmem:[%s1643_s24 + $0x1ac] ss:$16 sps:$4 sm:$0xff]   ;;  %v1528_v24 = vld [vmem:[%s1643_s24 + $0x1a8] ss:$16 sps:$4 sm:$0xff]  }
  0x30   : > { %937 = vmatpush1.bf16.msra.mxu1 %v1461_v37  ;;  %897 = vmatprep.subr.bf16.mxu0 %v1462_v38  ;;  %v1533_v23 = vld [vmem:[%s1643_s24 + $0x2ac] ss:$16 sps:$4 sm:$0xff]   ;;  %v1531_v25 = vld [vmem:[%s1643_s24 + $0x2a8] ss:$16 sps:$4 sm:$0xff]  }
  0x31   : > { %938 = vmatprep.subr.bf16.mxu1 %v1464_v39  ;;  %v1536_v26 = vld [vmem:[%s1643_s24 + $0x18c] ss:$16 sps:$4 sm:$0xff]   ;;  %v1534_v28 = vld [vmem:[%s1643_s24 + $0x188] ss:$16 sps:$4 sm:$0xff]  }
  0x32   : > { %v1539_v27 = vld [vmem:[%s1643_s24 + $0x28c] ss:$16 sps:$4 sm:$0xff]   ;;  %v1537_v30 = vld [vmem:[%s1643_s24 + $0x288] ss:$16 sps:$4 sm:$0xff]  }
  0x33   : > { %898 = vmatpush1.bf16.msra.mxu0 %v1466_v41  ;;  %v1545_v31 = vld [vmem:[%s1643_s24 + $0x26c] ss:$16 sps:$4 sm:$0xff]   ;;  %v1540_v32 = vld [vmem:[%s1643_s24 + $0x168] ss:$16 sps:$4 sm:$0xff]  }
  0x34   : > { %939 = vmatpush1.bf16.msra.mxu1 %v1467_v43  ;;  %899 = vmatprep.subr.bf16.mxu0 %v1468_v44  ;;  %v1543_v33 = vld [vmem:[%s1643_s24 + $0x268] ss:$16 sps:$4 sm:$0xff]   ;;  %v1548_v34 = vld [vmem:[%s1643_s24 + $0x14c] ss:$16 sps:$4 sm:$0xff]  }
  0x35   : > { %965 = vmatprep.subr.bf16.mxu1 %v1472_v45  ;;  %v1551_v36 = vld [vmem:[%s1643_s24 + $0x24c] ss:$16 sps:$4 sm:$0xff]   ;;  %v1546_v37 = vld [vmem:[%s1643_s24 + $0x148] ss:$16 sps:$4 sm:$0xff]  }
  0x36   : > { %v1549_v38 = vld [vmem:[%s1643_s24 + $0x248] ss:$16 sps:$4 sm:$0xff]   ;;  %v1554_v39 = vld [vmem:[%s1643_s24 + $0x12c] ss:$16 sps:$4 sm:$0xff]  }
  0x37   : > { %957 = vmatmul.mubr.bf16.vlgmr.msra.gmra.mxu1 %v1697_v46  ;;  %900 = vmatpush2.bf16.msra.mxu0 %v1473_v48  ;;  %v1552_v41 = vld [vmem:[%s1643_s24 + $0x128] ss:$16 sps:$4 sm:$0xff]   ;;  %v1560_v44 = vld [vmem:[%s1643_s24 + $0x10c] ss:$16 sps:$4 sm:$0xff]  }
  0x38   : > { %966 = vmatpush1.bf16.msra.mxu1 %v1470_v47  ;;  %901 = vmatprep.subr.bf16.mxu0 %v1474_v49  ;;  %v1555_v43 = vld [vmem:[%s1643_s24 + $0x228] ss:$16 sps:$4 sm:$0xff]   ;;  %v1563_v45 = vld [vmem:[%s1643_s24 + $0x20c] ss:$16 sps:$4 sm:$0xff]  }
  0x39   : > { %967 = vmatprep.subr.bf16.mxu1 %v1478_v50  ;;  %997 = vmatprep.mubr.bf16.mxu1 %v398_v40  ;;  %v1557_v40 = vld [vmem:[%s1643_s24 + $0x22c] ss:$16 sps:$4 sm:$0xff]   ;;  %v1558_v47 = vld [vmem:[%s1643_s24 + $0x108] ss:$16 sps:$4 sm:$0xff]  }
  0x3a   : > { %v1561_v48 = vld [vmem:[%s1643_s24 + $0x208] ss:$16 sps:$4 sm:$0xff]  }
  0x3b   : > { %902 = vmatpush2.bf16.msra.mxu0 %v1479_v52 }
  0x3c   : > { %968 = vmatpush1.bf16.msra.mxu1 %v1476_v51  ;;  %903 = vmatprep.subr.bf16.mxu0 %v1480_v53 }
  0x3d   : > { %969 = vmatprep.subr.bf16.mxu1 %v1484_v54 }
  0x3f   : > { %904 = vmatpush2.bf16.msra.mxu0 %v1485_v56 }
  0x40   : > { %970 = vmatpush1.bf16.msra.mxu1 %v1482_v55  ;;  %905 = vmatprep.subr.bf16.mxu0 %v1486_v57 }
  0x41   : > { %971 = vmatprep.subr.bf16.mxu1 %v1490_v58 }
  0x43   : > { %906 = vmatpush2.bf16.msra.mxu0 %v1491_v60  ;;  %v1591_v60 = vmov 1983009808  }
  0x44   : > { %972 = vmatpush1.bf16.msra.mxu1 %v1488_v59  ;;  %907 = vmatprep.subr.bf16.mxu0 %v1492_v61  ;;  %v1054_v61 = vunpack.c.l.s4 %v1591_v60 }
  0x45   : > { %973 = vmatprep.subr.bf16.mxu1 %v1496_v62 }
  0x46   : > { %v1055_v62 = vunpack.c.0.s8 %v1054_v61 }
  0x47   : > { %908 = vmatpush2.bf16.msra.mxu0 %v1497_v0 }
  0x48   : > { %974 = vmatpush1.bf16.msra.mxu1 %v1494_v63  ;;  %909 = vmatprep.subr.bf16.mxu0 %v1498_v1 }
  0x49   : > { %975 = vmatprep.subr.bf16.mxu1 %v1502_v2 }
  0x4b   : > { %910 = vmatpush2.bf16.msra.mxu0 %v1503_v5 }
  0x4c   : > { %976 = vmatpush1.bf16.msra.mxu1 %v1500_v4  ;;  %911 = vmatprep.subr.bf16.mxu0 %v1504_v6 }
  0x4d   : > { %977 = vmatprep.subr.bf16.mxu1 %v1508_v7 }
  0x4f   : > { %912 = vmatpush2.bf16.msra.mxu0 %v1509_v9 }
  0x50   : > { %978 = vmatpush1.bf16.msra.mxu1 %v1506_v8  ;;  %913 = vmatprep.subr.bf16.mxu0 %v1510_v10 }
  0x51   : > { %979 = vmatprep.subr.bf16.mxu1 %v1514_v11 }
  0x53   : > { %914 = vmatpush2.bf16.msra.mxu0 %v1515_v13 }
  0x54   : > { %980 = vmatpush1.bf16.msra.mxu1 %v1512_v12  ;;  %1006 = vmatprep.subr.bf16.mxu0 %v1521_v15  ;;  %v278_v12 = vld [vmem:[#allocation2] sm:$0xff] }
  0x55   : > { %981 = vmatprep.subr.bf16.mxu1 %v1518_v14 }
  0x56   : > { %916 = vmatmul.mubr.bf16.vlgmr.msra.gmra.mxu0 %v1690_v42 }
  0x57   : > { %1007 = vmatpush1.bf16.msra.mxu0 %v1519_v17  ;;  %1038 = vmatprep.mubr.bf16.mxu0 %v1589_v3  ;;  %v1542_v3 = vld [vmem:[%s1643_s24 + $0x16c] ss:$16 sps:$4 sm:$0xff]  }
  0x58   : > { %982 = vmatpush2.bf16.msra.mxu1 %v1516_v16  ;;  %1008 = vmatprep.subr.bf16.mxu0 %v1527_v19 }
  0x59   : > { %983 = vmatprep.subr.bf16.mxu1 %v1524_v18 }
  0x5b   : > { %1009 = vmatpush1.bf16.msra.mxu0 %v1525_v21 }
  0x5c   : > { %984 = vmatpush2.bf16.msra.mxu1 %v1522_v20  ;;  %1010 = vmatprep.subr.bf16.mxu0 %v1533_v23 }
  0x5d   : > { %985 = vmatprep.subr.bf16.mxu1 %v1530_v22 }
  0x5f   : > { %1011 = vmatpush1.bf16.msra.mxu0 %v1531_v25 }
  0x60   : > { %986 = vmatpush2.bf16.msra.mxu1 %v1528_v24  ;;  %1012 = vmatprep.subr.bf16.mxu0 %v1539_v27 }
  0x61   : > { %987 = vmatprep.subr.bf16.mxu1 %v1536_v26 }
  0x63   : > { %1013 = vmatpush1.bf16.msra.mxu0 %v1537_v30 }
  0x64   : > { %988 = vmatpush2.bf16.msra.mxu1 %v1534_v28  ;;  %1014 = vmatprep.subr.bf16.mxu0 %v1545_v31 }
  0x65   : > { %989 = vmatprep.subr.bf16.mxu1 %v1542_v3 }
  0x67   : > { %1015 = vmatpush1.bf16.msra.mxu0 %v1543_v33 }
  0x68   : > { %990 = vmatpush2.bf16.msra.mxu1 %v1540_v32  ;;  %1016 = vmatprep.subr.bf16.mxu0 %v1551_v36 }
  0x69   : > { %991 = vmatprep.subr.bf16.mxu1 %v1548_v34 }
  0x6b   : > { %1017 = vmatpush1.bf16.msra.mxu0 %v1549_v38 }
  0x6c   : > { %992 = vmatpush2.bf16.msra.mxu1 %v1546_v37  ;;  %1018 = vmatprep.subr.bf16.mxu0 %v1557_v40 }
  0x6d   : > { %993 = vmatprep.subr.bf16.mxu1 %v1554_v39 }
  0x6f   : > { %1019 = vmatpush1.bf16.msra.mxu0 %v1555_v43 }
  0x70   : > { %994 = vmatpush2.bf16.msra.mxu1 %v1552_v41  ;;  %1020 = vmatprep.subr.bf16.mxu0 %v1563_v45 }
  0x71   : > { %995 = vmatprep.subr.bf16.mxu1 %v1560_v44 }
  0x73   : > { %1021 = vmatpush1.bf16.msra.mxu0 %v1561_v48 }
  0x74   : > { %996 = vmatpush2.bf16.msra.mxu1 %v1558_v47 }
  0x76   : > { %1039 = vmatmul.mubr.bf16.vlgmr.msra.gmra.mxu0 %v1697_v46  ;;  %v1058_v46 = vsub.s32 %v1055_v62, %v1670_v29 }
  0x77   : > { %998 = vmatmul.mubr.bf16.vlgmr.msra.gmra.mxu1 %v1690_v42 }
  0xf7   : > { %v958_v49 = vpop.f32.mrf.mxu1 }
  0xf9   : > { %v960_v50 = vpop.f32.mrf.mxu1 }
  0xfb   : > { %v962_v51 = vpop.f32.mrf.mxu1 }
  0xfd   : > { %v963_v52 = vpop.f32.mrf.mxu1 }
 0x116   : > { %v917_v53 = vpop.f32.mrf.mxu0 }
 0x117   : > { %v959_v55 = vadd.f32 %v958_v49, %v917_v53 }
 0x118   : > { %v919_v54 = vpop.f32.mrf.mxu0 }
 0x119   : > { %v961_v56 = vadd.f32 %v960_v50, %v919_v54 }
 0x11a   : > { %v921_v57 = vpop.f32.mrf.mxu0 }
 0x11b   : > { %v1051_v58 = vcombine.low %v959_v55, %v961_v56 }
 0x11c   : > { %v922_v59 = vpop.f32.mrf.mxu0 }
 0x11d   : > { %v1059_v10 = vrot.slane %v1051_v58, %v1058_v46 }
 0x136   : > { %v1040_v0 = vpop.f32.mrf.mxu0 }
 0x137   : > { %v999_v63 = vpop.f32.mrf.mxu1 }
 0x138   : > { %v1042_v42 = vpop.f32.mrf.mxu0  ;;  %v1041_v2 = vadd.f32 %v1040_v0, %v999_v63 }
 0x139   : > { %v1001_v1 = vpop.f32.mrf.mxu1 }
 0x13a   : > { %v1043_v4 = vadd.f32 %v1042_v42, %v1001_v1  ;;  %v1044_v6 = vpop.f32.mrf.mxu0 }
 0x13b   : > { %v1003_v5 = vpop.f32.mrf.mxu1 }
 0x13c   : > { %v1052_v7 = vcombine.low %v1041_v2, %v1043_v4  ;;  %v1045_v9 = vpop.f32.mrf.mxu0 }
 0x13d   : > { %v1004_v8 = vpop.f32.mrf.mxu1 }
 0x13e   : > { %v1066_v11 = vrot.slane %v1052_v7, %v1058_v46 }
 0x140   : > { %v1067_v13 = vcombine.low %v1059_v10, %v1066_v11  ;;  %1074 = sbr.rel (%p1383_p7) target bundleno = 352 (0x160), region = 40 }
 0x142   : > { %v1069_v14 = vadd.f32 %v1067_v13, %v278_v12 }
 0x144   : > { %1070 = vst [vmem:[#allocation2] sm:$0xff] %v1069_v14 }
 0x145   : > { %v1076_v15 = vld [vmem:[%s1791_s2] sm:$0xf]  ;;  %v1080_v16 = vsub.s32 0, %v1670_v29  ;;  %v1084_v17 = vsub.s32 1, %v1670_v29  ;;  %v1088_v18 = vsub.s32 2, %v1670_v29  ;;  %v1092_v19 = vsub.s32 3, %v1670_v29 }
 0x147   : > { %v1081_v20 = vrot.slane %v1076_v15, %v1080_v16  ;;  %v1085_v21 = vrot.slane %v1076_v15, %v1084_v17  ;;  %v1089_v22 = vrot.slane %v1076_v15, %v1088_v18  ;;  %v1093_v23 = vrot.slane %v1076_v15, %v1092_v19 }
 0x149   : > { %v1094_v24 = vcombine.low %v1081_v20, %v1085_v21  ;;  %v1095_v25 = vcombine.low %v1089_v22, %v1093_v23 }
 0x14b   : > { %v1102_v26 = vrot.slane %v1094_v24, %v1058_v46  ;;  %v1109_v27 = vrot.slane %v1095_v25, %v1058_v46  ;;  %v1075_v28 = vld [vmem:[#allocation2] sm:$0xff] }
 0x14d   : > { %v1110_v30 = vcombine.low %v1102_v26, %v1109_v27 }
 0x14f   : > { %v1112_v3 = vadd.f32 %v1110_v30, %v1075_v28 }
 0x151   : > { %v1113_v31 = vmax.f32 %v1112_v3, 0.0 }
 0x153   : > { %v1115_v32 = vcombine.high %v1113_v31, %v1113_v31  ;;  %v1122_v33 = vrot.slane %v1113_v31, %v1058_v46 }
 0x155   : > { %v1129_v34 = vrot.slane %v1115_v32, %v1058_v46  ;;  %v1130_v36 = vcombine.high %v1122_v33, %v1122_v33 }
 0x157   : > { %v1131_v37 = vcombine.high %v1129_v34, %v1129_v34  ;;  %v1384_v38 = vpack.c.bf16 %v1130_v36, %v1122_v33 }
 0x159   : > { %v1385_v39 = vpack.c.bf16 %v1131_v37, %v1129_v34  ;;  %v1152_v29 = vrot.slane %v1384_v38, %v1682_v35 }
 0x15b   : > { %v1159_v40 = vrot.slane %v1385_v39, %v1682_v35 }
 0x15d   : > { %v1160_v41 = vcombine.low %v1152_v29, %v1159_v40 }
 0x15f   : > { %1386 = vst.sshfl [vmem:[%s1792_s3] sm:$0x55 pattern:$0x73625140] %v1160_v41 }
 0x160 PF: > { %s13_s14 = sadd.s32 1, %s1586_s14   ;;  %s1793_s12 = smov %s1582_s13 }
 0x161   : > { %p10_p8 = scmp.ge.s32.totalorder %s13_s14, 8   ;;  %s1794_s13 = smov %s1796_s15 }
 0x163   :  { %12 = sbr.rel (!%p10_p8) target bundleno = 2 (0x2), region = 76 }

// kernel: cancer_classifier_forward.43
= control target key start
LH: loop header
LB: loop body
LE: loop exit
PB: predicated region body
PF: predicated region fallthrough
CT: control target
= control target key end

     0   :  { %s1885_s12 = smov 0   ;;  %s1887_s13 = smov 0   ;;  %s2092_s0 = inlined_call_operand.vmem [shape: bf16[2,4608], index: 0, kind: input, shape index: {}]   ;;  %s2093_s1 = inlined_call_operand.vmem [shape: bf16[4608,512], index: 1, kind: input, shape index: {}]   ;;  %s2094_s2 = inlined_call_operand.vmem [shape: f32[1,512], index: 2, kind: input, shape index: {}]   ;;  %s2095_s3 = inlined_call_operand.vmem [shape: bf16[2,512], index: 3, kind: output, shape index: {}]  }
   0x1   :  { %s1889_s14 = smov 0  }
   0x2 LB: > { %s25_s15 = sadd.s32 1, %s1856_s13  ;;  %p1475_p0 = scmp.ge.s32.totalorder %s1860_s14, 1  ;;  %s1860_s14 = sphi %s1889_s14, %s13_s14   ;;  %s1856_s13 = sphi %s1887_s13, %s2097_s13   ;;  %s1852_s12 = sphi %s1885_s12, %s2096_s12  }
   0x3   : > { %p26_p1 = scmp.ge.s32.totalorder %s25_s15, 9  ;;  %p193_p2 = scmp.lt.s32.totalorder %s1860_s14, 10 }
   0x5   : > { %s2099_s15 = smov (%p26_p1, %s25_s15), 0  ;;  %p194_p3 = pnand %p1475_p0, %p193_p2 }
   0x6   : > { %s1476_s16 = sshll.u32 (!%p194_p3), %s1852_s12, 2  ;;  %s1477_s17 = sshll.u32 (!%p194_p3), %s1852_s12, 6 }
   0x7   : > { %197 = sbr.rel (%p194_p3) target bundleno = 384 (0x180), region = 32  ;;  %p240_p4 = scmp.lt.s32.totalorder (!%p194_p3), %s1476_s16, 35 }
   0x8   : > { %p248_p5 = scmp.lt.s32.totalorder (!%p194_p3), %s1477_s17, 575  ;;  %p1480_p6 = scmp.ne.s32.totalorder (!%p194_p3), %s1852_s12, 0 }
   0xc   : > { %s2101_s16 = smov (!%p240_p4, %s1476_s16), 35  ;;  %s2103_s17 = smov (!%p248_p5, %s1477_s17), 575 }
   0xd   : > { %s244_s20 = scalar_lea.vmem %s2092_s0, %s2101_s16  ;;  %s1618_s21 = sshll.u32 %s2103_s17, 4 }
   0xe   : > { %s1916_s24 = scalar_lea.vmem %s2093_s1, %s1618_s21  ;;  %275 = sbr.rel (%p1480_p6) target bundleno = 21 (0x15), region = 36 }
  0x13   : > { %v1862_v0 = vmov 0.0  }
  0x14   : > { %276 = vst [vmem:[#allocation2] sm:$0xff] %v1862_v0 }
  0x15 PF: > { %v1646_v1 = vld [vmem:[%s1916_s24 + $0xe4] ss:$16 sps:$4 sm:$0xff]   ;;  %v1650_v3 = vld [vmem:[%s1916_s24 + $0xe0] ss:$16 sps:$4 sm:$0xff]   ;;  %v1863_v39 = vmov 1966171168   ;;  %v419_v41 = vlaneseq }
  0x16   : > { %v1648_v2 = vld [vmem:[%s1916_s24 + $0x2e4] ss:$16 sps:$4 sm:$0xff]   ;;  %1076 = vmatprep.subr.bf16.mxu0 %v1646_v1  ;;  %v1651_v4 = vld [vmem:[%s1916_s24 + $0x2e0] ss:$16 sps:$4 sm:$0xff]   ;;  %v417_v40 = vunpack.c.l.s4 %v1863_v39  ;;  %v1778_v39 = vld [vmem:[%s1916_s24 + $0x28] ss:$16 sps:$4 sm:$0xff]  }
  0x17   : > { %1117 = vmatprep.subr.bf16.mxu1 %v1648_v2  ;;  %v1652_v5 = vld [vmem:[%s1916_s24 + $0xc4] ss:$16 sps:$4 sm:$0xff]   ;;  %1077 = vmatpush1.bf16.msra.mxu0 %v1650_v3  ;;  %v1656_v7 = vld [vmem:[%s1916_s24 + $0xc0] ss:$16 sps:$4 sm:$0xff]   ;;  %v1961_v47 = vshrl.u32 %v419_v41, 7  ;;  %p1610_p7 = scmp.ne.s32.totalorder %s1852_s12, 8 }
  0x18   : > { %1118 = vmatpush1.bf16.msra.mxu1 %v1651_v4  ;;  %v1654_v6 = vld [vmem:[%s1916_s24 + $0x2c4] ss:$16 sps:$4 sm:$0xff]   ;;  %1078 = vmatprep.subr.bf16.mxu0 %v1652_v5  ;;  %v1657_v8 = vld [vmem:[%s1916_s24 + $0x2c0] ss:$16 sps:$4 sm:$0xff]   ;;  %v418_v46 = vunpack.c.0.s8 %v417_v40  ;;  %v1781_v40 = vld [vmem:[%s1916_s24 + $0x228] ss:$16 sps:$4 sm:$0xff]  }
  0x19   : > { %1119 = vmatprep.subr.bf16.mxu1 %v1654_v6  ;;  %v1658_v9 = vld [vmem:[%s1916_s24 + $0xa4] ss:$16 sps:$4 sm:$0xff]   ;;  %v1662_v11 = vld [vmem:[%s1916_s24 + $0xa0] ss:$16 sps:$4 sm:$0xff]   ;;  %v1786_v41 = vld [vmem:[%s1916_s24 + $0xc] ss:$16 sps:$4 sm:$0xff]  }
  0x1a   : > { %v1660_v10 = vld [vmem:[%s1916_s24 + $0x2a4] ss:$16 sps:$4 sm:$0xff]   ;;  %v1663_v12 = vld [vmem:[%s1916_s24 + $0x2a0] ss:$16 sps:$4 sm:$0xff]   ;;  %v1968_v52 = vsub.s32 %v418_v46, %v1961_v47  ;;  %v1795_v46 = vld [vmem:[%s1916_s24 + $0x3ec] ss:$16 sps:$4 sm:$0xff]  }
  0x1b   : > { %1079 = vmatpush1.bf16.msra.mxu0 %v1656_v7  ;;  %v1664_v13 = vld [vmem:[%s1916_s24 + $0x84] ss:$16 sps:$4 sm:$0xff]   ;;  %v1668_v15 = vld [vmem:[%s1916_s24 + $0x80] ss:$16 sps:$4 sm:$0xff]  }
  0x1c   : > { %1120 = vmatpush1.bf16.msra.mxu1 %v1657_v8  ;;  %1080 = vmatprep.subr.bf16.mxu0 %v1658_v9  ;;  %v1666_v14 = vld [vmem:[%s1916_s24 + $0x284] ss:$16 sps:$4 sm:$0xff]   ;;  %v1669_v16 = vld [vmem:[%s1916_s24 + $0x280] ss:$16 sps:$4 sm:$0xff]  }
  0x1d   : > { %1121 = vmatprep.subr.bf16.mxu1 %v1660_v10  ;;  %v1670_v17 = vld [vmem:[%s1916_s24 + $0x64] ss:$16 sps:$4 sm:$0xff]   ;;  %v1674_v19 = vld [vmem:[%s1916_s24 + $0x60] ss:$16 sps:$4 sm:$0xff]  }
  0x1e   : > { %v1672_v18 = vld [vmem:[%s1916_s24 + $0x264] ss:$16 sps:$4 sm:$0xff]   ;;  %v1675_v20 = vld [vmem:[%s1916_s24 + $0x260] ss:$16 sps:$4 sm:$0xff]  }
  0x1f   : > { %1081 = vmatpush1.bf16.msra.mxu0 %v1662_v11  ;;  %v1676_v21 = vld [vmem:[%s1916_s24 + $0x44] ss:$16 sps:$4 sm:$0xff]   ;;  %v1680_v23 = vld [vmem:[%s1916_s24 + $0x40] ss:$16 sps:$4 sm:$0xff]  }
  0x20   : > { %1122 = vmatpush1.bf16.msra.mxu1 %v1663_v12  ;;  %1082 = vmatprep.subr.bf16.mxu0 %v1664_v13  ;;  %v1678_v22 = vld [vmem:[%s1916_s24 + $0x244] ss:$16 sps:$4 sm:$0xff]   ;;  %v1681_v24 = vld [vmem:[%s1916_s24 + $0x240] ss:$16 sps:$4 sm:$0xff]   ;;  %v1744_v12 = vld [vmem:[%s1916_s24 + $0xec] ss:$16 sps:$4 sm:$0xff]  }
  0x21   : > { %1123 = vmatprep.subr.bf16.mxu1 %v1666_v14  ;;  %v1682_v25 = vld [vmem:[%s1916_s24 + $0x24] ss:$16 sps:$4 sm:$0xff]   ;;  %v1686_v27 = vld [vmem:[%s1916_s24 + $0x20] ss:$16 sps:$4 sm:$0xff]   ;;  %v1747_v13 = vld [vmem:[%s1916_s24 + $0x2ec] ss:$16 sps:$4 sm:$0xff]  }
  0x22   : > { %v1684_v26 = vld [vmem:[%s1916_s24 + $0x224] ss:$16 sps:$4 sm:$0xff]   ;;  %v1687_v28 = vld [vmem:[%s1916_s24 + $0x220] ss:$16 sps:$4 sm:$0xff]  }
  0x23   : > { %1083 = vmatpush1.bf16.msra.mxu0 %v1668_v15  ;;  %v1688_v29 = vld [vmem:[%s1916_s24 + $0x4] ss:$16 sps:$4 sm:$0xff]   ;;  %v1692_v31 = vld [vmem:[%s1916_s24] ss:$16 sps:$4 sm:$0xff]   ;;  %v1742_v15 = vld [vmem:[%s1916_s24 + $0xe8] ss:$16 sps:$4 sm:$0xff]  }
  0x24   : > { %1124 = vmatpush1.bf16.msra.mxu1 %v1669_v16  ;;  %1084 = vmatprep.subr.bf16.mxu0 %v1670_v17  ;;  %v1690_v30 = vld [vmem:[%s1916_s24 + $0x204] ss:$16 sps:$4 sm:$0xff]   ;;  %v1693_v32 = vld [vmem:[%s1916_s24 + $0x200] ss:$16 sps:$4 sm:$0xff]   ;;  %v1745_v16 = vld [vmem:[%s1916_s24 + $0x2e8] ss:$16 sps:$4 sm:$0xff]  }
  0x25   : > { %1125 = vmatprep.subr.bf16.mxu1 %v1672_v18  ;;  %v1694_v33 = vld [vmem:[%s1916_s24 + $0x1e4] ss:$16 sps:$4 sm:$0xff]   ;;  %v1698_v35 = vld [vmem:[%s1916_s24 + $0x1e0] ss:$16 sps:$4 sm:$0xff]   ;;  %v1750_v17 = vld [vmem:[%s1916_s24 + $0xcc] ss:$16 sps:$4 sm:$0xff]  }
  0x26   : > { %v1696_v34 = vld [vmem:[%s1916_s24 + $0x3e4] ss:$16 sps:$4 sm:$0xff]   ;;  %v1699_v36 = vld [vmem:[%s1916_s24 + $0x3e0] ss:$16 sps:$4 sm:$0xff]   ;;  %v1753_v18 = vld [vmem:[%s1916_s24 + $0x2cc] ss:$16 sps:$4 sm:$0xff]  }
  0x27   : > { %1085 = vmatpush1.bf16.msra.mxu0 %v1674_v19  ;;  %v1700_v37 = vld [vmem:[%s1916_s24 + $0x1c4] ss:$16 sps:$4 sm:$0xff]   ;;  %v1704_v42 = vld [vmem:[%s1916_s24 + $0x1c0] ss:$16 sps:$4 sm:$0xff]   ;;  %v1748_v19 = vld [vmem:[%s1916_s24 + $0xc8] ss:$16 sps:$4 sm:$0xff]  }
  0x28   : > { %1126 = vmatpush1.bf16.msra.mxu1 %v1675_v20  ;;  %1086 = vmatprep.subr.bf16.mxu0 %v1676_v21  ;;  %v1702_v38 = vld [vmem:[%s1916_s24 + $0x3c4] ss:$16 sps:$4 sm:$0xff]   ;;  %v1705_v43 = vld [vmem:[%s1916_s24 + $0x3c0] ss:$16 sps:$4 sm:$0xff]   ;;  %v1751_v20 = vld [vmem:[%s1916_s24 + $0x2c8] ss:$16 sps:$4 sm:$0xff]  }
  0x29   : > { %1127 = vmatprep.subr.bf16.mxu1 %v1678_v22  ;;  %v1706_v44 = vld [vmem:[%s1916_s24 + $0x1a4] ss:$16 sps:$4 sm:$0xff]   ;;  %v1710_v48 = vld [vmem:[%s1916_s24 + $0x1a0] ss:$16 sps:$4 sm:$0xff]   ;;  %v1756_v21 = vld [vmem:[%s1916_s24 + $0xac] ss:$16 sps:$4 sm:$0xff]  }
  0x2a   : > { %v1708_v45 = vld [vmem:[%s1916_s24 + $0x3a4] ss:$16 sps:$4 sm:$0xff]   ;;  %v1711_v49 = vld [vmem:[%s1916_s24 + $0x3a0] ss:$16 sps:$4 sm:$0xff]   ;;  %v1759_v22 = vld [vmem:[%s1916_s24 + $0x2ac] ss:$16 sps:$4 sm:$0xff]  }
  0x2b   : > { %1087 = vmatpush1.bf16.msra.mxu0 %v1680_v23  ;;  %v1712_v50 = vld [vmem:[%s1916_s24 + $0x184] ss:$16 sps:$4 sm:$0xff]   ;;  %v1481_v53 = vld.sshfl [vmem:[%s244_s20] sm:$0x33 pattern:$0x75316420] }
  0x2c   : > { %1128 = vmatpush1.bf16.msra.mxu1 %v1681_v24  ;;  %1088 = vmatprep.subr.bf16.mxu0 %v1682_v25  ;;  %v1714_v51 = vld [vmem:[%s1916_s24 + $0x384] ss:$16 sps:$4 sm:$0xff]   ;;  %v1716_v54 = vld [vmem:[%s1916_s24 + $0x180] ss:$16 sps:$4 sm:$0xff]   ;;  %v415_v56 = vcombine.high %v1481_v53, %v1481_v53  ;;  %v1994_v10 = vrot.slane %v1481_v53, %v1968_v52  ;;  %v1754_v23 = vld [vmem:[%s1916_s24 + $0xa8] ss:$16 sps:$4 sm:$0xff]  }
  0x2d   : > { %1129 = vmatprep.subr.bf16.mxu1 %v1684_v26  ;;  %v1717_v55 = vld [vmem:[%s1916_s24 + $0x380] ss:$16 sps:$4 sm:$0xff]   ;;  %v1718_v57 = vld [vmem:[%s1916_s24 + $0x164] ss:$16 sps:$4 sm:$0xff]   ;;  %v1757_v24 = vld [vmem:[%s1916_s24 + $0x2a8] ss:$16 sps:$4 sm:$0xff]  }
  0x2e   : > { %v1720_v58 = vld [vmem:[%s1916_s24 + $0x364] ss:$16 sps:$4 sm:$0xff]   ;;  %v429_v59 = vrot.slane %v415_v56, %v1968_v52  ;;  %v1722_v60 = vld [vmem:[%s1916_s24 + $0x160] ss:$16 sps:$4 sm:$0xff]   ;;  %v2001_v14 = vcombine.high %v1994_v10, %v1994_v10  ;;  %v1762_v25 = vld [vmem:[%s1916_s24 + $0x8c] ss:$16 sps:$4 sm:$0xff]  }
  0x2f   : > { %1089 = vmatpush1.bf16.msra.mxu0 %v1686_v27  ;;  %v1723_v61 = vld [vmem:[%s1916_s24 + $0x360] ss:$16 sps:$4 sm:$0xff]   ;;  %v1724_v63 = vld [vmem:[%s1916_s24 + $0x144] ss:$16 sps:$4 sm:$0xff]   ;;  %v1765_v26 = vld [vmem:[%s1916_s24 + $0x28c] ss:$16 sps:$4 sm:$0xff]  }
  0x30   : > { %1130 = vmatpush1.bf16.msra.mxu1 %v1687_v28  ;;  %1090 = vmatprep.subr.bf16.mxu0 %v1688_v29  ;;  %v431_v62 = vcombine.high %v429_v59, %v429_v59  ;;  %v1726_v0 = vld [vmem:[%s1916_s24 + $0x344] ss:$16 sps:$4 sm:$0xff]   ;;  %v1728_v1 = vld [vmem:[%s1916_s24 + $0x140] ss:$16 sps:$4 sm:$0xff]   ;;  %v1760_v27 = vld [vmem:[%s1916_s24 + $0x88] ss:$16 sps:$4 sm:$0xff]  }
  0x31   : > { %1131 = vmatprep.subr.bf16.mxu1 %v1690_v30  ;;  %1108 = vmatprep.mubr.bf16.mxu0 %v429_v59  ;;  %v1729_v2 = vld [vmem:[%s1916_s24 + $0x340] ss:$16 sps:$4 sm:$0xff]   ;;  %v1730_v3 = vld [vmem:[%s1916_s24 + $0x124] ss:$16 sps:$4 sm:$0xff]   ;;  %v1763_v28 = vld [vmem:[%s1916_s24 + $0x288] ss:$16 sps:$4 sm:$0xff]  }
  0x32   : > { %1149 = vmatprep.mubr.bf16.mxu1 %v431_v62  ;;  %v1732_v4 = vld [vmem:[%s1916_s24 + $0x324] ss:$16 sps:$4 sm:$0xff]   ;;  %v1734_v5 = vld [vmem:[%s1916_s24 + $0x120] ss:$16 sps:$4 sm:$0xff]   ;;  %v1768_v29 = vld [vmem:[%s1916_s24 + $0x6c] ss:$16 sps:$4 sm:$0xff]  }
  0x33   : > { %1091 = vmatpush1.bf16.msra.mxu0 %v1692_v31  ;;  %v1735_v6 = vld [vmem:[%s1916_s24 + $0x320] ss:$16 sps:$4 sm:$0xff]   ;;  %v1736_v7 = vld [vmem:[%s1916_s24 + $0x104] ss:$16 sps:$4 sm:$0xff]   ;;  %v1771_v30 = vld [vmem:[%s1916_s24 + $0x26c] ss:$16 sps:$4 sm:$0xff]  }
  0x34   : > { %1132 = vmatpush1.bf16.msra.mxu1 %v1693_v32  ;;  %1092 = vmatprep.subr.bf16.mxu0 %v1694_v33  ;;  %v1738_v8 = vld [vmem:[%s1916_s24 + $0x304] ss:$16 sps:$4 sm:$0xff]   ;;  %v1740_v9 = vld [vmem:[%s1916_s24 + $0x100] ss:$16 sps:$4 sm:$0xff]   ;;  %v1766_v31 = vld [vmem:[%s1916_s24 + $0x68] ss:$16 sps:$4 sm:$0xff]  }
  0x35   : > { %1133 = vmatprep.subr.bf16.mxu1 %v1696_v34  ;;  %v1741_v11 = vld [vmem:[%s1916_s24 + $0x300] ss:$16 sps:$4 sm:$0xff]   ;;  %v1769_v32 = vld [vmem:[%s1916_s24 + $0x268] ss:$16 sps:$4 sm:$0xff]   ;;  %v1774_v33 = vld [vmem:[%s1916_s24 + $0x4c] ss:$16 sps:$4 sm:$0xff]  }
  0x36   : > { %v1777_v34 = vld [vmem:[%s1916_s24 + $0x24c] ss:$16 sps:$4 sm:$0xff]   ;;  %v1796_v53 = vld [vmem:[%s1916_s24 + $0x1c8] ss:$16 sps:$4 sm:$0xff]  }
  0x37   : > { %1093 = vmatpush2.bf16.msra.mxu0 %v1698_v35  ;;  %v1772_v35 = vld [vmem:[%s1916_s24 + $0x48] ss:$16 sps:$4 sm:$0xff]   ;;  %v1807_v56 = vld [vmem:[%s1916_s24 + $0x3ac] ss:$16 sps:$4 sm:$0xff]  }
  0x38   : > { %1134 = vmatpush2.bf16.msra.mxu1 %v1699_v36  ;;  %1094 = vmatprep.subr.bf16.mxu0 %v1700_v37  ;;  %v1775_v36 = vld [vmem:[%s1916_s24 + $0x248] ss:$16 sps:$4 sm:$0xff]   ;;  %v1780_v37 = vld [vmem:[%s1916_s24 + $0x2c] ss:$16 sps:$4 sm:$0xff]  }
  0x39   : > { %1135 = vmatprep.subr.bf16.mxu1 %v1702_v38  ;;  %v1783_v38 = vld [vmem:[%s1916_s24 + $0x22c] ss:$16 sps:$4 sm:$0xff]  }
  0x3b   : > { %1095 = vmatpush2.bf16.msra.mxu0 %v1704_v42  ;;  %v1789_v42 = vld [vmem:[%s1916_s24 + $0x20c] ss:$16 sps:$4 sm:$0xff]  }
  0x3c   : > { %1136 = vmatpush2.bf16.msra.mxu1 %v1705_v43  ;;  %1096 = vmatprep.subr.bf16.mxu0 %v1706_v44  ;;  %v1784_v43 = vld [vmem:[%s1916_s24 + $0x8] ss:$16 sps:$4 sm:$0xff]  }
  0x3d   : > { %1137 = vmatprep.subr.bf16.mxu1 %v1708_v45  ;;  %v1787_v44 = vld [vmem:[%s1916_s24 + $0x208] ss:$16 sps:$4 sm:$0xff]   ;;  %v1792_v45 = vld [vmem:[%s1916_s24 + $0x1ec] ss:$16 sps:$4 sm:$0xff]  }
  0x3f   : > { %1097 = vmatpush2.bf16.msra.mxu0 %v1710_v48  ;;  %v1790_v48 = vld [vmem:[%s1916_s24 + $0x1e8] ss:$16 sps:$4 sm:$0xff]  }
  0x40   : > { %1138 = vmatpush2.bf16.msra.mxu1 %v1711_v49  ;;  %1098 = vmatprep.subr.bf16.mxu0 %v1712_v50  ;;  %v1793_v49 = vld [vmem:[%s1916_s24 + $0x3e8] ss:$16 sps:$4 sm:$0xff]   ;;  %v1798_v50 = vld [vmem:[%s1916_s24 + $0x1cc] ss:$16 sps:$4 sm:$0xff]  }
  0x41   : > { %1139 = vmatprep.subr.bf16.mxu1 %v1714_v51  ;;  %v1801_v51 = vld [vmem:[%s1916_s24 + $0x3cc] ss:$16 sps:$4 sm:$0xff]  }
  0x43   : > { %1099 = vmatpush2.bf16.msra.mxu0 %v1716_v54  ;;  %v1799_v54 = vld [vmem:[%s1916_s24 + $0x3c8] ss:$16 sps:$4 sm:$0xff]  }
  0x44   : > { %1140 = vmatpush2.bf16.msra.mxu1 %v1717_v55  ;;  %1100 = vmatprep.subr.bf16.mxu0 %v1718_v57  ;;  %v1804_v55 = vld [vmem:[%s1916_s24 + $0x1ac] ss:$16 sps:$4 sm:$0xff]   ;;  %v1802_v57 = vld [vmem:[%s1916_s24 + $0x1a8] ss:$16 sps:$4 sm:$0xff]  }
  0x45   : > { %1141 = vmatprep.subr.bf16.mxu1 %v1720_v58  ;;  %v1805_v58 = vld [vmem:[%s1916_s24 + $0x3a8] ss:$16 sps:$4 sm:$0xff]  }
  0x47   : > { %1101 = vmatpush2.bf16.msra.mxu0 %v1722_v60  ;;  %v1813_v60 = vld [vmem:[%s1916_s24 + $0x38c] ss:$16 sps:$4 sm:$0xff]  }
  0x48   : > { %1142 = vmatpush2.bf16.msra.mxu1 %v1723_v61  ;;  %1102 = vmatprep.subr.bf16.mxu0 %v1724_v63  ;;  %v1808_v61 = vld [vmem:[%s1916_s24 + $0x188] ss:$16 sps:$4 sm:$0xff]   ;;  %v1816_v63 = vld [vmem:[%s1916_s24 + $0x16c] ss:$16 sps:$4 sm:$0xff]  }
  0x49   : > { %1143 = vmatprep.subr.bf16.mxu1 %v1726_v0  ;;  %v1819_v0 = vld [vmem:[%s1916_s24 + $0x36c] ss:$16 sps:$4 sm:$0xff]  }
  0x4b   : > { %1103 = vmatpush2.bf16.msra.mxu0 %v1728_v1  ;;  %v1814_v1 = vld [vmem:[%s1916_s24 + $0x168] ss:$16 sps:$4 sm:$0xff]  }
  0x4c   : > { %1144 = vmatpush2.bf16.msra.mxu1 %v1729_v2  ;;  %1104 = vmatprep.subr.bf16.mxu0 %v1730_v3  ;;  %v1817_v2 = vld [vmem:[%s1916_s24 + $0x368] ss:$16 sps:$4 sm:$0xff]   ;;  %v1822_v3 = vld [vmem:[%s1916_s24 + $0x14c] ss:$16 sps:$4 sm:$0xff]  }
  0x4d   : > { %1145 = vmatprep.subr.bf16.mxu1 %v1732_v4  ;;  %v1825_v4 = vld [vmem:[%s1916_s24 + $0x34c] ss:$16 sps:$4 sm:$0xff]  }
  0x4f   : > { %1105 = vmatpush2.bf16.msra.mxu0 %v1734_v5  ;;  %v1820_v5 = vld [vmem:[%s1916_s24 + $0x148] ss:$16 sps:$4 sm:$0xff]  }
  0x50   : > { %1146 = vmatpush2.bf16.msra.mxu1 %v1735_v6  ;;  %1106 = vmatprep.subr.bf16.mxu0 %v1736_v7  ;;  %v1823_v6 = vld [vmem:[%s1916_s24 + $0x348] ss:$16 sps:$4 sm:$0xff]   ;;  %v1828_v7 = vld [vmem:[%s1916_s24 + $0x12c] ss:$16 sps:$4 sm:$0xff]  }
  0x51   : > { %1147 = vmatprep.subr.bf16.mxu1 %v1738_v8  ;;  %v1831_v8 = vld [vmem:[%s1916_s24 + $0x32c] ss:$16 sps:$4 sm:$0xff]  }
  0x53   : > { %1107 = vmatpush2.bf16.msra.mxu0 %v1740_v9  ;;  %v1826_v9 = vld [vmem:[%s1916_s24 + $0x128] ss:$16 sps:$4 sm:$0xff]  }
  0x54   : > { %1148 = vmatpush2.bf16.msra.mxu1 %v1741_v11  ;;  %1158 = vmatprep.subr.bf16.mxu0 %v1744_v12  ;;  %v1829_v11 = vld [vmem:[%s1916_s24 + $0x328] ss:$16 sps:$4 sm:$0xff]   ;;  %v1834_v12 = vld [vmem:[%s1916_s24 + $0x10c] ss:$16 sps:$4 sm:$0xff]  }
  0x55   : > { %1199 = vmatprep.subr.bf16.mxu1 %v1747_v13  ;;  %v1837_v13 = vld [vmem:[%s1916_s24 + $0x30c] ss:$16 sps:$4 sm:$0xff]  }
  0x56   : > { %1109 = vmatmul.mubr.bf16.vlgmr.msra.gmra.mxu0 %v1994_v10 }
  0x57   : > { %1150 = vmatmul.mubr.bf16.vlgmr.msra.gmra.mxu1 %v2001_v14  ;;  %1159 = vmatpush1.bf16.msra.mxu0 %v1742_v15  ;;  %v1832_v15 = vld [vmem:[%s1916_s24 + $0x108] ss:$16 sps:$4 sm:$0xff]  }
  0x58   : > { %1200 = vmatpush1.bf16.msra.mxu1 %v1745_v16  ;;  %1160 = vmatprep.subr.bf16.mxu0 %v1750_v17  ;;  %v1835_v16 = vld [vmem:[%s1916_s24 + $0x308] ss:$16 sps:$4 sm:$0xff]  }
  0x59   : > { %1201 = vmatprep.subr.bf16.mxu1 %v1753_v18  ;;  %1190 = vmatprep.mubr.bf16.mxu0 %v429_v59  ;;  %v1810_v59 = vld [vmem:[%s1916_s24 + $0x18c] ss:$16 sps:$4 sm:$0xff]  }
  0x5a   : > { %1231 = vmatprep.mubr.bf16.mxu1 %v431_v62  ;;  %v1811_v62 = vld [vmem:[%s1916_s24 + $0x388] ss:$16 sps:$4 sm:$0xff]  }
  0x5b   : > { %1161 = vmatpush1.bf16.msra.mxu0 %v1748_v19 }
  0x5c   : > { %1202 = vmatpush1.bf16.msra.mxu1 %v1751_v20  ;;  %1162 = vmatprep.subr.bf16.mxu0 %v1756_v21 }
  0x5d   : > { %1203 = vmatprep.subr.bf16.mxu1 %v1759_v22 }
  0x5f   : > { %1163 = vmatpush1.bf16.msra.mxu0 %v1754_v23 }
  0x60   : > { %1204 = vmatpush1.bf16.msra.mxu1 %v1757_v24  ;;  %1164 = vmatprep.subr.bf16.mxu0 %v1762_v25 }
  0x61   : > { %1205 = vmatprep.subr.bf16.mxu1 %v1765_v26 }
  0x63   : > { %1165 = vmatpush1.bf16.msra.mxu0 %v1760_v27 }
  0x64   : > { %1206 = vmatpush1.bf16.msra.mxu1 %v1763_v28  ;;  %1166 = vmatprep.subr.bf16.mxu0 %v1768_v29  ;;  %v1864_v28 = vmov 1983009808  }
  0x65   : > { %1207 = vmatprep.subr.bf16.mxu1 %v1771_v30  ;;  %v1247_v29 = vunpack.c.l.s4 %v1864_v28 }
  0x67   : > { %1167 = vmatpush1.bf16.msra.mxu0 %v1766_v31  ;;  %v1248_v30 = vunpack.c.0.s8 %v1247_v29 }
  0x68   : > { %1208 = vmatpush1.bf16.msra.mxu1 %v1769_v32  ;;  %1168 = vmatprep.subr.bf16.mxu0 %v1774_v33 }
  0x69   : > { %1209 = vmatprep.subr.bf16.mxu1 %v1777_v34 }
  0x6b   : > { %1169 = vmatpush1.bf16.msra.mxu0 %v1772_v35 }
  0x6c   : > { %1210 = vmatpush1.bf16.msra.mxu1 %v1775_v36  ;;  %1170 = vmatprep.subr.bf16.mxu0 %v1780_v37 }
  0x6d   : > { %1211 = vmatprep.subr.bf16.mxu1 %v1783_v38 }
  0x6f   : > { %1171 = vmatpush1.bf16.msra.mxu0 %v1778_v39 }
  0x70   : > { %1212 = vmatpush1.bf16.msra.mxu1 %v1781_v40  ;;  %1172 = vmatprep.subr.bf16.mxu0 %v1786_v41 }
  0x71   : > { %1213 = vmatprep.subr.bf16.mxu1 %v1789_v42 }
  0x73   : > { %1173 = vmatpush1.bf16.msra.mxu0 %v1784_v43  ;;  %v277_v43 = vld [vmem:[#allocation2] sm:$0xff] }
  0x74   : > { %1214 = vmatpush1.bf16.msra.mxu1 %v1787_v44  ;;  %1174 = vmatprep.subr.bf16.mxu0 %v1792_v45 }
  0x75   : > { %1215 = vmatprep.subr.bf16.mxu1 %v1795_v46 }
  0x77   : > { %1175 = vmatpush2.bf16.msra.mxu0 %v1790_v48 }
  0x78   : > { %1216 = vmatpush2.bf16.msra.mxu1 %v1793_v49  ;;  %1176 = vmatprep.subr.bf16.mxu0 %v1798_v50 }
  0x79   : > { %1217 = vmatprep.subr.bf16.mxu1 %v1801_v51 }
  0x7b   : > { %1177 = vmatpush2.bf16.msra.mxu0 %v1796_v53 }
  0x7c   : > { %1218 = vmatpush2.bf16.msra.mxu1 %v1799_v54  ;;  %1178 = vmatprep.subr.bf16.mxu0 %v1804_v55 }
  0x7d   : > { %1219 = vmatprep.subr.bf16.mxu1 %v1807_v56 }
  0x7f   : > { %1179 = vmatpush2.bf16.msra.mxu0 %v1802_v57 }
  0x80   : > { %1220 = vmatpush2.bf16.msra.mxu1 %v1805_v58  ;;  %1180 = vmatprep.subr.bf16.mxu0 %v1810_v59 }
  0x81   : > { %1221 = vmatprep.subr.bf16.mxu1 %v1813_v60 }
  0x83   : > { %1181 = vmatpush2.bf16.msra.mxu0 %v1808_v61 }
  0x84   : > { %1222 = vmatpush2.bf16.msra.mxu1 %v1811_v62  ;;  %1182 = vmatprep.subr.bf16.mxu0 %v1816_v63 }
  0x85   : > { %1223 = vmatprep.subr.bf16.mxu1 %v1819_v0 }
  0x87   : > { %1183 = vmatpush2.bf16.msra.mxu0 %v1814_v1 }
  0x88   : > { %1224 = vmatpush2.bf16.msra.mxu1 %v1817_v2  ;;  %1184 = vmatprep.subr.bf16.mxu0 %v1822_v3 }
  0x89   : > { %1225 = vmatprep.subr.bf16.mxu1 %v1825_v4 }
  0x8b   : > { %1185 = vmatpush2.bf16.msra.mxu0 %v1820_v5 }
  0x8c   : > { %1226 = vmatpush2.bf16.msra.mxu1 %v1823_v6  ;;  %1186 = vmatprep.subr.bf16.mxu0 %v1828_v7 }
  0x8d   : > { %1227 = vmatprep.subr.bf16.mxu1 %v1831_v8 }
  0x8f   : > { %1187 = vmatpush2.bf16.msra.mxu0 %v1826_v9 }
  0x90   : > { %1228 = vmatpush2.bf16.msra.mxu1 %v1829_v11  ;;  %1188 = vmatprep.subr.bf16.mxu0 %v1834_v12 }
  0x91   : > { %1229 = vmatprep.subr.bf16.mxu1 %v1837_v13 }
  0x93   : > { %1189 = vmatpush2.bf16.msra.mxu0 %v1832_v15 }
  0x94   : > { %1230 = vmatpush2.bf16.msra.mxu1 %v1835_v16 }
  0x96   : > { %1191 = vmatmul.mubr.bf16.vlgmr.msra.gmra.mxu0 %v1994_v10 }
  0x97   : > { %1232 = vmatmul.mubr.bf16.vlgmr.msra.gmra.mxu1 %v2001_v14  ;;  %v1251_v14 = vsub.s32 %v1248_v30, %v1961_v47 }
 0x116   : > { %v1110_v17 = vpop.f32.mrf.mxu0 }
 0x117   : > { %v1151_v18 = vpop.f32.mrf.mxu1 }
 0x118   : > { %v1152_v19 = vadd.f32 %v1151_v18, %v1110_v17  ;;  %v1112_v20 = vpop.f32.mrf.mxu0 }
 0x119   : > { %v1153_v21 = vpop.f32.mrf.mxu1 }
 0x11a   : > { %v1154_v22 = vadd.f32 %v1153_v21, %v1112_v20  ;;  %v1114_v23 = vpop.f32.mrf.mxu0 }
 0x11b   : > { %v1155_v24 = vpop.f32.mrf.mxu1 }
 0x11c   : > { %v1244_v25 = vcombine.low %v1152_v19, %v1154_v22  ;;  %v1115_v26 = vpop.f32.mrf.mxu0 }
 0x11d   : > { %v1156_v27 = vpop.f32.mrf.mxu1 }
 0x11e   : > { %v1252_v41 = vrot.slane %v1244_v25, %v1251_v14 }
 0x156   : > { %v1192_v31 = vpop.f32.mrf.mxu0 }
 0x157   : > { %v1233_v32 = vpop.f32.mrf.mxu1 }
 0x158   : > { %v1194_v33 = vpop.f32.mrf.mxu0  ;;  %v1234_v34 = vadd.f32 %v1233_v32, %v1192_v31 }
 0x159   : > { %v1235_v10 = vpop.f32.mrf.mxu1 }
 0x15a   : > { %v1236_v35 = vadd.f32 %v1235_v10, %v1194_v33  ;;  %v1196_v36 = vpop.f32.mrf.mxu0 }
 0x15b   : > { %v1237_v37 = vpop.f32.mrf.mxu1 }
 0x15c   : > { %v1245_v38 = vcombine.low %v1234_v34, %v1236_v35  ;;  %v1197_v39 = vpop.f32.mrf.mxu0 }
 0x15d   : > { %v1238_v40 = vpop.f32.mrf.mxu1 }
 0x15e   : > { %v1259_v42 = vrot.slane %v1245_v38, %v1251_v14 }
 0x160   : > { %v1260_v44 = vcombine.low %v1252_v41, %v1259_v42  ;;  %1267 = sbr.rel (%p1610_p7) target bundleno = 384 (0x180), region = 40 }
 0x162   : > { %v1262_v45 = vadd.f32 %v1260_v44, %v277_v43 }
 0x164   : > { %1263 = vst [vmem:[#allocation2] sm:$0xff] %v1262_v45 }
 0x165   : > { %v1269_v46 = vld [vmem:[%s2094_s2] sm:$0xf]  ;;  %v1273_v48 = vsub.s32 0, %v1961_v47  ;;  %v1277_v49 = vsub.s32 1, %v1961_v47  ;;  %v1281_v50 = vsub.s32 2, %v1961_v47  ;;  %v1285_v51 = vsub.s32 3, %v1961_v47 }
 0x167   : > { %v1274_v53 = vrot.slane %v1269_v46, %v1273_v48  ;;  %v1278_v54 = vrot.slane %v1269_v46, %v1277_v49  ;;  %v1282_v55 = vrot.slane %v1269_v46, %v1281_v50  ;;  %v1286_v56 = vrot.slane %v1269_v46, %v1285_v51 }
 0x169   : > { %v1287_v57 = vcombine.low %v1274_v53, %v1278_v54  ;;  %v1288_v58 = vcombine.low %v1282_v55, %v1286_v56 }
 0x16b   : > { %v1295_v59 = vrot.slane %v1287_v57, %v1251_v14  ;;  %v1302_v60 = vrot.slane %v1288_v58, %v1251_v14  ;;  %v1268_v61 = vld [vmem:[#allocation2] sm:$0xff] }
 0x16d   : > { %v1303_v62 = vcombine.low %v1295_v59, %v1302_v60 }
 0x16f   : > { %v1305_v63 = vadd.f32 %v1303_v62, %v1268_v61 }
 0x171   : > { %v1306_v0 = vmax.f32 %v1305_v63, 0.0 }
 0x173   : > { %v1308_v1 = vcombine.high %v1306_v0, %v1306_v0  ;;  %v1315_v2 = vrot.slane %v1306_v0, %v1251_v14 }
 0x175   : > { %v1322_v3 = vrot.slane %v1308_v1, %v1251_v14  ;;  %v1323_v4 = vcombine.high %v1315_v2, %v1315_v2 }
 0x177   : > { %v1324_v5 = vcombine.high %v1322_v3, %v1322_v3  ;;  %v1611_v6 = vpack.c.bf16 %v1323_v4, %v1315_v2 }
 0x179   : > { %v1612_v7 = vpack.c.bf16 %v1324_v5, %v1322_v3  ;;  %v1345_v47 = vrot.slane %v1611_v6, %v1968_v52 }
 0x17b   : > { %v1352_v8 = vrot.slane %v1612_v7, %v1968_v52 }
 0x17d   : > { %v1353_v9 = vcombine.low %v1345_v47, %v1352_v8 }
 0x17f   : > { %1613 = vst.sshfl [vmem:[%s2095_s3] sm:$0x55 pattern:$0x73625140] %v1353_v9 }
 0x180 PF: > { %s13_s14 = sadd.s32 1, %s1860_s14   ;;  %s2096_s12 = smov %s1856_s13 }
 0x181   : > { %p10_p8 = scmp.ge.s32.totalorder %s13_s14, 11   ;;  %s2097_s13 = smov %s2099_s15 }
 0x183   :  { %12 = sbr.rel (!%p10_p8) target bundleno = 2 (0x2), region = 76 }

// kernel: cancer_classifier_forward.42
= control target key start
LH: loop header
LB: loop body
LE: loop exit
PB: predicated region body
PF: predicated region fallthrough
CT: control target
= control target key end

     0   :  { %s1972_s15 = smov 0   ;;  %s1974_s16 = smov 0   ;;  %s2182_s0 = inlined_call_operand.vmem [shape: bf16[2,4608], index: 0, kind: input, shape index: {}]   ;;  %s2183_s1 = inlined_call_operand.vmem [shape: bf16[4608,512], index: 1, kind: input, shape index: {}]   ;;  %s2184_s2 = inlined_call_operand.vmem [shape: f32[1,512], index: 2, kind: input, shape index: {}]   ;;  %s2185_s3 = inlined_call_operand.vmem [shape: bf16[2,512], index: 3, kind: input, shape index: {}]   ;;  %s2186_s4 = inlined_call_operand.vmem [shape: bf16[2,512], index: 4, kind: output, shape index: {}]  }
   0x1   :  { %s1976_s17 = smov 0  }
   0x2 LB: > { %s26_s18 = sadd.s32 1, %s1938_s16  ;;  %p1557_p0 = scmp.ge.s32.totalorder %s1942_s17, 1  ;;  %s1942_s17 = sphi %s1976_s17, %s14_s17   ;;  %s1938_s16 = sphi %s1974_s16, %s2188_s16   ;;  %s1934_s15 = sphi %s1972_s15, %s2187_s15  }
   0x3   : > { %p27_p1 = scmp.ge.s32.totalorder %s26_s18, 9  ;;  %p234_p2 = scmp.lt.s32.totalorder %s1942_s17, 10 }
   0x5   : > { %s2190_s18 = smov (%p27_p1, %s26_s18), 0  ;;  %p235_p3 = pnand %p1557_p0, %p234_p2 }
   0x6   : > { %s1558_s19 = sshll.u32 (!%p235_p3), %s1934_s15, 2  ;;  %s1559_s20 = sshll.u32 (!%p235_p3), %s1934_s15, 6 }
   0x7   : > { %238 = sbr.rel (%p235_p3) target bundleno = 386 (0x182), region = 36  ;;  %p291_p4 = scmp.lt.s32.totalorder (!%p235_p3), %s1558_s19, 35 }
   0x8   : > { %p299_p5 = scmp.lt.s32.totalorder (!%p235_p3), %s1559_s20, 575  ;;  %p1562_p6 = scmp.ne.s32.totalorder (!%p235_p3), %s1934_s15, 0 }
   0xc   : > { %s2192_s19 = smov (!%p291_p4, %s1558_s19), 35  ;;  %s2194_s20 = smov (!%p299_p5, %s1559_s20), 575 }
   0xd   : > { %s295_s23 = scalar_lea.vmem %s2182_s0, %s2192_s19  ;;  %s1700_s24 = sshll.u32 %s2194_s20, 4 }
   0xe   : > { %s2003_s27 = scalar_lea.vmem %s2183_s1, %s1700_s24  ;;  %335 = sbr.rel (%p1562_p6) target bundleno = 21 (0x15), region = 40 }
  0x13   : > { %v1944_v0 = vmov 0.0  }
  0x14   : > { %336 = vst [vmem:[#allocation2] sm:$0xff] %v1944_v0 }
  0x15 PF: > { %v1728_v1 = vld [vmem:[%s2003_s27 + $0xe4] ss:$16 sps:$4 sm:$0xff]   ;;  %v1732_v3 = vld [vmem:[%s2003_s27 + $0xe0] ss:$16 sps:$4 sm:$0xff]   ;;  %v1945_v39 = vmov 1966171168   ;;  %v479_v41 = vlaneseq }
  0x16   : > { %v1730_v2 = vld [vmem:[%s2003_s27 + $0x2e4] ss:$16 sps:$4 sm:$0xff]   ;;  %1136 = vmatprep.subr.bf16.mxu0 %v1728_v1  ;;  %v1733_v4 = vld [vmem:[%s2003_s27 + $0x2e0] ss:$16 sps:$4 sm:$0xff]   ;;  %v477_v40 = vunpack.c.l.s4 %v1945_v39  ;;  %v1860_v39 = vld [vmem:[%s2003_s27 + $0x28] ss:$16 sps:$4 sm:$0xff]  }
  0x17   : > { %1177 = vmatprep.subr.bf16.mxu1 %v1730_v2  ;;  %v1734_v5 = vld [vmem:[%s2003_s27 + $0xc4] ss:$16 sps:$4 sm:$0xff]   ;;  %1137 = vmatpush1.bf16.msra.mxu0 %v1732_v3  ;;  %v1738_v7 = vld [vmem:[%s2003_s27 + $0xc0] ss:$16 sps:$4 sm:$0xff]   ;;  %v2048_v47 = vshrl.u32 %v479_v41, 7  ;;  %p1692_p7 = scmp.ne.s32.totalorder %s1934_s15, 8 }
  0x18   : > { %1178 = vmatpush1.bf16.msra.mxu1 %v1733_v4  ;;  %v1736_v6 = vld [vmem:[%s2003_s27 + $0x2c4] ss:$16 sps:$4 sm:$0xff]   ;;  %1138 = vmatprep.subr.bf16.mxu0 %v1734_v5  ;;  %v1739_v8 = vld [vmem:[%s2003_s27 + $0x2c0] ss:$16 sps:$4 sm:$0xff]   ;;  %v478_v46 = vunpack.c.0.s8 %v477_v40  ;;  %v1863_v40 = vld [vmem:[%s2003_s27 + $0x228] ss:$16 sps:$4 sm:$0xff]  }
  0x19   : > { %1179 = vmatprep.subr.bf16.mxu1 %v1736_v6  ;;  %v1740_v9 = vld [vmem:[%s2003_s27 + $0xa4] ss:$16 sps:$4 sm:$0xff]   ;;  %v1744_v11 = vld [vmem:[%s2003_s27 + $0xa0] ss:$16 sps:$4 sm:$0xff]   ;;  %v1868_v41 = vld [vmem:[%s2003_s27 + $0xc] ss:$16 sps:$4 sm:$0xff]  }
  0x1a   : > { %v1742_v10 = vld [vmem:[%s2003_s27 + $0x2a4] ss:$16 sps:$4 sm:$0xff]   ;;  %v1745_v12 = vld [vmem:[%s2003_s27 + $0x2a0] ss:$16 sps:$4 sm:$0xff]   ;;  %v2055_v52 = vsub.s32 %v478_v46, %v2048_v47  ;;  %v1877_v46 = vld [vmem:[%s2003_s27 + $0x3ec] ss:$16 sps:$4 sm:$0xff]  }
  0x1b   : > { %1139 = vmatpush1.bf16.msra.mxu0 %v1738_v7  ;;  %v1746_v13 = vld [vmem:[%s2003_s27 + $0x84] ss:$16 sps:$4 sm:$0xff]   ;;  %v1750_v15 = vld [vmem:[%s2003_s27 + $0x80] ss:$16 sps:$4 sm:$0xff]  }
  0x1c   : > { %1180 = vmatpush1.bf16.msra.mxu1 %v1739_v8  ;;  %1140 = vmatprep.subr.bf16.mxu0 %v1740_v9  ;;  %v1748_v14 = vld [vmem:[%s2003_s27 + $0x284] ss:$16 sps:$4 sm:$0xff]   ;;  %v1751_v16 = vld [vmem:[%s2003_s27 + $0x280] ss:$16 sps:$4 sm:$0xff]  }
  0x1d   : > { %1181 = vmatprep.subr.bf16.mxu1 %v1742_v10  ;;  %v1752_v17 = vld [vmem:[%s2003_s27 + $0x64] ss:$16 sps:$4 sm:$0xff]   ;;  %v1756_v19 = vld [vmem:[%s2003_s27 + $0x60] ss:$16 sps:$4 sm:$0xff]  }
  0x1e   : > { %v1754_v18 = vld [vmem:[%s2003_s27 + $0x264] ss:$16 sps:$4 sm:$0xff]   ;;  %v1757_v20 = vld [vmem:[%s2003_s27 + $0x260] ss:$16 sps:$4 sm:$0xff]  }
  0x1f   : > { %1141 = vmatpush1.bf16.msra.mxu0 %v1744_v11  ;;  %v1758_v21 = vld [vmem:[%s2003_s27 + $0x44] ss:$16 sps:$4 sm:$0xff]   ;;  %v1762_v23 = vld [vmem:[%s2003_s27 + $0x40] ss:$16 sps:$4 sm:$0xff]  }
  0x20   : > { %1182 = vmatpush1.bf16.msra.mxu1 %v1745_v12  ;;  %1142 = vmatprep.subr.bf16.mxu0 %v1746_v13  ;;  %v1760_v22 = vld [vmem:[%s2003_s27 + $0x244] ss:$16 sps:$4 sm:$0xff]   ;;  %v1763_v24 = vld [vmem:[%s2003_s27 + $0x240] ss:$16 sps:$4 sm:$0xff]   ;;  %v1826_v12 = vld [vmem:[%s2003_s27 + $0xec] ss:$16 sps:$4 sm:$0xff]  }
  0x21   : > { %1183 = vmatprep.subr.bf16.mxu1 %v1748_v14  ;;  %v1764_v25 = vld [vmem:[%s2003_s27 + $0x24] ss:$16 sps:$4 sm:$0xff]   ;;  %v1768_v27 = vld [vmem:[%s2003_s27 + $0x20] ss:$16 sps:$4 sm:$0xff]   ;;  %v1829_v13 = vld [vmem:[%s2003_s27 + $0x2ec] ss:$16 sps:$4 sm:$0xff]  }
  0x22   : > { %v1766_v26 = vld [vmem:[%s2003_s27 + $0x224] ss:$16 sps:$4 sm:$0xff]   ;;  %v1769_v28 = vld [vmem:[%s2003_s27 + $0x220] ss:$16 sps:$4 sm:$0xff]  }
  0x23   : > { %1143 = vmatpush1.bf16.msra.mxu0 %v1750_v15  ;;  %v1770_v29 = vld [vmem:[%s2003_s27 + $0x4] ss:$16 sps:$4 sm:$0xff]   ;;  %v1774_v31 = vld [vmem:[%s2003_s27] ss:$16 sps:$4 sm:$0xff]   ;;  %v1824_v15 = vld [vmem:[%s2003_s27 + $0xe8] ss:$16 sps:$4 sm:$0xff]  }
  0x24   : > { %1184 = vmatpush1.bf16.msra.mxu1 %v1751_v16  ;;  %1144 = vmatprep.subr.bf16.mxu0 %v1752_v17  ;;  %v1772_v30 = vld [vmem:[%s2003_s27 + $0x204] ss:$16 sps:$4 sm:$0xff]   ;;  %v1775_v32 = vld [vmem:[%s2003_s27 + $0x200] ss:$16 sps:$4 sm:$0xff]   ;;  %v1827_v16 = vld [vmem:[%s2003_s27 + $0x2e8] ss:$16 sps:$4 sm:$0xff]  }
  0x25   : > { %1185 = vmatprep.subr.bf16.mxu1 %v1754_v18  ;;  %v1776_v33 = vld [vmem:[%s2003_s27 + $0x1e4] ss:$16 sps:$4 sm:$0xff]   ;;  %v1780_v35 = vld [vmem:[%s2003_s27 + $0x1e0] ss:$16 sps:$4 sm:$0xff]   ;;  %v1832_v17 = vld [vmem:[%s2003_s27 + $0xcc] ss:$16 sps:$4 sm:$0xff]  }
  0x26   : > { %v1778_v34 = vld [vmem:[%s2003_s27 + $0x3e4] ss:$16 sps:$4 sm:$0xff]   ;;  %v1781_v36 = vld [vmem:[%s2003_s27 + $0x3e0] ss:$16 sps:$4 sm:$0xff]   ;;  %v1835_v18 = vld [vmem:[%s2003_s27 + $0x2cc] ss:$16 sps:$4 sm:$0xff]  }
  0x27   : > { %1145 = vmatpush1.bf16.msra.mxu0 %v1756_v19  ;;  %v1782_v37 = vld [vmem:[%s2003_s27 + $0x1c4] ss:$16 sps:$4 sm:$0xff]   ;;  %v1786_v42 = vld [vmem:[%s2003_s27 + $0x1c0] ss:$16 sps:$4 sm:$0xff]   ;;  %v1830_v19 = vld [vmem:[%s2003_s27 + $0xc8] ss:$16 sps:$4 sm:$0xff]  }
  0x28   : > { %1186 = vmatpush1.bf16.msra.mxu1 %v1757_v20  ;;  %1146 = vmatprep.subr.bf16.mxu0 %v1758_v21  ;;  %v1784_v38 = vld [vmem:[%s2003_s27 + $0x3c4] ss:$16 sps:$4 sm:$0xff]   ;;  %v1787_v43 = vld [vmem:[%s2003_s27 + $0x3c0] ss:$16 sps:$4 sm:$0xff]   ;;  %v1833_v20 = vld [vmem:[%s2003_s27 + $0x2c8] ss:$16 sps:$4 sm:$0xff]  }
  0x29   : > { %1187 = vmatprep.subr.bf16.mxu1 %v1760_v22  ;;  %v1788_v44 = vld [vmem:[%s2003_s27 + $0x1a4] ss:$16 sps:$4 sm:$0xff]   ;;  %v1792_v48 = vld [vmem:[%s2003_s27 + $0x1a0] ss:$16 sps:$4 sm:$0xff]   ;;  %v1838_v21 = vld [vmem:[%s2003_s27 + $0xac] ss:$16 sps:$4 sm:$0xff]  }
  0x2a   : > { %v1790_v45 = vld [vmem:[%s2003_s27 + $0x3a4] ss:$16 sps:$4 sm:$0xff]   ;;  %v1793_v49 = vld [vmem:[%s2003_s27 + $0x3a0] ss:$16 sps:$4 sm:$0xff]   ;;  %v1841_v22 = vld [vmem:[%s2003_s27 + $0x2ac] ss:$16 sps:$4 sm:$0xff]  }
  0x2b   : > { %1147 = vmatpush1.bf16.msra.mxu0 %v1762_v23  ;;  %v1794_v50 = vld [vmem:[%s2003_s27 + $0x184] ss:$16 sps:$4 sm:$0xff]   ;;  %v1563_v53 = vld.sshfl [vmem:[%s295_s23] sm:$0x33 pattern:$0x75316420] }
  0x2c   : > { %1188 = vmatpush1.bf16.msra.mxu1 %v1763_v24  ;;  %1148 = vmatprep.subr.bf16.mxu0 %v1764_v25  ;;  %v1796_v51 = vld [vmem:[%s2003_s27 + $0x384] ss:$16 sps:$4 sm:$0xff]   ;;  %v1798_v54 = vld [vmem:[%s2003_s27 + $0x180] ss:$16 sps:$4 sm:$0xff]   ;;  %v475_v56 = vcombine.high %v1563_v53, %v1563_v53  ;;  %v2081_v10 = vrot.slane %v1563_v53, %v2055_v52  ;;  %v1836_v23 = vld [vmem:[%s2003_s27 + $0xa8] ss:$16 sps:$4 sm:$0xff]  }
  0x2d   : > { %1189 = vmatprep.subr.bf16.mxu1 %v1766_v26  ;;  %v1799_v55 = vld [vmem:[%s2003_s27 + $0x380] ss:$16 sps:$4 sm:$0xff]   ;;  %v1800_v57 = vld [vmem:[%s2003_s27 + $0x164] ss:$16 sps:$4 sm:$0xff]   ;;  %v1839_v24 = vld [vmem:[%s2003_s27 + $0x2a8] ss:$16 sps:$4 sm:$0xff]  }
  0x2e   : > { %v1802_v58 = vld [vmem:[%s2003_s27 + $0x364] ss:$16 sps:$4 sm:$0xff]   ;;  %v489_v59 = vrot.slane %v475_v56, %v2055_v52  ;;  %v1804_v60 = vld [vmem:[%s2003_s27 + $0x160] ss:$16 sps:$4 sm:$0xff]   ;;  %v2088_v14 = vcombine.high %v2081_v10, %v2081_v10  ;;  %v1844_v25 = vld [vmem:[%s2003_s27 + $0x8c] ss:$16 sps:$4 sm:$0xff]  }
  0x2f   : > { %1149 = vmatpush1.bf16.msra.mxu0 %v1768_v27  ;;  %v1805_v61 = vld [vmem:[%s2003_s27 + $0x360] ss:$16 sps:$4 sm:$0xff]   ;;  %v1806_v63 = vld [vmem:[%s2003_s27 + $0x144] ss:$16 sps:$4 sm:$0xff]   ;;  %v1847_v26 = vld [vmem:[%s2003_s27 + $0x28c] ss:$16 sps:$4 sm:$0xff]  }
  0x30   : > { %1190 = vmatpush1.bf16.msra.mxu1 %v1769_v28  ;;  %1150 = vmatprep.subr.bf16.mxu0 %v1770_v29  ;;  %v491_v62 = vcombine.high %v489_v59, %v489_v59  ;;  %v1808_v0 = vld [vmem:[%s2003_s27 + $0x344] ss:$16 sps:$4 sm:$0xff]   ;;  %v1810_v1 = vld [vmem:[%s2003_s27 + $0x140] ss:$16 sps:$4 sm:$0xff]   ;;  %v1842_v27 = vld [vmem:[%s2003_s27 + $0x88] ss:$16 sps:$4 sm:$0xff]  }
  0x31   : > { %1191 = vmatprep.subr.bf16.mxu1 %v1772_v30  ;;  %1168 = vmatprep.mubr.bf16.mxu0 %v489_v59  ;;  %v1811_v2 = vld [vmem:[%s2003_s27 + $0x340] ss:$16 sps:$4 sm:$0xff]   ;;  %v1812_v3 = vld [vmem:[%s2003_s27 + $0x124] ss:$16 sps:$4 sm:$0xff]   ;;  %v1845_v28 = vld [vmem:[%s2003_s27 + $0x288] ss:$16 sps:$4 sm:$0xff]  }
  0x32   : > { %1209 = vmatprep.mubr.bf16.mxu1 %v491_v62  ;;  %v1814_v4 = vld [vmem:[%s2003_s27 + $0x324] ss:$16 sps:$4 sm:$0xff]   ;;  %v1816_v5 = vld [vmem:[%s2003_s27 + $0x120] ss:$16 sps:$4 sm:$0xff]   ;;  %v1850_v29 = vld [vmem:[%s2003_s27 + $0x6c] ss:$16 sps:$4 sm:$0xff]  }
  0x33   : > { %1151 = vmatpush1.bf16.msra.mxu0 %v1774_v31  ;;  %v1817_v6 = vld [vmem:[%s2003_s27 + $0x320] ss:$16 sps:$4 sm:$0xff]   ;;  %v1818_v7 = vld [vmem:[%s2003_s27 + $0x104] ss:$16 sps:$4 sm:$0xff]   ;;  %v1853_v30 = vld [vmem:[%s2003_s27 + $0x26c] ss:$16 sps:$4 sm:$0xff]  }
  0x34   : > { %1192 = vmatpush1.bf16.msra.mxu1 %v1775_v32  ;;  %1152 = vmatprep.subr.bf16.mxu0 %v1776_v33  ;;  %v1820_v8 = vld [vmem:[%s2003_s27 + $0x304] ss:$16 sps:$4 sm:$0xff]   ;;  %v1822_v9 = vld [vmem:[%s2003_s27 + $0x100] ss:$16 sps:$4 sm:$0xff]   ;;  %v1848_v31 = vld [vmem:[%s2003_s27 + $0x68] ss:$16 sps:$4 sm:$0xff]  }
  0x35   : > { %1193 = vmatprep.subr.bf16.mxu1 %v1778_v34  ;;  %v1823_v11 = vld [vmem:[%s2003_s27 + $0x300] ss:$16 sps:$4 sm:$0xff]   ;;  %v1851_v32 = vld [vmem:[%s2003_s27 + $0x268] ss:$16 sps:$4 sm:$0xff]   ;;  %v1856_v33 = vld [vmem:[%s2003_s27 + $0x4c] ss:$16 sps:$4 sm:$0xff]  }
  0x36   : > { %v1859_v34 = vld [vmem:[%s2003_s27 + $0x24c] ss:$16 sps:$4 sm:$0xff]   ;;  %v1878_v53 = vld [vmem:[%s2003_s27 + $0x1c8] ss:$16 sps:$4 sm:$0xff]  }
  0x37   : > { %1153 = vmatpush2.bf16.msra.mxu0 %v1780_v35  ;;  %v1854_v35 = vld [vmem:[%s2003_s27 + $0x48] ss:$16 sps:$4 sm:$0xff]   ;;  %v1889_v56 = vld [vmem:[%s2003_s27 + $0x3ac] ss:$16 sps:$4 sm:$0xff]  }
  0x38   : > { %1194 = vmatpush2.bf16.msra.mxu1 %v1781_v36  ;;  %1154 = vmatprep.subr.bf16.mxu0 %v1782_v37  ;;  %v1857_v36 = vld [vmem:[%s2003_s27 + $0x248] ss:$16 sps:$4 sm:$0xff]   ;;  %v1862_v37 = vld [vmem:[%s2003_s27 + $0x2c] ss:$16 sps:$4 sm:$0xff]  }
  0x39   : > { %1195 = vmatprep.subr.bf16.mxu1 %v1784_v38  ;;  %v1865_v38 = vld [vmem:[%s2003_s27 + $0x22c] ss:$16 sps:$4 sm:$0xff]  }
  0x3b   : > { %1155 = vmatpush2.bf16.msra.mxu0 %v1786_v42  ;;  %v1871_v42 = vld [vmem:[%s2003_s27 + $0x20c] ss:$16 sps:$4 sm:$0xff]  }
  0x3c   : > { %1196 = vmatpush2.bf16.msra.mxu1 %v1787_v43  ;;  %1156 = vmatprep.subr.bf16.mxu0 %v1788_v44  ;;  %v1866_v43 = vld [vmem:[%s2003_s27 + $0x8] ss:$16 sps:$4 sm:$0xff]  }
  0x3d   : > { %1197 = vmatprep.subr.bf16.mxu1 %v1790_v45  ;;  %v1869_v44 = vld [vmem:[%s2003_s27 + $0x208] ss:$16 sps:$4 sm:$0xff]   ;;  %v1874_v45 = vld [vmem:[%s2003_s27 + $0x1ec] ss:$16 sps:$4 sm:$0xff]  }
  0x3f   : > { %1157 = vmatpush2.bf16.msra.mxu0 %v1792_v48  ;;  %v1872_v48 = vld [vmem:[%s2003_s27 + $0x1e8] ss:$16 sps:$4 sm:$0xff]  }
  0x40   : > { %1198 = vmatpush2.bf16.msra.mxu1 %v1793_v49  ;;  %1158 = vmatprep.subr.bf16.mxu0 %v1794_v50  ;;  %v1875_v49 = vld [vmem:[%s2003_s27 + $0x3e8] ss:$16 sps:$4 sm:$0xff]   ;;  %v1880_v50 = vld [vmem:[%s2003_s27 + $0x1cc] ss:$16 sps:$4 sm:$0xff]  }
  0x41   : > { %1199 = vmatprep.subr.bf16.mxu1 %v1796_v51  ;;  %v1883_v51 = vld [vmem:[%s2003_s27 + $0x3cc] ss:$16 sps:$4 sm:$0xff]  }
  0x43   : > { %1159 = vmatpush2.bf16.msra.mxu0 %v1798_v54  ;;  %v1881_v54 = vld [vmem:[%s2003_s27 + $0x3c8] ss:$16 sps:$4 sm:$0xff]  }
  0x44   : > { %1200 = vmatpush2.bf16.msra.mxu1 %v1799_v55  ;;  %1160 = vmatprep.subr.bf16.mxu0 %v1800_v57  ;;  %v1886_v55 = vld [vmem:[%s2003_s27 + $0x1ac] ss:$16 sps:$4 sm:$0xff]   ;;  %v1884_v57 = vld [vmem:[%s2003_s27 + $0x1a8] ss:$16 sps:$4 sm:$0xff]  }
  0x45   : > { %1201 = vmatprep.subr.bf16.mxu1 %v1802_v58  ;;  %v1887_v58 = vld [vmem:[%s2003_s27 + $0x3a8] ss:$16 sps:$4 sm:$0xff]  }
  0x47   : > { %1161 = vmatpush2.bf16.msra.mxu0 %v1804_v60  ;;  %v1895_v60 = vld [vmem:[%s2003_s27 + $0x38c] ss:$16 sps:$4 sm:$0xff]  }
  0x48   : > { %1202 = vmatpush2.bf16.msra.mxu1 %v1805_v61  ;;  %1162 = vmatprep.subr.bf16.mxu0 %v1806_v63  ;;  %v1890_v61 = vld [vmem:[%s2003_s27 + $0x188] ss:$16 sps:$4 sm:$0xff]   ;;  %v1898_v63 = vld [vmem:[%s2003_s27 + $0x16c] ss:$16 sps:$4 sm:$0xff]  }
  0x49   : > { %1203 = vmatprep.subr.bf16.mxu1 %v1808_v0  ;;  %v1901_v0 = vld [vmem:[%s2003_s27 + $0x36c] ss:$16 sps:$4 sm:$0xff]  }
  0x4b   : > { %1163 = vmatpush2.bf16.msra.mxu0 %v1810_v1  ;;  %v1896_v1 = vld [vmem:[%s2003_s27 + $0x168] ss:$16 sps:$4 sm:$0xff]  }
  0x4c   : > { %1204 = vmatpush2.bf16.msra.mxu1 %v1811_v2  ;;  %1164 = vmatprep.subr.bf16.mxu0 %v1812_v3  ;;  %v1899_v2 = vld [vmem:[%s2003_s27 + $0x368] ss:$16 sps:$4 sm:$0xff]   ;;  %v1904_v3 = vld [vmem:[%s2003_s27 + $0x14c] ss:$16 sps:$4 sm:$0xff]  }
  0x4d   : > { %1205 = vmatprep.subr.bf16.mxu1 %v1814_v4  ;;  %v1907_v4 = vld [vmem:[%s2003_s27 + $0x34c] ss:$16 sps:$4 sm:$0xff]  }
  0x4f   : > { %1165 = vmatpush2.bf16.msra.mxu0 %v1816_v5  ;;  %v1902_v5 = vld [vmem:[%s2003_s27 + $0x148] ss:$16 sps:$4 sm:$0xff]  }
  0x50   : > { %1206 = vmatpush2.bf16.msra.mxu1 %v1817_v6  ;;  %1166 = vmatprep.subr.bf16.mxu0 %v1818_v7  ;;  %v1905_v6 = vld [vmem:[%s2003_s27 + $0x348] ss:$16 sps:$4 sm:$0xff]   ;;  %v1910_v7 = vld [vmem:[%s2003_s27 + $0x12c] ss:$16 sps:$4 sm:$0xff]  }
  0x51   : > { %1207 = vmatprep.subr.bf16.mxu1 %v1820_v8  ;;  %v1913_v8 = vld [vmem:[%s2003_s27 + $0x32c] ss:$16 sps:$4 sm:$0xff]  }
  0x53   : > { %1167 = vmatpush2.bf16.msra.mxu0 %v1822_v9  ;;  %v1908_v9 = vld [vmem:[%s2003_s27 + $0x128] ss:$16 sps:$4 sm:$0xff]  }
  0x54   : > { %1208 = vmatpush2.bf16.msra.mxu1 %v1823_v11  ;;  %1218 = vmatprep.subr.bf16.mxu0 %v1826_v12  ;;  %v1911_v11 = vld [vmem:[%s2003_s27 + $0x328] ss:$16 sps:$4 sm:$0xff]   ;;  %v1916_v12 = vld [vmem:[%s2003_s27 + $0x10c] ss:$16 sps:$4 sm:$0xff]  }
  0x55   : > { %1259 = vmatprep.subr.bf16.mxu1 %v1829_v13  ;;  %v1919_v13 = vld [vmem:[%s2003_s27 + $0x30c] ss:$16 sps:$4 sm:$0xff]  }
  0x56   : > { %1169 = vmatmul.mubr.bf16.vlgmr.msra.gmra.mxu0 %v2081_v10 }
  0x57   : > { %1210 = vmatmul.mubr.bf16.vlgmr.msra.gmra.mxu1 %v2088_v14  ;;  %1219 = vmatpush1.bf16.msra.mxu0 %v1824_v15  ;;  %v1914_v15 = vld [vmem:[%s2003_s27 + $0x108] ss:$16 sps:$4 sm:$0xff]  }
  0x58   : > { %1260 = vmatpush1.bf16.msra.mxu1 %v1827_v16  ;;  %1220 = vmatprep.subr.bf16.mxu0 %v1832_v17  ;;  %v1917_v16 = vld [vmem:[%s2003_s27 + $0x308] ss:$16 sps:$4 sm:$0xff]  }
  0x59   : > { %1261 = vmatprep.subr.bf16.mxu1 %v1835_v18  ;;  %1250 = vmatprep.mubr.bf16.mxu0 %v489_v59  ;;  %v1892_v59 = vld [vmem:[%s2003_s27 + $0x18c] ss:$16 sps:$4 sm:$0xff]  }
  0x5a   : > { %1291 = vmatprep.mubr.bf16.mxu1 %v491_v62  ;;  %v1893_v62 = vld [vmem:[%s2003_s27 + $0x388] ss:$16 sps:$4 sm:$0xff]  }
  0x5b   : > { %1221 = vmatpush1.bf16.msra.mxu0 %v1830_v19 }
  0x5c   : > { %1262 = vmatpush1.bf16.msra.mxu1 %v1833_v20  ;;  %1222 = vmatprep.subr.bf16.mxu0 %v1838_v21 }
  0x5d   : > { %1263 = vmatprep.subr.bf16.mxu1 %v1841_v22 }
  0x5f   : > { %1223 = vmatpush1.bf16.msra.mxu0 %v1836_v23 }
  0x60   : > { %1264 = vmatpush1.bf16.msra.mxu1 %v1839_v24  ;;  %1224 = vmatprep.subr.bf16.mxu0 %v1844_v25 }
  0x61   : > { %1265 = vmatprep.subr.bf16.mxu1 %v1847_v26 }
  0x63   : > { %1225 = vmatpush1.bf16.msra.mxu0 %v1842_v27 }
  0x64   : > { %1266 = vmatpush1.bf16.msra.mxu1 %v1845_v28  ;;  %1226 = vmatprep.subr.bf16.mxu0 %v1850_v29  ;;  %v1946_v28 = vmov 1983009808  }
  0x65   : > { %1267 = vmatprep.subr.bf16.mxu1 %v1853_v30  ;;  %v1307_v29 = vunpack.c.l.s4 %v1946_v28 }
  0x67   : > { %1227 = vmatpush1.bf16.msra.mxu0 %v1848_v31  ;;  %v1308_v30 = vunpack.c.0.s8 %v1307_v29 }
  0x68   : > { %1268 = vmatpush1.bf16.msra.mxu1 %v1851_v32  ;;  %1228 = vmatprep.subr.bf16.mxu0 %v1856_v33 }
  0x69   : > { %1269 = vmatprep.subr.bf16.mxu1 %v1859_v34 }
  0x6b   : > { %1229 = vmatpush1.bf16.msra.mxu0 %v1854_v35 }
  0x6c   : > { %1270 = vmatpush1.bf16.msra.mxu1 %v1857_v36  ;;  %1230 = vmatprep.subr.bf16.mxu0 %v1862_v37 }
  0x6d   : > { %1271 = vmatprep.subr.bf16.mxu1 %v1865_v38 }
  0x6f   : > { %1231 = vmatpush1.bf16.msra.mxu0 %v1860_v39 }
  0x70   : > { %1272 = vmatpush1.bf16.msra.mxu1 %v1863_v40  ;;  %1232 = vmatprep.subr.bf16.mxu0 %v1868_v41 }
  0x71   : > { %1273 = vmatprep.subr.bf16.mxu1 %v1871_v42 }
  0x73   : > { %1233 = vmatpush1.bf16.msra.mxu0 %v1866_v43  ;;  %v337_v43 = vld [vmem:[#allocation2] sm:$0xff] }
  0x74   : > { %1274 = vmatpush1.bf16.msra.mxu1 %v1869_v44  ;;  %1234 = vmatprep.subr.bf16.mxu0 %v1874_v45 }
  0x75   : > { %1275 = vmatprep.subr.bf16.mxu1 %v1877_v46 }
  0x77   : > { %1235 = vmatpush2.bf16.msra.mxu0 %v1872_v48 }
  0x78   : > { %1276 = vmatpush2.bf16.msra.mxu1 %v1875_v49  ;;  %1236 = vmatprep.subr.bf16.mxu0 %v1880_v50 }
  0x79   : > { %1277 = vmatprep.subr.bf16.mxu1 %v1883_v51 }
  0x7b   : > { %1237 = vmatpush2.bf16.msra.mxu0 %v1878_v53 }
  0x7c   : > { %1278 = vmatpush2.bf16.msra.mxu1 %v1881_v54  ;;  %1238 = vmatprep.subr.bf16.mxu0 %v1886_v55 }
  0x7d   : > { %1279 = vmatprep.subr.bf16.mxu1 %v1889_v56 }
  0x7f   : > { %1239 = vmatpush2.bf16.msra.mxu0 %v1884_v57 }
  0x80   : > { %1280 = vmatpush2.bf16.msra.mxu1 %v1887_v58  ;;  %1240 = vmatprep.subr.bf16.mxu0 %v1892_v59 }
  0x81   : > { %1281 = vmatprep.subr.bf16.mxu1 %v1895_v60 }
  0x83   : > { %1241 = vmatpush2.bf16.msra.mxu0 %v1890_v61 }
  0x84   : > { %1282 = vmatpush2.bf16.msra.mxu1 %v1893_v62  ;;  %1242 = vmatprep.subr.bf16.mxu0 %v1898_v63 }
  0x85   : > { %1283 = vmatprep.subr.bf16.mxu1 %v1901_v0 }
  0x87   : > { %1243 = vmatpush2.bf16.msra.mxu0 %v1896_v1 }
  0x88   : > { %1284 = vmatpush2.bf16.msra.mxu1 %v1899_v2  ;;  %1244 = vmatprep.subr.bf16.mxu0 %v1904_v3 }
  0x89   : > { %1285 = vmatprep.subr.bf16.mxu1 %v1907_v4 }
  0x8b   : > { %1245 = vmatpush2.bf16.msra.mxu0 %v1902_v5 }
  0x8c   : > { %1286 = vmatpush2.bf16.msra.mxu1 %v1905_v6  ;;  %1246 = vmatprep.subr.bf16.mxu0 %v1910_v7 }
  0x8d   : > { %1287 = vmatprep.subr.bf16.mxu1 %v1913_v8 }
  0x8f   : > { %1247 = vmatpush2.bf16.msra.mxu0 %v1908_v9 }
  0x90   : > { %1288 = vmatpush2.bf16.msra.mxu1 %v1911_v11  ;;  %1248 = vmatprep.subr.bf16.mxu0 %v1916_v12 }
  0x91   : > { %1289 = vmatprep.subr.bf16.mxu1 %v1919_v13 }
  0x93   : > { %1249 = vmatpush2.bf16.msra.mxu0 %v1914_v15 }
  0x94   : > { %1290 = vmatpush2.bf16.msra.mxu1 %v1917_v16 }
  0x96   : > { %1251 = vmatmul.mubr.bf16.vlgmr.msra.gmra.mxu0 %v2081_v10 }
  0x97   : > { %1292 = vmatmul.mubr.bf16.vlgmr.msra.gmra.mxu1 %v2088_v14  ;;  %v1311_v14 = vsub.s32 %v1308_v30, %v2048_v47 }
 0x116   : > { %v1170_v17 = vpop.f32.mrf.mxu0 }
 0x117   : > { %v1211_v18 = vpop.f32.mrf.mxu1 }
 0x118   : > { %v1212_v19 = vadd.f32 %v1211_v18, %v1170_v17  ;;  %v1172_v20 = vpop.f32.mrf.mxu0 }
 0x119   : > { %v1213_v21 = vpop.f32.mrf.mxu1 }
 0x11a   : > { %v1214_v22 = vadd.f32 %v1213_v21, %v1172_v20  ;;  %v1174_v23 = vpop.f32.mrf.mxu0 }
 0x11b   : > { %v1215_v24 = vpop.f32.mrf.mxu1 }
 0x11c   : > { %v1304_v25 = vcombine.low %v1212_v19, %v1214_v22  ;;  %v1175_v26 = vpop.f32.mrf.mxu0 }
 0x11d   : > { %v1216_v27 = vpop.f32.mrf.mxu1 }
 0x11e   : > { %v1312_v41 = vrot.slane %v1304_v25, %v1311_v14 }
 0x156   : > { %v1252_v31 = vpop.f32.mrf.mxu0 }
 0x157   : > { %v1293_v32 = vpop.f32.mrf.mxu1 }
 0x158   : > { %v1254_v33 = vpop.f32.mrf.mxu0  ;;  %v1294_v34 = vadd.f32 %v1293_v32, %v1252_v31 }
 0x159   : > { %v1295_v10 = vpop.f32.mrf.mxu1 }
 0x15a   : > { %v1296_v35 = vadd.f32 %v1295_v10, %v1254_v33  ;;  %v1256_v36 = vpop.f32.mrf.mxu0 }
 0x15b   : > { %v1297_v37 = vpop.f32.mrf.mxu1 }
 0x15c   : > { %v1305_v38 = vcombine.low %v1294_v34, %v1296_v35  ;;  %v1257_v39 = vpop.f32.mrf.mxu0 }
 0x15d   : > { %v1298_v40 = vpop.f32.mrf.mxu1 }
 0x15e   : > { %v1319_v42 = vrot.slane %v1305_v38, %v1311_v14 }
 0x160   : > { %v1320_v44 = vcombine.low %v1312_v41, %v1319_v42  ;;  %1327 = sbr.rel (%p1692_p7) target bundleno = 386 (0x182), region = 44 }
 0x162   : > { %v1322_v45 = vadd.f32 %v1320_v44, %v337_v43 }
 0x164   : > { %1323 = vst [vmem:[#allocation2] sm:$0xff] %v1322_v45 }
 0x165   : > { %v1329_v46 = vld [vmem:[%s2184_s2] sm:$0xf]  ;;  %v1333_v48 = vsub.s32 0, %v2048_v47  ;;  %v1337_v49 = vsub.s32 1, %v2048_v47  ;;  %v1341_v50 = vsub.s32 2, %v2048_v47  ;;  %v1345_v51 = vsub.s32 3, %v2048_v47 }
 0x166   : > { %v1366_v60 = vld [vmem:[%s2185_s3] sm:$0xf] }
 0x167   : > { %v1334_v53 = vrot.slane %v1329_v46, %v1333_v48  ;;  %v1338_v54 = vrot.slane %v1329_v46, %v1337_v49  ;;  %v1342_v55 = vrot.slane %v1329_v46, %v1341_v50  ;;  %v1346_v56 = vrot.slane %v1329_v46, %v1345_v51 }
 0x168   : > { %v1367_v0 = vunpack.c.l.bf16 %v1366_v60 }
 0x169   : > { %v1347_v57 = vcombine.low %v1334_v53, %v1338_v54  ;;  %v1348_v58 = vcombine.low %v1342_v55, %v1346_v56 }
 0x16b   : > { %v1355_v59 = vrot.slane %v1347_v57, %v1311_v14  ;;  %v1362_v61 = vrot.slane %v1348_v58, %v1311_v14  ;;  %v1328_v62 = vld [vmem:[#allocation2] sm:$0xff] }
 0x16d   : > { %v1363_v63 = vcombine.low %v1355_v59, %v1362_v61 }
 0x16f   : > { %v1365_v1 = vadd.f32 %v1363_v63, %v1328_v62 }
 0x171   : > { %v1368_v2 = vadd.f32 %v1367_v0, %v1365_v1 }
 0x173   : > { %v1369_v3 = vmax.f32 %v1368_v2, 0.0 }
 0x175   : > { %v1371_v4 = vcombine.high %v1369_v3, %v1369_v3  ;;  %v1378_v47 = vrot.slane %v1369_v3, %v1311_v14 }
 0x177   : > { %v1385_v5 = vrot.slane %v1371_v4, %v1311_v14  ;;  %v1386_v6 = vcombine.high %v1378_v47, %v1378_v47 }
 0x179   : > { %v1387_v7 = vcombine.high %v1385_v5, %v1385_v5  ;;  %v1693_v8 = vpack.c.bf16 %v1386_v6, %v1378_v47 }
 0x17b   : > { %v1694_v9 = vpack.c.bf16 %v1387_v7, %v1385_v5  ;;  %v1408_v11 = vrot.slane %v1693_v8, %v2055_v52 }
 0x17d   : > { %v1415_v12 = vrot.slane %v1694_v9, %v2055_v52 }
 0x17f   : > { %v1416_v13 = vcombine.low %v1408_v11, %v1415_v12 }
 0x181   : > { %1695 = vst.sshfl [vmem:[%s2186_s4] sm:$0x55 pattern:$0x73625140] %v1416_v13 }
 0x182 PF: > { %s14_s17 = sadd.s32 1, %s1942_s17   ;;  %s2187_s15 = smov %s1938_s16 }
 0x183   : > { %p11_p8 = scmp.ge.s32.totalorder %s14_s17, 11   ;;  %s2188_s16 = smov %s2190_s18 }
 0x185   :  { %13 = sbr.rel (!%p11_p8) target bundleno = 2 (0x2), region = 83 }

// kernel: cancer_classifier_forward.45
= control target key start
LH: loop header
LB: loop body
LE: loop exit
PB: predicated region body
PF: predicated region fallthrough
CT: control target
= control target key end

     0   :  { %vm27_vm0 = vcmask 1041409   ;;  %vm29_vm1 = vcmask 1043459   ;;  %vm31_vm2 = vcmask 1045509   ;;  %vm33_vm3 = vcmask 1047559   ;;  %s68_s0 = inlined_call_operand.vmem [shape: bf16[2,1,512], index: 0, kind: input, shape index: {}]   ;;  %s69_s1 = inlined_call_operand.vmem [shape: f32[2,512], index: 1, kind: output, shape index: {}]  }
   0x1   :  { %v48_v0 = vld [vmem:[%s68_s0] sm:$0xff]  }
   0x2   :  { %v49_v1 = vunpack.c.l.bf16 %v48_v0  ;;  %v50_v2 = vunpack.c.h.bf16 %v48_v0 }
   0x4   :  { %v26_v3 = vrot.slane %v50_v2, 7 }
   0x6   :  { %v28_v4 = vsel %vm27_vm0, %v26_v3, %v49_v1 }
   0x7   :  { %v30_v5 = vsel %vm29_vm1, %v26_v3, %v28_v4 }
   0x8   :  { %v32_v6 = vsel %vm31_vm2, %v26_v3, %v30_v5 }
   0x9   :  { %v34_v7 = vsel %vm33_vm3, %v26_v3, %v32_v6 }
   0xa   :  { %42 = vst [vmem:[%s69_s1] sm:$0xff] %v34_v7 }

// kernel: cancer_classifier_forward.46
= control target key start
LH: loop header
LB: loop body
LE: loop exit
PB: predicated region body
PF: predicated region fallthrough
CT: control target
= control target key end

     0   :  { %v1434_v38 = vmov 1966171168   ;;  %v161_v40 = vlaneseq  ;;  %s1873_s1 = inlined_call_operand.vmem [shape: bf16[512,512], index: 1, kind: input, shape index: {}]   ;;  %s1874_s0 = inlined_call_operand.vmem [shape: bf16[2,512], index: 0, kind: input, shape index: {}]   ;;  %s1875_s2 = inlined_call_operand.vmem [shape: f32[1,512], index: 2, kind: input, shape index: {}]   ;;  %s1876_s3 = inlined_call_operand.vmem [shape: bf16[2,512], index: 3, kind: output, shape index: {}]  }
   0x1   :  { %v1242_v0 = vld [vmem:[%s1873_s1 + $0xe4] ss:$16 sps:$4 sm:$0xff]   ;;  %v1246_v2 = vld [vmem:[%s1873_s1 + $0xe0] ss:$16 sps:$4 sm:$0xff]   ;;  %v159_v39 = vunpack.c.l.s4 %v1434_v38  ;;  %v1374_v38 = vld [vmem:[%s1873_s1 + $0x28] ss:$16 sps:$4 sm:$0xff]  }
   0x2   :  { %v1244_v1 = vld [vmem:[%s1873_s1 + $0x2e4] ss:$16 sps:$4 sm:$0xff]   ;;  %818 = vmatprep.subr.bf16.mxu0 %v1242_v0  ;;  %v1247_v3 = vld [vmem:[%s1873_s1 + $0x2e0] ss:$16 sps:$4 sm:$0xff]   ;;  %v1582_v46 = vshrl.u32 %v161_v40, 7 }
   0x3   :  { %859 = vmatprep.subr.bf16.mxu1 %v1244_v1  ;;  %v1248_v4 = vld [vmem:[%s1873_s1 + $0xc4] ss:$16 sps:$4 sm:$0xff]   ;;  %819 = vmatpush1.bf16.msra.mxu0 %v1246_v2  ;;  %v1252_v6 = vld [vmem:[%s1873_s1 + $0xc0] ss:$16 sps:$4 sm:$0xff]   ;;  %v160_v45 = vunpack.c.0.s8 %v159_v39  ;;  %v1377_v39 = vld [vmem:[%s1873_s1 + $0x228] ss:$16 sps:$4 sm:$0xff]  }
   0x4   :  { %860 = vmatpush1.bf16.msra.mxu1 %v1247_v3  ;;  %v1250_v5 = vld [vmem:[%s1873_s1 + $0x2c4] ss:$16 sps:$4 sm:$0xff]   ;;  %820 = vmatprep.subr.bf16.mxu0 %v1248_v4  ;;  %v1253_v7 = vld [vmem:[%s1873_s1 + $0x2c0] ss:$16 sps:$4 sm:$0xff]   ;;  %v1382_v40 = vld [vmem:[%s1873_s1 + $0xc] ss:$16 sps:$4 sm:$0xff]  }
   0x5   :  { %861 = vmatprep.subr.bf16.mxu1 %v1250_v5  ;;  %v1254_v8 = vld [vmem:[%s1873_s1 + $0xa4] ss:$16 sps:$4 sm:$0xff]   ;;  %v1258_v10 = vld [vmem:[%s1873_s1 + $0xa0] ss:$16 sps:$4 sm:$0xff]   ;;  %v1597_v51 = vsub.s32 %v160_v45, %v1582_v46  ;;  %v1391_v45 = vld [vmem:[%s1873_s1 + $0x3ec] ss:$16 sps:$4 sm:$0xff]  }
   0x6   :  { %v1256_v9 = vld [vmem:[%s1873_s1 + $0x2a4] ss:$16 sps:$4 sm:$0xff]   ;;  %v1259_v11 = vld [vmem:[%s1873_s1 + $0x2a0] ss:$16 sps:$4 sm:$0xff]  }
   0x7   :  { %821 = vmatpush1.bf16.msra.mxu0 %v1252_v6  ;;  %v1260_v12 = vld [vmem:[%s1873_s1 + $0x84] ss:$16 sps:$4 sm:$0xff]   ;;  %v1264_v14 = vld [vmem:[%s1873_s1 + $0x80] ss:$16 sps:$4 sm:$0xff]  }
   0x8   :  { %862 = vmatpush1.bf16.msra.mxu1 %v1253_v7  ;;  %822 = vmatprep.subr.bf16.mxu0 %v1254_v8  ;;  %v1262_v13 = vld [vmem:[%s1873_s1 + $0x284] ss:$16 sps:$4 sm:$0xff]   ;;  %v1265_v15 = vld [vmem:[%s1873_s1 + $0x280] ss:$16 sps:$4 sm:$0xff]  }
   0x9   :  { %863 = vmatprep.subr.bf16.mxu1 %v1256_v9  ;;  %v1266_v16 = vld [vmem:[%s1873_s1 + $0x64] ss:$16 sps:$4 sm:$0xff]   ;;  %v1270_v18 = vld [vmem:[%s1873_s1 + $0x60] ss:$16 sps:$4 sm:$0xff]  }
   0xa   :  { %v1268_v17 = vld [vmem:[%s1873_s1 + $0x264] ss:$16 sps:$4 sm:$0xff]   ;;  %v1271_v19 = vld [vmem:[%s1873_s1 + $0x260] ss:$16 sps:$4 sm:$0xff]  }
   0xb   :  { %823 = vmatpush1.bf16.msra.mxu0 %v1258_v10  ;;  %v1272_v20 = vld [vmem:[%s1873_s1 + $0x44] ss:$16 sps:$4 sm:$0xff]   ;;  %v1276_v22 = vld [vmem:[%s1873_s1 + $0x40] ss:$16 sps:$4 sm:$0xff]  }
   0xc   :  { %864 = vmatpush1.bf16.msra.mxu1 %v1259_v11  ;;  %824 = vmatprep.subr.bf16.mxu0 %v1260_v12  ;;  %v1274_v21 = vld [vmem:[%s1873_s1 + $0x244] ss:$16 sps:$4 sm:$0xff]   ;;  %v1277_v23 = vld [vmem:[%s1873_s1 + $0x240] ss:$16 sps:$4 sm:$0xff]   ;;  %v1340_v11 = vld [vmem:[%s1873_s1 + $0xec] ss:$16 sps:$4 sm:$0xff]  }
   0xd   :  { %865 = vmatprep.subr.bf16.mxu1 %v1262_v13  ;;  %v1278_v24 = vld [vmem:[%s1873_s1 + $0x24] ss:$16 sps:$4 sm:$0xff]   ;;  %v1282_v26 = vld [vmem:[%s1873_s1 + $0x20] ss:$16 sps:$4 sm:$0xff]   ;;  %v1343_v12 = vld [vmem:[%s1873_s1 + $0x2ec] ss:$16 sps:$4 sm:$0xff]  }
   0xe   :  { %v1280_v25 = vld [vmem:[%s1873_s1 + $0x224] ss:$16 sps:$4 sm:$0xff]   ;;  %v1283_v27 = vld [vmem:[%s1873_s1 + $0x220] ss:$16 sps:$4 sm:$0xff]  }
   0xf   :  { %825 = vmatpush1.bf16.msra.mxu0 %v1264_v14  ;;  %v1284_v28 = vld [vmem:[%s1873_s1 + $0x4] ss:$16 sps:$4 sm:$0xff]   ;;  %v1288_v30 = vld [vmem:[%s1873_s1] ss:$16 sps:$4 sm:$0xff]   ;;  %v1338_v14 = vld [vmem:[%s1873_s1 + $0xe8] ss:$16 sps:$4 sm:$0xff]  }
  0x10   :  { %866 = vmatpush1.bf16.msra.mxu1 %v1265_v15  ;;  %826 = vmatprep.subr.bf16.mxu0 %v1266_v16  ;;  %v1286_v29 = vld [vmem:[%s1873_s1 + $0x204] ss:$16 sps:$4 sm:$0xff]   ;;  %v1289_v31 = vld [vmem:[%s1873_s1 + $0x200] ss:$16 sps:$4 sm:$0xff]   ;;  %v1341_v15 = vld [vmem:[%s1873_s1 + $0x2e8] ss:$16 sps:$4 sm:$0xff]  }
  0x11   :  { %867 = vmatprep.subr.bf16.mxu1 %v1268_v17  ;;  %v1290_v32 = vld [vmem:[%s1873_s1 + $0x1e4] ss:$16 sps:$4 sm:$0xff]   ;;  %v1294_v34 = vld [vmem:[%s1873_s1 + $0x1e0] ss:$16 sps:$4 sm:$0xff]   ;;  %v1346_v16 = vld [vmem:[%s1873_s1 + $0xcc] ss:$16 sps:$4 sm:$0xff]  }
  0x12   :  { %v1292_v33 = vld [vmem:[%s1873_s1 + $0x3e4] ss:$16 sps:$4 sm:$0xff]   ;;  %v1295_v35 = vld [vmem:[%s1873_s1 + $0x3e0] ss:$16 sps:$4 sm:$0xff]   ;;  %v1349_v17 = vld [vmem:[%s1873_s1 + $0x2cc] ss:$16 sps:$4 sm:$0xff]  }
  0x13   :  { %827 = vmatpush1.bf16.msra.mxu0 %v1270_v18  ;;  %v1296_v36 = vld [vmem:[%s1873_s1 + $0x1c4] ss:$16 sps:$4 sm:$0xff]   ;;  %v1300_v41 = vld [vmem:[%s1873_s1 + $0x1c0] ss:$16 sps:$4 sm:$0xff]   ;;  %v1344_v18 = vld [vmem:[%s1873_s1 + $0xc8] ss:$16 sps:$4 sm:$0xff]  }
  0x14   :  { %868 = vmatpush1.bf16.msra.mxu1 %v1271_v19  ;;  %828 = vmatprep.subr.bf16.mxu0 %v1272_v20  ;;  %v1298_v37 = vld [vmem:[%s1873_s1 + $0x3c4] ss:$16 sps:$4 sm:$0xff]   ;;  %v1301_v42 = vld [vmem:[%s1873_s1 + $0x3c0] ss:$16 sps:$4 sm:$0xff]   ;;  %v1347_v19 = vld [vmem:[%s1873_s1 + $0x2c8] ss:$16 sps:$4 sm:$0xff]  }
  0x15   :  { %869 = vmatprep.subr.bf16.mxu1 %v1274_v21  ;;  %v1302_v43 = vld [vmem:[%s1873_s1 + $0x1a4] ss:$16 sps:$4 sm:$0xff]   ;;  %v1306_v47 = vld [vmem:[%s1873_s1 + $0x1a0] ss:$16 sps:$4 sm:$0xff]   ;;  %v1352_v20 = vld [vmem:[%s1873_s1 + $0xac] ss:$16 sps:$4 sm:$0xff]  }
  0x16   :  { %v1304_v44 = vld [vmem:[%s1873_s1 + $0x3a4] ss:$16 sps:$4 sm:$0xff]   ;;  %v1307_v48 = vld [vmem:[%s1873_s1 + $0x3a0] ss:$16 sps:$4 sm:$0xff]   ;;  %v1355_v21 = vld [vmem:[%s1873_s1 + $0x2ac] ss:$16 sps:$4 sm:$0xff]  }
  0x17   :  { %829 = vmatpush1.bf16.msra.mxu0 %v1276_v22  ;;  %v1308_v49 = vld [vmem:[%s1873_s1 + $0x184] ss:$16 sps:$4 sm:$0xff]   ;;  %v1108_v52 = vld.sshfl [vmem:[%s1874_s0] sm:$0x33 pattern:$0x75316420] }
  0x18   :  { %870 = vmatpush1.bf16.msra.mxu1 %v1277_v23  ;;  %830 = vmatprep.subr.bf16.mxu0 %v1278_v24  ;;  %v1310_v50 = vld [vmem:[%s1873_s1 + $0x384] ss:$16 sps:$4 sm:$0xff]   ;;  %v1312_v53 = vld [vmem:[%s1873_s1 + $0x180] ss:$16 sps:$4 sm:$0xff]   ;;  %v157_v55 = vcombine.high %v1108_v52, %v1108_v52  ;;  %v1655_v9 = vrot.slane %v1108_v52, %v1597_v51  ;;  %v1350_v22 = vld [vmem:[%s1873_s1 + $0xa8] ss:$16 sps:$4 sm:$0xff]  }
  0x19   :  { %871 = vmatprep.subr.bf16.mxu1 %v1280_v25  ;;  %v1313_v54 = vld [vmem:[%s1873_s1 + $0x380] ss:$16 sps:$4 sm:$0xff]   ;;  %v1314_v56 = vld [vmem:[%s1873_s1 + $0x164] ss:$16 sps:$4 sm:$0xff]   ;;  %v1353_v23 = vld [vmem:[%s1873_s1 + $0x2a8] ss:$16 sps:$4 sm:$0xff]  }
  0x1a   :  { %v1316_v57 = vld [vmem:[%s1873_s1 + $0x364] ss:$16 sps:$4 sm:$0xff]   ;;  %v171_v58 = vrot.slane %v157_v55, %v1597_v51  ;;  %v1318_v59 = vld [vmem:[%s1873_s1 + $0x160] ss:$16 sps:$4 sm:$0xff]   ;;  %v1668_v13 = vcombine.high %v1655_v9, %v1655_v9  ;;  %v1358_v24 = vld [vmem:[%s1873_s1 + $0x8c] ss:$16 sps:$4 sm:$0xff]  }
  0x1b   :  { %831 = vmatpush1.bf16.msra.mxu0 %v1282_v26  ;;  %v1319_v60 = vld [vmem:[%s1873_s1 + $0x360] ss:$16 sps:$4 sm:$0xff]   ;;  %v1320_v62 = vld [vmem:[%s1873_s1 + $0x144] ss:$16 sps:$4 sm:$0xff]   ;;  %v1361_v25 = vld [vmem:[%s1873_s1 + $0x28c] ss:$16 sps:$4 sm:$0xff]  }
  0x1c   :  { %872 = vmatpush1.bf16.msra.mxu1 %v1283_v27  ;;  %832 = vmatprep.subr.bf16.mxu0 %v1284_v28  ;;  %v173_v61 = vcombine.high %v171_v58, %v171_v58  ;;  %v1322_v63 = vld [vmem:[%s1873_s1 + $0x344] ss:$16 sps:$4 sm:$0xff]   ;;  %v1324_v0 = vld [vmem:[%s1873_s1 + $0x140] ss:$16 sps:$4 sm:$0xff]   ;;  %v1356_v26 = vld [vmem:[%s1873_s1 + $0x88] ss:$16 sps:$4 sm:$0xff]  }
  0x1d   :  { %873 = vmatprep.subr.bf16.mxu1 %v1286_v29  ;;  %850 = vmatprep.mubr.bf16.mxu0 %v171_v58  ;;  %v1325_v1 = vld [vmem:[%s1873_s1 + $0x340] ss:$16 sps:$4 sm:$0xff]   ;;  %v1326_v2 = vld [vmem:[%s1873_s1 + $0x124] ss:$16 sps:$4 sm:$0xff]   ;;  %v1359_v27 = vld [vmem:[%s1873_s1 + $0x288] ss:$16 sps:$4 sm:$0xff]  }
  0x1e   :  { %891 = vmatprep.mubr.bf16.mxu1 %v173_v61  ;;  %v1328_v3 = vld [vmem:[%s1873_s1 + $0x324] ss:$16 sps:$4 sm:$0xff]   ;;  %v1330_v4 = vld [vmem:[%s1873_s1 + $0x120] ss:$16 sps:$4 sm:$0xff]   ;;  %v1364_v28 = vld [vmem:[%s1873_s1 + $0x6c] ss:$16 sps:$4 sm:$0xff]  }
  0x1f   :  { %833 = vmatpush1.bf16.msra.mxu0 %v1288_v30  ;;  %v1331_v5 = vld [vmem:[%s1873_s1 + $0x320] ss:$16 sps:$4 sm:$0xff]   ;;  %v1332_v6 = vld [vmem:[%s1873_s1 + $0x104] ss:$16 sps:$4 sm:$0xff]   ;;  %v1367_v29 = vld [vmem:[%s1873_s1 + $0x26c] ss:$16 sps:$4 sm:$0xff]  }
  0x20   :  { %874 = vmatpush1.bf16.msra.mxu1 %v1289_v31  ;;  %834 = vmatprep.subr.bf16.mxu0 %v1290_v32  ;;  %v1334_v7 = vld [vmem:[%s1873_s1 + $0x304] ss:$16 sps:$4 sm:$0xff]   ;;  %v1336_v8 = vld [vmem:[%s1873_s1 + $0x100] ss:$16 sps:$4 sm:$0xff]   ;;  %v1362_v30 = vld [vmem:[%s1873_s1 + $0x68] ss:$16 sps:$4 sm:$0xff]  }
  0x21   :  { %875 = vmatprep.subr.bf16.mxu1 %v1292_v33  ;;  %v1337_v10 = vld [vmem:[%s1873_s1 + $0x300] ss:$16 sps:$4 sm:$0xff]   ;;  %v1365_v31 = vld [vmem:[%s1873_s1 + $0x268] ss:$16 sps:$4 sm:$0xff]   ;;  %v1370_v32 = vld [vmem:[%s1873_s1 + $0x4c] ss:$16 sps:$4 sm:$0xff]  }
  0x22   :  { %v1373_v33 = vld [vmem:[%s1873_s1 + $0x24c] ss:$16 sps:$4 sm:$0xff]   ;;  %v1392_v52 = vld [vmem:[%s1873_s1 + $0x1c8] ss:$16 sps:$4 sm:$0xff]  }
  0x23   :  { %835 = vmatpush2.bf16.msra.mxu0 %v1294_v34  ;;  %v1368_v34 = vld [vmem:[%s1873_s1 + $0x48] ss:$16 sps:$4 sm:$0xff]   ;;  %v1403_v55 = vld [vmem:[%s1873_s1 + $0x3ac] ss:$16 sps:$4 sm:$0xff]  }
  0x24   :  { %876 = vmatpush2.bf16.msra.mxu1 %v1295_v35  ;;  %836 = vmatprep.subr.bf16.mxu0 %v1296_v36  ;;  %v1371_v35 = vld [vmem:[%s1873_s1 + $0x248] ss:$16 sps:$4 sm:$0xff]   ;;  %v1376_v36 = vld [vmem:[%s1873_s1 + $0x2c] ss:$16 sps:$4 sm:$0xff]  }
  0x25   :  { %877 = vmatprep.subr.bf16.mxu1 %v1298_v37  ;;  %v1379_v37 = vld [vmem:[%s1873_s1 + $0x22c] ss:$16 sps:$4 sm:$0xff]  }
  0x27   :  { %837 = vmatpush2.bf16.msra.mxu0 %v1300_v41  ;;  %v1385_v41 = vld [vmem:[%s1873_s1 + $0x20c] ss:$16 sps:$4 sm:$0xff]  }
  0x28   :  { %878 = vmatpush2.bf16.msra.mxu1 %v1301_v42  ;;  %838 = vmatprep.subr.bf16.mxu0 %v1302_v43  ;;  %v1380_v42 = vld [vmem:[%s1873_s1 + $0x8] ss:$16 sps:$4 sm:$0xff]  }
  0x29   :  { %879 = vmatprep.subr.bf16.mxu1 %v1304_v44  ;;  %v1383_v43 = vld [vmem:[%s1873_s1 + $0x208] ss:$16 sps:$4 sm:$0xff]   ;;  %v1388_v44 = vld [vmem:[%s1873_s1 + $0x1ec] ss:$16 sps:$4 sm:$0xff]  }
  0x2b   :  { %839 = vmatpush2.bf16.msra.mxu0 %v1306_v47  ;;  %v1386_v47 = vld [vmem:[%s1873_s1 + $0x1e8] ss:$16 sps:$4 sm:$0xff]  }
  0x2c   :  { %880 = vmatpush2.bf16.msra.mxu1 %v1307_v48  ;;  %840 = vmatprep.subr.bf16.mxu0 %v1308_v49  ;;  %v1389_v48 = vld [vmem:[%s1873_s1 + $0x3e8] ss:$16 sps:$4 sm:$0xff]   ;;  %v1394_v49 = vld [vmem:[%s1873_s1 + $0x1cc] ss:$16 sps:$4 sm:$0xff]  }
  0x2d   :  { %881 = vmatprep.subr.bf16.mxu1 %v1310_v50  ;;  %v1397_v50 = vld [vmem:[%s1873_s1 + $0x3cc] ss:$16 sps:$4 sm:$0xff]  }
  0x2f   :  { %841 = vmatpush2.bf16.msra.mxu0 %v1312_v53  ;;  %v1395_v53 = vld [vmem:[%s1873_s1 + $0x3c8] ss:$16 sps:$4 sm:$0xff]  }
  0x30   :  { %882 = vmatpush2.bf16.msra.mxu1 %v1313_v54  ;;  %842 = vmatprep.subr.bf16.mxu0 %v1314_v56  ;;  %v1400_v54 = vld [vmem:[%s1873_s1 + $0x1ac] ss:$16 sps:$4 sm:$0xff]   ;;  %v1398_v56 = vld [vmem:[%s1873_s1 + $0x1a8] ss:$16 sps:$4 sm:$0xff]  }
  0x31   :  { %883 = vmatprep.subr.bf16.mxu1 %v1316_v57  ;;  %v1401_v57 = vld [vmem:[%s1873_s1 + $0x3a8] ss:$16 sps:$4 sm:$0xff]  }
  0x33   :  { %843 = vmatpush2.bf16.msra.mxu0 %v1318_v59  ;;  %v1409_v59 = vld [vmem:[%s1873_s1 + $0x38c] ss:$16 sps:$4 sm:$0xff]  }
  0x34   :  { %884 = vmatpush2.bf16.msra.mxu1 %v1319_v60  ;;  %844 = vmatprep.subr.bf16.mxu0 %v1320_v62  ;;  %v1404_v60 = vld [vmem:[%s1873_s1 + $0x188] ss:$16 sps:$4 sm:$0xff]   ;;  %v1412_v62 = vld [vmem:[%s1873_s1 + $0x16c] ss:$16 sps:$4 sm:$0xff]  }
  0x35   :  { %885 = vmatprep.subr.bf16.mxu1 %v1322_v63  ;;  %v1415_v63 = vld [vmem:[%s1873_s1 + $0x36c] ss:$16 sps:$4 sm:$0xff]  }
  0x37   :  { %845 = vmatpush2.bf16.msra.mxu0 %v1324_v0  ;;  %v1410_v0 = vld [vmem:[%s1873_s1 + $0x168] ss:$16 sps:$4 sm:$0xff]  }
  0x38   :  { %886 = vmatpush2.bf16.msra.mxu1 %v1325_v1  ;;  %846 = vmatprep.subr.bf16.mxu0 %v1326_v2  ;;  %v1413_v1 = vld [vmem:[%s1873_s1 + $0x368] ss:$16 sps:$4 sm:$0xff]   ;;  %v1418_v2 = vld [vmem:[%s1873_s1 + $0x14c] ss:$16 sps:$4 sm:$0xff]  }
  0x39   :  { %887 = vmatprep.subr.bf16.mxu1 %v1328_v3  ;;  %v1421_v3 = vld [vmem:[%s1873_s1 + $0x34c] ss:$16 sps:$4 sm:$0xff]  }
  0x3b   :  { %847 = vmatpush2.bf16.msra.mxu0 %v1330_v4  ;;  %v1416_v4 = vld [vmem:[%s1873_s1 + $0x148] ss:$16 sps:$4 sm:$0xff]  }
  0x3c   :  { %888 = vmatpush2.bf16.msra.mxu1 %v1331_v5  ;;  %848 = vmatprep.subr.bf16.mxu0 %v1332_v6  ;;  %v1419_v5 = vld [vmem:[%s1873_s1 + $0x348] ss:$16 sps:$4 sm:$0xff]   ;;  %v1424_v6 = vld [vmem:[%s1873_s1 + $0x12c] ss:$16 sps:$4 sm:$0xff]  }
  0x3d   :  { %889 = vmatprep.subr.bf16.mxu1 %v1334_v7  ;;  %v1427_v7 = vld [vmem:[%s1873_s1 + $0x32c] ss:$16 sps:$4 sm:$0xff]  }
  0x3f   :  { %849 = vmatpush2.bf16.msra.mxu0 %v1336_v8  ;;  %v1422_v8 = vld [vmem:[%s1873_s1 + $0x128] ss:$16 sps:$4 sm:$0xff]  }
  0x40   :  { %890 = vmatpush2.bf16.msra.mxu1 %v1337_v10  ;;  %900 = vmatprep.subr.bf16.mxu0 %v1340_v11  ;;  %v1425_v10 = vld [vmem:[%s1873_s1 + $0x328] ss:$16 sps:$4 sm:$0xff]   ;;  %v1430_v11 = vld [vmem:[%s1873_s1 + $0x10c] ss:$16 sps:$4 sm:$0xff]  }
  0x41   :  { %941 = vmatprep.subr.bf16.mxu1 %v1343_v12  ;;  %v1433_v12 = vld [vmem:[%s1873_s1 + $0x30c] ss:$16 sps:$4 sm:$0xff]  }
  0x42   :  { %851 = vmatmul.mubr.bf16.vlgmr.msra.gmra.mxu0 %v1655_v9 }
  0x43   :  { %892 = vmatmul.mubr.bf16.vlgmr.msra.gmra.mxu1 %v1668_v13  ;;  %901 = vmatpush1.bf16.msra.mxu0 %v1338_v14  ;;  %v1428_v14 = vld [vmem:[%s1873_s1 + $0x108] ss:$16 sps:$4 sm:$0xff]  }
  0x44   :  { %942 = vmatpush1.bf16.msra.mxu1 %v1341_v15  ;;  %902 = vmatprep.subr.bf16.mxu0 %v1346_v16  ;;  %v1431_v15 = vld [vmem:[%s1873_s1 + $0x308] ss:$16 sps:$4 sm:$0xff]  }
  0x45   :  { %943 = vmatprep.subr.bf16.mxu1 %v1349_v17  ;;  %932 = vmatprep.mubr.bf16.mxu0 %v171_v58  ;;  %v1406_v58 = vld [vmem:[%s1873_s1 + $0x18c] ss:$16 sps:$4 sm:$0xff]  }
  0x46   :  { %973 = vmatprep.mubr.bf16.mxu1 %v173_v61  ;;  %v1407_v61 = vld [vmem:[%s1873_s1 + $0x388] ss:$16 sps:$4 sm:$0xff]  }
  0x47   :  { %903 = vmatpush1.bf16.msra.mxu0 %v1344_v18 }
  0x48   :  { %944 = vmatpush1.bf16.msra.mxu1 %v1347_v19  ;;  %904 = vmatprep.subr.bf16.mxu0 %v1352_v20 }
  0x49   :  { %945 = vmatprep.subr.bf16.mxu1 %v1355_v21 }
  0x4b   :  { %905 = vmatpush1.bf16.msra.mxu0 %v1350_v22 }
  0x4c   :  { %946 = vmatpush1.bf16.msra.mxu1 %v1353_v23  ;;  %906 = vmatprep.subr.bf16.mxu0 %v1358_v24 }
  0x4d   :  { %947 = vmatprep.subr.bf16.mxu1 %v1361_v25 }
  0x4f   :  { %907 = vmatpush1.bf16.msra.mxu0 %v1356_v26 }
  0x50   :  { %948 = vmatpush1.bf16.msra.mxu1 %v1359_v27  ;;  %908 = vmatprep.subr.bf16.mxu0 %v1364_v28  ;;  %v1014_v27 = vsub.s32 0, %v1582_v46  ;;  %v1018_v28 = vsub.s32 1, %v1582_v46 }
  0x51   :  { %949 = vmatprep.subr.bf16.mxu1 %v1367_v29  ;;  %v1022_v29 = vsub.s32 2, %v1582_v46 }
  0x53   :  { %909 = vmatpush1.bf16.msra.mxu0 %v1362_v30  ;;  %v1435_v30 = vmov 1983009808  }
  0x54   :  { %950 = vmatpush1.bf16.msra.mxu1 %v1365_v31  ;;  %910 = vmatprep.subr.bf16.mxu0 %v1370_v32  ;;  %v989_v31 = vunpack.c.l.s4 %v1435_v30 }
  0x55   :  { %951 = vmatprep.subr.bf16.mxu1 %v1373_v33 }
  0x57   :  { %911 = vmatpush1.bf16.msra.mxu0 %v1368_v34 }
  0x58   :  { %952 = vmatpush1.bf16.msra.mxu1 %v1371_v35  ;;  %912 = vmatprep.subr.bf16.mxu0 %v1376_v36  ;;  %v990_v36 = vunpack.c.0.s8 %v989_v31 }
  0x59   :  { %953 = vmatprep.subr.bf16.mxu1 %v1379_v37 }
  0x5b   :  { %913 = vmatpush1.bf16.msra.mxu0 %v1374_v38 }
  0x5c   :  { %954 = vmatpush1.bf16.msra.mxu1 %v1377_v39  ;;  %914 = vmatprep.subr.bf16.mxu0 %v1382_v40 }
  0x5d   :  { %955 = vmatprep.subr.bf16.mxu1 %v1385_v41  ;;  %v993_v41 = vsub.s32 %v990_v36, %v1582_v46 }
  0x5f   :  { %915 = vmatpush1.bf16.msra.mxu0 %v1380_v42 }
  0x60   :  { %956 = vmatpush1.bf16.msra.mxu1 %v1383_v43  ;;  %916 = vmatprep.subr.bf16.mxu0 %v1388_v44 }
  0x61   :  { %957 = vmatprep.subr.bf16.mxu1 %v1391_v45 }
  0x63   :  { %917 = vmatpush2.bf16.msra.mxu0 %v1386_v47 }
  0x64   :  { %958 = vmatpush2.bf16.msra.mxu1 %v1389_v48  ;;  %918 = vmatprep.subr.bf16.mxu0 %v1394_v49 }
  0x65   :  { %959 = vmatprep.subr.bf16.mxu1 %v1397_v50 }
  0x67   :  { %919 = vmatpush2.bf16.msra.mxu0 %v1392_v52 }
  0x68   :  { %960 = vmatpush2.bf16.msra.mxu1 %v1395_v53  ;;  %920 = vmatprep.subr.bf16.mxu0 %v1400_v54 }
  0x69   :  { %961 = vmatprep.subr.bf16.mxu1 %v1403_v55 }
  0x6b   :  { %921 = vmatpush2.bf16.msra.mxu0 %v1398_v56 }
  0x6c   :  { %962 = vmatpush2.bf16.msra.mxu1 %v1401_v57  ;;  %922 = vmatprep.subr.bf16.mxu0 %v1406_v58 }
  0x6d   :  { %963 = vmatprep.subr.bf16.mxu1 %v1409_v59 }
  0x6f   :  { %923 = vmatpush2.bf16.msra.mxu0 %v1404_v60 }
  0x70   :  { %964 = vmatpush2.bf16.msra.mxu1 %v1407_v61  ;;  %924 = vmatprep.subr.bf16.mxu0 %v1412_v62 }
  0x71   :  { %965 = vmatprep.subr.bf16.mxu1 %v1415_v63 }
  0x73   :  { %925 = vmatpush2.bf16.msra.mxu0 %v1410_v0 }
  0x74   :  { %966 = vmatpush2.bf16.msra.mxu1 %v1413_v1  ;;  %926 = vmatprep.subr.bf16.mxu0 %v1418_v2 }
  0x75   :  { %967 = vmatprep.subr.bf16.mxu1 %v1421_v3 }
  0x77   :  { %927 = vmatpush2.bf16.msra.mxu0 %v1416_v4 }
  0x78   :  { %968 = vmatpush2.bf16.msra.mxu1 %v1419_v5  ;;  %928 = vmatprep.subr.bf16.mxu0 %v1424_v6 }
  0x79   :  { %969 = vmatprep.subr.bf16.mxu1 %v1427_v7 }
  0x7b   :  { %929 = vmatpush2.bf16.msra.mxu0 %v1422_v8 }
  0x7c   :  { %970 = vmatpush2.bf16.msra.mxu1 %v1425_v10  ;;  %930 = vmatprep.subr.bf16.mxu0 %v1430_v11 }
  0x7d   :  { %971 = vmatprep.subr.bf16.mxu1 %v1433_v12 }
  0x7f   :  { %931 = vmatpush2.bf16.msra.mxu0 %v1428_v14 }
  0x80   :  { %972 = vmatpush2.bf16.msra.mxu1 %v1431_v15 }
  0x82   :  { %933 = vmatmul.mubr.bf16.vlgmr.msra.gmra.mxu0 %v1655_v9  ;;  %v1026_v9 = vsub.s32 3, %v1582_v46 }
  0x83   :  { %974 = vmatmul.mubr.bf16.vlgmr.msra.gmra.mxu1 %v1668_v13  ;;  %v1010_v13 = vld [vmem:[%s1875_s2] sm:$0xf] }
  0x84   :  { %v1015_v32 = vrot.slane %v1010_v13, %v1014_v27  ;;  %v1019_v33 = vrot.slane %v1010_v13, %v1018_v28  ;;  %v1023_v34 = vrot.slane %v1010_v13, %v1022_v29  ;;  %v1027_v35 = vrot.slane %v1010_v13, %v1026_v9 }
  0x86   :  { %v1028_v37 = vcombine.low %v1015_v32, %v1019_v33  ;;  %v1029_v38 = vcombine.low %v1023_v34, %v1027_v35 }
  0x88   :  { %v1036_v47 = vrot.slane %v1028_v37, %v993_v41  ;;  %v1043_v48 = vrot.slane %v1029_v38, %v993_v41 }
  0x8a   :  { %v1044_v57 = vcombine.low %v1036_v47, %v1043_v48 }
 0x102   :  { %v852_v16 = vpop.f32.mrf.mxu0 }
 0x103   :  { %v893_v17 = vpop.f32.mrf.mxu1 }
 0x104   :  { %v894_v18 = vadd.f32 %v893_v17, %v852_v16  ;;  %v854_v19 = vpop.f32.mrf.mxu0 }
 0x105   :  { %v895_v20 = vpop.f32.mrf.mxu1 }
 0x106   :  { %v896_v21 = vadd.f32 %v895_v20, %v854_v19  ;;  %v856_v22 = vpop.f32.mrf.mxu0 }
 0x107   :  { %v897_v23 = vpop.f32.mrf.mxu1 }
 0x108   :  { %v986_v24 = vcombine.low %v894_v18, %v896_v21  ;;  %v857_v25 = vpop.f32.mrf.mxu0 }
 0x109   :  { %v898_v26 = vpop.f32.mrf.mxu1 }
 0x10a   :  { %v994_v55 = vrot.slane %v986_v24, %v993_v41 }
 0x142   :  { %v934_v39 = vpop.f32.mrf.mxu0 }
 0x143   :  { %v975_v40 = vpop.f32.mrf.mxu1 }
 0x144   :  { %v936_v42 = vpop.f32.mrf.mxu0  ;;  %v976_v44 = vadd.f32 %v975_v40, %v934_v39 }
 0x145   :  { %v977_v43 = vpop.f32.mrf.mxu1 }
 0x146   :  { %v978_v45 = vadd.f32 %v977_v43, %v936_v42  ;;  %v938_v49 = vpop.f32.mrf.mxu0 }
 0x147   :  { %v979_v50 = vpop.f32.mrf.mxu1 }
 0x148   :  { %v987_v52 = vcombine.low %v976_v44, %v978_v45  ;;  %v939_v53 = vpop.f32.mrf.mxu0 }
 0x149   :  { %v980_v54 = vpop.f32.mrf.mxu1 }
 0x14a   :  { %v1001_v56 = vrot.slane %v987_v52, %v993_v41 }
 0x14c   :  { %v1002_v58 = vcombine.low %v994_v55, %v1001_v56 }
 0x14e   :  { %v1046_v59 = vadd.f32 %v1044_v57, %v1002_v58 }
 0x150   :  { %v1047_v60 = vmax.f32 %v1046_v59, 0.0 }
 0x152   :  { %v1049_v61 = vcombine.high %v1047_v60, %v1047_v60  ;;  %v1056_v62 = vrot.slane %v1047_v60, %v993_v41 }
 0x154   :  { %v1063_v46 = vrot.slane %v1049_v61, %v993_v41  ;;  %v1064_v63 = vcombine.high %v1056_v62, %v1056_v62 }
 0x156   :  { %v1065_v0 = vcombine.high %v1063_v46, %v1063_v46  ;;  %v1237_v1 = vpack.c.bf16 %v1064_v63, %v1056_v62 }
 0x158   :  { %v1238_v2 = vpack.c.bf16 %v1065_v0, %v1063_v46  ;;  %v1086_v3 = vrot.slane %v1237_v1, %v1597_v51 }
 0x15a   :  { %v1093_v4 = vrot.slane %v1238_v2, %v1597_v51 }
 0x15c   :  { %v1094_v5 = vcombine.low %v1086_v3, %v1093_v4 }
 0x15e   :  { %1239 = vst.sshfl [vmem:[%s1876_s3] sm:$0x55 pattern:$0x73625140] %v1094_v5 }

// kernel: cancer_classifier_forward.47
= control target key start
LH: loop header
LB: loop body
LE: loop exit
PB: predicated region body
PF: predicated region fallthrough
CT: control target
= control target key end

     0   :  { %v522_v22 = vmov 1966171168   ;;  %v101_v24 = vlaneseq  ;;  %vm21_vm0 = vcmask 1024   ;;  %v523_v44 = vmov 0.0   ;;  %s652_s1 = inlined_call_operand.vmem [shape: bf16[512,1], index: 1, kind: input, shape index: {}]   ;;  %s653_s0 = inlined_call_operand.vmem [shape: bf16[2,512], index: 0, kind: input, shape index: {}]   ;;  %s654_s2 = inlined_call_operand.<no memory space> [shape: f32[1,1], index: 2, kind: input, shape index: {}]   ;;  %s655_s3 = inlined_call_operand.vmem [shape: f32[2,1], index: 3, kind: output, shape index: {}]  }
   0x1   :  { %v490_v0 = vld [vmem:[%s652_s1 + $0x78] sm:$0xff]   ;;  %v494_v4 = vld [vmem:[%s652_s1 + $0x70] sm:$0xff]   ;;  %v498_v8 = vld [vmem:[%s652_s1 + $0x68] sm:$0xff]   ;;  %v99_v23 = vunpack.c.l.s4 %v522_v22  ;;  %22 = vst.msk [vmem:[#allocation2] sm:$0x3] %vm21_vm0, %v523_v44  ;;  %v8_v45 = vstv %s654_s2 }
   0x2   :  { %v491_v1 = vld [vmem:[%s652_s1 + $0xf8] sm:$0xff]   ;;  %444 = vmatprep.subr.bf16.mxu0 %v490_v0  ;;  %v495_v5 = vld [vmem:[%s652_s1 + $0xf0] sm:$0xff]   ;;  %v499_v9 = vld [vmem:[%s652_s1 + $0xe8] sm:$0xff]   ;;  %v102_v30 = vshrl.u32 %v101_v24, 7  ;;  %9 = vst [vmem:[#allocation3] sm:$0x1] %v8_v45 }
   0x3   :  { %v492_v2 = vld [vmem:[%s652_s1 + $0x38] sm:$0xff]   ;;  %466 = vmatprep.subr.bf16.mxu1 %v491_v1  ;;  %v496_v6 = vld [vmem:[%s652_s1 + $0x30] sm:$0xff]   ;;  %v500_v10 = vld [vmem:[%s652_s1 + $0x28] sm:$0xff]   ;;  %v100_v29 = vunpack.c.0.s8 %v99_v23 }
   0x4   :  { %v493_v3 = vld [vmem:[%s652_s1 + $0xb8] sm:$0xff]   ;;  %445 = vmatpush3.bf16.msra.mxu0 %v492_v2  ;;  %v497_v7 = vld [vmem:[%s652_s1 + $0xb0] sm:$0xff]   ;;  %v501_v11 = vld [vmem:[%s652_s1 + $0xa8] sm:$0xff]  }
   0x5   :  { %467 = vmatpush3.bf16.msra.mxu1 %v493_v3  ;;  %446 = vmatprep.subr.bf16.mxu0 %v494_v4  ;;  %v502_v12 = vld [vmem:[%s652_s1 + $0x60] sm:$0xff]   ;;  %v506_v16 = vld [vmem:[%s652_s1 + $0x58] sm:$0xff]   ;;  %v510_v20 = vld [vmem:[%s652_s1 + $0x50] sm:$0xff]   ;;  %v103_v35 = vsub.s32 %v100_v29, %v102_v30 }
   0x6   :  { %468 = vmatprep.subr.bf16.mxu1 %v495_v5  ;;  %v503_v13 = vld [vmem:[%s652_s1 + $0xe0] sm:$0xff]   ;;  %v507_v17 = vld [vmem:[%s652_s1 + $0xd8] sm:$0xff]   ;;  %v511_v21 = vld [vmem:[%s652_s1 + $0xd0] sm:$0xff]  }
   0x7   :  { %v504_v14 = vld [vmem:[%s652_s1 + $0x20] sm:$0xff]   ;;  %v508_v18 = vld [vmem:[%s652_s1 + $0x18] sm:$0xff]   ;;  %v512_v25 = vld [vmem:[%s652_s1 + $0x10] sm:$0xff]  }
   0x8   :  { %447 = vmatpush3.bf16.msra.mxu0 %v496_v6  ;;  %v505_v15 = vld [vmem:[%s652_s1 + $0xa0] sm:$0xff]   ;;  %v509_v19 = vld [vmem:[%s652_s1 + $0x98] sm:$0xff]   ;;  %v513_v26 = vld [vmem:[%s652_s1 + $0x90] sm:$0xff]  }
   0x9   :  { %469 = vmatpush3.bf16.msra.mxu1 %v497_v7  ;;  %448 = vmatprep.subr.bf16.mxu0 %v498_v8  ;;  %v514_v27 = vld [vmem:[%s652_s1 + $0x48] sm:$0xff]   ;;  %v518_v33 = vld [vmem:[%s652_s1 + $0x40] sm:$0xff]  }
   0xa   :  { %470 = vmatprep.subr.bf16.mxu1 %v499_v9  ;;  %v515_v28 = vld [vmem:[%s652_s1 + $0xc8] sm:$0xff]   ;;  %v519_v34 = vld [vmem:[%s652_s1 + $0xc0] sm:$0xff]  }
   0xb   :  { %v516_v31 = vld [vmem:[%s652_s1 + $0x8] sm:$0xff]   ;;  %v520_v36 = vld [vmem:[%s652_s1] sm:$0xff]  }
   0xc   :  { %449 = vmatpush3.bf16.msra.mxu0 %v500_v10  ;;  %v517_v32 = vld [vmem:[%s652_s1 + $0x88] sm:$0xff]   ;;  %v521_v37 = vld [vmem:[%s652_s1 + $0x80] sm:$0xff]  }
   0xd   :  { %471 = vmatpush3.bf16.msra.mxu1 %v501_v11  ;;  %450 = vmatprep.subr.bf16.mxu0 %v502_v12  ;;  %v410_v38 = vld.sshfl [vmem:[%s653_s0] sm:$0x33 pattern:$0x75316420] }
   0xe   :  { %472 = vmatprep.subr.bf16.mxu1 %v503_v13  ;;  %v97_v39 = vcombine.high %v410_v38, %v410_v38  ;;  %v104_v40 = vrot.slane %v410_v38, %v103_v35  ;;  %v23_v53 = vld [vmem:[#allocation2] sm:$0x3]  ;;  %v443_v59 = vld [vmem:[#allocation3] ss:$0 sm:$0xff] }
  0x10   :  { %451 = vmatpush3.bf16.msra.mxu0 %v504_v14  ;;  %v111_v41 = vrot.slane %v97_v39, %v103_v35  ;;  %v112_v42 = vcombine.high %v104_v40, %v104_v40 }
  0x11   :  { %473 = vmatpush3.bf16.msra.mxu1 %v505_v15  ;;  %452 = vmatprep.subr.bf16.mxu0 %v506_v16 }
  0x12   :  { %474 = vmatprep.subr.bf16.mxu1 %v507_v17  ;;  %342 = vmatprep.mubr.bf16.mxu0 %v111_v41  ;;  %v113_v43 = vcombine.high %v111_v41, %v111_v41 }
  0x14   :  { %453 = vmatpush3.bf16.msra.mxu0 %v508_v18  ;;  %382 = vmatprep.mubr.bf16.mxu1 %v113_v43 }
  0x15   :  { %475 = vmatpush3.bf16.msra.mxu1 %v509_v19  ;;  %454 = vmatprep.subr.bf16.mxu0 %v510_v20 }
  0x16   :  { %476 = vmatprep.subr.bf16.mxu1 %v511_v21 }
  0x18   :  { %455 = vmatpush3.bf16.msra.mxu0 %v512_v25 }
  0x19   :  { %477 = vmatpush3.bf16.msra.mxu1 %v513_v26  ;;  %456 = vmatprep.subr.bf16.mxu0 %v514_v27 }
  0x1a   :  { %478 = vmatprep.subr.bf16.mxu1 %v515_v28 }
  0x1c   :  { %457 = vmatpush3.bf16.msra.mxu0 %v516_v31 }
  0x1d   :  { %479 = vmatpush3.bf16.msra.mxu1 %v517_v32  ;;  %458 = vmatprep.subr.bf16.mxu0 %v518_v33 }
  0x1e   :  { %480 = vmatprep.subr.bf16.mxu1 %v519_v34 }
  0x20   :  { %459 = vmatpush3.bf16.msra.mxu0 %v520_v36 }
  0x21   :  { %481 = vmatpush3.bf16.msra.mxu1 %v521_v37 }
  0x23   :  { %343 = vmatmul.mubr.bf16.vlgmr.msra.gmra.mxu0 %v104_v40 }
  0x24   :  { %383 = vmatmul.mubr.bf16.vlgmr.msra.gmra.mxu1 %v112_v42 }
  0xe3   :  { %v460_v46 = vpop.f32.mrf.mxu0 }
  0xe4   :  { %v482_v47 = vpop.f32.mrf.mxu1 }
  0xe5   :  { %v461_v48 = vpop.f32.mrf.mxu0 }
  0xe6   :  { %v462_v49 = vadd.f32 %v461_v48, %v460_v46  ;;  %v483_v50 = vpop.f32.mrf.mxu1 }
  0xe7   :  { %v463_v51 = vpop.f32.mrf.mxu0  ;;  %v484_v52 = vadd.f32 %v483_v50, %v482_v47 }
  0xe8   :  { %v485_v54 = vpop.f32.mrf.mxu1 }
  0xe9   :  { %v464_v55 = vpop.f32.mrf.mxu0  ;;  %v385_v56 = vadd.f32 %v484_v52, %v462_v49 }
  0xea   :  { %v486_v57 = vpop.f32.mrf.mxu1 }
  0xeb   :  { %v390_v58 = vadd.f32 %v385_v56, %v23_v53 }
  0xed   :  { %392 = vst.msk [vmem:[#allocation2] sm:$0x3] %vm21_vm0, %v390_v58 }
  0xf4   :  { %v396_v60 = vld [vmem:[#allocation2] sm:$0x3] }
  0xf5   :  { %v404_v61 = vadd.f32 %v443_v59, %v396_v60 }
  0xf7   :  { %405 = vst.msk [vmem:[%s655_s3] sm:$0x3] %vm21_vm0, %v404_v61 }

</bundles_post_ra>
